<compile_context>
chip_gen: v5e
topology: v5e:2x2
jax: 0.10.0
libtpu: 0.0.40
codegen_flags: <defaults>
</compile_context>

<pallas_src>
import functools

import jax
import jax.numpy as jnp
from jax.experimental import pallas as pl
from jax.experimental.pallas import tpu as pltpu

BN_EPS = 1e-5
_VMEM = pl.BlockSpec(memory_space=pltpu.MemorySpace.VMEM)


# ---------------------------------------------------------------------------
# Pallas kernels
# ---------------------------------------------------------------------------
def _conv_kernel(*refs, taps, mrows, relu, has_residual):
    """Fused conv (+folded BN shift, +optional residual, +ReLU) for one image.

    The padded input arrives as flattened spatial planes (P, L, Cin); each tap
    is a static shifted slice of length `mrows` matmul'd against its (Cin,Cout)
    weight slice on the MXU, accumulated in f32.
    """
    if has_residual:
        x_ref, w_ref, b_ref, r_ref, o_ref = refs
    else:
        x_ref, w_ref, b_ref, o_ref = refs
        r_ref = None

    cin = w_ref.shape[1]
    cout = w_ref.shape[2]
    acc = jnp.zeros((mrows, cout), jnp.float32)

    for t, (plane, off) in enumerate(taps):
        lhs = x_ref[0, plane, off:off + mrows, :]            # (mrows, Cin) bf16
        if cin >= 8:
            acc = acc + jnp.dot(lhs, w_ref[t],
                                preferred_element_type=jnp.float32)
        else:
            # Tiny Cin (first conv, Cin=3): VPU broadcast-accumulate instead of
            # a badly-shaped K=3 MXU matmul.
            w_t = w_ref[t].astype(jnp.float32)               # (Cin, Cout)
            lhs_f = lhs.astype(jnp.float32)
            for ci in range(cin):
                acc = acc + lhs_f[:, ci:ci + 1] * w_t[ci:ci + 1, :]

    acc = acc + b_ref[...]                                   # folded-BN shift
    if has_residual:
        acc = acc + r_ref[0].astype(jnp.float32)
    if relu:
        acc = jnp.maximum(acc, 0.0)
    o_ref[0] = acc.astype(o_ref.dtype)


def _pool_fc_kernel(x_ref, w_ref, b_ref, o_ref, *, inv_hw):
    # AdaptiveAvgPool2d((1,1)) over flattened spatial axis, then Linear.
    pooled = jnp.sum(x_ref[...].astype(jnp.float32), axis=1) * inv_hw  # (B, C)
    o_ref[...] = (
        jnp.dot(pooled, w_ref[...], preferred_element_type=jnp.float32)
        + b_ref[...]
    )


# ---------------------------------------------------------------------------
# Host-side prep: flattened shifted-plane representation (no im2col blowup)
# ---------------------------------------------------------------------------
def _prep_input(x, kh, kw, stride, pad):
    """Return (x_flat (B,P,L,Cin) bf16, taps [(plane, flat_offset)], mrows,
    w_row, ho, wo). Valid outputs live at columns [0, wo) of each w_row-wide
    output row; the few extra columns are junk and sliced off on the host."""
    b, h, w, c = x.shape
    ho = (h + 2 * pad - kh) // stride + 1
    wo = (w + 2 * pad - kw) // stride + 1
    xp = jnp.pad(x, ((0, 0), (pad, pad), (pad, pad), (0, 0))) if pad else x

    if stride == 1:
        wp = xp.shape[2]
        planes = xp[:, None]                                  # (B,1,Hp,Wp,C)
        taps = [(0, di * wp + dj) for di in range(kh) for dj in range(kw)]
        w_row = wp
    elif kh == 1 and kw == 1:
        sub = xp[:, ::stride, ::stride, :]                    # plain subsample
        planes = sub[:, None]
        taps = [(0, 0)]
        w_row = wo
    else:
        # stride-2 3x3: parity decomposition -> 4 planes, zero HBM expansion.
        hp, wp = xp.shape[1], xp.shape[2]
        xp = jnp.pad(xp, ((0, 0), (0, hp % 2), (0, wp % 2), (0, 0)))
        wp2 = xp.shape[2] // 2
        planes = jnp.stack(
            [xp[:, p::2, q::2, :] for p in (0, 1) for q in (0, 1)], axis=1)
        taps = [(2 * (di % 2) + (dj % 2), (di // 2) * wp2 + (dj // 2))
                for di in range(kh) for dj in range(kw)]
        w_row = wp2

    bsz, nplanes, ph, pw, _ = planes.shape
    x_flat = planes.reshape(bsz, nplanes, ph * pw, c)
    mrows = ho * w_row
    need = max(off for _, off in taps) + mrows
    if need > ph * pw:                                        # keep taps in-bounds
        x_flat = jnp.pad(x_flat, ((0, 0), (0, 0), (0, need - ph * pw), (0, 0)))
    return x_flat.astype(jnp.bfloat16), taps, mrows, w_row, ho, wo


def _conv_call(x_flat, w_taps, shift, res_flat, taps, mrows, relu):
    b, nplanes, length, cin = x_flat.shape
    t, _, cout = w_taps.shape
    kernel = functools.partial(
        _conv_kernel, taps=tuple(taps), mrows=mrows, relu=relu,
        has_residual=res_flat is not None)

    in_specs = [
        pl.BlockSpec((1, nplanes, length, cin), lambda i: (i, 0, 0, 0)),
        pl.BlockSpec((t, cin, cout), lambda i: (0, 0, 0)),   # resident weights
        pl.BlockSpec((1, cout), lambda i: (0, 0)),           # folded-BN shift
    ]
    args = [x_flat, w_taps, shift]
    if res_flat is not None:
        in_specs.append(pl.BlockSpec((1, mrows, cout), lambda i: (i, 0, 0)))
        args.append(res_flat)

    return pl.pallas_call(
        kernel,
        out_shape=jax.ShapeDtypeStruct((b, mrows, cout), jnp.bfloat16),
        grid=(b,),
        in_specs=in_specs,
        out_specs=pl.BlockSpec((1, mrows, cout), lambda i: (i, 0, 0)),
        compiler_params=pltpu.CompilerParams(
            dimension_semantics=("parallel",)),
    )(*args)


def conv_bn(x, w_oihw, bn_scale, bn_shift, stride, pad, residual=None, relu=True):
    cout, cin, kh, kw = w_oihw.shape
    b = x.shape[0]
    x_flat, taps, mrows, w_row, ho, wo = _prep_input(x, kh, kw, stride, pad)

    # PyTorch (Cout,Cin,kh,kw) -> (kh*kw, Cin, Cout); fold BN scale into weights.
    w_taps = jnp.transpose(w_oihw, (2, 3, 1, 0)).reshape(kh * kw, cin, cout)
    w_taps = (w_taps * bn_scale.reshape(1, 1, cout)).astype(jnp.bfloat16)
    shift = bn_shift.reshape(1, cout).astype(jnp.float32)

    res_flat = None
    if residual is not None:
        r = residual
        if w_row > wo:
            r = jnp.pad(r, ((0, 0), (0, 0), (0, w_row - wo), (0, 0)))
        res_flat = r.reshape(b, ho * w_row, cout).astype(jnp.bfloat16)

    out_flat = _conv_call(x_flat, w_taps, shift, res_flat, taps, mrows, relu)
    out = out_flat.reshape(b, ho, w_row, cout)
    if w_row > wo:
        out = out[:, :, :wo, :]
    return out


def basic_block(x, p):
    stride = p["stride"]
    out = conv_bn(x, p["conv1_w"], p["bn1_s"], p["bn1_b"], stride, 1, relu=True)
    if "sc_w" in p:
        shortcut = conv_bn(x, p["sc_w"], p["sc_bn_s"], p["sc_bn_b"], stride, 0,
                           relu=False)
    else:
        shortcut = x
    out = conv_bn(out, p["conv2_w"], p["bn2_s"], p["bn2_b"], 1, 1,
                  residual=shortcut, relu=True)
    return out


def forward(params, x_nchw):
    x = jnp.transpose(x_nchw, (0, 2, 3, 1)).astype(jnp.bfloat16)  # NCHW -> NHWC
    out = conv_bn(x, params["conv1_w"], params["bn1_s"], params["bn1_b"], 1, 1,
                  relu=True)
    for blk in params["layer1"]:
        out = basic_block(out, blk)
    for blk in params["layer2"]:
        out = basic_block(out, blk)
    for blk in params["layer3"]:
        out = basic_block(out, blk)

    b, h, w, c = out.shape
    x3 = out.reshape(b, h * w, c)
    bp = ((b + 7) // 8) * 8                     # pad batch rows to sublane mult
    if bp != b:
        x3 = jnp.pad(x3, ((0, bp - b), (0, 0), (0, 0)))
    # TODO(synk): Dropout(0.5) is inference-mode identity; training-mode masking not modeled.
    logits = pl.pallas_call(
        functools.partial(_pool_fc_kernel, inv_hw=1.0 / float(h * w)),
        out_shape=jax.ShapeDtypeStruct((bp, 10), jnp.float32),
        in_specs=[_VMEM, _VMEM, _VMEM],
        out_specs=_VMEM,
    )(x3, params["fc_w"], params["fc_b"])
    return logits[:b]


# ---------------------------------------------------------------------------
# Deterministic parameter construction (mirrors nn.Module __init__)
# ---------------------------------------------------------------------------
def _kaiming_conv(key, cout, cin, kh, kw):
    std = (2.0 / (cout * kh * kw)) ** 0.5  # kaiming_normal_, fan_out, relu
    return std * jax.random.normal(key, (cout, cin, kh, kw), jnp.float32)


def _bn_params(c):
    # Folded inference BN: gamma=1, beta=0, running_mean=0, running_var=1.
    scale = jnp.full((c,), 1.0 / (1.0 + BN_EPS) ** 0.5, jnp.float32)
    shift = jnp.zeros((c,), jnp.float32)
    return scale, shift


def _block_params(key, cin, cout, stride):
    k1, k2, k3 = jax.random.split(key, 3)
    p = {"stride": stride, "conv1_w": _kaiming_conv(k1, cout, cin, 3, 3)}
    p["bn1_s"], p["bn1_b"] = _bn_params(cout)
    p["conv2_w"] = _kaiming_conv(k2, cout, cout, 3, 3)
    p["bn2_s"], p["bn2_b"] = _bn_params(cout)
    if stride != 1 or cin != cout:
        p["sc_w"] = _kaiming_conv(k3, cout, cin, 1, 1)
        p["sc_bn_s"], p["sc_bn_b"] = _bn_params(cout)
    return p


def init_params(key):
    keys = jax.random.split(key, 9)
    params = {"conv1_w": _kaiming_conv(keys[0], 64, 3, 3, 3)}
    params["bn1_s"], params["bn1_b"] = _bn_params(64)
    params["layer1"] = [_block_params(keys[1], 64, 64, 1),
                        _block_params(keys[2], 64, 64, 1)]
    params["layer2"] = [_block_params(keys[3], 64, 128, 2),
                        _block_params(keys[4], 128, 128, 1)]
    params["layer3"] = [_block_params(keys[5], 128, 256, 2),
                        _block_params(keys[6], 256, 256, 1)]
    bound = 1.0 / (256.0 ** 0.5)  # nn.Linear default init
    params["fc_w"] = jax.random.uniform(keys[7], (256, 10), jnp.float32, -bound, bound)
    params["fc_b"] = jax.random.uniform(keys[8], (1, 10), jnp.float32, -bound, bound)
    return params


if __name__ == "__main__":
    key = jax.random.PRNGKey(0)
    pkey, xkey = jax.random.split(key)
    params = init_params(pkey)
    # Small CIFAR-like input: NCHW, 3 channels (conv1 requires Cin=3).
    x = jax.random.normal(xkey, (2, 3, 16, 16), jnp.float32)
    logits = forward(params, x)
    logits = jax.block_until_ready(logits)
    assert logits.shape == (2, 10) and logits.dtype == jnp.float32
    print("KERNEL_OK")
</pallas_src>

<mosaic_0001>
module attributes {stable_mosaic.version = 11 : i64} {
  func.func @_conv_kernel(%arg0: i32, %arg1: memref<1x1x326x3xbf16, #tpu.memory_space<vmem>>, %arg2: memref<9x3x64xbf16, #tpu.memory_space<vmem>>, %arg3: memref<1x64xf32, #tpu.memory_space<vmem>>, %arg4: memref<1x288x64xbf16, #tpu.memory_space<vmem>>) attributes {dimension_semantics = [#tpu.dimension_semantics<parallel>], iteration_bounds = array<i64: 2>, scalar_prefetch = 0 : i64, scratch_operands = 0 : i64, tpu.core_type = #tpu.core_type<tc>, window_params = [{transform_indices = @transform_0, window_bounds = array<i64: 1, 1, 326, 3>}, {pipeline_mode = #tpu.pipeline_mode<synchronous>, transform_indices = @transform_1, window_bounds = array<i64: 9, 3, 64>}, {pipeline_mode = #tpu.pipeline_mode<synchronous>, transform_indices = @transform_2, window_bounds = array<i64: 1, 64>}, {transform_indices = @transform_3, window_bounds = array<i64: 1, 288, 64>}]} {
    %cst = arith.constant 0.000000e+00 : f32
    %0 = vector.broadcast %cst : f32 to vector<288x64xf32>
    %c0 = arith.constant 0 : index
    %c0_0 = arith.constant 0 : index
    %c0_1 = arith.constant 0 : index
    %c0_2 = arith.constant 0 : index
    %1 = vector.load %arg1[%c0, %c0_0, %c0_1, %c0_2] : memref<1x1x326x3xbf16, #tpu.memory_space<vmem>>, vector<1x1x288x3xbf16>
    %2 = vector.shape_cast %1 : vector<1x1x288x3xbf16> to vector<288x3xbf16>
    %c0_3 = arith.constant 0 : index
    %c0_4 = arith.constant 0 : index
    %c0_5 = arith.constant 0 : index
    %3 = vector.load %arg2[%c0_3, %c0_4, %c0_5] : memref<9x3x64xbf16, #tpu.memory_space<vmem>>, vector<1x3x64xbf16>
    %4 = vector.shape_cast %3 : vector<1x3x64xbf16> to vector<3x64xbf16>
    %5 = arith.extf %4 : vector<3x64xbf16> to vector<3x64xf32>
    %6 = arith.extf %2 : vector<288x3xbf16> to vector<288x3xf32>
    %7 = vector.extract_strided_slice %6 {offsets = [0, 0], sizes = [288, 1], strides = [1, 1]} : vector<288x3xf32> to vector<288x1xf32>
    %8 = vector.extract_strided_slice %5 {offsets = [0, 0], sizes = [1, 64], strides = [1, 1]} : vector<3x64xf32> to vector<1x64xf32>
    %9 = vector.broadcast %7 : vector<288x1xf32> to vector<288x64xf32>
    %10 = vector.broadcast %8 : vector<1x64xf32> to vector<288x64xf32>
    %11 = arith.mulf %9, %10 : vector<288x64xf32>
    %12 = arith.addf %0, %11 : vector<288x64xf32>
    %13 = vector.extract_strided_slice %6 {offsets = [0, 1], sizes = [288, 1], strides = [1, 1]} : vector<288x3xf32> to vector<288x1xf32>
    %14 = vector.extract_strided_slice %5 {offsets = [1, 0], sizes = [1, 64], strides = [1, 1]} : vector<3x64xf32> to vector<1x64xf32>
    %15 = vector.broadcast %13 : vector<288x1xf32> to vector<288x64xf32>
    %16 = vector.broadcast %14 : vector<1x64xf32> to vector<288x64xf32>
    %17 = arith.mulf %15, %16 : vector<288x64xf32>
    %18 = arith.addf %12, %17 : vector<288x64xf32>
    %19 = vector.extract_strided_slice %6 {offsets = [0, 2], sizes = [288, 1], strides = [1, 1]} : vector<288x3xf32> to vector<288x1xf32>
    %20 = vector.extract_strided_slice %5 {offsets = [2, 0], sizes = [1, 64], strides = [1, 1]} : vector<3x64xf32> to vector<1x64xf32>
    %21 = vector.broadcast %19 : vector<288x1xf32> to vector<288x64xf32>
    %22 = vector.broadcast %20 : vector<1x64xf32> to vector<288x64xf32>
    %23 = arith.mulf %21, %22 : vector<288x64xf32>
    %24 = arith.addf %18, %23 : vector<288x64xf32>
    %c0_6 = arith.constant 0 : index
    %c0_7 = arith.constant 0 : index
    %c1 = arith.constant 1 : index
    %c0_8 = arith.constant 0 : index
    %25 = vector.load %arg1[%c0_6, %c0_7, %c1, %c0_8] : memref<1x1x326x3xbf16, #tpu.memory_space<vmem>>, vector<1x1x288x3xbf16>
    %26 = vector.shape_cast %25 : vector<1x1x288x3xbf16> to vector<288x3xbf16>
    %c1_9 = arith.constant 1 : index
    %c0_10 = arith.constant 0 : index
    %c0_11 = arith.constant 0 : index
    %27 = vector.load %arg2[%c1_9, %c0_10, %c0_11] : memref<9x3x64xbf16, #tpu.memory_space<vmem>>, vector<1x3x64xbf16>
    %28 = vector.shape_cast %27 : vector<1x3x64xbf16> to vector<3x64xbf16>
    %29 = arith.extf %28 : vector<3x64xbf16> to vector<3x64xf32>
    %30 = arith.extf %26 : vector<288x3xbf16> to vector<288x3xf32>
    %31 = vector.extract_strided_slice %30 {offsets = [0, 0], sizes = [288, 1], strides = [1, 1]} : vector<288x3xf32> to vector<288x1xf32>
    %32 = vector.extract_strided_slice %29 {offsets = [0, 0], sizes = [1, 64], strides = [1, 1]} : vector<3x64xf32> to vector<1x64xf32>
    %33 = vector.broadcast %31 : vector<288x1xf32> to vector<288x64xf32>
    %34 = vector.broadcast %32 : vector<1x64xf32> to vector<288x64xf32>
    %35 = arith.mulf %33, %34 : vector<288x64xf32>
    %36 = arith.addf %24, %35 : vector<288x64xf32>
    %37 = vector.extract_strided_slice %30 {offsets = [0, 1], sizes = [288, 1], strides = [1, 1]} : vector<288x3xf32> to vector<288x1xf32>
    %38 = vector.extract_strided_slice %29 {offsets = [1, 0], sizes = [1, 64], strides = [1, 1]} : vector<3x64xf32> to vector<1x64xf32>
    %39 = vector.broadcast %37 : vector<288x1xf32> to vector<288x64xf32>
    %40 = vector.broadcast %38 : vector<1x64xf32> to vector<288x64xf32>
    %41 = arith.mulf %39, %40 : vector<288x64xf32>
    %42 = arith.addf %36, %41 : vector<288x64xf32>
    %43 = vector.extract_strided_slice %30 {offsets = [0, 2], sizes = [288, 1], strides = [1, 1]} : vector<288x3xf32> to vector<288x1xf32>
    %44 = vector.extract_strided_slice %29 {offsets = [2, 0], sizes = [1, 64], strides = [1, 1]} : vector<3x64xf32> to vector<1x64xf32>
    %45 = vector.broadcast %43 : vector<288x1xf32> to vector<288x64xf32>
    %46 = vector.broadcast %44 : vector<1x64xf32> to vector<288x64xf32>
    %47 = arith.mulf %45, %46 : vector<288x64xf32>
    %48 = arith.addf %42, %47 : vector<288x64xf32>
    %c0_12 = arith.constant 0 : index
    %c0_13 = arith.constant 0 : index
    %c2 = arith.constant 2 : index
    %c0_14 = arith.constant 0 : index
    %49 = vector.load %arg1[%c0_12, %c0_13, %c2, %c0_14] : memref<1x1x326x3xbf16, #tpu.memory_space<vmem>>, vector<1x1x288x3xbf16>
    %50 = vector.shape_cast %49 : vector<1x1x288x3xbf16> to vector<288x3xbf16>
    %c2_15 = arith.constant 2 : index
    %c0_16 = arith.constant 0 : index
    %c0_17 = arith.constant 0 : index
    %51 = vector.load %arg2[%c2_15, %c0_16, %c0_17] : memref<9x3x64xbf16, #tpu.memory_space<vmem>>, vector<1x3x64xbf16>
    %52 = vector.shape_cast %51 : vector<1x3x64xbf16> to vector<3x64xbf16>
    %53 = arith.extf %52 : vector<3x64xbf16> to vector<3x64xf32>
    %54 = arith.extf %50 : vector<288x3xbf16> to vector<288x3xf32>
    %55 = vector.extract_strided_slice %54 {offsets = [0, 0], sizes = [288, 1], strides = [1, 1]} : vector<288x3xf32> to vector<288x1xf32>
    %56 = vector.extract_strided_slice %53 {offsets = [0, 0], sizes = [1, 64], strides = [1, 1]} : vector<3x64xf32> to vector<1x64xf32>
    %57 = vector.broadcast %55 : vector<288x1xf32> to vector<288x64xf32>
    %58 = vector.broadcast %56 : vector<1x64xf32> to vector<288x64xf32>
    %59 = arith.mulf %57, %58 : vector<288x64xf32>
    %60 = arith.addf %48, %59 : vector<288x64xf32>
    %61 = vector.extract_strided_slice %54 {offsets = [0, 1], sizes = [288, 1], strides = [1, 1]} : vector<288x3xf32> to vector<288x1xf32>
    %62 = vector.extract_strided_slice %53 {offsets = [1, 0], sizes = [1, 64], strides = [1, 1]} : vector<3x64xf32> to vector<1x64xf32>
    %63 = vector.broadcast %61 : vector<288x1xf32> to vector<288x64xf32>
    %64 = vector.broadcast %62 : vector<1x64xf32> to vector<288x64xf32>
    %65 = arith.mulf %63, %64 : vector<288x64xf32>
    %66 = arith.addf %60, %65 : vector<288x64xf32>
    %67 = vector.extract_strided_slice %54 {offsets = [0, 2], sizes = [288, 1], strides = [1, 1]} : vector<288x3xf32> to vector<288x1xf32>
    %68 = vector.extract_strided_slice %53 {offsets = [2, 0], sizes = [1, 64], strides = [1, 1]} : vector<3x64xf32> to vector<1x64xf32>
    %69 = vector.broadcast %67 : vector<288x1xf32> to vector<288x64xf32>
    %70 = vector.broadcast %68 : vector<1x64xf32> to vector<288x64xf32>
    %71 = arith.mulf %69, %70 : vector<288x64xf32>
    %72 = arith.addf %66, %71 : vector<288x64xf32>
    %c0_18 = arith.constant 0 : index
    %c0_19 = arith.constant 0 : index
    %c18 = arith.constant 18 : index
    %c0_20 = arith.constant 0 : index
    %73 = vector.load %arg1[%c0_18, %c0_19, %c18, %c0_20] : memref<1x1x326x3xbf16, #tpu.memory_space<vmem>>, vector<1x1x288x3xbf16>
    %74 = vector.shape_cast %73 : vector<1x1x288x3xbf16> to vector<288x3xbf16>
    %c3 = arith.constant 3 : index
    %c0_21 = arith.constant 0 : index
    %c0_22 = arith.constant 0 : index
    %75 = vector.load %arg2[%c3, %c0_21, %c0_22] : memref<9x3x64xbf16, #tpu.memory_space<vmem>>, vector<1x3x64xbf16>
    %76 = vector.shape_cast %75 : vector<1x3x64xbf16> to vector<3x64xbf16>
    %77 = arith.extf %76 : vector<3x64xbf16> to vector<3x64xf32>
    %78 = arith.extf %74 : vector<288x3xbf16> to vector<288x3xf32>
    %79 = vector.extract_strided_slice %78 {offsets = [0, 0], sizes = [288, 1], strides = [1, 1]} : vector<288x3xf32> to vector<288x1xf32>
    %80 = vector.extract_strided_slice %77 {offsets = [0, 0], sizes = [1, 64], strides = [1, 1]} : vector<3x64xf32> to vector<1x64xf32>
    %81 = vector.broadcast %79 : vector<288x1xf32> to vector<288x64xf32>
    %82 = vector.broadcast %80 : vector<1x64xf32> to vector<288x64xf32>
    %83 = arith.mulf %81, %82 : vector<288x64xf32>
    %84 = arith.addf %72, %83 : vector<288x64xf32>
    %85 = vector.extract_strided_slice %78 {offsets = [0, 1], sizes = [288, 1], strides = [1, 1]} : vector<288x3xf32> to vector<288x1xf32>
    %86 = vector.extract_strided_slice %77 {offsets = [1, 0], sizes = [1, 64], strides = [1, 1]} : vector<3x64xf32> to vector<1x64xf32>
    %87 = vector.broadcast %85 : vector<288x1xf32> to vector<288x64xf32>
    %88 = vector.broadcast %86 : vector<1x64xf32> to vector<288x64xf32>
    %89 = arith.mulf %87, %88 : vector<288x64xf32>
    %90 = arith.addf %84, %89 : vector<288x64xf32>
    %91 = vector.extract_strided_slice %78 {offsets = [0, 2], sizes = [288, 1], strides = [1, 1]} : vector<288x3xf32> to vector<288x1xf32>
    %92 = vector.extract_strided_slice %77 {offsets = [2, 0], sizes = [1, 64], strides = [1, 1]} : vector<3x64xf32> to vector<1x64xf32>
    %93 = vector.broadcast %91 : vector<288x1xf32> to vector<288x64xf32>
    %94 = vector.broadcast %92 : vector<1x64xf32> to vector<288x64xf32>
    %95 = arith.mulf %93, %94 : vector<288x64xf32>
    %96 = arith.addf %90, %95 : vector<288x64xf32>
    %c0_23 = arith.constant 0 : index
    %c0_24 = arith.constant 0 : index
    %c19 = arith.constant 19 : index
    %c0_25 = arith.constant 0 : index
    %97 = vector.load %arg1[%c0_23, %c0_24, %c19, %c0_25] : memref<1x1x326x3xbf16, #tpu.memory_space<vmem>>, vector<1x1x288x3xbf16>
    %98 = vector.shape_cast %97 : vector<1x1x288x3xbf16> to vector<288x3xbf16>
    %c4 = arith.constant 4 : index
    %c0_26 = arith.constant 0 : index
    %c0_27 = arith.constant 0 : index
    %99 = vector.load %arg2[%c4, %c0_26, %c0_27] : memref<9x3x64xbf16, #tpu.memory_space<vmem>>, vector<1x3x64xbf16>
    %100 = vector.shape_cast %99 : vector<1x3x64xbf16> to vector<3x64xbf16>
    %101 = arith.extf %100 : vector<3x64xbf16> to vector<3x64xf32>
    %102 = arith.extf %98 : vector<288x3xbf16> to vector<288x3xf32>
    %103 = vector.extract_strided_slice %102 {offsets = [0, 0], sizes = [288, 1], strides = [1, 1]} : vector<288x3xf32> to vector<288x1xf32>
    %104 = vector.extract_strided_slice %101 {offsets = [0, 0], sizes = [1, 64], strides = [1, 1]} : vector<3x64xf32> to vector<1x64xf32>
    %105 = vector.broadcast %103 : vector<288x1xf32> to vector<288x64xf32>
    %106 = vector.broadcast %104 : vector<1x64xf32> to vector<288x64xf32>
    %107 = arith.mulf %105, %106 : vector<288x64xf32>
    %108 = arith.addf %96, %107 : vector<288x64xf32>
    %109 = vector.extract_strided_slice %102 {offsets = [0, 1], sizes = [288, 1], strides = [1, 1]} : vector<288x3xf32> to vector<288x1xf32>
    %110 = vector.extract_strided_slice %101 {offsets = [1, 0], sizes = [1, 64], strides = [1, 1]} : vector<3x64xf32> to vector<1x64xf32>
    %111 = vector.broadcast %109 : vector<288x1xf32> to vector<288x64xf32>
    %112 = vector.broadcast %110 : vector<1x64xf32> to vector<288x64xf32>
    %113 = arith.mulf %111, %112 : vector<288x64xf32>
    %114 = arith.addf %108, %113 : vector<288x64xf32>
    %115 = vector.extract_strided_slice %102 {offsets = [0, 2], sizes = [288, 1], strides = [1, 1]} : vector<288x3xf32> to vector<288x1xf32>
    %116 = vector.extract_strided_slice %101 {offsets = [2, 0], sizes = [1, 64], strides = [1, 1]} : vector<3x64xf32> to vector<1x64xf32>
    %117 = vector.broadcast %115 : vector<288x1xf32> to vector<288x64xf32>
    %118 = vector.broadcast %116 : vector<1x64xf32> to vector<288x64xf32>
    %119 = arith.mulf %117, %118 : vector<288x64xf32>
    %120 = arith.addf %114, %119 : vector<288x64xf32>
    %c0_28 = arith.constant 0 : index
    %c0_29 = arith.constant 0 : index
    %c20 = arith.constant 20 : index
    %c0_30 = arith.constant 0 : index
    %121 = vector.load %arg1[%c0_28, %c0_29, %c20, %c0_30] : memref<1x1x326x3xbf16, #tpu.memory_space<vmem>>, vector<1x1x288x3xbf16>
    %122 = vector.shape_cast %121 : vector<1x1x288x3xbf16> to vector<288x3xbf16>
    %c5 = arith.constant 5 : index
    %c0_31 = arith.constant 0 : index
    %c0_32 = arith.constant 0 : index
    %123 = vector.load %arg2[%c5, %c0_31, %c0_32] : memref<9x3x64xbf16, #tpu.memory_space<vmem>>, vector<1x3x64xbf16>
    %124 = vector.shape_cast %123 : vector<1x3x64xbf16> to vector<3x64xbf16>
    %125 = arith.extf %124 : vector<3x64xbf16> to vector<3x64xf32>
    %126 = arith.extf %122 : vector<288x3xbf16> to vector<288x3xf32>
    %127 = vector.extract_strided_slice %126 {offsets = [0, 0], sizes = [288, 1], strides = [1, 1]} : vector<288x3xf32> to vector<288x1xf32>
    %128 = vector.extract_strided_slice %125 {offsets = [0, 0], sizes = [1, 64], strides = [1, 1]} : vector<3x64xf32> to vector<1x64xf32>
    %129 = vector.broadcast %127 : vector<288x1xf32> to vector<288x64xf32>
    %130 = vector.broadcast %128 : vector<1x64xf32> to vector<288x64xf32>
    %131 = arith.mulf %129, %130 : vector<288x64xf32>
    %132 = arith.addf %120, %131 : vector<288x64xf32>
    %133 = vector.extract_strided_slice %126 {offsets = [0, 1], sizes = [288, 1], strides = [1, 1]} : vector<288x3xf32> to vector<288x1xf32>
    %134 = vector.extract_strided_slice %125 {offsets = [1, 0], sizes = [1, 64], strides = [1, 1]} : vector<3x64xf32> to vector<1x64xf32>
    %135 = vector.broadcast %133 : vector<288x1xf32> to vector<288x64xf32>
    %136 = vector.broadcast %134 : vector<1x64xf32> to vector<288x64xf32>
    %137 = arith.mulf %135, %136 : vector<288x64xf32>
    %138 = arith.addf %132, %137 : vector<288x64xf32>
    %139 = vector.extract_strided_slice %126 {offsets = [0, 2], sizes = [288, 1], strides = [1, 1]} : vector<288x3xf32> to vector<288x1xf32>
    %140 = vector.extract_strided_slice %125 {offsets = [2, 0], sizes = [1, 64], strides = [1, 1]} : vector<3x64xf32> to vector<1x64xf32>
    %141 = vector.broadcast %139 : vector<288x1xf32> to vector<288x64xf32>
    %142 = vector.broadcast %140 : vector<1x64xf32> to vector<288x64xf32>
    %143 = arith.mulf %141, %142 : vector<288x64xf32>
    %144 = arith.addf %138, %143 : vector<288x64xf32>
    %c0_33 = arith.constant 0 : index
    %c0_34 = arith.constant 0 : index
    %c36 = arith.constant 36 : index
    %c0_35 = arith.constant 0 : index
    %145 = vector.load %arg1[%c0_33, %c0_34, %c36, %c0_35] : memref<1x1x326x3xbf16, #tpu.memory_space<vmem>>, vector<1x1x288x3xbf16>
    %146 = vector.shape_cast %145 : vector<1x1x288x3xbf16> to vector<288x3xbf16>
    %c6 = arith.constant 6 : index
    %c0_36 = arith.constant 0 : index
    %c0_37 = arith.constant 0 : index
    %147 = vector.load %arg2[%c6, %c0_36, %c0_37] : memref<9x3x64xbf16, #tpu.memory_space<vmem>>, vector<1x3x64xbf16>
    %148 = vector.shape_cast %147 : vector<1x3x64xbf16> to vector<3x64xbf16>
    %149 = arith.extf %148 : vector<3x64xbf16> to vector<3x64xf32>
    %150 = arith.extf %146 : vector<288x3xbf16> to vector<288x3xf32>
    %151 = vector.extract_strided_slice %150 {offsets = [0, 0], sizes = [288, 1], strides = [1, 1]} : vector<288x3xf32> to vector<288x1xf32>
    %152 = vector.extract_strided_slice %149 {offsets = [0, 0], sizes = [1, 64], strides = [1, 1]} : vector<3x64xf32> to vector<1x64xf32>
    %153 = vector.broadcast %151 : vector<288x1xf32> to vector<288x64xf32>
    %154 = vector.broadcast %152 : vector<1x64xf32> to vector<288x64xf32>
    %155 = arith.mulf %153, %154 : vector<288x64xf32>
    %156 = arith.addf %144, %155 : vector<288x64xf32>
    %157 = vector.extract_strided_slice %150 {offsets = [0, 1], sizes = [288, 1], strides = [1, 1]} : vector<288x3xf32> to vector<288x1xf32>
    %158 = vector.extract_strided_slice %149 {offsets = [1, 0], sizes = [1, 64], strides = [1, 1]} : vector<3x64xf32> to vector<1x64xf32>
    %159 = vector.broadcast %157 : vector<288x1xf32> to vector<288x64xf32>
    %160 = vector.broadcast %158 : vector<1x64xf32> to vector<288x64xf32>
    %161 = arith.mulf %159, %160 : vector<288x64xf32>
    %162 = arith.addf %156, %161 : vector<288x64xf32>
    %163 = vector.extract_strided_slice %150 {offsets = [0, 2], sizes = [288, 1], strides = [1, 1]} : vector<288x3xf32> to vector<288x1xf32>
    %164 = vector.extract_strided_slice %149 {offsets = [2, 0], sizes = [1, 64], strides = [1, 1]} : vector<3x64xf32> to vector<1x64xf32>
    %165 = vector.broadcast %163 : vector<288x1xf32> to vector<288x64xf32>
    %166 = vector.broadcast %164 : vector<1x64xf32> to vector<288x64xf32>
    %167 = arith.mulf %165, %166 : vector<288x64xf32>
    %168 = arith.addf %162, %167 : vector<288x64xf32>
    %c0_38 = arith.constant 0 : index
    %c0_39 = arith.constant 0 : index
    %c37 = arith.constant 37 : index
    %c0_40 = arith.constant 0 : index
    %169 = vector.load %arg1[%c0_38, %c0_39, %c37, %c0_40] : memref<1x1x326x3xbf16, #tpu.memory_space<vmem>>, vector<1x1x288x3xbf16>
    %170 = vector.shape_cast %169 : vector<1x1x288x3xbf16> to vector<288x3xbf16>
    %c7 = arith.constant 7 : index
    %c0_41 = arith.constant 0 : index
    %c0_42 = arith.constant 0 : index
    %171 = vector.load %arg2[%c7, %c0_41, %c0_42] : memref<9x3x64xbf16, #tpu.memory_space<vmem>>, vector<1x3x64xbf16>
    %172 = vector.shape_cast %171 : vector<1x3x64xbf16> to vector<3x64xbf16>
    %173 = arith.extf %172 : vector<3x64xbf16> to vector<3x64xf32>
    %174 = arith.extf %170 : vector<288x3xbf16> to vector<288x3xf32>
    %175 = vector.extract_strided_slice %174 {offsets = [0, 0], sizes = [288, 1], strides = [1, 1]} : vector<288x3xf32> to vector<288x1xf32>
    %176 = vector.extract_strided_slice %173 {offsets = [0, 0], sizes = [1, 64], strides = [1, 1]} : vector<3x64xf32> to vector<1x64xf32>
    %177 = vector.broadcast %175 : vector<288x1xf32> to vector<288x64xf32>
    %178 = vector.broadcast %176 : vector<1x64xf32> to vector<288x64xf32>
    %179 = arith.mulf %177, %178 : vector<288x64xf32>
    %180 = arith.addf %168, %179 : vector<288x64xf32>
    %181 = vector.extract_strided_slice %174 {offsets = [0, 1], sizes = [288, 1], strides = [1, 1]} : vector<288x3xf32> to vector<288x1xf32>
    %182 = vector.extract_strided_slice %173 {offsets = [1, 0], sizes = [1, 64], strides = [1, 1]} : vector<3x64xf32> to vector<1x64xf32>
    %183 = vector.broadcast %181 : vector<288x1xf32> to vector<288x64xf32>
    %184 = vector.broadcast %182 : vector<1x64xf32> to vector<288x64xf32>
    %185 = arith.mulf %183, %184 : vector<288x64xf32>
    %186 = arith.addf %180, %185 : vector<288x64xf32>
    %187 = vector.extract_strided_slice %174 {offsets = [0, 2], sizes = [288, 1], strides = [1, 1]} : vector<288x3xf32> to vector<288x1xf32>
    %188 = vector.extract_strided_slice %173 {offsets = [2, 0], sizes = [1, 64], strides = [1, 1]} : vector<3x64xf32> to vector<1x64xf32>
    %189 = vector.broadcast %187 : vector<288x1xf32> to vector<288x64xf32>
    %190 = vector.broadcast %188 : vector<1x64xf32> to vector<288x64xf32>
    %191 = arith.mulf %189, %190 : vector<288x64xf32>
    %192 = arith.addf %186, %191 : vector<288x64xf32>
    %c0_43 = arith.constant 0 : index
    %c0_44 = arith.constant 0 : index
    %c38 = arith.constant 38 : index
    %c0_45 = arith.constant 0 : index
    %193 = vector.load %arg1[%c0_43, %c0_44, %c38, %c0_45] : memref<1x1x326x3xbf16, #tpu.memory_space<vmem>>, vector<1x1x288x3xbf16>
    %194 = vector.shape_cast %193 : vector<1x1x288x3xbf16> to vector<288x3xbf16>
    %c8 = arith.constant 8 : index
    %c0_46 = arith.constant 0 : index
    %c0_47 = arith.constant 0 : index
    %195 = vector.load %arg2[%c8, %c0_46, %c0_47] : memref<9x3x64xbf16, #tpu.memory_space<vmem>>, vector<1x3x64xbf16>
    %196 = vector.shape_cast %195 : vector<1x3x64xbf16> to vector<3x64xbf16>
    %197 = arith.extf %196 : vector<3x64xbf16> to vector<3x64xf32>
    %198 = arith.extf %194 : vector<288x3xbf16> to vector<288x3xf32>
    %199 = vector.extract_strided_slice %198 {offsets = [0, 0], sizes = [288, 1], strides = [1, 1]} : vector<288x3xf32> to vector<288x1xf32>
    %200 = vector.extract_strided_slice %197 {offsets = [0, 0], sizes = [1, 64], strides = [1, 1]} : vector<3x64xf32> to vector<1x64xf32>
    %201 = vector.broadcast %199 : vector<288x1xf32> to vector<288x64xf32>
    %202 = vector.broadcast %200 : vector<1x64xf32> to vector<288x64xf32>
    %203 = arith.mulf %201, %202 : vector<288x64xf32>
    %204 = arith.addf %192, %203 : vector<288x64xf32>
    %205 = vector.extract_strided_slice %198 {offsets = [0, 1], sizes = [288, 1], strides = [1, 1]} : vector<288x3xf32> to vector<288x1xf32>
    %206 = vector.extract_strided_slice %197 {offsets = [1, 0], sizes = [1, 64], strides = [1, 1]} : vector<3x64xf32> to vector<1x64xf32>
    %207 = vector.broadcast %205 : vector<288x1xf32> to vector<288x64xf32>
    %208 = vector.broadcast %206 : vector<1x64xf32> to vector<288x64xf32>
    %209 = arith.mulf %207, %208 : vector<288x64xf32>
    %210 = arith.addf %204, %209 : vector<288x64xf32>
    %211 = vector.extract_strided_slice %198 {offsets = [0, 2], sizes = [288, 1], strides = [1, 1]} : vector<288x3xf32> to vector<288x1xf32>
    %212 = vector.extract_strided_slice %197 {offsets = [2, 0], sizes = [1, 64], strides = [1, 1]} : vector<3x64xf32> to vector<1x64xf32>
    %213 = vector.broadcast %211 : vector<288x1xf32> to vector<288x64xf32>
    %214 = vector.broadcast %212 : vector<1x64xf32> to vector<288x64xf32>
    %215 = arith.mulf %213, %214 : vector<288x64xf32>
    %216 = arith.addf %210, %215 : vector<288x64xf32>
    %c0_48 = arith.constant 0 : index
    %c0_49 = arith.constant 0 : index
    %217 = vector.load %arg3[%c0_48, %c0_49] : memref<1x64xf32, #tpu.memory_space<vmem>>, vector<1x64xf32>
    %218 = vector.broadcast %217 : vector<1x64xf32> to vector<288x64xf32>
    %219 = arith.addf %216, %218 : vector<288x64xf32>
    %cst_50 = arith.constant 0.000000e+00 : f32
    %220 = vector.broadcast %cst_50 : f32 to vector<288x64xf32>
    %221 = arith.maximumf %219, %220 : vector<288x64xf32>
    %222 = arith.truncf %221 : vector<288x64xf32> to vector<288x64xbf16>
    %c0_51 = arith.constant 0 : index
    %c0_52 = arith.constant 0 : index
    %c0_53 = arith.constant 0 : index
    %223 = vector.load %arg4[%c0_51, %c0_52, %c0_53] : memref<1x288x64xbf16, #tpu.memory_space<vmem>>, vector<1x288x64xbf16>
    %224 = vector.shape_cast %223 : vector<1x288x64xbf16> to vector<288x64xbf16>
    %225 = vector.shape_cast %222 : vector<288x64xbf16> to vector<1x288x64xbf16>
    tpu.vector_store %arg4[%c0_51, %c0_52, %c0_53], %225 {strides = array<i32>} : memref<1x288x64xbf16, #tpu.memory_space<vmem>>, vector<1x288x64xbf16>,
    return
  }
  func.func @transform_0(%arg0: i32) -> (i32, i32, i32, i32) {
    %c0_i32 = arith.constant 0 : i32
    %c0_i32_0 = arith.constant 0 : i32
    %c0_i32_1 = arith.constant 0 : i32
    %c0_i32_2 = arith.constant 0 : i32
    return %arg0, %c0_i32, %c0_i32_0, %c0_i32_1 : i32, i32, i32, i32
  }
  func.func @transform_1(%arg0: i32) -> (i32, i32, i32) {
    %c0_i32 = arith.constant 0 : i32
    %c0_i32_0 = arith.constant 0 : i32
    %c0_i32_1 = arith.constant 0 : i32
    %c0_i32_2 = arith.constant 0 : i32
    return %c0_i32, %c0_i32_0, %c0_i32_1 : i32, i32, i32
  }
  func.func @transform_2(%arg0: i32) -> (i32, i32) {
    %c0_i32 = arith.constant 0 : i32
    %c0_i32_0 = arith.constant 0 : i32
    %c0_i32_1 = arith.constant 0 : i32
    return %c0_i32, %c0_i32_0 : i32, i32
  }
  func.func @transform_3(%arg0: i32) -> (i32, i32, i32) {
    %c0_i32 = arith.constant 0 : i32
    %c0_i32_0 = arith.constant 0 : i32
    %c0_i32_1 = arith.constant 0 : i32
    return %arg0, %c0_i32, %c0_i32_0 : i32, i32, i32
  }
}

</mosaic_0001>

<bundles_post_ra>
// kernel: tpu_custom_call.1
= control target key start
LH: loop header
LB: loop body
LE: loop exit
PB: predicated region body
PF: predicated region fallthrough
CT: control target
= control target key end

     0   :  { %s9768_s12 = smov 0   ;;  %s18225_s0 = inlined_call_operand.vmem [shape: bf16[2,1,326,3], index: 0, kind: input, shape index: {}]   ;;  %s18226_s1 = inlined_call_operand.vmem [shape: bf16[9,3,64], index: 1, kind: input, shape index: {}]   ;;  %s18227_s2 = inlined_call_operand.vmem [shape: f32[1,64], index: 2, kind: input, shape index: {}]   ;;  %s18228_s3 = inlined_call_operand.vmem [shape: bf16[2,288,64], index: 3, kind: output, shape index: {}]  }
   0x1 LB: > { %s8186_s13 = sadd.s32 4294967295, %s9743_s12   ;;  %p8190_p0 = scmp.ge.s32.totalorder %s9743_s12, 1  ;;  %s9743_s12 = sphi %s9768_s12, %s13_s12  }
   0x2   : > { %p137_p1 = scmp.lt.s32.totalorder %s9743_s12, 3 }
   0x4   : > { %p138_p2 = pnand %p8190_p0, %p137_p1 }
   0x6   : > { %141 = sbr.rel (%p138_p2) target bundleno = 1510 (0x5e6), region = 32 }
   0xb   : > { %p161_p3 = scmp.lt.s32.totalorder %s8186_s13, 1  ;;  %v18233_v0 = vmov 1   ;;  %v18239_v1 = vmov 0   ;;  %vm1269_vm0 = vcmask 1046528   ;;  %vm2236_vm1 = vcmask 1045504  }
   0xc   : > { %8626 = vset.pattern.permute.xlu0 %v18233_v0  ;;  %8575 = vset.pattern.permute.xlu2 %v18239_v1  ;;  %vm4133_vm2 = vcmask 1044480   ;;  %vm4812_vm3 = vcmask 1043456   ;;  %vm6709_vm4 = vcmask 1042432   ;;  %vm7388_vm5 = vcmask 1041408  }
   0xd   : > { %8564 = vset.pattern.permute.xlu1 %v18239_v1  ;;  %s21247_s13 = smov (!%p161_p3, %s8186_s13), 1  ;;  %vm8094_vm6 = vcmask 519168  }
   0xe   : > { %s8551_s14 = smul.u32 164, %s21247_s13 }
   0xf   : > { %s8552_s11 = smul.u32 144, %s21247_s13 }
  0x10   : > { %s9785_s17 = scalar_lea.vmem %s18225_s0, %s8551_s14 }
  0x11   : > { %v9788_v2 = vld [vmem:[%s9785_s17 + $0x20] sm:$0xff]   ;;  %v8484_v3 = vld [vmem:[%s9785_s17 + $0x10] sm:$0xff]   ;;  %v9795_v11 = vld [vmem:[%s9785_s17 + $0x28] sm:$0xff]   ;;  %s16754_s15 = scalar_lea.vmem %s18228_s3, %s8552_s11 }
  0x12   : > { %v8204_v4 = vld [vmem:[%s9785_s17] sm:$0xff]   ;;  %v8221_v5 = vunpack.c.l.bf16 %v9788_v2  ;;  %v8222_v6 = vunpack.c.h.bf16 %v9788_v2  ;;  %v8213_v7 = vunpack.c.l.bf16 %v8484_v3  ;;  %v8214_v8 = vunpack.c.h.bf16 %v8484_v3  ;;  %18747 = vst [vmem:[#allocation2_spill] sm:$0xff] %v9795_v11  ;;  %v8485_v12 = vld [vmem:[%s9785_s17 + $0x18] sm:$0xff]   ;;  %v9830_v31 = vld [vmem:[%s9785_s17 + $0x50] sm:$0xff]  }
  0x13   : > { %v8205_v9 = vunpack.c.l.bf16 %v8204_v4  ;;  %v8206_v10 = vunpack.c.h.bf16 %v8204_v4  ;;  %v8225_v16 = vunpack.c.l.bf16 %v9795_v11  ;;  %v18232_v17 = vunpack.c.h.bf16 %v9795_v11  ;;  %v8490_v22 = vld [vmem:[%s9785_s17 + $0x40] sm:$0xff]   ;;  %v8489_v23 = vld [vmem:[%s9785_s17 + $0x38] sm:$0xff]   ;;  %18751 = vst [vmem:[#allocation6_spill] sm:$0xff] %v9830_v31  ;;  %v8496_v38 = vld [vmem:[%s9785_s17 + $0x70] sm:$0xff]  }
  0x14   : > { %v9800_v13 = vpack.i.bf16 %v8222_v6, %v8221_v5  ;;  %v9802_v14 = vpack.i.bf16 %v8214_v8, %v8213_v7  ;;  %v8217_v18 = vunpack.c.l.bf16 %v8485_v12  ;;  %v8218_v19 = vunpack.c.h.bf16 %v8485_v12  ;;  %v8493_v30 = vld [vmem:[%s9785_s17 + $0x58] sm:$0xff]   ;;  %v9847_v39 = vld [vmem:[%s9785_s17 + $0x68] sm:$0xff]   ;;  %v9864_v47 = vld [vmem:[%s9785_s17 + $0x80] sm:$0xff]  }
  0x15   : > { %v9804_v15 = vpack.i.bf16 %v8206_v10, %v8205_v9  ;;  %v9815_v20 = vpack.i.bf16 %v18232_v17, %v8225_v16  ;;  %v8237_v24 = vunpack.c.l.bf16 %v8490_v22  ;;  %v8238_v25 = vunpack.c.h.bf16 %v8490_v22  ;;  %18753 = vst [vmem:[#allocation8_spill] sm:$0xff] %v9847_v39  ;;  %v8499_v46 = vld [vmem:[%s9785_s17 + $0x88] sm:$0xff]   ;;  %v8488_v58 = vld [vmem:[%s9785_s17 + $0x30] sm:$0xff]   ;;  %v9907_v5 = vld [vmem:[%s9785_s17 + $0x60] sm:$0xff]  }
  0x16   : > { %8577 = vperm.xlu2 %8575, %v9800_v13   ;;  %8566 = vperm.xlu1 %8564, %v9802_v14   ;;  %v9817_v21 = vpack.i.bf16 %v8218_v19, %v8217_v18  ;;  %v8233_v26 = vunpack.c.l.bf16 %v8489_v23  ;;  %v8234_v27 = vunpack.c.h.bf16 %v8489_v23  ;;  %v8249_v32 = vunpack.c.l.bf16 %v8493_v30  ;;  %18755 = vst [vmem:[#allocation10_spill] sm:$0xff] %v9864_v47  ;;  %v8483_v54 = vld [vmem:[%s9785_s17 + $0x8] sm:$0xff]   ;;  %v9919_v10 = vld [vmem:[%s9785_s17 + $0x78] sm:$0xff]   ;;  %v207_v2 = vld [vmem:[%s18226_s1] sm:$0x3] }
  0x17   : > { %18748 = vst [vmem:[#allocation3_spill] sm:$0xff] %v9804_v15  ;;  %8628 = vperm.xlu0 %8626, %v9804_v15   ;;  %v9824_v28 = vpack.i.bf16 %v8238_v25, %v8237_v24  ;;  %v8250_v33 = vunpack.c.h.bf16 %v8493_v30  ;;  %v8245_v34 = vunpack.c.l.bf16 %v9830_v31  ;;  %v18231_v35 = vunpack.c.h.bf16 %v9830_v31  ;;  %v9897_v62 = vld [vmem:[%s9785_s17 + $0x48] sm:$0xff]  }
  0x18   : > { %18749 = vst [vmem:[#allocation4_spill] sm:$0xff] %v9817_v21  ;;  %v9826_v29 = vpack.i.bf16 %v8234_v27, %v8233_v26  ;;  %v8261_v40 = vunpack.c.l.bf16 %v8496_v38  ;;  %v8262_v41 = vunpack.c.h.bf16 %v8496_v38  ;;  %v8257_v42 = vunpack.c.l.bf16 %v9847_v39 }
  0x19   : > { %18750 = vst [vmem:[#allocation5_spill] sm:$0xff] %v9824_v28  ;;  %v9837_v36 = vpack.i.bf16 %v8250_v33, %v8249_v32  ;;  %v9843_v37 = vpack.i.bf16 %v18231_v35, %v8245_v34  ;;  %v18230_v43 = vunpack.c.h.bf16 %v9847_v39  ;;  %v8273_v48 = vunpack.c.l.bf16 %v8499_v46  ;;  %v4727_v32 = vld [vmem:[%s9785_s17 + $0x8] sm:$0xc]  ;;  %v5406_v33 = vld [vmem:[%s9785_s17 + $0x10] sm:$0xc] }
  0x1a   : > { %v9854_v44 = vpack.i.bf16 %v8262_v41, %v8261_v40  ;;  %v8274_v49 = vunpack.c.h.bf16 %v8499_v46  ;;  %v18237_v50 = vunpack.c.l.bf16 %v9864_v47  ;;  %v18229_v51 = vunpack.c.h.bf16 %v9864_v47 }
  0x1b   : > { %18752 = vst [vmem:[#allocation7_spill] sm:$0xff] %v9837_v36  ;;  %v9860_v45 = vpack.i.bf16 %v18230_v43, %v8257_v42  ;;  %v8209_v55 = vunpack.c.l.bf16 %v8483_v54  ;;  %v8210_v56 = vunpack.c.h.bf16 %v8483_v54  ;;  %v8229_v59 = vunpack.c.l.bf16 %v8488_v58 }
  0x1c   : > { %18754 = vst [vmem:[#allocation9_spill] sm:$0xff] %v9854_v44  ;;  %v9871_v52 = vpack.i.bf16 %v8274_v49, %v8273_v48  ;;  %v9877_v53 = vpack.i.bf16 %v18229_v51, %v18237_v50  ;;  %v8230_v60 = vunpack.c.h.bf16 %v8488_v58  ;;  %v8241_v63 = vunpack.c.l.bf16 %v9897_v62 }
  0x1d   : > { %v9883_v57 = vpack.i.bf16 %v8210_v56, %v8209_v55  ;;  %v8242_v3 = vunpack.c.h.bf16 %v9897_v62  ;;  %v8253_v7 = vunpack.c.l.bf16 %v9907_v5  ;;  %v8254_v8 = vunpack.c.h.bf16 %v9907_v5 }
  0x1e   : > { %8582 = vperm.xlu2 %8575, %v9815_v20   ;;  %8571 = vperm.xlu1 %8564, %v9817_v21   ;;  %18756 = vst [vmem:[#allocation11_spill] sm:$0xff] %v9871_v52  ;;  %v9894_v61 = vpack.i.bf16 %v8230_v60, %v8229_v59  ;;  %v8265_v12 = vunpack.c.l.bf16 %v9919_v10  ;;  %v18238_v18 = vunpack.c.h.bf16 %v9919_v10  ;;  %v18235_v23 = vmov 2  }
  0x1f   : > { %8655 = vperm.xlu0 %8626, %v9815_v20   ;;  %18757 = vst [vmem:[#allocation12_spill] sm:$0xff] %v9877_v53  ;;  %v9904_v4 = vpack.i.bf16 %v8242_v3, %v8241_v63  ;;  %v9916_v9 = vpack.i.bf16 %v8254_v8, %v8253_v7  ;;  %v4731_v38 = vunpack.c.l.bf16 %v4727_v32  ;;  %v5446_v40 = vunpack.c.l.bf16 %v5406_v33 }
  0x20   : > { %18758 = vst [vmem:[#allocation13_spill] sm:$0xff] %v9883_v57  ;;  %v9928_v19 = vpack.i.bf16 %v18238_v18, %v8265_v12  ;;  %v9978_v58 = vpack.i.bf16 %v8225_v16, %v8222_v6  ;;  %v9994_v6 = vpack.i.bf16 %v8245_v34, %v8242_v3  ;;  %v9996_v16 = vunpack.c.l.bf16 %v207_v2 }
  0x21   : > { %18759 = vst [vmem:[#allocation14_spill] sm:$0xff] %v9894_v61  ;;  %v9963_v49 = vpack.i.bf16 %v5446_v40, %v4731_v38 }
  0x22   : > { %18760 = vst [vmem:[#allocation15_spill] sm:$0xff] %v9904_v4  ;;  %v10003_v32 = vperm.slane %v9996_v16, 0  ;;  %v10016_v2 = vperm.slane %v9996_v16, 1 }
  0x23   : > { %18761 = vst [vmem:[#allocation16_spill] sm:$0xff] %v9916_v9 }
  0x24   : > { %18762 = vst [vmem:[#allocation17_spill] sm:$0xff] %v9928_v19 }
  0x25   : > { %18763 = vst [vmem:[#allocation18_spill] sm:$0xff] %v9963_v49 }
  0x26   : > { %8592 = vperm.xlu2 %8575, %v9824_v28   ;;  %8587 = vperm.xlu1 %8564, %v9826_v29   ;;  %18764 = vst [vmem:[#allocation19_spill] sm:$0xff] %v9978_v58 }
  0x27   : > { %8670 = vperm.xlu0 %8626, %v9824_v28   ;;  %18765 = vst [vmem:[#allocation20_spill] sm:$0xff] %v9994_v6 }
  0x28   : > { %18766 = vst [vmem:[#allocation21_spill] sm:$0xff] %v10003_v32 }
  0x2e   : > { %8602 = vperm.xlu2 %8575, %v9837_v36   ;;  %8597 = vperm.xlu1 %8564, %v9843_v37  }
  0x2f   : > { %8685 = vperm.xlu0 %8626, %v9837_v36  }
  0x36   : > { %8612 = vperm.xlu2 %8575, %v9854_v44   ;;  %8607 = vperm.xlu1 %8564, %v9860_v45  }
  0x37   : > { %8700 = vperm.xlu0 %8626, %v9854_v44  }
  0x3e   : > { %8622 = vperm.xlu2 %8575, %v9871_v52   ;;  %8617 = vperm.xlu1 %8564, %v9877_v53  }
  0x3f   : > { %8715 = vperm.xlu0 %8626, %v9871_v52  }
  0x46   : > { %8638 = vset.pattern.permute.xlu2 %v18233_v0  ;;  %8632 = vset.pattern.permute.xlu1 %v18233_v0 }
  0x47   : > { %8866 = vperm.xlu0 %8626, %v9802_v14   ;;  %8640 = vperm.xlu2 %8638, %v9802_v14  }
  0x48   : > { %8634 = vperm.xlu1 %8632, %v9883_v57  }
  0x4f   : > { %8891 = vperm.xlu0 %8626, %v9826_v29   ;;  %8650 = vperm.xlu2 %8638, %v9800_v13  }
  0x50   : > { %8645 = vperm.xlu1 %8632, %v9817_v21  }
  0x57   : > { %8906 = vperm.xlu0 %8626, %v9843_v37   ;;  %8665 = vperm.xlu2 %8638, %v9826_v29  }
  0x58   : > { %8660 = vperm.xlu1 %8632, %v9894_v61  }
  0x5f   : > { %8921 = vperm.xlu0 %8626, %v9860_v45   ;;  %8680 = vperm.xlu2 %8638, %v9843_v37  }
  0x60   : > { %8675 = vperm.xlu1 %8632, %v9904_v4  }
  0x67   : > { %8936 = vperm.xlu0 %8626, %v9877_v53   ;;  %8695 = vperm.xlu2 %8638, %v9860_v45  }
  0x68   : > { %8690 = vperm.xlu1 %8632, %v9916_v9  }
  0x6f   : > { %9097 = vperm.xlu0 %8626, %v9817_v21   ;;  %8710 = vperm.xlu2 %8638, %v9877_v53  }
  0x70   : > { %8705 = vperm.xlu1 %8632, %v9928_v19   ;;  %v8578_v22 = vpop.permute.xlu2 %8577 }
  0x71   : > { %v8580_v63 = vunpack.i.h.bf16 %v8578_v22  ;;  %v8579_v7 = vunpack.i.l.bf16 %v8578_v22 }
  0x73   : > { %v10019_v51 = vmul.f32 %v8580_v63, %v10003_v32  ;;  %v10022_v43 = vmul.f32 %v8579_v7, %v10003_v32 }
  0x77   : > { %9122 = vperm.xlu0 %8626, %v9824_v28   ;;  %8725 = vset.pattern.permute.xlu2 %v18235_v23 }
  0x78   : > { %8719 = vset.pattern.permute.xlu1 %v18235_v23  ;;  %v9936_v24 = vpop.permute.xlu2 %8582  ;;  %8727 = vperm.xlu2 %8725, %v9883_v57  }
  0x79   : > { %8721 = vperm.xlu1 %8719, %v9804_v15   ;;  %v8585_v33 = vunpack.i.h.bf16 %v9936_v24  ;;  %v8584_v3 = vunpack.i.l.bf16 %v9936_v24  ;;  %v10029_v24 = vpack.i.bf16 %v8257_v42, %v8254_v8 }
  0x7b   : > { %18767 = vst [vmem:[#allocation22_spill] sm:$0xff] %v10029_v24  ;;  %v437_v63 = vmul.f32 %v8585_v33, %v10003_v32  ;;  %v436_v5 = vmul.f32 %v8584_v3, %v10003_v32  ;;  %v8194_v3 = vld [vmem:[%s18226_s1 + $0x4] sm:$0x3] }
  0x7f   : > { %9137 = vperm.xlu0 %8626, %v9837_v36  }
  0x80   : > { %v9941_v25 = vpop.permute.xlu2 %8592  ;;  %8737 = vperm.xlu2 %8725, %v9800_v13  }
  0x81   : > { %8732 = vperm.xlu1 %8719, %v9817_v21   ;;  %v8595_v22 = vunpack.i.h.bf16 %v9941_v25  ;;  %v8594_v40 = vunpack.i.l.bf16 %v9941_v25 }
  0x83   : > { %v442_v42 = vmul.f32 %v8594_v40, %v10003_v32 }
  0x87   : > { %9152 = vperm.xlu0 %8626, %v9854_v44  }
  0x88   : > { %v9946_v26 = vpop.permute.xlu2 %8602  ;;  %v9948_v27 = vpop.permute.xlu1 %8566  ;;  %8747 = vperm.xlu2 %8725, %v9894_v61  }
  0x89   : > { %8742 = vperm.xlu1 %8719, %v9815_v20   ;;  %v9952_v30 = vpop.permute.xlu0 %8628  ;;  %v8605_v35 = vunpack.i.h.bf16 %v9946_v26  ;;  %v8604_v17 = vunpack.i.l.bf16 %v9946_v26  ;;  %v8569_v25 = vunpack.i.h.bf16 %v9948_v27  ;;  %v8568_v50 = vunpack.i.l.bf16 %v9948_v27  ;;  %v8193_v26 = vld [vmem:[%s18226_s1 + $0x2] sm:$0x3] }
  0x8a   : > { %v8631_v7 = vunpack.i.h.bf16 %v9952_v30  ;;  %v8630_v18 = vunpack.i.l.bf16 %v9952_v30 }
  0x8b   : > { %v10058_v40 = vmul.f32 %v8569_v25, %v10003_v32 }
  0x8c   : > { %v10071_v31 = vmul.f32 %v8630_v18, %v10016_v2 }
  0x8e   : > { %18769 = vst [vmem:[#allocation24_spill] sm:$0xff] %v10071_v31 }
  0x8f   : > { %9167 = vperm.xlu0 %8626, %v9871_v52  }
  0x90   : > { %v9957_v41 = vpop.permute.xlu2 %8612  ;;  %v9959_v46 = vpop.permute.xlu1 %8571  ;;  %8757 = vperm.xlu2 %8725, %v9904_v4  }
  0x91   : > { %8752 = vperm.xlu1 %8719, %v9824_v28   ;;  %v8656_v48 = vpop.permute.xlu0 %8655  ;;  %v8615_v8 = vunpack.i.h.bf16 %v9957_v41  ;;  %v8614_v27 = vunpack.i.l.bf16 %v9957_v41  ;;  %v8574_v33 = vunpack.i.h.bf16 %v9959_v46  ;;  %v8573_v30 = vunpack.i.l.bf16 %v9959_v46 }
  0x92   : > { %v8658_v0 = vunpack.i.h.bf16 %v8656_v48  ;;  %v8657_v23 = vunpack.i.l.bf16 %v8656_v48  ;;  %v10045_v48 = vmul.f32 %v8605_v35, %v10003_v32  ;;  %v10065_v46 = vmul.f32 %v8568_v50, %v10003_v32 }
  0x93   : > { %v10082_v50 = vmul.f32 %v8615_v8, %v10003_v32  ;;  %v10090_v11 = vmul.f32 %v8614_v27, %v10003_v32  ;;  %v18773_v8 = vunpack.c.h.bf16 %v9919_v10 }
  0x94   : > { %v654_v35 = vmul.f32 %v8658_v0, %v10016_v2  ;;  %v653_v41 = vmul.f32 %v8657_v23, %v10016_v2  ;;  %v10079_v0 = vunpack.c.l.bf16 %v8193_v26  ;;  %v10096_v26 = vmul.f32 %v8573_v30, %v10003_v32 }
  0x96   : > { %18771 = vst [vmem:[#allocation25_spill] sm:$0xff] %v10079_v0  ;;  %v10106_v31 = vadd.f32 %v653_v41, %v436_v5 }
  0x97   : > { %9255 = vperm.xlu0 %8626, %v9963_v49   ;;  %v18774_v49 = vunpack.c.l.bf16 %v9864_v47 }
  0x98   : > { %v9966_v54 = vpop.permute.xlu2 %8622  ;;  %v9968_v55 = vpop.permute.xlu1 %8587  ;;  %8767 = vperm.xlu2 %8725, %v9916_v9   ;;  %18777 = vst [vmem:[#allocation29_spill] sm:$0xff] %v10106_v31 }
  0x99   : > { %8762 = vperm.xlu1 %8719, %v9837_v36   ;;  %v9972_v56 = vpop.permute.xlu0 %8670  ;;  %v8624_v27 = vunpack.i.l.bf16 %v9966_v54  ;;  %v8590_v30 = vunpack.i.h.bf16 %v9968_v55  ;;  %v8589_v9 = vunpack.i.l.bf16 %v9968_v55 }
  0x9a   : > { %v8673_v23 = vunpack.i.h.bf16 %v9972_v56  ;;  %v8672_v18 = vunpack.i.l.bf16 %v9972_v56  ;;  %v10104_v56 = vadd.f32 %v654_v35, %v437_v63 }
  0x9b   : > { %v10139_v61 = vmul.f32 %v8590_v30, %v10003_v32 }
  0x9c   : > { %18776 = vst [vmem:[#allocation28_spill] sm:$0xff] %v10104_v56  ;;  %v660_v63 = vmul.f32 %v8673_v23, %v10016_v2  ;;  %v659_v5 = vmul.f32 %v8672_v18, %v10016_v2  ;;  %v10134_v23 = vmul.f32 %v8624_v27, %v10003_v32 }
  0x9e   : > { %v10153_v56 = vadd.f32 %v659_v5, %v442_v42 }
  0x9f   : > { %9343 = vperm.xlu0 %8626, %v9978_v58   ;;  %v10093_v58 = vmul.f32 %v8574_v33, %v10003_v32  ;;  %v10112_v33 = vld [vmem:[%s9785_s17 + $0x98] sm:$0xff]  }
  0xa0   : > { %v9981_v59 = vpop.permute.xlu1 %8597  ;;  %8777 = vperm.xlu2 %8725, %v9928_v19   ;;  %v8549_v19 = vld [vmem:[%s9785_s17 + $0x90] sm:$0xff]   ;;  %18778 = vst [vmem:[#allocation30_spill] sm:$0xff] %v10112_v33  ;;  %v8481_v47 = vunpack.c.l.bf16 %v10112_v33 }
  0xa1   : > { %8772 = vperm.xlu1 %8719, %v9854_v44   ;;  %v9985_v60 = vpop.permute.xlu0 %8685  ;;  %v9987_v62 = vpop.permute.xlu2 %8640  ;;  %v8478_v55 = vunpack.c.h.bf16 %v8549_v19  ;;  %v8599_v18 = vunpack.i.l.bf16 %v9981_v59 }
  0xa2   : > { %v8688_v10 = vunpack.i.h.bf16 %v9985_v60  ;;  %v8687_v35 = vunpack.i.l.bf16 %v9985_v60  ;;  %v8643_v41 = vunpack.i.h.bf16 %v9987_v62  ;;  %v8600_v60 = vunpack.i.h.bf16 %v9981_v59 }
  0xa3   : > { %v10169_v42 = vmul.f32 %v8599_v18, %v10003_v32 }
  0xa4   : > { %v666_v19 = vmul.f32 %v8688_v10, %v10016_v2  ;;  %v665_v59 = vmul.f32 %v8687_v35, %v10016_v2  ;;  %v648_v10 = vmul.f32 %v8643_v41, %v10016_v2 }
  0xa6   : > { %v10174_v5 = vadd.f32 %v666_v19, %v10045_v48  ;;  %v10189_v48 = vadd.f32 %v648_v10, %v10058_v40 }
  0xa7   : > { %9368 = vperm.xlu0 %8626, %v9994_v6  }
  0xa8   : > { %v9999_v12 = vpop.permute.xlu1 %8607  ;;  %8786 = vset.pattern.permute.xlu2 %v18239_v1  ;;  %v443_v1 = vmul.f32 %v8595_v22, %v10003_v32  ;;  %v10055_v22 = vmul.f32 %v8604_v17, %v10003_v32  ;;  %v18770_v17 = vmov 0   ;;  %18783 = vst [vmem:[#allocation35_spill] sm:$0xff] %v10189_v48 }
  0xa9   : > { %8782 = vperm.xlu1 %8719, %v9871_v52   ;;  %v10007_v38 = vpop.permute.xlu0 %8700  ;;  %v10009_v34 = vpop.permute.xlu2 %8650  ;;  %8788 = vperm.xlu2 %8786, %v9804_v15   ;;  %v8610_v35 = vunpack.i.h.bf16 %v9999_v12  ;;  %v8609_v41 = vunpack.i.l.bf16 %v9999_v12 }
  0xaa   : > { %v10151_v27 = vadd.f32 %v660_v63, %v443_v1  ;;  %v8702_v30 = vunpack.i.l.bf16 %v10007_v38  ;;  %v10166_v1 = vmul.f32 %v8600_v60, %v10003_v32  ;;  %v8652_v63 = vunpack.i.l.bf16 %v10009_v34 }
  0xab   : > { %v10202_v40 = vmul.f32 %v8609_v41, %v10003_v32 }
  0xaf   : > { %9383 = vperm.xlu0 %8626, %v10029_v24   ;;  %v10068_v24 = vmul.f32 %v8631_v7, %v10016_v2  ;;  %v10087_v7 = vunpack.c.l.bf16 %v8194_v3  ;;  %v8625_v3 = vunpack.i.h.bf16 %v9966_v54 }
  0xb0   : > { %v10062_v39 = vpop.permute.xlu1 %8617 }
  0xb1   : > { %18768 = vst [vmem:[#allocation23_spill] sm:$0xff] %v10068_v24  ;;  %8792 = vset.pattern.permute.xlu1 %v18770_v17  ;;  %v10074_v6 = vpop.permute.xlu0 %8715  ;;  %v10076_v25 = vpop.permute.xlu2 %8665  ;;  %8799 = vperm.xlu2 %8786, %v9817_v21   ;;  %v10102_v24 = vpack.i.bf16 %v18774_v49, %v18773_v8  ;;  %v10118_v49 = vperm.slane %v10079_v0, 1  ;;  %v10124_v54 = vperm.slane %v10087_v7, 1  ;;  %v8642_v8 = vunpack.i.l.bf16 %v9987_v62 }
  0xb2   : > { %8794 = vperm.xlu1 %8792, %v9802_v14   ;;  %18772 = vst [vmem:[#allocation26_spill] sm:$0xff] %v10087_v7  ;;  %v10131_v4 = vmul.f32 %v8625_v3, %v10003_v32  ;;  %v10142_v62 = vmul.f32 %v8589_v9, %v10003_v32  ;;  %v10163_v0 = vpack.i.bf16 %v8481_v47, %v8478_v55  ;;  %v8718_v60 = vunpack.i.h.bf16 %v10074_v6 }
  0xb3   : > { %18775 = vst [vmem:[#allocation27_spill] sm:$0xff] %v10102_v24  ;;  %v647_v31 = vmul.f32 %v8642_v8, %v10016_v2  ;;  %v10180_v8 = vadd.f32 %v665_v59, %v10055_v22  ;;  %v671_v55 = vmul.f32 %v8702_v30, %v10016_v2  ;;  %v8717_v18 = vunpack.i.l.bf16 %v10074_v6 }
  0xb4   : > { %18779 = vst [vmem:[#allocation31_spill] sm:$0xff] %v10118_v49  ;;  %v8668_v19 = vunpack.i.h.bf16 %v10076_v25  ;;  %v8667_v12 = vunpack.i.l.bf16 %v10076_v25  ;;  %v651_v22 = vmul.f32 %v8652_v63, %v10016_v2  ;;  %v8620_v25 = vunpack.i.h.bf16 %v10062_v39 }
  0xb5   : > { %18780 = vst [vmem:[#allocation32_spill] sm:$0xff] %v10124_v54  ;;  %v678_v63 = vmul.f32 %v8718_v60, %v10016_v2 }
  0xb6   : > { %18781 = vst [vmem:[#allocation33_spill] sm:$0xff] %v10163_v0 }
  0xb7   : > { %9398 = vperm.xlu0 %8626, %v10102_v24   ;;  %v8703_v24 = vunpack.i.h.bf16 %v10007_v38  ;;  %v8653_v38 = vunpack.i.h.bf16 %v10009_v34  ;;  %v10186_v34 = vadd.f32 %v647_v31, %v10065_v46  ;;  %v10199_v31 = vmul.f32 %v8610_v35, %v10003_v32 }
  0xb8   : > { %v677_v35 = vmul.f32 %v8717_v18, %v10016_v2  ;;  %v10235_v18 = vmul.f32 %v8620_v25, %v10003_v32 }
  0xb9   : > { %v10146_v17 = vpop.permute.xlu0 %8866  ;;  %v10148_v3 = vpop.permute.xlu2 %8680  ;;  %8809 = vperm.xlu2 %8786, %v9815_v20   ;;  %v672_v47 = vmul.f32 %v8703_v24, %v10016_v2  ;;  %18782 = vst [vmem:[#allocation34_spill] sm:$0xff] %v10186_v34  ;;  %v652_v24 = vmul.f32 %v8653_v38, %v10016_v2  ;;  %v10212_v38 = vadd.f32 %v671_v55, %v10090_v11 }
  0xba   : > { %v10157_v9 = vpop.permute.xlu1 %8634  ;;  %8804 = vperm.xlu1 %8792, %v9800_v13   ;;  %v8869_v59 = vunpack.i.h.bf16 %v10146_v17  ;;  %v8868_v6 = vunpack.i.l.bf16 %v10146_v17  ;;  %v8619_v17 = vunpack.i.l.bf16 %v10062_v39  ;;  %v8683_v7 = vunpack.i.h.bf16 %v10148_v3 }
  0xbb   : > { %v10205_v46 = vadd.f32 %v672_v47, %v10082_v50  ;;  %v658_v50 = vmul.f32 %v8668_v19, %v10016_v2  ;;  %v657_v47 = vmul.f32 %v8667_v12, %v10016_v2  ;;  %v8682_v33 = vunpack.i.l.bf16 %v10148_v3 }
  0xbc   : > { %v10223_v11 = vadd.f32 %v652_v24, %v10019_v51  ;;  %v10226_v39 = vadd.f32 %v651_v22, %v10022_v43  ;;  %v10229_v55 = vmul.f32 %v8869_v59, %v10118_v49  ;;  %v10232_v60 = vmul.f32 %v8868_v6, %v10118_v49 }
  0xbd   : > { %v10238_v19 = vmul.f32 %v8869_v59, %v10124_v54  ;;  %v8637_v3 = vunpack.i.h.bf16 %v10157_v9  ;;  %v8636_v51 = vunpack.i.l.bf16 %v10157_v9  ;;  %v10243_v12 = vmul.f32 %v8619_v17, %v10003_v32 }
  0xbe   : > { %18784 = vst [vmem:[#allocation36_spill] sm:$0xff] %v10229_v55  ;;  %v10246_v43 = vadd.f32 %v678_v63, %v10131_v4  ;;  %v10249_v24 = vadd.f32 %v677_v35, %v10134_v23  ;;  %v10252_v22 = vmul.f32 %v8868_v6, %v10124_v54  ;;  %v10255_v25 = vadd.f32 %v657_v47, %v10142_v62  ;;  %v8195_v62 = vld [vmem:[%s18226_s1 + $0x6] sm:$0x3] }
  0xbf   : > { %9413 = vperm.xlu0 %8626, %v10163_v0   ;;  %18785 = vst [vmem:[#allocation37_spill] sm:$0xff] %v10232_v60  ;;  %v10258_v59 = vadd.f32 %v658_v50, %v10139_v61  ;;  %v664_v9 = vmul.f32 %v8683_v7, %v10016_v2  ;;  %v663_v17 = vmul.f32 %v8682_v33, %v10016_v2  ;;  %v18790_v0 = vmov 2   ;;  %v8196_v61 = vld [vmem:[%s18226_s1 + $0x8] sm:$0x3] }
  0xc0   : > { %18786 = vst [vmem:[#allocation38_spill] sm:$0xff] %v10238_v19  ;;  %v10274_v33 = vmul.f32 %v8637_v3, %v10016_v2  ;;  %v10277_v6 = vmul.f32 %v8636_v51, %v10016_v2  ;;  %v10281_v47 = vperm.slane %v9996_v16, 2  ;;  %v18796_v16 = vrot.slane %v10229_v55, 1 }
  0xc1   : > { %v8892_v30 = vpop.permute.xlu0 %8891  ;;  %v10208_v10 = vpop.permute.xlu2 %8695  ;;  %8819 = vperm.xlu2 %8786, %v9824_v28   ;;  %18787 = vst [vmem:[#allocation39_spill] sm:$0xff] %v10252_v22  ;;  %v10288_v3 = vadd.f32 %v663_v17, %v10169_v42  ;;  %v18797_v23 = vrot.slane %v10232_v60, 1 }
  0xc2   : > { %v8646_v41 = vpop.permute.xlu1 %8645  ;;  %8814 = vperm.xlu1 %8792, %v9826_v29   ;;  %18788 = vst [vmem:[#allocation40_spill] sm:$0xff] %v10255_v25  ;;  %v8894_v63 = vunpack.i.h.bf16 %v8892_v30  ;;  %v8893_v35 = vunpack.i.l.bf16 %v8892_v30  ;;  %v8698_v4 = vunpack.i.h.bf16 %v10208_v10  ;;  %v8697_v32 = vunpack.i.l.bf16 %v10208_v10 }
  0xc3   : > { %18789 = vst [vmem:[#allocation41_spill] sm:$0xff] %v10258_v59  ;;  %v8648_v7 = vunpack.i.h.bf16 %v8646_v41  ;;  %v8647_v51 = vunpack.i.l.bf16 %v8646_v41  ;;  %v10299_v59 = vsel %vm1269_vm0, %v18797_v23, %v18796_v16  ;;  %v10302_v10 = vadd.f32 %v664_v9, %v10166_v1 }
  0xc4   : > { %18791 = vst [vmem:[#allocation42_spill] sm:$0xff] %v10274_v33  ;;  %v10292_v33 = vunpack.c.l.bf16 %v8196_v61  ;;  %v10305_v34 = vmul.f32 %v8894_v63, %v10118_v49  ;;  %v10308_v42 = vmul.f32 %v8893_v35, %v10118_v49  ;;  %v10311_v41 = vmul.f32 %v8894_v63, %v10124_v54 }
  0xc5   : > { %18792 = vst [vmem:[#allocation43_spill] sm:$0xff] %v10277_v6  ;;  %v10290_v6 = vunpack.c.l.bf16 %v8195_v62  ;;  %v10314_v17 = vmul.f32 %v8893_v35, %v10124_v54  ;;  %v18804_v23 = vrot.slane %v10238_v19, 2  ;;  %v18805_v16 = vrot.slane %v10252_v22, 2  ;;  %v8197_v19 = vld [vmem:[%s18226_s1 + $0xa] sm:$0x3] }
  0xc6   : > { %18793 = vst [vmem:[#allocation44_spill] sm:$0xff] %v10288_v3  ;;  %v670_v9 = vmul.f32 %v8698_v4, %v10016_v2  ;;  %v669_v55 = vmul.f32 %v8697_v32, %v10016_v2  ;;  %v649_v63 = vmul.f32 %v8647_v51, %v10016_v2  ;;  %v10358_v3 = vunpack.c.l.bf16 %v8197_v19 }
  0xc7   : > { %9417 = vset.pattern.permute.xlu0 %v18790_v0  ;;  %18794 = vst [vmem:[#allocation45_spill] sm:$0xff] %v10290_v6  ;;  %v10321_v1 = vsel %vm2236_vm1, %v18805_v16, %v18804_v23  ;;  %v10328_v35 = vperm.slane %v10290_v6, 1 }
  0xc8   : > { %9419 = vperm.xlu0 %9417, %v9802_v14   ;;  %18795 = vst [vmem:[#allocation46_spill] sm:$0xff] %v10292_v33  ;;  %v10349_v23 = vadd.f32 %v669_v55, %v10202_v40  ;;  %v10361_v22 = vadd.f32 %v649_v63, %v10096_v26  ;;  %v18820_v63 = vrot.slane %v10314_v17, 2 }
  0xc9   : > { %v8907_v50 = vpop.permute.xlu0 %8906  ;;  %v8711_v30 = vpop.permute.xlu2 %8710  ;;  %8829 = vperm.xlu2 %8786, %v9837_v36   ;;  %18798 = vst [vmem:[#allocation47_spill] sm:$0xff] %v10299_v59 }
  0xca   : > { %v8661_v25 = vpop.permute.xlu1 %8660  ;;  %8824 = vperm.xlu1 %8792, %v9843_v37   ;;  %18799 = vst [vmem:[#allocation48_spill] sm:$0xff] %v10302_v10  ;;  %v8909_v62 = vunpack.i.h.bf16 %v8907_v50  ;;  %v8908_v61 = vunpack.i.l.bf16 %v8907_v50  ;;  %v650_v10 = vmul.f32 %v8648_v7, %v10016_v2  ;;  %v10331_v50 = vperm.slane %v10292_v33, 1 }
  0xcb   : > { %18800 = vst [vmem:[#allocation49_spill] sm:$0xff] %v10305_v34  ;;  %v8713_v16 = vunpack.i.h.bf16 %v8711_v30  ;;  %v8712_v32 = vunpack.i.l.bf16 %v8711_v30  ;;  %v10352_v30 = vadd.f32 %v670_v9, %v10199_v31  ;;  %v8663_v40 = vunpack.i.h.bf16 %v8661_v25 }
  0xcc   : > { %18801 = vst [vmem:[#allocation50_spill] sm:$0xff] %v10308_v42  ;;  %v10342_v6 = vmul.f32 %v8909_v62, %v10118_v49  ;;  %v10345_v33 = vmul.f32 %v8908_v61, %v10118_v49  ;;  %v10355_v4 = vadd.f32 %v650_v10, %v10093_v58  ;;  %v10364_v60 = vmul.f32 %v8909_v62, %v10124_v54 }
  0xcd   : > { %18802 = vst [vmem:[#allocation51_spill] sm:$0xff] %v10311_v41  ;;  %v8662_v55 = vunpack.i.l.bf16 %v8661_v25  ;;  %v18815_v31 = vrot.slane %v10305_v34, 1  ;;  %v18816_v9 = vrot.slane %v10308_v42, 1  ;;  %v10374_v10 = vmul.f32 %v8908_v61, %v10124_v54 }
  0xce   : > { %18803 = vst [vmem:[#allocation52_spill] sm:$0xff] %v10314_v17  ;;  %v676_v19 = vmul.f32 %v8713_v16, %v10016_v2  ;;  %v675_v26 = vmul.f32 %v8712_v32, %v10016_v2  ;;  %v18819_v62 = vrot.slane %v10311_v41, 2  ;;  %v10388_v61 = vperm.slane %v10358_v3, 1 }
  0xcf   : > { %18806 = vst [vmem:[#allocation53_spill] sm:$0xff] %v10321_v1  ;;  %v10371_v58 = vsel %vm1269_vm0, %v18816_v9, %v18815_v31  ;;  %v10392_v42 = vmul.f32 %v8663_v40, %v10016_v2  ;;  %v10395_v32 = vmul.f32 %v8662_v55, %v10016_v2  ;;  %v18827_v16 = vrot.slane %v10342_v6, 1 }
  0xd0   : > { %18807 = vst [vmem:[#allocation54_spill] sm:$0xff] %v10328_v35  ;;  %9424 = vperm.xlu0 %9417, %v9826_v29   ;;  %v10383_v25 = vsel %vm2236_vm1, %v18820_v63, %v18819_v62  ;;  %v10399_v63 = vadd.f32 %v675_v26, %v10243_v12  ;;  %v10402_v31 = vadd.f32 %v676_v19, %v10235_v18  ;;  %v18828_v40 = vrot.slane %v10345_v33, 1 }
  0xd1   : > { %18808 = vst [vmem:[#allocation55_spill] sm:$0xff] %v10331_v50  ;;  %v8922_v1 = vpop.permute.xlu0 %8921  ;;  %8839 = vperm.xlu2 %8786, %v9854_v44  }
  0xd2   : > { %18809 = vst [vmem:[#allocation56_spill] sm:$0xff] %v10342_v6  ;;  %v8676_v7 = vpop.permute.xlu1 %8675  ;;  %8834 = vperm.xlu1 %8792, %v9860_v45   ;;  %v8728_v51 = vpop.permute.xlu2 %8727  ;;  %v8924_v9 = vunpack.i.h.bf16 %v8922_v1  ;;  %v8923_v41 = vunpack.i.l.bf16 %v8922_v1  ;;  %v10411_v55 = vsel %vm1269_vm0, %v18828_v40, %v18827_v16 }
  0xd3   : > { %18810 = vst [vmem:[#allocation57_spill] sm:$0xff] %v10345_v33  ;;  %v8678_v34 = vunpack.i.h.bf16 %v8676_v7  ;;  %v8677_v1 = vunpack.i.l.bf16 %v8676_v7  ;;  %v8729_v62 = vunpack.i.l.bf16 %v8728_v51 }
  0xd4   : > { %18811 = vst [vmem:[#allocation58_spill] sm:$0xff] %v10349_v23  ;;  %v10415_v18 = vmul.f32 %v8924_v9, %v10118_v49  ;;  %v10418_v12 = vmul.f32 %v8924_v9, %v10124_v54  ;;  %v10422_v7 = vmul.f32 %v8923_v41, %v10118_v49  ;;  %v18835_v9 = vrot.slane %v10374_v10, 2 }
  0xd5   : > { %18812 = vst [vmem:[#allocation59_spill] sm:$0xff] %v10352_v30  ;;  %v10438_v17 = vmul.f32 %v8677_v1, %v10016_v2  ;;  %v18845_v1 = vmov 1  }
  0xd6   : > { %18813 = vst [vmem:[#allocation60_spill] sm:$0xff] %v10358_v3  ;;  %v8505_v3 = vld [vmem:[%s9785_s17 + $0x30] sm:$0xff]  }
  0xd7   : > { %18814 = vst [vmem:[#allocation61_spill] sm:$0xff] %v10364_v60  ;;  %v8301_v16 = vunpack.c.l.bf16 %v8505_v3  ;;  %v8302_v40 = vunpack.c.h.bf16 %v8505_v3 }
  0xd8   : > { %18817 = vst [vmem:[#allocation62_spill] sm:$0xff] %v10371_v58  ;;  %9429 = vperm.xlu0 %9417, %v9843_v37  }
  0xd9   : > { %18818 = vst [vmem:[#allocation63_spill] sm:$0xff] %v10374_v10  ;;  %8849 = vperm.xlu2 %8786, %v9871_v52  }
  0xda   : > { %18821 = vst [vmem:[#allocation64_spill] sm:$0xff] %v10383_v25  ;;  %v8691_v25 = vpop.permute.xlu1 %8690  ;;  %8844 = vperm.xlu1 %8792, %v9877_v53   ;;  %v8738_v6 = vpop.permute.xlu2 %8737 }
  0xdb   : > { %18822 = vst [vmem:[#allocation65_spill] sm:$0xff] %v10388_v61  ;;  %v8740_v33 = vunpack.i.h.bf16 %v8738_v6  ;;  %v8739_v3 = vunpack.i.l.bf16 %v8738_v6  ;;  %v8692_v10 = vunpack.i.l.bf16 %v8691_v25 }
  0xdc   : > { %18823 = vst [vmem:[#allocation66_spill] sm:$0xff] %v10392_v42  ;;  %v8937_v42 = vpop.permute.xlu0 %8936 }
  0xdd   : > { %18824 = vst [vmem:[#allocation67_spill] sm:$0xff] %v10395_v32  ;;  %v8730_v32 = vunpack.i.h.bf16 %v8728_v51  ;;  %v8939_v19 = vunpack.i.h.bf16 %v8937_v42  ;;  %v8938_v26 = vunpack.i.l.bf16 %v8937_v42  ;;  %v10425_v51 = vmul.f32 %v8923_v41, %v10124_v54 }
  0xde   : > { %18825 = vst [vmem:[#allocation68_spill] sm:$0xff] %v10399_v63  ;;  %v10435_v42 = vmul.f32 %v8678_v34, %v10016_v2  ;;  %v10444_v41 = vmul.f32 %v8729_v62, %v10281_v47 }
  0xdf   : > { %18826 = vst [vmem:[#allocation69_spill] sm:$0xff] %v10402_v31  ;;  %v18834_v31 = vrot.slane %v10364_v60, 2  ;;  %v10441_v23 = vmul.f32 %v8730_v32, %v10281_v47  ;;  %v10452_v34 = vmul.f32 %v8938_v26, %v10118_v49  ;;  %v10460_v6 = vmul.f32 %v8939_v19, %v10124_v54 }
  0xe0   : > { %18829 = vst [vmem:[#allocation70_spill] sm:$0xff] %v10411_v55  ;;  %v10463_v62 = vmul.f32 %v8938_v26, %v10124_v54  ;;  %v869_v60 = vmul.f32 %v8740_v33, %v10281_v47  ;;  %9434 = vperm.xlu0 %9417, %v9860_v45  }
  0xe1   : > { %18830 = vst [vmem:[#allocation71_spill] sm:$0xff] %v10415_v18  ;;  %v10432_v63 = vsel %vm2236_vm1, %v18835_v9, %v18834_v31  ;;  %v10449_v31 = vmul.f32 %v8939_v19, %v10118_v49  ;;  %v8508_v9 = vld [vmem:[%s9785_s17 + $0x48] sm:$0xff]   ;;  %8859 = vset.pattern.permute.xlu2 %v18845_v1 }
  0xe2   : > { %18831 = vst [vmem:[#allocation72_spill] sm:$0xff] %v10418_v12  ;;  %v8313_v32 = vunpack.c.l.bf16 %v8508_v9  ;;  %v8706_v26 = vpop.permute.xlu1 %8705  ;;  %8853 = vset.pattern.permute.xlu1 %v18845_v1  ;;  %8861 = vperm.xlu2 %8859, %v9883_v57   ;;  %v8748_v33 = vpop.permute.xlu2 %8747 }
  0xe3   : > { %18832 = vst [vmem:[#allocation73_spill] sm:$0xff] %v10422_v7  ;;  %8855 = vperm.xlu1 %8853, %v9804_v15   ;;  %v18857_v1 = vrot.slane %v10449_v31, 1 }
  0xe4   : > { %18833 = vst [vmem:[#allocation74_spill] sm:$0xff] %v10425_v51 }
  0xe5   : > { %18836 = vst [vmem:[#allocation75_spill] sm:$0xff] %v10432_v63  ;;  %v8314_v63 = vunpack.c.h.bf16 %v8508_v9  ;;  %v18849_v9 = vrot.slane %v10418_v12, 2  ;;  %v8749_v12 = vunpack.i.l.bf16 %v8748_v33 }
  0xe6   : > { %18837 = vst [vmem:[#allocation76_spill] sm:$0xff] %v10435_v42  ;;  %v10457_v42 = vpack.i.bf16 %v8302_v40, %v8301_v16  ;;  %v18850_v16 = vrot.slane %v10425_v51, 2 }
  0xe7   : > { %18838 = vst [vmem:[#allocation77_spill] sm:$0xff] %v10438_v17  ;;  %v8693_v17 = vunpack.i.h.bf16 %v8691_v25  ;;  %v18846_v25 = vrot.slane %v10415_v18, 1 }
  0xe8   : > { %18839 = vst [vmem:[#allocation78_spill] sm:$0xff] %v10441_v23  ;;  %v9098_v23 = vpop.permute.xlu0 %9097  ;;  %v10485_v19 = vsel %vm2236_vm1, %v18850_v16, %v18849_v9  ;;  %9439 = vperm.xlu0 %9417, %v9877_v53  }
  0xe9   : > { %18840 = vst [vmem:[#allocation79_spill] sm:$0xff] %v10444_v41  ;;  %v868_v41 = vmul.f32 %v8739_v3, %v10281_v47  ;;  %v9100_v40 = vunpack.i.h.bf16 %v9098_v23  ;;  %v9099_v30 = vunpack.i.l.bf16 %v9098_v23  ;;  %v18847_v3 = vrot.slane %v10422_v7, 1 }
  0xea   : > { %18841 = vst [vmem:[#allocation80_spill] sm:$0xff] %v10449_v31  ;;  %v10488_v23 = vmul.f32 %v8693_v17, %v10016_v2  ;;  %v8750_v31 = vunpack.i.h.bf16 %v8748_v33  ;;  %8876 = vperm.xlu2 %8859, %v9800_v13  }
  0xeb   : > { %18842 = vst [vmem:[#allocation81_spill] sm:$0xff] %v10452_v34  ;;  %v10478_v55 = vsel %vm1269_vm0, %v18847_v3, %v18846_v25  ;;  %v10494_v25 = vmul.f32 %v8692_v10, %v10016_v2  ;;  %v10497_v3 = vadd.f32 %v869_v60, %v10223_v11  ;;  %v10500_v16 = vadd.f32 %v868_v41, %v10226_v39  ;;  %v8511_v60 = vld [vmem:[%s9785_s17 + $0x60] sm:$0xff]  }
  0xec   : > { %18843 = vst [vmem:[#allocation82_spill] sm:$0xff] %v10460_v6  ;;  %v10503_v17 = vmul.f32 %v9100_v40, %v10328_v35  ;;  %v10506_v9 = vmul.f32 %v9099_v30, %v10328_v35  ;;  %v18858_v10 = vrot.slane %v10452_v34, 1  ;;  %v10518_v11 = vmul.f32 %v9100_v40, %v10331_v50  ;;  %8871 = vperm.xlu1 %8853, %v9817_v21  }
  0xed   : > { %18844 = vst [vmem:[#allocation83_spill] sm:$0xff] %v10463_v62  ;;  %v10521_v39 = vmul.f32 %v9099_v30, %v10331_v50  ;;  %v10525_v41 = vmul.f32 %v9100_v40, %v10388_v61  ;;  %v8326_v51 = vunpack.c.h.bf16 %v8511_v60 }
  0xee   : > { %18848 = vst [vmem:[#allocation84_spill] sm:$0xff] %v10478_v55  ;;  %v10515_v18 = vsel %vm1269_vm0, %v18858_v10, %v18857_v1  ;;  %v18865_v1 = vrot.slane %v10463_v62, 2 }
  0xef   : > { %18851 = vst [vmem:[#allocation85_spill] sm:$0xff] %v10485_v19  ;;  %v18864_v19 = vrot.slane %v10460_v6, 2  ;;  %v10553_v6 = vmul.f32 %v8750_v31, %v10281_v47 }
  0xf0   : > { %18852 = vst [vmem:[#allocation86_spill] sm:$0xff] %v10488_v23  ;;  %v10508_v23 = vpack.i.bf16 %v8314_v63, %v8313_v32  ;;  %v10528_v63 = vmul.f32 %v9099_v30, %v10388_v61  ;;  %v8708_v32 = vunpack.i.h.bf16 %v8706_v26  ;;  %v8325_v30 = vunpack.c.l.bf16 %v8511_v60  ;;  %v8722_v60 = vpop.permute.xlu1 %8721  ;;  %9444 = vperm.xlu0 %9417, %v9804_v15  }
  0xf1   : > { %18853 = vst [vmem:[#allocation87_spill] sm:$0xff] %v10494_v25  ;;  %v8707_v25 = vunpack.i.l.bf16 %v8706_v26  ;;  %v10535_v10 = vsel %vm2236_vm1, %v18865_v1, %v18864_v19  ;;  %v8758_v19 = vpop.permute.xlu2 %8757  ;;  %v8723_v15 = vunpack.i.l.bf16 %v8722_v60 }
  0xf2   : > { %18854 = vst [vmem:[#allocation88_spill] sm:$0xff] %v10503_v17  ;;  %v10546_v34 = vmul.f32 %v8708_v32, %v10016_v2  ;;  %v18873_v32 = vrot.slane %v10503_v17, 2  ;;  %v18884_v17 = vrot.slane %v10525_v41, 4  ;;  %8886 = vperm.xlu2 %8859, %v10457_v42  }
  0xf3   : > { %18855 = vst [vmem:[#allocation89_spill] sm:$0xff] %v10506_v9  ;;  %v10549_v40 = vmul.f32 %v8707_v25, %v10016_v2  ;;  %v18874_v2 = vrot.slane %v10506_v9, 2  ;;  %v18887_v9 = vld [vmem:[#allocation25_spill] sm:$0xff] }
  0xf4   : > { %18856 = vst [vmem:[#allocation90_spill] sm:$0xff] %v10508_v23  ;;  %8881 = vperm.xlu1 %8853, %v9815_v20  }
  0xf5   : > { %18859 = vst [vmem:[#allocation91_spill] sm:$0xff] %v10515_v18  ;;  %v9123_v18 = vpop.permute.xlu0 %9122  ;;  %v10569_v25 = vsel %vm2236_vm1, %v18874_v2, %v18873_v32 }
  0xf6   : > { %18860 = vst [vmem:[#allocation92_spill] sm:$0xff] %v10518_v11  ;;  %v9125_v7 = vunpack.i.h.bf16 %v9123_v18  ;;  %v9124_v62 = vunpack.i.l.bf16 %v9123_v18  ;;  %v10556_v18 = vmul.f32 %v8749_v12, %v10281_v47 }
  0xf7   : > { %18861 = vst [vmem:[#allocation93_spill] sm:$0xff] %v10521_v39 }
  0xf8   : > { %18862 = vst [vmem:[#allocation94_spill] sm:$0xff] %v10525_v41  ;;  %v10559_v26 = vmul.f32 %v9125_v7, %v10328_v35  ;;  %v10562_v1 = vmul.f32 %v9124_v62, %v10328_v35  ;;  %v10572_v33 = vmul.f32 %v9125_v7, %v10331_v50  ;;  %v10575_v31 = vmul.f32 %v9125_v7, %v10388_v61 }
  0xf9   : > { %18863 = vst [vmem:[#allocation95_spill] sm:$0xff] %v10528_v63  ;;  %v10578_v12 = vmul.f32 %v9124_v62, %v10331_v50  ;;  %v10591_v2 = vmul.f32 %v9124_v62, %v10388_v61  ;;  %v10593_v7 = vpack.i.bf16 %v8326_v51, %v8325_v30  ;;  %v8724_v51 = vunpack.i.h.bf16 %v8722_v60  ;;  %9449 = vperm.xlu0 %9417, %v9815_v20  }
  0xfa   : > { %18866 = vst [vmem:[#allocation96_spill] sm:$0xff] %v10535_v10  ;;  %v18899_v60 = vrot.slane %v10572_v33, 3  ;;  %8901 = vperm.xlu2 %8859, %v10508_v23  }
  0xfb   : > { %18867 = vst [vmem:[#allocation97_spill] sm:$0xff] %v10546_v34  ;;  %v18879_v34 = vrot.slane %v10518_v11, 3 }
  0xfc   : > { %18868 = vst [vmem:[#allocation98_spill] sm:$0xff] %v10549_v40  ;;  %v8198_v40 = vld [vmem:[%s18226_s1 + $0xc] sm:$0x3]  ;;  %8896 = vperm.xlu1 %8853, %v9824_v28  }
  0xfd   : > { %18869 = vst [vmem:[#allocation99_spill] sm:$0xff] %v10553_v6  ;;  %v18885_v6 = vrot.slane %v10528_v63, 4  ;;  %v10614_v41 = vunpack.c.l.bf16 %v8198_v40  ;;  %v8514_v63 = vld [vmem:[%s9785_s17 + $0x78] sm:$0xff]   ;;  %v9138_v10 = vpop.permute.xlu0 %9137 }
  0xfe   : > { %18870 = vst [vmem:[#allocation100_spill] sm:$0xff] %v10556_v18  ;;  %v18880_v18 = vrot.slane %v10521_v39, 3  ;;  %v8760_v39 = vunpack.i.h.bf16 %v8758_v19  ;;  %v9140_v55 = vunpack.i.h.bf16 %v9138_v10  ;;  %v9139_v30 = vunpack.i.l.bf16 %v9138_v10 }
  0xff   : > { %18871 = vst [vmem:[#allocation101_spill] sm:$0xff] %v10559_v26  ;;  %v10603_v11 = vsel %vm4812_vm3, %v18885_v6, %v18884_v17  ;;  %v8733_v17 = vpop.permute.xlu1 %8732  ;;  %v8337_v6 = vunpack.c.l.bf16 %v8514_v63  ;;  %v10639_v58 = vperm.slane %v10614_v41, 1 }
 0x100   : > { %18872 = vst [vmem:[#allocation102_spill] sm:$0xff] %v10562_v1  ;;  %v10588_v32 = vsel %vm4133_vm2, %v18880_v18, %v18879_v34  ;;  %v10606_v34 = vperm.slane %v18887_v9, 0  ;;  %v18889_v18 = vld [vmem:[#allocation26_spill] sm:$0xff]  ;;  %v10625_v40 = vmul.f32 %v8760_v39, %v10281_v47  ;;  %v8338_v39 = vunpack.c.h.bf16 %v8514_v63 }
 0x101   : > { %18875 = vst [vmem:[#allocation103_spill] sm:$0xff] %v10569_v25  ;;  %v8199_v25 = vld [vmem:[%s18226_s1 + $0xe] sm:$0x3]  ;;  %v10609_v62 = vperm.slane %v18889_v18, 0  ;;  %v18906_v63 = vrot.slane %v10591_v2, 4  ;;  %9454 = vperm.xlu0 %9417, %v9824_v28  }
 0x102   : > { %18876 = vst [vmem:[#allocation104_spill] sm:$0xff] %v10572_v33  ;;  %v10620_v9 = vunpack.c.l.bf16 %v8199_v25  ;;  %v18895_v25 = vrot.slane %v10562_v1, 2  ;;  %v10665_v33 = vmul.f32 %v8724_v51, %v10281_v47  ;;  %v10683_v51 = vmul.f32 %v9139_v30, %v10388_v61  ;;  %8916 = vperm.xlu2 %8859, %v10593_v7  }
 0x103   : > { %18877 = vst [vmem:[#allocation105_spill] sm:$0xff] %v10575_v31 }
 0x104   : > { %18878 = vst [vmem:[#allocation106_spill] sm:$0xff] %v10578_v12  ;;  %8911 = vperm.xlu1 %8853, %v9837_v36  }
 0x105   : > { %18881 = vst [vmem:[#allocation107_spill] sm:$0xff] %v10588_v32  ;;  %v8759_v32 = vunpack.i.l.bf16 %v8758_v19  ;;  %v8768_v19 = vpop.permute.xlu2 %8767 }
 0x106   : > { %18882 = vst [vmem:[#allocation108_spill] sm:$0xff] %v10591_v2  ;;  %v10686_v2 = vpack.i.bf16 %v8338_v39, %v8337_v6 }
 0x107   : > { %18883 = vst [vmem:[#allocation109_spill] sm:$0xff] %v10593_v7  ;;  %v10636_v10 = vmul.f32 %v8759_v32, %v10281_v47  ;;  %v10655_v32 = vperm.slane %v10620_v9, 1 }
 0x108   : > { %18886 = vst [vmem:[#allocation110_spill] sm:$0xff] %v10603_v11  ;;  %v18894_v11 = vrot.slane %v10559_v26, 2  ;;  %v10649_v26 = vmul.f32 %v9140_v55, %v10328_v35 }
 0x109   : > { %18888 = vst [vmem:[#allocation111_spill] sm:$0xff] %v10606_v34  ;;  %9459 = vperm.xlu0 %9417, %v9837_v36  }
 0x10a   : > { %18890 = vst [vmem:[#allocation112_spill] sm:$0xff] %v10609_v62  ;;  %v10633_v18 = vsel %vm2236_vm1, %v18895_v25, %v18894_v11  ;;  %v10652_v11 = vmul.f32 %v9140_v55, %v10331_v50  ;;  %v18905_v25 = vrot.slane %v10575_v31, 4  ;;  %v10677_v31 = vmul.f32 %v8723_v15, %v10281_v47  ;;  %v9153_v15 = vpop.permute.xlu0 %9152  ;;  %8931 = vperm.xlu2 %8859, %v10686_v2  }
 0x10b   : > { %18891 = vst [vmem:[#allocation113_spill] sm:$0xff] %v10614_v41  ;;  %v18921_v41 = vrot.slane %v10649_v26, 2 }
 0x10c   : > { %18892 = vst [vmem:[#allocation114_spill] sm:$0xff] %v10620_v9  ;;  %v9155_v9 = vunpack.i.h.bf16 %v9153_v15  ;;  %v18924_v59 = vrot.slane %v10652_v11, 3  ;;  %8926 = vperm.xlu1 %8853, %v9854_v44  }
 0x10d   : > { %18893 = vst [vmem:[#allocation115_spill] sm:$0xff] %v10625_v40  ;;  %v18900_v40 = vrot.slane %v10578_v12, 3  ;;  %v8778_v20 = vpop.permute.xlu2 %8777 }
 0x10e   : > { %18896 = vst [vmem:[#allocation116_spill] sm:$0xff] %v10633_v18  ;;  %v10662_v18 = vsel %vm4812_vm3, %v18906_v63, %v18905_v25  ;;  %v8770_v25 = vunpack.i.h.bf16 %v8768_v19  ;;  %v8769_v63 = vunpack.i.l.bf16 %v8768_v19  ;;  %v10706_v1 = vmul.f32 %v9155_v9, %v10328_v35 }
 0x10f   : > { %18897 = vst [vmem:[#allocation117_spill] sm:$0xff] %v10636_v10  ;;  %v10646_v53 = vsel %vm4133_vm2, %v18900_v40, %v18899_v60  ;;  %v10668_v40 = vmul.f32 %v9139_v30, %v10328_v35  ;;  %v10671_v60 = vmul.f32 %v9139_v30, %v10331_v50  ;;  %v10680_v10 = vmul.f32 %v9140_v55, %v10388_v61 }
 0x110   : > { %18898 = vst [vmem:[#allocation118_spill] sm:$0xff] %v10639_v58  ;;  %v9154_v30 = vunpack.i.l.bf16 %v9153_v15  ;;  %v10697_v39 = vmul.f32 %v8770_v25, %v10281_v47  ;;  %v10713_v25 = vmul.f32 %v9155_v9, %v10331_v50  ;;  %v8779_v12 = vunpack.i.l.bf16 %v8778_v20 }
 0x111   : > { %18901 = vst [vmem:[#allocation119_spill] sm:$0xff] %v10646_v53  ;;  %v8200_v53 = vld [vmem:[%s18226_s1 + $0x10] sm:$0x3]  ;;  %v18922_v19 = vrot.slane %v10668_v40, 2  ;;  %v18925_v54 = vrot.slane %v10671_v60, 3  ;;  %v10732_v49 = vmul.f32 %v9155_v9, %v10388_v61  ;;  %9464 = vperm.xlu0 %9417, %v9854_v44  }
 0x112   : > { %18902 = vst [vmem:[#allocation120_spill] sm:$0xff] %v10649_v26  ;;  %v10709_v55 = vmul.f32 %v9154_v30, %v10328_v35 }
 0x113   : > { %18903 = vst [vmem:[#allocation121_spill] sm:$0xff] %v10652_v11 }
 0x114   : > { %18904 = vst [vmem:[#allocation122_spill] sm:$0xff] %v10655_v32  ;;  %8941 = vperm.xlu1 %8853, %v9871_v52  }
 0x115   : > { %18907 = vst [vmem:[#allocation123_spill] sm:$0xff] %v10662_v18  ;;  %v8735_v18 = vunpack.i.h.bf16 %v8733_v17 }
 0x116   : > { %18908 = vst [vmem:[#allocation124_spill] sm:$0xff] %v10665_v33  ;;  %v8734_v33 = vunpack.i.l.bf16 %v8733_v17  ;;  %v10700_v17 = vmul.f32 %v8769_v63, %v10281_v47  ;;  %v8780_v63 = vunpack.i.h.bf16 %v8778_v20 }
 0x117   : > { %18909 = vst [vmem:[#allocation125_spill] sm:$0xff] %v10668_v40  ;;  %v867_v15 = vmul.f32 %v8735_v18, %v10281_v47  ;;  %v10722_v18 = vsel %vm2236_vm1, %v18922_v19, %v18921_v41  ;;  %v10740_v41 = vmul.f32 %v9154_v30, %v10331_v50  ;;  %v10743_v19 = vmul.f32 %v9154_v30, %v10388_v61  ;;  %v8789_v30 = vpop.permute.xlu2 %8788 }
 0x118   : > { %18910 = vst [vmem:[#allocation126_spill] sm:$0xff] %v10671_v60  ;;  %v866_v6 = vmul.f32 %v8734_v33, %v10281_v47  ;;  %v10729_v33 = vsel %vm4133_vm2, %v18925_v54, %v18924_v59  ;;  %v18932_v54 = vrot.slane %v10683_v51, 4  ;;  %v10761_v11 = vmul.f32 %v8780_v63, %v10281_v47 }
 0x119   : > { %18911 = vst [vmem:[#allocation127_spill] sm:$0xff] %v10677_v31  ;;  %v10690_v31 = vunpack.c.l.bf16 %v8200_v53  ;;  %v8743_v53 = vpop.permute.xlu1 %8742  ;;  %v10753_v9 = vadd.f32 %v867_v15, %v10355_v4  ;;  %v8791_v28 = vunpack.i.h.bf16 %v8789_v30  ;;  %9469 = vperm.xlu0 %9417, %v9871_v52  }
 0x11a   : > { %18912 = vst [vmem:[#allocation128_spill] sm:$0xff] %v10680_v10  ;;  %v8744_v4 = vunpack.i.l.bf16 %v8743_v53 }
 0x11b   : > { %18913 = vst [vmem:[#allocation129_spill] sm:$0xff] %v10683_v51  ;;  %v10735_v20 = vperm.slane %v10690_v31, 1 }
 0x11c   : > { %18914 = vst [vmem:[#allocation130_spill] sm:$0xff] %v10686_v2  ;;  %v870_v51 = vmul.f32 %v8744_v4, %v10281_v47  ;;  %8950 = vset.pattern.permute.xlu1 %v18790_v0 }
 0x11d   : > { %18915 = vst [vmem:[#allocation131_spill] sm:$0xff] %v10690_v31  ;;  %v18950_v31 = vrot.slane %v10743_v19, 4  ;;  %8952 = vperm.xlu1 %8950, %v9883_v57  }
 0x11e   : > { %18916 = vst [vmem:[#allocation132_spill] sm:$0xff] %v10697_v39  ;;  %v2151_v39 = vld [vmem:[%s9785_s17] sm:$0xe] }
 0x11f   : > { %18917 = vst [vmem:[#allocation133_spill] sm:$0xff] %v10700_v17  ;;  %v968_v17 = vld [vmem:[%s9785_s17 + $0x90] sm:$0x1]  ;;  %v2155_v40 = vunpack.c.l.bf16 %v2151_v39  ;;  %v18937_v39 = vrot.slane %v10709_v55, 2 }
 0x120   : > { %18918 = vst [vmem:[#allocation134_spill] sm:$0xff] %v10706_v1  ;;  %v1008_v26 = vunpack.c.l.bf16 %v968_v17 }
 0x121   : > { %18919 = vst [vmem:[#allocation135_spill] sm:$0xff] %v10709_v55 }
 0x122   : > { %18920 = vst [vmem:[#allocation136_spill] sm:$0xff] %v10713_v25 }
 0x123   : > { %18923 = vst [vmem:[#allocation137_spill] sm:$0xff] %v10722_v18  ;;  %v18931_v18 = vrot.slane %v10680_v10, 4  ;;  %v10764_v10 = vmul.f32 %v8779_v12, %v10281_v47 }
 0x124   : > { %18926 = vst [vmem:[#allocation138_spill] sm:$0xff] %v10729_v33  ;;  %v10757_v33 = vadd.f32 %v866_v6, %v10361_v22  ;;  %v18936_v6 = vrot.slane %v10706_v1, 2 }
 0x125   : > { %18927 = vst [vmem:[#allocation139_spill] sm:$0xff] %v10732_v49  ;;  %v10750_v59 = vsel %vm4812_vm3, %v18932_v54, %v18931_v18  ;;  %v9168_v18 = vpop.permute.xlu0 %9167  ;;  %v8745_v54 = vunpack.i.h.bf16 %v8743_v53  ;;  %v8753_v53 = vpop.permute.xlu1 %8752  ;;  %8963 = vperm.xlu1 %8950, %v9817_v21  }
 0x126   : > { %18928 = vst [vmem:[#allocation140_spill] sm:$0xff] %v10735_v20  ;;  %v9170_v15 = vunpack.i.h.bf16 %v9168_v18  ;;  %v10773_v17 = vsel %vm2236_vm1, %v18937_v39, %v18936_v6  ;;  %v2830_v6 = vld [vmem:[%s9785_s17 + $0x8] sm:$0xe]  ;;  %v2831_v39 = vld [vmem:[%s9785_s17 + $0xc] sm:$0xf]  ;;  %v8754_v1 = vunpack.i.l.bf16 %v8753_v53 }
 0x127   : > { %18929 = vst [vmem:[#allocation141_spill] sm:$0xff] %v10740_v41  ;;  %v871_v55 = vmul.f32 %v8745_v54, %v10281_v47  ;;  %v18952_v54 = vld [vmem:[#allocation29_spill] sm:$0xff] }
 0x128   : > { %18930 = vst [vmem:[#allocation142_spill] sm:$0xff] %v10743_v19  ;;  %v10782_v22 = vmul.f32 %v9170_v15, %v10331_v50  ;;  %v10792_v12 = vmul.f32 %v9170_v15, %v10388_v61  ;;  %v876_v4 = vmul.f32 %v8754_v1, %v10281_v47  ;;  %v10826_v48 = vadd.f32 %v870_v51, %v18952_v54 }
 0x129   : > { %18933 = vst [vmem:[#allocation143_spill] sm:$0xff] %v10750_v59  ;;  %v9169_v59 = vunpack.i.l.bf16 %v9168_v18  ;;  %v10779_v18 = vmul.f32 %v9170_v15, %v10328_v35  ;;  %v10829_v1 = vmul.f32 %v8791_v28, %v10606_v34 }
 0x12a   : > { %18934 = vst [vmem:[#allocation144_spill] sm:$0xff] %v10761_v11  ;;  %v10787_v11 = vpack.i.bf16 %v2155_v40, %v1008_v26  ;;  %v8755_v26 = vunpack.i.h.bf16 %v8753_v53  ;;  %v2870_v40 = vunpack.c.l.bf16 %v2830_v6  ;;  %v18946_v53 = vrot.slane %v10713_v25, 3 }
 0x12b   : > { %18935 = vst [vmem:[#allocation145_spill] sm:$0xff] %v10764_v10  ;;  %v10785_v10 = vmul.f32 %v9169_v59, %v10328_v35  ;;  %v10795_v63 = vmul.f32 %v9169_v59, %v10331_v50  ;;  %v2871_v35 = vunpack.c.l.bf16 %v2831_v39  ;;  %v8790_v50 = vunpack.i.l.bf16 %v8789_v30 }
 0x12c   : > { %18938 = vst [vmem:[#allocation146_spill] sm:$0xff] %v10773_v17  ;;  %v10798_v17 = vmul.f32 %v9169_v59, %v10388_v61  ;;  %v18947_v6 = vrot.slane %v10740_v41, 3  ;;  %v18949_v30 = vrot.slane %v10732_v49, 4  ;;  %v877_v54 = vmul.f32 %v8755_v26, %v10281_v47  ;;  %8946 = vperm.xlu2 %8859, %v10787_v11  }
 0x12d   : > { %18939 = vst [vmem:[#allocation147_spill] sm:$0xff] %v10779_v18  ;;  %v9256_v60 = vpop.permute.xlu0 %9255  ;;  %v1195_v15 = vmul.f32 %v8790_v50, %v10606_v34  ;;  %v18960_v50 = vrot.slane %v10782_v22, 3  ;;  %v18961_v19 = vrot.slane %v10795_v63, 3  ;;  %8973 = vperm.xlu1 %8950, %v10457_v42  }
 0x12e   : > { %18940 = vst [vmem:[#allocation148_spill] sm:$0xff] %v10782_v22  ;;  %v10815_v39 = vsel %vm4133_vm2, %v18947_v6, %v18946_v53  ;;  %v10822_v59 = vsel %vm4812_vm3, %v18950_v31, %v18949_v30  ;;  %v9258_v25 = vunpack.i.h.bf16 %v9256_v60  ;;  %v8763_v53 = vpop.permute.xlu1 %8762  ;;  %v8800_v6 = vpop.permute.xlu2 %8799  ;;  %v18956_v31 = vrot.slane %v10779_v18, 2 }
 0x12f   : > { %18941 = vst [vmem:[#allocation149_spill] sm:$0xff] %v10785_v10  ;;  %v18957_v30 = vrot.slane %v10785_v10, 2  ;;  %v10851_v41 = vsel %vm4133_vm2, %v18961_v19, %v18960_v50  ;;  %v9257_v26 = vunpack.i.l.bf16 %v9256_v60  ;;  %v1270_v50 = vrot.slane %v1195_v15, 1 }
 0x130   : > { %18942 = vst [vmem:[#allocation150_spill] sm:$0xff] %v10787_v11  ;;  %v10884_v15 = vadd.f32 %v877_v54, %v10151_v27 }
 0x131   : > { %18943 = vst [vmem:[#allocation151_spill] sm:$0xff] %v10792_v12  ;;  %v10841_v51 = vsel %vm2236_vm1, %v18957_v30, %v18956_v31  ;;  %v10861_v31 = vadd.f32 %v876_v4, %v10153_v56  ;;  %v8802_v30 = vunpack.i.h.bf16 %v8800_v6  ;;  %v10887_v4 = vmul.f32 %v9258_v25, %v10655_v32 }
 0x132   : > { %18944 = vst [vmem:[#allocation152_spill] sm:$0xff] %v10795_v63 }
 0x133   : > { %18945 = vst [vmem:[#allocation153_spill] sm:$0xff] %v10798_v17  ;;  %v10874_v56 = vmul.f32 %v8802_v30, %v10609_v62 }
 0x134   : > { %18948 = vst [vmem:[#allocation154_spill] sm:$0xff] %v10815_v39  ;;  %v18954_v39 = vld [vmem:[#allocation28_spill] sm:$0xff]  ;;  %8956 = vset.pattern.permute.xlu2 %v18790_v0 }
 0x135   : > { %18951 = vst [vmem:[#allocation155_spill] sm:$0xff] %v10822_v59  ;;  %v10834_v49 = vadd.f32 %v871_v55, %v18954_v39  ;;  %v10844_v59 = vpack.i.bf16 %v2871_v35, %v2870_v40  ;;  %v18963_v55 = vrot.slane %v10792_v12, 4  ;;  %v18964_v39 = vrot.slane %v10798_v17, 4  ;;  %8958 = vperm.xlu2 %8956, %v9802_v14   ;;  %8983 = vperm.xlu1 %8950, %v10508_v23  }
 0x136   : > { %18953 = vst [vmem:[#allocation29_spill] sm:$0xff] %v10829_v1  ;;  %v10864_v35 = vmul.f32 %v8791_v28, %v10609_v62  ;;  %v8765_v40 = vunpack.i.h.bf16 %v8763_v53  ;;  %v8764_v12 = vunpack.i.l.bf16 %v8763_v53  ;;  %v9344_v53 = vpop.permute.xlu0 %9343 }
 0x137   : > { %18955 = vst [vmem:[#allocation28_spill] sm:$0xff] %v10834_v49  ;;  %v10858_v18 = vsel %vm4812_vm3, %v18964_v39, %v18963_v55  ;;  %v10871_v55 = vmul.f32 %v8802_v30, %v10606_v34  ;;  %v9345_v22 = vunpack.i.l.bf16 %v9344_v53  ;;  %9474 = vperm.xlu0 %9417, %v10844_v59  }
 0x138   : > { %18958 = vst [vmem:[#allocation156_spill] sm:$0xff] %v10841_v51  ;;  %v8801_v51 = vunpack.i.l.bf16 %v8800_v6  ;;  %v10890_v6 = vmul.f32 %v9257_v26, %v10388_v61  ;;  %v883_v39 = vmul.f32 %v8765_v40, %v10281_v47  ;;  %v8810_v26 = vpop.permute.xlu2 %8809  ;;  %v18971_v40 = vrot.slane %v10829_v1, 1 }
 0x139   : > { %18959 = vst [vmem:[#allocation157_spill] sm:$0xff] %v10844_v59  ;;  %v18973_v27 = vrot.slane %v10871_v55, 1 }
 0x13a   : > { %18962 = vst [vmem:[#allocation158_spill] sm:$0xff] %v10851_v41  ;;  %v10868_v41 = vmul.f32 %v9258_v25, %v10639_v58  ;;  %v10877_v28 = vmul.f32 %v8801_v51, %v10606_v34  ;;  %v10880_v60 = vmul.f32 %v8801_v51, %v10609_v62  ;;  %v882_v51 = vmul.f32 %v8764_v12, %v10281_v47 }
 0x13b   : > { %18965 = vst [vmem:[#allocation159_spill] sm:$0xff] %v10858_v18  ;;  %v9346_v25 = vunpack.i.h.bf16 %v9344_v53  ;;  %v8773_v18 = vpop.permute.xlu1 %8772  ;;  %v10904_v30 = vsel %vm1269_vm0, %v1270_v50, %v18971_v40  ;;  %v10927_v12 = vadd.f32 %v883_v39, %v10174_v5  ;;  %v10946_v5 = vmul.f32 %v9345_v22, %v10735_v20 }
 0x13c   : > { %18966 = vst [vmem:[#allocation160_spill] sm:$0xff] %v10864_v35  ;;  %v18974_v54 = vrot.slane %v10877_v28, 1  ;;  %v8775_v49 = vunpack.i.h.bf16 %v8773_v18  ;;  %v8774_v63 = vunpack.i.l.bf16 %v8773_v18  ;;  %v10924_v40 = vadd.f32 %v882_v51, %v10180_v8 }
 0x13d   : > { %18967 = vst [vmem:[#allocation161_spill] sm:$0xff] %v10868_v41  ;;  %v10915_v35 = vmul.f32 %v9346_v25, %v10639_v58  ;;  %v10918_v50 = vmul.f32 %v9346_v25, %v10655_v32  ;;  %v10921_v53 = vmul.f32 %v9346_v25, %v10735_v20  ;;  %v18980_v18 = vrot.slane %v10880_v60, 2  ;;  %8968 = vperm.xlu2 %8956, %v9800_v13  }
 0x13e   : > { %18968 = vst [vmem:[#allocation162_spill] sm:$0xff] %v10884_v15  ;;  %v1284_v15 = vsel %vm1269_vm0, %v18974_v54, %v18973_v27  ;;  %v18979_v27 = vrot.slane %v10874_v56, 2  ;;  %v10940_v25 = vmul.f32 %v9345_v22, %v10639_v58  ;;  %v10943_v8 = vmul.f32 %v9345_v22, %v10655_v32  ;;  %8993 = vperm.xlu1 %8950, %v10593_v7  }
 0x13f   : > { %18969 = vst [vmem:[#allocation163_spill] sm:$0xff] %v10887_v4  ;;  %v10937_v19 = vadd.f32 %v1284_v15, %v10757_v33  ;;  %v889_v39 = vmul.f32 %v8775_v49, %v10281_v47  ;;  %v888_v51 = vmul.f32 %v8774_v63, %v10281_v47  ;;  %v8811_v33 = vunpack.i.l.bf16 %v8810_v26  ;;  %v9369_v15 = vpop.permute.xlu0 %9368  ;;  %9479 = vperm.xlu0 %9417, %v10457_v42  }
 0x140   : > { %18970 = vst [vmem:[#allocation164_spill] sm:$0xff] %v10890_v6  ;;  %v10934_v54 = vsel %vm2236_vm1, %v18980_v18, %v18979_v27  ;;  %v8812_v27 = vunpack.i.h.bf16 %v8810_v26  ;;  %v9371_v41 = vunpack.i.h.bf16 %v9369_v15  ;;  %v8820_v26 = vpop.permute.xlu2 %8819  ;;  %v9370_v1 = vunpack.i.l.bf16 %v9369_v15 }
 0x141   : > { %18972 = vst [vmem:[#allocation165_spill] sm:$0xff] %v10904_v30  ;;  %v10962_v49 = vmul.f32 %v8811_v33, %v10606_v34  ;;  %v10965_v63 = vmul.f32 %v8811_v33, %v10609_v62  ;;  %v10980_v6 = vadd.f32 %v888_v51, %v10212_v38  ;;  %v10983_v4 = vadd.f32 %v889_v39, %v10205_v46 }
 0x142   : > { %18975 = vst [vmem:[#allocation166_spill] sm:$0xff] %v10915_v35  ;;  %v10956_v22 = vmul.f32 %v8812_v27, %v10606_v34  ;;  %v10970_v17 = vmul.f32 %v9371_v41, %v10639_v58  ;;  %v10973_v18 = vmul.f32 %v9371_v41, %v10655_v32  ;;  %v10988_v15 = vmul.f32 %v9371_v41, %v10735_v20 }
 0x143   : > { %18976 = vst [vmem:[#allocation167_spill] sm:$0xff] %v10918_v50  ;;  %v10991_v14 = vmul.f32 %v9370_v1, %v10639_v58  ;;  %v10996_v38 = vmul.f32 %v9370_v1, %v10655_v32  ;;  %v10999_v46 = vmul.f32 %v9370_v1, %v10735_v20  ;;  %v8821_v10 = vunpack.i.l.bf16 %v8820_v26 }
 0x144   : > { %18977 = vst [vmem:[#allocation168_spill] sm:$0xff] %v10921_v53  ;;  %v18995_v1 = vrot.slane %v10962_v49, 1  ;;  %v18996_v52 = vrot.slane %v10915_v35, 4  ;;  %v18997_v30 = vrot.slane %v10940_v25, 4 }
 0x145   : > { %18978 = vst [vmem:[#allocation169_spill] sm:$0xff] %v10927_v12  ;;  %v10959_v12 = vmul.f32 %v8812_v27, %v10609_v62  ;;  %v8783_v27 = vpop.permute.xlu1 %8782  ;;  %8978 = vperm.xlu2 %8956, %v9826_v29  }
 0x146   : > { %18981 = vst [vmem:[#allocation170_spill] sm:$0xff] %v10934_v54  ;;  %v8784_v61 = vunpack.i.l.bf16 %v8783_v27  ;;  %v8785_v33 = vunpack.i.h.bf16 %v8783_v27  ;;  %v18994_v54 = vrot.slane %v10956_v22, 1  ;;  %v11019_v27 = vsel %vm4812_vm3, %v18997_v30, %v18996_v52  ;;  %9003 = vperm.xlu1 %8950, %v10686_v2  }
 0x147   : > { %18982 = vst [vmem:[#allocation171_spill] sm:$0xff] %v10940_v25  ;;  %v9384_v0 = vpop.permute.xlu0 %9383  ;;  %v19005_v39 = vrot.slane %v10959_v12, 2  ;;  %v19006_v52 = vrot.slane %v10965_v63, 2  ;;  %9484 = vperm.xlu0 %9417, %v10508_v23  }
 0x148   : > { %18983 = vst [vmem:[#allocation172_spill] sm:$0xff] %v10943_v8  ;;  %v1292_v57 = vsel %vm1269_vm0, %v18995_v1, %v18994_v54  ;;  %v894_v41 = vmul.f32 %v8784_v61, %v10281_v47  ;;  %v19002_v54 = vrot.slane %v10921_v53, 6  ;;  %v19003_v1 = vrot.slane %v10946_v5, 6 }
 0x149   : > { %18984 = vst [vmem:[#allocation173_spill] sm:$0xff] %v10946_v5  ;;  %v9386_v51 = vunpack.i.h.bf16 %v9384_v0  ;;  %v11040_v30 = vsel %vm2236_vm1, %v19006_v52, %v19005_v39  ;;  %v19011_v39 = vrot.slane %v10991_v14, 4  ;;  %v895_v13 = vmul.f32 %v8785_v33, %v10281_v47 }
 0x14a   : > { %18985 = vst [vmem:[#allocation174_spill] sm:$0xff] %v10956_v22  ;;  %v19000_v22 = vrot.slane %v10943_v8, 5  ;;  %v11033_v61 = vsel %vm7388_vm5, %v19003_v1, %v19002_v54  ;;  %v8830_v54 = vpop.permute.xlu2 %8829  ;;  %v11053_v1 = vadd.f32 %v1292_v57, %v10826_v48  ;;  %v19016_v57 = vrot.slane %v10988_v15, 6 }
 0x14b   : > { %18986 = vst [vmem:[#allocation175_spill] sm:$0xff] %v10959_v12  ;;  %v19017_v48 = vrot.slane %v10999_v46, 6  ;;  %v11088_v33 = vmul.f32 %v9386_v51, %v10655_v32 }
 0x14c   : > { %18987 = vst [vmem:[#allocation176_spill] sm:$0xff] %v10970_v17 }
 0x14d   : > { %18988 = vst [vmem:[#allocation177_spill] sm:$0xff] %v10973_v18  ;;  %8988 = vperm.xlu2 %8956, %v9843_v37  }
 0x14e   : > { %18989 = vst [vmem:[#allocation178_spill] sm:$0xff] %v10983_v4  ;;  %v8822_v4 = vunpack.i.h.bf16 %v8820_v26  ;;  %v18999_v26 = vrot.slane %v10918_v50, 5  ;;  %9013 = vperm.xlu1 %8950, %v10787_v11  }
 0x14f   : > { %18990 = vst [vmem:[#allocation179_spill] sm:$0xff] %v10988_v15  ;;  %v8831_v15 = vunpack.i.l.bf16 %v8830_v54  ;;  %9489 = vperm.xlu0 %9417, %v10593_v7  }
 0x150   : > { %18991 = vst [vmem:[#allocation180_spill] sm:$0xff] %v10991_v14  ;;  %v11026_v44 = vsel %vm6709_vm4, %v19000_v22, %v18999_v26  ;;  %v11046_v22 = vmul.f32 %v8822_v4, %v10609_v62  ;;  %v11049_v26 = vmul.f32 %v8821_v10, %v10606_v34 }
 0x151   : > { %18992 = vst [vmem:[#allocation181_spill] sm:$0xff] %v10996_v38 }
 0x152   : > { %18993 = vst [vmem:[#allocation182_spill] sm:$0xff] %v10999_v46  ;;  %v9399_v46 = vpop.permute.xlu0 %9398  ;;  %v19030_v29 = vrot.slane %v11046_v22, 2 }
 0x153   : > { %18998 = vst [vmem:[#allocation183_spill] sm:$0xff] %v11019_v27  ;;  %v11043_v27 = vmul.f32 %v8822_v4, %v10606_v34  ;;  %v19014_v4 = vrot.slane %v10996_v38, 5  ;;  %v9401_v14 = vunpack.i.h.bf16 %v9399_v46 }
 0x154   : > { %19001 = vst [vmem:[#allocation184_spill] sm:$0xff] %v11026_v44  ;;  %v19013_v44 = vrot.slane %v10973_v18, 5  ;;  %v11114_v18 = vmul.f32 %v8831_v15, %v10606_v34 }
 0x155   : > { %19004 = vst [vmem:[#allocation185_spill] sm:$0xff] %v11033_v61  ;;  %v19010_v61 = vrot.slane %v10970_v17, 4  ;;  %v11076_v17 = vsel %vm7388_vm5, %v19017_v48, %v19016_v57  ;;  %v19027_v38 = vrot.slane %v11043_v27, 1  ;;  %v19028_v57 = vrot.slane %v11049_v26, 1  ;;  %8998 = vperm.xlu2 %8956, %v9860_v45  }
 0x156   : > { %19007 = vst [vmem:[#allocation186_spill] sm:$0xff] %v11040_v30  ;;  %v11067_v53 = vsel %vm6709_vm4, %v19014_v4, %v19013_v44  ;;  %v8795_v44 = vpop.permute.xlu1 %8794  ;;  %v11085_v4 = vmul.f32 %v9386_v51, %v10639_v58  ;;  %v19034_v50 = vrot.slane %v11114_v18, 1 }
 0x157   : > { %19008 = vst [vmem:[#allocation187_spill] sm:$0xff] %v11043_v27  ;;  %v11060_v52 = vsel %vm4812_vm3, %v19011_v39, %v19010_v61  ;;  %v11079_v61 = vadd.f32 %v894_v41, %v10249_v24  ;;  %v11082_v39 = vmul.f32 %v8821_v10, %v10609_v62  ;;  %v8797_v35 = vunpack.i.h.bf16 %v8795_v44  ;;  %9494 = vperm.xlu0 %9417, %v10686_v2  }
 0x158   : > { %19009 = vst [vmem:[#allocation188_spill] sm:$0xff] %v11046_v22  ;;  %v8796_v5 = vunpack.i.l.bf16 %v8795_v44  ;;  %v9400_v27 = vunpack.i.l.bf16 %v9399_v46 }
 0x159   : > { %19012 = vst [vmem:[#allocation189_spill] sm:$0xff] %v11060_v52  ;;  %v9385_v52 = vunpack.i.l.bf16 %v9384_v0  ;;  %v11098_v0 = vmul.f32 %v9386_v51, %v10735_v20  ;;  %v11117_v51 = vmul.f32 %v8831_v15, %v10609_v62  ;;  %v11141_v15 = vadd.f32 %v895_v13, %v10246_v43 }
 0x15a   : > { %19015 = vst [vmem:[#allocation190_spill] sm:$0xff] %v11067_v53  ;;  %v8832_v53 = vunpack.i.h.bf16 %v8830_v54  ;;  %v19036_v43 = vrot.slane %v11085_v4, 4 }
 0x15b   : > { %19018 = vst [vmem:[#allocation191_spill] sm:$0xff] %v11076_v17  ;;  %v11094_v41 = vmul.f32 %v9385_v52, %v10639_v58  ;;  %v11101_v10 = vmul.f32 %v9385_v52, %v10655_v32  ;;  %v11104_v48 = vmul.f32 %v9385_v52, %v10735_v20  ;;  %v19031_v17 = vrot.slane %v11082_v39, 2 }
 0x15c   : > { %19019 = vst [vmem:[#allocation192_spill] sm:$0xff] %v11085_v4  ;;  %v11107_v54 = vmul.f32 %v8832_v53, %v10606_v34  ;;  %v11111_v24 = vmul.f32 %v8832_v53, %v10609_v62  ;;  %v1304_v53 = vsel %vm1269_vm0, %v19028_v57, %v19027_v38  ;;  %v11137_v38 = vmul.f32 %v8797_v35, %v10606_v34 }
 0x15d   : > { %19020 = vst [vmem:[#allocation193_spill] sm:$0xff] %v11088_v33  ;;  %v2167_v57 = vmul.f32 %v8797_v35, %v10609_v62  ;;  %v11148_v52 = vsel %vm2236_vm1, %v19031_v17, %v19030_v29  ;;  %v11156_v35 = vadd.f32 %v1304_v53, %v10861_v31  ;;  %v19037_v13 = vrot.slane %v11094_v41, 4 }
 0x15e   : > { %19021 = vst [vmem:[#allocation194_spill] sm:$0xff] %v11094_v41  ;;  %v19033_v8 = vrot.slane %v11107_v54, 1  ;;  %v19039_v17 = vrot.slane %v11088_v33, 5  ;;  %v19040_v29 = vrot.slane %v11101_v10, 5  ;;  %v19043_v31 = vrot.slane %v11098_v0, 6 }
 0x15f   : > { %19022 = vst [vmem:[#allocation195_spill] sm:$0xff] %v11098_v0  ;;  %v11163_v44 = vsel %vm4812_vm3, %v19037_v13, %v19036_v43  ;;  %v19044_v46 = vrot.slane %v11104_v48, 6  ;;  %v11184_v43 = vmul.f32 %v9401_v14, %v10639_v58  ;;  %v11187_v13 = vmul.f32 %v9401_v14, %v10655_v32 }
 0x160   : > { %19023 = vst [vmem:[#allocation196_spill] sm:$0xff] %v11101_v10  ;;  %v1316_v25 = vsel %vm1269_vm0, %v19034_v50, %v19033_v8  ;;  %v11173_v50 = vmul.f32 %v8796_v5, %v10609_v62  ;;  %v8805_v8 = vpop.permute.xlu1 %8804  ;;  %v19051_v0 = vrot.slane %v11117_v51, 2  ;;  %v11204_v33 = vmul.f32 %v8796_v5, %v10606_v34 }
 0x161   : > { %19024 = vst [vmem:[#allocation197_spill] sm:$0xff] %v11104_v48  ;;  %v11181_v53 = vsel %vm7388_vm5, %v19044_v46, %v19043_v31  ;;  %v11208_v4 = vmul.f32 %v9400_v27, %v10639_v58  ;;  %v8806_v10 = vunpack.i.l.bf16 %v8805_v8 }
 0x162   : > { %19025 = vst [vmem:[#allocation198_spill] sm:$0xff] %v11107_v54 }
 0x163   : > { %19026 = vst [vmem:[#allocation199_spill] sm:$0xff] %v11111_v24  ;;  %v1203_v5 = vmul.f32 %v8806_v10, %v10606_v34 }
 0x164   : > { %19029 = vst [vmem:[#allocation200_spill] sm:$0xff] %v11141_v15  ;;  %v11170_v15 = vsel %vm6709_vm4, %v19040_v29, %v19039_v17  ;;  %v11190_v17 = vmul.f32 %v9401_v14, %v10735_v20  ;;  %v8840_v29 = vpop.permute.xlu2 %8839 }
 0x165   : > { %19032 = vst [vmem:[#allocation201_spill] sm:$0xff] %v11148_v52  ;;  %v8842_v48 = vunpack.i.h.bf16 %v8840_v29 }
 0x166   : > { %19035 = vst [vmem:[#allocation202_spill] sm:$0xff] %v11156_v35 }
 0x167   : > { %19038 = vst [vmem:[#allocation203_spill] sm:$0xff] %v11163_v44  ;;  %v19050_v44 = vrot.slane %v11111_v24, 2  ;;  %v11221_v14 = vmul.f32 %v8842_v48, %v10606_v34  ;;  %v11224_v41 = vmul.f32 %v8842_v48, %v10609_v62  ;;  %v9414_v24 = vpop.permute.xlu0 %9413 }
 0x168   : > { %19041 = vst [vmem:[#allocation204_spill] sm:$0xff] %v11170_v15  ;;  %v11193_v15 = vadd.f32 %v1316_v25, %v10924_v40  ;;  %v11211_v40 = vmul.f32 %v9400_v27, %v10655_v32  ;;  %v11214_v25 = vmul.f32 %v9400_v27, %v10735_v20  ;;  %v9416_v54 = vunpack.i.h.bf16 %v9414_v24  ;;  %v8815_v30 = vpop.permute.xlu1 %8814 }
 0x169   : > { %19042 = vst [vmem:[#allocation205_spill] sm:$0xff] %v11173_v50  ;;  %v11200_v31 = vsel %vm2236_vm1, %v19051_v0, %v19050_v44  ;;  %v8841_v0 = vunpack.i.l.bf16 %v8840_v29  ;;  %v8807_v44 = vunpack.i.h.bf16 %v8805_v8  ;;  %v18383_v22 = vrot.slane %v11221_v14, 1 }
 0x16a   : > { %19045 = vst [vmem:[#allocation206_spill] sm:$0xff] %v11181_v53  ;;  %v2246_v53 = vrot.slane %v2167_v57, 2  ;;  %v9415_v35 = vunpack.i.l.bf16 %v9414_v24  ;;  %v19066_v24 = vrot.slane %v11211_v40, 5 }
 0x16b   : > { %19046 = vst [vmem:[#allocation207_spill] sm:$0xff] %v11184_v43  ;;  %v11227_v27 = vmul.f32 %v8841_v0, %v10606_v34  ;;  %v11230_v29 = vmul.f32 %v8841_v0, %v10609_v62  ;;  %v1204_v57 = vmul.f32 %v8807_v44, %v10606_v34  ;;  %v11235_v8 = vmul.f32 %v8807_v44, %v10609_v62 }
 0x16c   : > { %19047 = vst [vmem:[#allocation208_spill] sm:$0xff] %v11187_v13  ;;  %v19068_v0 = vrot.slane %v11190_v17, 6 }
 0x16d   : > { %19048 = vst [vmem:[#allocation209_spill] sm:$0xff] %v11190_v17  ;;  %v18384_v12 = vrot.slane %v11227_v27, 1  ;;  %v2254_v44 = vrot.slane %v11235_v8, 2 }
 0x16e   : > { %19049 = vst [vmem:[#allocation210_spill] sm:$0xff] %v11193_v15  ;;  %v19059_v15 = vrot.slane %v10880_v60, 2  ;;  %v19062_v60 = vrot.slane %v11184_v43, 4  ;;  %v19071_v43 = vrot.slane %v10962_v49, 1  ;;  %v11303_v49 = vmul.f32 %v9416_v54, %v10639_v58 }
 0x16f   : > { %19052 = vst [vmem:[#allocation211_spill] sm:$0xff] %v11200_v31  ;;  %v1287_v31 = vrot.slane %v1204_v57, 1  ;;  %v1328_v48 = vsel %vm1269_vm0, %v18384_v12, %v18383_v22  ;;  %v19061_v57 = vrot.slane %v11173_v50, 2  ;;  %v19065_v22 = vrot.slane %v11187_v13, 5 }
 0x170   : > { %19053 = vst [vmem:[#allocation212_spill] sm:$0xff] %v11204_v33  ;;  %v11249_v52 = vsel %vm2236_vm1, %v2246_v53, %v19059_v15  ;;  %v19063_v15 = vrot.slane %v11208_v4, 4  ;;  %v19085_v13 = vrot.slane %v10874_v56, 2 }
 0x171   : > { %19054 = vst [vmem:[#allocation213_spill] sm:$0xff] %v11208_v4  ;;  %v11260_v8 = vsel %vm2236_vm1, %v19061_v57, %v2246_v53  ;;  %v11274_v12 = vsel %vm6709_vm4, %v19066_v24, %v19065_v22  ;;  %v19069_v53 = vrot.slane %v11214_v25, 6  ;;  %v19073_v22 = vrot.slane %v11230_v29, 2 }
 0x172   : > { %19055 = vst [vmem:[#allocation214_spill] sm:$0xff] %v11211_v40  ;;  %v11267_v46 = vsel %vm4812_vm3, %v19063_v15, %v19062_v60  ;;  %v1290_v60 = vsel %vm1269_vm0, %v1287_v31, %v19071_v43  ;;  %v11288_v15 = vadd.f32 %v1328_v48, %v10980_v6  ;;  %v11307_v6 = vmul.f32 %v9416_v54, %v10655_v32 }
 0x173   : > { %19056 = vst [vmem:[#allocation215_spill] sm:$0xff] %v11214_v25  ;;  %v11281_v57 = vsel %vm7388_vm5, %v19069_v53, %v19068_v0  ;;  %v11313_v43 = vmul.f32 %v9415_v35, %v10639_v58 }
 0x174   : > { %19057 = vst [vmem:[#allocation216_spill] sm:$0xff] %v11221_v14  ;;  %v1285_v14 = vrot.slane %v1203_v5, 1  ;;  %v2170_v5 = vmul.f32 %v8806_v10, %v10609_v62  ;;  %v11310_v10 = vmul.f32 %v9416_v54, %v10735_v20  ;;  %v19091_v56 = vrot.slane %v11307_v6, 5 }
 0x175   : > { %19058 = vst [vmem:[#allocation217_spill] sm:$0xff] %v11224_v41 }
 0x176   : > { %19060 = vst [vmem:[#allocation218_spill] sm:$0xff] %v11249_v52  ;;  %v8850_v52 = vpop.permute.xlu2 %8849  ;;  %v1288_v53 = vsel %vm1269_vm0, %v1285_v14, %v1287_v31  ;;  %v2252_v54 = vrot.slane %v2170_v5, 2 }
 0x177   : > { %19064 = vst [vmem:[#allocation219_spill] sm:$0xff] %v11267_v46  ;;  %v19072_v46 = vrot.slane %v11224_v41, 2  ;;  %v8852_v17 = vunpack.i.h.bf16 %v8850_v52  ;;  %v8851_v25 = vunpack.i.l.bf16 %v8850_v52  ;;  %v11352_v37 = vadd.f32 %v1288_v53, %v10500_v16 }
 0x178   : > { %19067 = vst [vmem:[#allocation220_spill] sm:$0xff] %v11274_v12  ;;  %v19075_v12 = vrot.slane %v10965_v63, 2  ;;  %v19081_v63 = vrot.slane %v10871_v55, 1  ;;  %v9420_v55 = vpop.permute.xlu0 %9419 }
 0x179   : > { %19070 = vst [vmem:[#allocation221_spill] sm:$0xff] %v11281_v57  ;;  %v11295_v24 = vsel %vm2236_vm1, %v19073_v22, %v19072_v46  ;;  %v11316_v46 = vmul.f32 %v9415_v35, %v10655_v32  ;;  %v11326_v22 = vmul.f32 %v9415_v35, %v10735_v20  ;;  %v11336_v35 = vmul.f32 %v8852_v17, %v10606_v34 }
 0x17a   : > { %19074 = vst [vmem:[#allocation222_spill] sm:$0xff] %v11295_v24  ;;  %v11300_v0 = vsel %vm2236_vm1, %v2254_v44, %v19075_v12  ;;  %v11319_v12 = vadd.f32 %v1290_v60, %v10497_v3  ;;  %v1286_v48 = vsel %vm1269_vm0, %v19081_v63, %v1285_v14  ;;  %v8817_v3 = vunpack.i.h.bf16 %v8815_v30 }
 0x17b   : > { %19076 = vst [vmem:[#allocation223_spill] sm:$0xff] %v11303_v49  ;;  %v8816_v60 = vunpack.i.l.bf16 %v8815_v30  ;;  %v11340_v5 = vmul.f32 %v8852_v17, %v10609_v62  ;;  %v11343_v52 = vmul.f32 %v8851_v25, %v10606_v34  ;;  %v11346_v30 = vmul.f32 %v8851_v25, %v10609_v62  ;;  %v8825_v17 = vpop.permute.xlu1 %8824 }
 0x17c   : > { %19077 = vst [vmem:[#allocation224_spill] sm:$0xff] %v11307_v6  ;;  %v11349_v63 = vadd.f32 %v1286_v48, %v10753_v9  ;;  %v11355_v31 = vmul.f32 %v8817_v3, %v10606_v34  ;;  %v2177_v14 = vmul.f32 %v8817_v3, %v10609_v62  ;;  %v11361_v57 = vsel %vm2236_vm1, %v19085_v13, %v2252_v54 }
 0x17d   : > { %19078 = vst [vmem:[#allocation225_spill] sm:$0xff] %v11310_v10  ;;  %v11364_v25 = vsel %vm2236_vm1, %v2252_v54, %v2254_v44  ;;  %v19087_v9 = vrot.slane %v11303_v49, 4  ;;  %v19088_v48 = vrot.slane %v11313_v43, 4  ;;  %v11374_v53 = vmul.f32 %v8816_v60, %v10606_v34 }
 0x17e   : > { %19079 = vst [vmem:[#allocation226_spill] sm:$0xff] %v11313_v43  ;;  %v8862_v3 = vpop.permute.xlu2 %8861  ;;  %v19092_v13 = vrot.slane %v11316_v46, 5  ;;  %v2266_v54 = vrot.slane %v2177_v14, 2  ;;  %v8827_v40 = vunpack.i.h.bf16 %v8825_v17  ;;  %v19105_v45 = vrot.slane %v11340_v5, 2 }
 0x17f   : > { %19080 = vst [vmem:[#allocation227_spill] sm:$0xff] %v11316_v46  ;;  %v11371_v16 = vsel %vm4812_vm3, %v19088_v48, %v19087_v9  ;;  %v11387_v9 = vmul.f32 %v8816_v60, %v10609_v62  ;;  %v19095_v48 = vrot.slane %v11310_v10, 6  ;;  %v8826_v10 = vunpack.i.l.bf16 %v8825_v17 }
 0x180   : > { %19082 = vst [vmem:[#allocation228_spill] sm:$0xff] %v11326_v22  ;;  %v11382_v44 = vsel %vm6709_vm4, %v19092_v13, %v19091_v56  ;;  %v9422_v56 = vunpack.i.h.bf16 %v9420_v55  ;;  %v1299_v13 = vrot.slane %v11355_v31, 1  ;;  %v8864_v31 = vunpack.i.h.bf16 %v8862_v3 }
 0x181   : > { %19083 = vst [vmem:[#allocation229_spill] sm:$0xff] %v11336_v35  ;;  %v11411_v49 = vmul.f32 %v8827_v40, %v10606_v34  ;;  %v2183_v17 = vmul.f32 %v8827_v40, %v10609_v62  ;;  %v8863_v6 = vunpack.i.l.bf16 %v8862_v3  ;;  %v19108_v40 = vrot.slane %v11137_v38, 1  ;;  %v19112_v3 = vld [vmem:[#allocation32_spill] sm:$0xff] }
 0x182   : > { %19084 = vst [vmem:[#allocation230_spill] sm:$0xff] %v11340_v5  ;;  %v865_v60 = vmul.f32 %v9422_v56, %v10281_v47  ;;  %v11415_v56 = vmul.f32 %v8826_v10, %v10606_v34  ;;  %v19109_v20 = vrot.slane %v11204_v33, 1  ;;  %v2390_v58 = vmul.f32 %v8864_v31, %v19112_v3  ;;  %v9425_v5 = vpop.permute.xlu0 %9424  ;;  %v19124_v33 = vld [vmem:[#allocation41_spill] sm:$0xff] }
 0x183   : > { %19086 = vst [vmem:[#allocation231_spill] sm:$0xff] %v11361_v57  ;;  %v19116_v41 = vrot.slane %v11387_v9, 2 }
 0x184   : > { %19089 = vst [vmem:[#allocation232_spill] sm:$0xff] %v11371_v16  ;;  %v19096_v16 = vrot.slane %v11326_v22, 6  ;;  %v19098_v22 = vrot.slane %v11336_v35, 1  ;;  %v1280_v32 = vsel %vm1269_vm0, %v19109_v20, %v19108_v40 }
 0x185   : > { %19090 = vst [vmem:[#allocation233_spill] sm:$0xff] %v11374_v53  ;;  %v11451_v20 = vsel %vm2236_vm1, %v19116_v41, %v2266_v54 }
 0x186   : > { %19093 = vst [vmem:[#allocation234_spill] sm:$0xff] %v11382_v44  ;;  %v11394_v43 = vsel %vm7388_vm5, %v19096_v16, %v19095_v48  ;;  %v9421_v44 = vunpack.i.l.bf16 %v9420_v55  ;;  %v19099_v16 = vrot.slane %v11343_v52, 1  ;;  %v19100_v55 = vld [vmem:[#allocation35_spill] sm:$0xff] }
 0x187   : > { %19094 = vst [vmem:[#allocation235_spill] sm:$0xff] %v11387_v9  ;;  %v901_v14 = vadd.f32 %v865_v60, %v19100_v55  ;;  %v19106_v60 = vrot.slane %v11346_v30, 2 }
 0x188   : > { %19097 = vst [vmem:[#allocation236_spill] sm:$0xff] %v11394_v43  ;;  %v1340_v48 = vsel %vm1269_vm0, %v19099_v16, %v19098_v22  ;;  %v864_v46 = vmul.f32 %v9421_v44, %v10281_v47  ;;  %v19102_v43 = vld [vmem:[#allocation34_spill] sm:$0xff]  ;;  %v11419_v22 = vmul.f32 %v8826_v10, %v10609_v62  ;;  %v19104_v16 = vld [vmem:[#allocation31_spill] sm:$0xff]  ;;  %v19111_v10 = vmov %v19108_v40 }
 0x189   : > { %19101 = vst [vmem:[#allocation35_spill] sm:$0xff] %v11415_v56  ;;  %v1567_v44 = vmul.f32 %v8864_v31, %v19104_v16  ;;  %v11427_v55 = vsel %vm2236_vm1, %v19106_v60, %v19105_v45  ;;  %v11441_v35 = vadd.f32 %v1340_v48, %v11079_v61  ;;  %v19114_v45 = vrot.slane %v11082_v39, 2  ;;  %v8835_v31 = vpop.permute.xlu1 %8834 }
 0x18a   : > { %v900_v4 = vadd.f32 %v864_v46, %v19102_v43  ;;  %19103 = vst [vmem:[#allocation34_spill] sm:$0xff] %v11419_v22  ;;  %v19110_v43 = vrot.slane %v10877_v28, 1  ;;  %v19118_v28 = vrot.slane %v11374_v53, 1  ;;  %v2278_v48 = vrot.slane %v2183_v17, 2 }
 0x18b   : > { %19107 = vst [vmem:[#allocation31_spill] sm:$0xff] %v11427_v55  ;;  %v11446_v60 = vsel %vm2236_vm1, %v2266_v54, %v19114_v45  ;;  %v1643_v9 = vrot.slane %v1567_v44, 1  ;;  %v11464_v41 = vmul.f32 %v8863_v6, %v19104_v16  ;;  %v2466_v54 = vrot.slane %v2390_v58, 2  ;;  %v19122_v45 = vld [vmem:[#allocation47_spill] sm:$0xff] }
 0x18c   : > { %v1282_v46 = vsel %vm1269_vm0, %v19111_v10, %v19110_v43  ;;  %19113 = vst [vmem:[#allocation32_spill] sm:$0xff] %v11441_v35  ;;  %v11456_v38 = vsel %vm1269_vm0, %v19118_v28, %v1299_v13  ;;  %v8877_v43 = vpop.permute.xlu2 %8876  ;;  %v1383_v10 = vadd.f32 %v1280_v32, %v900_v4  ;;  %v11467_v28 = vmul.f32 %v8863_v6, %v19112_v3 }
 0x18d   : > { %19115 = vst [vmem:[#allocation237_spill] sm:$0xff] %v11446_v60  ;;  %v11458_v40 = vadd.f32 %v1282_v46, %v901_v14  ;;  %v9427_v53 = vunpack.i.h.bf16 %v9425_v5  ;;  %v9426_v14 = vunpack.i.l.bf16 %v9425_v5  ;;  %v8837_v46 = vunpack.i.h.bf16 %v8835_v31 }
 0x18e   : > { %19117 = vst [vmem:[#allocation238_spill] sm:$0xff] %v11451_v20  ;;  %v8836_v61 = vunpack.i.l.bf16 %v8835_v31  ;;  %v8879_v17 = vunpack.i.h.bf16 %v8877_v43  ;;  %v19119_v39 = vrot.slane %v11117_v51, 2  ;;  %v19121_v4 = vrot.slane %v11049_v26, 1  ;;  %v19123_v31 = vld [vmem:[#allocation12_spill] sm:$0xff]  ;;  %v19132_v26 = vld [vmem:[#allocation39_spill] sm:$0xff] }
 0x18f   : > { %v875_v58 = vmul.f32 %v9427_v53, %v10281_v47  ;;  %v874_v6 = vmul.f32 %v9426_v14, %v10281_v47  ;;  %v11480_v50 = vadd.f32 %v19122_v45, %v1383_v10  ;;  %9008 = vperm.xlu2 %8956, %v19123_v31   ;;  %v11485_v51 = vmul.f32 %v8837_v46, %v10606_v34  ;;  %v8533_v10 = vld [vmem:[%s9785_s17 + $0x90] sm:$0xff]   ;;  %v19129_v31 = vld [vmem:[#allocation37_spill] sm:$0xff] }
 0x190   : > { %v11472_v32 = vsel %vm2236_vm1, %v2278_v48, %v19119_v39  ;;  %v1302_v44 = vsel %vm1269_vm0, %v1299_v13, %v19121_v4  ;;  %v2189_v39 = vmul.f32 %v8837_v46, %v10609_v62  ;;  %v11491_v53 = vmul.f32 %v8836_v61, %v10606_v34 }
 0x191   : > { %19120 = vst [vmem:[#allocation239_spill] sm:$0xff] %v11472_v32  ;;  %v911_v13 = vadd.f32 %v875_v58, %v19124_v33  ;;  %v11494_v14 = vmul.f32 %v8836_v61, %v10609_v62  ;;  %v19127_v45 = vrot.slane %v11419_v22, 2  ;;  %v19130_v5 = vrot.slane %v19129_v31, 1  ;;  %v8845_v55 = vpop.permute.xlu1 %8844 }
 0x192   : > { %19125 = vst [vmem:[#allocation47_spill] sm:$0xff] %v11491_v53  ;;  %v19133_v57 = vrot.slane %v19132_v26, 2  ;;  %v11513_v58 = vmul.f32 %v8879_v17, %v19104_v16  ;;  %v19135_v61 = vrot.slane %v11464_v41, 1  ;;  %v11527_v26 = vmul.f32 %v8879_v17, %v19112_v3 }
 0x193   : > { %19126 = vst [vmem:[#allocation12_spill] sm:$0xff] %v11494_v14  ;;  %v11500_v4 = vsel %vm2236_vm1, %v19127_v45, %v2278_v48  ;;  %v11505_v46 = vsel %vm1269_vm0, %v1643_v9, %v19130_v5  ;;  %v19137_v48 = vrot.slane %v11467_v28, 2  ;;  %v19139_v5 = vld [vmem:[#allocation40_spill] sm:$0xff]  ;;  %v8413_v32 = vunpack.c.l.bf16 %v8533_v10 }
 0x194   : > { %19128 = vst [vmem:[#allocation41_spill] sm:$0xff] %v11500_v4  ;;  %v11510_v33 = vsel %vm2236_vm1, %v2466_v54, %v19133_v57  ;;  %v11518_v22 = vsel %vm1269_vm0, %v19135_v61, %v1643_v9  ;;  %v910_v31 = vadd.f32 %v874_v6, %v19139_v5  ;;  %v9430_v57 = vpop.permute.xlu0 %9429  ;;  %v8878_v4 = vunpack.i.l.bf16 %v8877_v43 }
 0x195   : > { %19131 = vst [vmem:[#allocation37_spill] sm:$0xff] %v11505_v46  ;;  %v11523_v45 = vsel %vm2236_vm1, %v19137_v48, %v2466_v54  ;;  %v2290_v46 = vrot.slane %v2189_v39, 2  ;;  %v11530_v20 = vadd.f32 %v1302_v44, %v911_v13  ;;  %v8414_v54 = vunpack.c.h.bf16 %v8533_v10 }
 0x196   : > { %19134 = vst [vmem:[#allocation39_spill] sm:$0xff] %v11510_v33  ;;  %v11536_v6 = vmul.f32 %v8878_v4, %v19104_v16  ;;  %v9432_v17 = vunpack.i.h.bf16 %v9430_v57  ;;  %v9431_v5 = vunpack.i.l.bf16 %v9430_v57  ;;  %v11539_v39 = vmul.f32 %v8878_v4, %v19112_v3  ;;  %v19147_v57 = vld [vmem:[#allocation44_spill] sm:$0xff] }
 0x197   : > { %19136 = vst [vmem:[#allocation240_spill] sm:$0xff] %v11518_v22  ;;  %v11541_v43 = vpack.i.bf16 %v8414_v54, %v8413_v32  ;;  %v8847_v44 = vunpack.i.h.bf16 %v8845_v55  ;;  %v19141_v33 = vmov 0   ;;  %v8846_v48 = vunpack.i.l.bf16 %v8845_v55 }
 0x198   : > { %19138 = vst [vmem:[#allocation241_spill] sm:$0xff] %v11523_v45  ;;  %v8887_v45 = vpop.permute.xlu2 %8886  ;;  %v18413_v13 = vrot.slane %v11536_v6, 1  ;;  %v881_v9 = vmul.f32 %v9432_v17, %v10281_v47  ;;  %v880_v10 = vmul.f32 %v9431_v5, %v10281_v47  ;;  %9017 = vset.pattern.permute.xlu2 %v19141_v33  ;;  %v1393_v61 = vadd.f32 %v11456_v38, %v910_v31 }
 0x199   : > { %19140 = vst [vmem:[#allocation40_spill] sm:$0xff] %v11541_v43  ;;  %9499 = vperm.xlu0 %9417, %v11541_v43   ;;  %v2195_v32 = vmul.f32 %v8847_v44, %v10609_v62  ;;  %v8889_v4 = vunpack.i.h.bf16 %v8887_v45  ;;  %v19142_v54 = vrot.slane %v11230_v29, 2  ;;  %v19144_v5 = vrot.slane %v11494_v14, 2  ;;  %9019 = vperm.xlu2 %9017, %v10844_v59   ;;  %v19169_v59 = vld [vmem:[#allocation58_spill] sm:$0xff] }
 0x19a   : > { %v19146_v38 = vrot.slane %v11513_v58, 1  ;;  %v916_v22 = vadd.f32 %v880_v10, %v19147_v57  ;;  %v19149_v14 = vrot.slane %v11415_v56, 1  ;;  %v8888_v56 = vunpack.i.l.bf16 %v8887_v45  ;;  %9023 = vset.pattern.permute.xlu1 %v19141_v33 }
 0x19b   : > { %v11555_v17 = vsel %vm2236_vm1, %v2290_v46, %v19142_v54  ;;  %v11560_v55 = vsel %vm2236_vm1, %v19144_v5, %v2290_v46  ;;  %v19148_v54 = vrot.slane %v11411_v49, 1  ;;  %v11578_v5 = vmul.f32 %v8847_v44, %v10606_v34  ;;  %9025 = vperm.xlu1 %9023, %v9817_v21  }
 0x19c   : > { %19143 = vst [vmem:[#allocation242_spill] sm:$0xff] %v11555_v17  ;;  %v1656_v31 = vsel %vm1269_vm0, %v18413_v13, %v19146_v38  ;;  %v11581_v17 = vld [vmem:[%s9785_s17 + $0x18] sm:$0xff]   ;;  %v19151_v38 = vld [vmem:[#allocation48_spill] sm:$0xff]  ;;  %v2302_v10 = vrot.slane %v2195_v32, 2  ;;  %v1577_v29 = vmul.f32 %v8889_v4, %v19104_v16  ;;  %v2400_v44 = vmul.f32 %v8889_v4, %v19112_v3  ;;  %v9730_v32 = vld [vmem:[%s9785_s17 + $0x20] sm:$0xff]  }
 0x19d   : > { %19145 = vst [vmem:[#allocation243_spill] sm:$0xff] %v11560_v55  ;;  %v11569_v11 = vadd.f32 %v1656_v31, %v11352_v37  ;;  %v1312_v46 = vsel %vm1269_vm0, %v19149_v14, %v19148_v54  ;;  %v917_v13 = vadd.f32 %v881_v9, %v19151_v38  ;;  %v11585_v37 = vmul.f32 %v8846_v48, %v10606_v34  ;;  %v19154_v14 = vld [vmem:[#allocation62_spill] sm:$0xff] }
 0x19e   : > { %19150 = vst [vmem:[#allocation44_spill] sm:$0xff] %v11581_v17  ;;  %v1399_v57 = vadd.f32 %v1312_v46, %v916_v22  ;;  %v11588_v31 = vmul.f32 %v8846_v48, %v10609_v62  ;;  %v11592_v54 = vadd.f32 %v19154_v14, %v1393_v61  ;;  %v8418_v9 = vunpack.c.h.bf16 %v11581_v17  ;;  %v8519_v62 = vld [vmem:[%s9785_s17 + $0x20] sm:$0xff]  }
 0x19f   : > { %19152 = vst [vmem:[#allocation48_spill] sm:$0xff] %v11585_v37  ;;  %v8421_v38 = vunpack.c.l.bf16 %v9730_v32  ;;  %v19156_v34 = vrot.slane %v11527_v26, 2  ;;  %v19157_v22 = vrot.slane %v11539_v39, 2  ;;  %v19158_v45 = vrot.slane %v11114_v18, 1  ;;  %v9435_v32 = vpop.permute.xlu0 %9434 }
 0x1a0   : > { %19153 = vst [vmem:[#allocation244_spill] sm:$0xff] %v11588_v31  ;;  %v19159_v61 = vrot.slane %v11411_v49, 1  ;;  %v11611_v14 = vmul.f32 %v8888_v56, %v19104_v16  ;;  %v11614_v4 = vmul.f32 %v8888_v56, %v19112_v3  ;;  %v8902_v18 = vpop.permute.xlu2 %8901  ;;  %v19161_v49 = vld [vmem:[#allocation70_spill] sm:$0xff]  ;;  %v1663_v35 = vrot.slane %v1577_v29, 1 }
 0x1a1   : > { %19155 = vst [vmem:[#allocation62_spill] sm:$0xff] %v11592_v54  ;;  %v11603_v48 = vsel %vm2236_vm1, %v19157_v22, %v19156_v34  ;;  %v11621_v22 = vpack.i.bf16 %v8421_v38, %v8418_v9  ;;  %v11624_v54 = vadd.f32 %v19161_v49, %v1399_v57  ;;  %v9436_v9 = vunpack.i.l.bf16 %v9435_v32  ;;  %v8856_v34 = vpop.permute.xlu1 %8855 }
 0x1a2   : > { %v1314_v46 = vsel %vm1269_vm0, %v19159_v61, %v19158_v45  ;;  %v19163_v45 = vrot.slane %v11346_v30, 2  ;;  %v8357_v38 = vunpack.c.l.bf16 %v8519_v62  ;;  %v8358_v30 = vunpack.c.h.bf16 %v8519_v62  ;;  %v19168_v62 = vld [vmem:[#allocation59_spill] sm:$0xff] }
 0x1a3   : > { %v11617_v55 = vadd.f32 %v1314_v46, %v917_v13  ;;  %19160 = vst [vmem:[#allocation245_spill] sm:$0xff] %v11621_v22  ;;  %v2486_v13 = vrot.slane %v2400_v44, 2  ;;  %9515 = vperm.xlu0 %9417, %v11621_v22   ;;  %v9437_v46 = vunpack.i.h.bf16 %v9435_v32  ;;  %v8904_v60 = vunpack.i.h.bf16 %v8902_v18 }
 0x1a4   : > { %19162 = vst [vmem:[#allocation70_spill] sm:$0xff] %v11624_v54  ;;  %v11629_v61 = vsel %vm2236_vm1, %v2302_v10, %v19163_v45  ;;  %v886_v56 = vmul.f32 %v9436_v9, %v10281_v47  ;;  %v8903_v29 = vunpack.i.l.bf16 %v8902_v18  ;;  %v8858_v32 = vunpack.i.h.bf16 %v8856_v34 }
 0x1a5   : > { %19164 = vst [vmem:[#allocation246_spill] sm:$0xff] %v11629_v61  ;;  %v887_v45 = vmul.f32 %v9437_v46, %v10281_v47  ;;  %v11638_v61 = vpack.i.bf16 %v8358_v30, %v8357_v38  ;;  %v1583_v44 = vmul.f32 %v8904_v60, %v19104_v16  ;;  %v2406_v22 = vmul.f32 %v8904_v60, %v19112_v3 }
 0x1a6   : > { %v19166_v54 = vrot.slane %v11588_v31, 2  ;;  %v922_v46 = vadd.f32 %v886_v56, %v19169_v59  ;;  %v11650_v9 = vmul.f32 %v8903_v29, %v19104_v16  ;;  %v19170_v60 = vrot.slane %v11485_v51, 1  ;;  %v19172_v59 = vld [vmem:[#allocation50_spill] sm:$0xff] }
 0x1a7   : > { %19165 = vst [vmem:[#allocation247_spill] sm:$0xff] %v11638_v61  ;;  %v923_v49 = vadd.f32 %v887_v45, %v19168_v62  ;;  %v19171_v38 = vrot.slane %v11491_v53, 1  ;;  %9030 = vperm.xlu2 %9017, %v11638_v61   ;;  %v19173_v56 = vrot.slane %v19172_v59, 1  ;;  %v2498_v62 = vrot.slane %v2406_v22, 2  ;;  %v11673_v53 = vld [vmem:[%s9785_s17 + $0x40] sm:$0xff]   ;;  %v19180_v22 = vld [vmem:[#allocation52_spill] sm:$0xff] }
 0x1a8   : > { %v11645_v57 = vsel %vm2236_vm1, %v19166_v54, %v2302_v10  ;;  %v1675_v10 = vrot.slane %v1583_v44, 1  ;;  %v11661_v54 = vmul.f32 %v8903_v29, %v19112_v3  ;;  %v1565_v18 = vmul.f32 %v8858_v32, %v19104_v16  ;;  %19175 = vst [vmem:[#allocation58_spill] sm:$0xff] %v11673_v53 }
 0x1a9   : > { %19167 = vst [vmem:[#allocation248_spill] sm:$0xff] %v11645_v57  ;;  %v1324_v30 = vsel %vm1269_vm0, %v19171_v38, %v19170_v60  ;;  %v11666_v45 = vsel %vm1269_vm0, %v1663_v35, %v19173_v56  ;;  %v11670_v31 = vmul.f32 %v8858_v32, %v19112_v3  ;;  %v19176_v60 = vrot.slane %v11611_v14, 1  ;;  %v9440_v57 = vpop.permute.xlu0 %9439 }
 0x1aa   : > { %19174 = vst [vmem:[#allocation59_spill] sm:$0xff] %v11666_v45  ;;  %v19178_v44 = vrot.slane %v11614_v4, 2  ;;  %v19181_v59 = vrot.slane %v19180_v22, 2  ;;  %v19183_v32 = vrot.slane %v11227_v27, 1  ;;  %v19184_v45 = vrot.slane %v11485_v51, 1 }
 0x1ab   : > { %v11678_v29 = vsel %vm1269_vm0, %v19176_v60, %v1663_v35  ;;  %v1405_v35 = vadd.f32 %v1324_v30, %v922_v46  ;;  %v8438_v27 = vunpack.c.h.bf16 %v11673_v53  ;;  %v9441_v60 = vunpack.i.l.bf16 %v9440_v57 }
 0x1ac   : > { %19177 = vst [vmem:[#allocation50_spill] sm:$0xff] %v11678_v29  ;;  %v11683_v38 = vsel %vm2236_vm1, %v19178_v44, %v2486_v13  ;;  %v11688_v56 = vsel %vm2236_vm1, %v2486_v13, %v19181_v59  ;;  %v1326_v17 = vsel %vm1269_vm0, %v19184_v45, %v19183_v32  ;;  %v8857_v29 = vunpack.i.l.bf16 %v8856_v34  ;;  %v19186_v44 = vld [vmem:[#allocation57_spill] sm:$0xff]  ;;  %v9731_v59 = vld [vmem:[%s9785_s17 + $0x48] sm:$0xff]  }
 0x1ad   : > { %19179 = vst [vmem:[#allocation249_spill] sm:$0xff] %v11683_v38  ;;  %v11695_v21 = vadd.f32 %v1326_v17, %v923_v49  ;;  %v19187_v38 = vrot.slane %v19186_v44, 1  ;;  %v8441_v51 = vunpack.c.l.bf16 %v9731_v59  ;;  %v8520_v45 = vld [vmem:[%s9785_s17 + $0x28] sm:$0xff]   ;;  %v1639_v34 = vrot.slane %v1565_v18, 1 }
 0x1ae   : > { %19182 = vst [vmem:[#allocation52_spill] sm:$0xff] %v11688_v56  ;;  %v8917_v56 = vpop.permute.xlu2 %8916  ;;  %v19189_v17 = vld [vmem:[#allocation63_spill] sm:$0xff]  ;;  %v1564_v32 = vmul.f32 %v8857_v29, %v19104_v16  ;;  %v9442_v13 = vunpack.i.h.bf16 %v9440_v57  ;;  %v892_v18 = vmul.f32 %v9441_v60, %v10281_v47  ;;  %v8362_v29 = vunpack.c.h.bf16 %v8520_v45 }
 0x1af   : > { %19185 = vst [vmem:[#allocation250_spill] sm:$0xff] %v11695_v21  ;;  %v11701_v22 = vsel %vm1269_vm0, %v1675_v10, %v19187_v38  ;;  %v19190_v49 = vrot.slane %v19189_v17, 2  ;;  %v8872_v38 = vpop.permute.xlu1 %8871  ;;  %v11714_v44 = vpack.i.bf16 %v8441_v51, %v8438_v27  ;;  %v8919_v59 = vunpack.i.h.bf16 %v8917_v56  ;;  %9040 = vperm.xlu2 %9017, %v10457_v42   ;;  %v19198_v51 = vld [vmem:[#allocation68_spill] sm:$0xff] }
 0x1b0   : > { %19188 = vst [vmem:[#allocation57_spill] sm:$0xff] %v11701_v22  ;;  %v19193_v22 = vld [vmem:[#allocation84_spill] sm:$0xff]  ;;  %v8918_v24 = vunpack.i.l.bf16 %v8917_v56  ;;  %v8361_v21 = vunpack.c.l.bf16 %v8520_v45  ;;  %v893_v17 = vmul.f32 %v9442_v13, %v10281_v47  ;;  %v19194_v27 = vrot.slane %v11650_v9, 1 }
 0x1b1   : > { %v11710_v46 = vsel %vm2236_vm1, %v2498_v62, %v19190_v49  ;;  %19192 = vst [vmem:[#allocation251_spill] sm:$0xff] %v11714_v44  ;;  %v11717_v61 = vadd.f32 %v19193_v22, %v1405_v35  ;;  %9541 = vperm.xlu0 %9417, %v11714_v44   ;;  %v8874_v49 = vunpack.i.h.bf16 %v8872_v38  ;;  %v1589_v35 = vmul.f32 %v8919_v59, %v19104_v16 }
 0x1b2   : > { %19191 = vst [vmem:[#allocation63_spill] sm:$0xff] %v11710_v46  ;;  %v11726_v57 = vsel %vm1269_vm0, %v19194_v27, %v1675_v10  ;;  %v2412_v56 = vmul.f32 %v8919_v59, %v19112_v3  ;;  %v11731_v22 = vmul.f32 %v8918_v24, %v19104_v16  ;;  %v19196_v13 = vrot.slane %v11661_v54, 2  ;;  %v19202_v46 = vld [vmem:[#allocation69_spill] sm:$0xff] }
 0x1b3   : > { %19195 = vst [vmem:[#allocation84_spill] sm:$0xff] %v11726_v57  ;;  %v1638_v60 = vrot.slane %v1564_v32, 1  ;;  %v928_v45 = vadd.f32 %v892_v18, %v19198_v51  ;;  %v11739_v30 = vpack.i.bf16 %v8362_v29, %v8361_v21  ;;  %v19200_v10 = vrot.slane %v11464_v41, 1 }
 0x1b4   : > { %v11736_v47 = vsel %vm2236_vm1, %v19196_v13, %v2498_v62  ;;  %v929_v59 = vadd.f32 %v893_v17, %v19202_v46  ;;  %v11748_v57 = vmul.f32 %v8918_v24, %v19112_v3  ;;  %v1571_v44 = vmul.f32 %v8874_v49, %v19104_v16  ;;  %v11764_v24 = vld [vmem:[%s9785_s17 + $0x58] sm:$0xff]  }
 0x1b5   : > { %19197 = vst [vmem:[#allocation252_spill] sm:$0xff] %v11736_v47  ;;  %v11744_v27 = vsel %vm1269_vm0, %v1639_v34, %v19200_v10  ;;  %v19203_v62 = vrot.slane %v11467_v28, 2  ;;  %v19204_v32 = vrot.slane %v11670_v31, 2  ;;  %v1687_v21 = vrot.slane %v1589_v35, 1  ;;  %9035 = vperm.xlu1 %9023, %v11739_v30  }
 0x1b6   : > { %19199 = vst [vmem:[#allocation68_spill] sm:$0xff] %v11739_v30  ;;  %v11761_v46 = vmul.f32 %v8874_v49, %v19112_v3  ;;  %v19207_v28 = vrot.slane %v11578_v5, 1  ;;  %v19208_v29 = vrot.slane %v11585_v37, 1  ;;  %v19209_v35 = vrot.slane %v11343_v52, 1 }
 0x1b7   : > { %19201 = vst [vmem:[#allocation253_spill] sm:$0xff] %v11744_v27  ;;  %v11756_v18 = vsel %vm2236_vm1, %v19204_v32, %v19203_v62  ;;  %v2510_v62 = vrot.slane %v2412_v56, 2  ;;  %v11778_v49 = vsel %vm1269_vm0, %v1638_v60, %v1639_v34  ;;  %v1651_v41 = vrot.slane %v1571_v44, 1  ;;  %v19214_v56 = vld [vmem:[#allocation73_spill] sm:$0xff]  ;;  %v9445_v60 = vpop.permute.xlu0 %9444  ;;  %9050 = vperm.xlu2 %9017, %v10508_v23  }
 0x1b8   : > { %19205 = vst [vmem:[#allocation69_spill] sm:$0xff] %v11756_v18  ;;  %v1336_v13 = vsel %vm1269_vm0, %v19208_v29, %v19207_v28  ;;  %v19210_v51 = vmov %v19207_v28  ;;  %v8873_v47 = vunpack.i.l.bf16 %v8872_v38  ;;  %v8450_v37 = vunpack.c.h.bf16 %v11764_v24  ;;  %v9732_v28 = vld [vmem:[%s9785_s17 + $0x60] sm:$0xff]  }
 0x1b9   : > { %19206 = vst [vmem:[#allocation254_spill] sm:$0xff] %v11764_v24  ;;  %v1338_v10 = vsel %vm1269_vm0, %v19210_v51, %v19209_v35  ;;  %v1411_v32 = vadd.f32 %v1336_v13, %v928_v45  ;;  %v8453_v29 = vunpack.c.l.bf16 %v9732_v28  ;;  %v19212_v52 = vrot.slane %v11731_v22, 1  ;;  %v8932_v45 = vpop.permute.xlu2 %8931 }
 0x1ba   : > { %19211 = vst [vmem:[#allocation255_spill] sm:$0xff] %v11778_v49  ;;  %v11780_v17 = vadd.f32 %v1338_v10, %v929_v59  ;;  %v19215_v35 = vrot.slane %v19214_v56, 1  ;;  %v2474_v38 = vrot.slane %v11761_v46, 2  ;;  %v1570_v44 = vmul.f32 %v8873_v47, %v19104_v16  ;;  %v19217_v59 = vld [vmem:[#allocation74_spill] sm:$0xff]  ;;  %v19221_v56 = vld [vmem:[#allocation91_spill] sm:$0xff] }
 0x1bb   : > { %v11788_v5 = vsel %vm1269_vm0, %v19212_v52, %v1687_v21  ;;  %v19218_v13 = vrot.slane %v19217_v59, 2  ;;  %v2393_v10 = vmul.f32 %v8873_v47, %v19112_v3  ;;  %v11803_v28 = vpack.i.bf16 %v8453_v29, %v8450_v37 }
 0x1bc   : > { %19213 = vst [vmem:[#allocation256_spill] sm:$0xff] %v11788_v5  ;;  %v11793_v34 = vsel %vm1269_vm0, %v1687_v21, %v19215_v35  ;;  %v9447_v52 = vunpack.i.h.bf16 %v9445_v60  ;;  %v11806_v18 = vadd.f32 %v19221_v56, %v1411_v32  ;;  %v19223_v21 = vrot.slane %v11536_v6, 1  ;;  %v19224_v5 = vld [vmem:[#allocation25_spill] sm:$0xff] }
 0x1bd   : > { %19216 = vst [vmem:[#allocation73_spill] sm:$0xff] %v11793_v34  ;;  %v11800_v51 = vsel %vm2236_vm1, %v2510_v62, %v19218_v13  ;;  %v9446_v35 = vunpack.i.l.bf16 %v9445_v60  ;;  %9556 = vperm.xlu0 %9417, %v11803_v28   ;;  %v11813_v59 = vperm.slane %v19224_v5, 2  ;;  %v19225_v13 = vld [vmem:[#allocation26_spill] sm:$0xff]  ;;  %v8934_v47 = vunpack.i.h.bf16 %v8932_v45  ;;  %v8882_v5 = vpop.permute.xlu1 %8881 }
 0x1be   : > { %19219 = vst [vmem:[#allocation74_spill] sm:$0xff] %v11800_v51  ;;  %v1654_v46 = vsel %vm1269_vm0, %v1651_v41, %v19223_v21  ;;  %v11816_v51 = vperm.slane %v19225_v13, 2  ;;  %v8933_v37 = vunpack.i.l.bf16 %v8932_v45  ;;  %v19226_v29 = vrot.slane %v11748_v57, 2  ;;  %v19232_v21 = vld [vmem:[#allocation36_spill] sm:$0xff] }
 0x1bf   : > { %19220 = vst [vmem:[#allocation257_spill] sm:$0xff] %v11803_v28  ;;  %v19228_v6 = vrot.slane %v11539_v39, 2  ;;  %v1649_v60 = vrot.slane %v1570_v44, 1  ;;  %v11831_v13 = vadd.f32 %v1654_v46, %v11349_v63  ;;  %v2472_v45 = vrot.slane %v2393_v10, 2  ;;  %9060 = vperm.xlu2 %9017, %v10593_v7   ;;  %v19271_v7 = vld [vmem:[#allocation202_spill] sm:$0xff] }
 0x1c0   : > { %19222 = vst [vmem:[#allocation91_spill] sm:$0xff] %v11806_v18  ;;  %v11821_v32 = vsel %vm2236_vm1, %v19226_v29, %v2510_v62  ;;  %v11834_v34 = vmul.f32 %v9447_v52, %v11813_v59  ;;  %v11837_v62 = vmul.f32 %v9447_v52, %v11816_v51  ;;  %v1932_v39 = vmul.f32 %v9446_v35, %v11813_v59  ;;  %v11857_v18 = vld [vmem:[%s9785_s17 + $0x70] sm:$0xff]  }
 0x1c1   : > { %19227 = vst [vmem:[#allocation25_spill] sm:$0xff] %v11821_v32  ;;  %v11826_v56 = vsel %vm2236_vm1, %v2474_v38, %v19228_v6  ;;  %v1595_v44 = vmul.f32 %v8934_v47, %v19104_v16  ;;  %v2418_v29 = vmul.f32 %v8934_v47, %v19112_v3  ;;  %v11843_v6 = vmul.f32 %v8933_v37, %v19104_v16  ;;  %v19234_v47 = vld [vmem:[#allocation5_spill] sm:$0xff] }
 0x1c2   : > { %19229 = vst [vmem:[#allocation26_spill] sm:$0xff] %v11826_v56  ;;  %v11846_v63 = vmul.f32 %v8933_v37, %v19112_v3  ;;  %v8884_v10 = vunpack.i.h.bf16 %v8882_v5  ;;  %v8883_v46 = vunpack.i.l.bf16 %v8882_v5  ;;  %v19233_v32 = vrot.slane %v19232_v21, 1  ;;  %9045 = vperm.xlu1 %9023, %v19234_v47   ;;  %v19236_v5 = vld [vmem:[#allocation38_spill] sm:$0xff] }
 0x1c3   : > { %19230 = vst [vmem:[#allocation258_spill] sm:$0xff] %v11834_v34  ;;  %v1652_v27 = vsel %vm1269_vm0, %v1649_v60, %v1651_v41  ;;  %v2006_v35 = vrot.slane %v1932_v39, 1  ;;  %v1699_v28 = vrot.slane %v1595_v44, 1  ;;  %v2522_v24 = vrot.slane %v2418_v29, 2 }
 0x1c4   : > { %19231 = vst [vmem:[#allocation259_spill] sm:$0xff] %v11837_v62  ;;  %v1650_v52 = vsel %vm1269_vm0, %v19233_v32, %v1649_v60  ;;  %v1575_v49 = vmul.f32 %v8884_v10, %v19104_v16  ;;  %v1574_v37 = vmul.f32 %v8883_v46, %v19104_v16  ;;  %v19237_v21 = vrot.slane %v19236_v5, 2 }
 0x1c5   : > { %19235 = vst [vmem:[#allocation36_spill] sm:$0xff] %v11857_v18  ;;  %v11865_v41 = vsel %vm2236_vm1, %v2472_v45, %v2474_v38  ;;  %v11869_v39 = vmul.f32 %v8884_v10, %v19112_v3  ;;  %v11872_v44 = vadd.f32 %v1650_v52, %v11458_v40  ;;  %v11875_v29 = vadd.f32 %v1652_v27, %v10937_v19  ;;  %v19243_v10 = vld [vmem:[#allocation81_spill] sm:$0xff] }
 0x1c6   : > { %v11862_v32 = vsel %vm2236_vm1, %v19237_v21, %v2472_v45  ;;  %19239 = vst [vmem:[#allocation260_spill] sm:$0xff] %v11865_v41  ;;  %v18439_v53 = vrot.slane %v11834_v34, 1  ;;  %v9450_v21 = vpop.permute.xlu0 %9449  ;;  %v1659_v47 = vrot.slane %v1575_v49, 1  ;;  %v1657_v23 = vrot.slane %v1574_v37, 1  ;;  %v9733_v45 = vld [vmem:[%s9785_s17 + $0x78] sm:$0xff]   ;;  %v8947_v41 = vpop.permute.xlu2 %8946  ;;  %v19246_v37 = vld [vmem:[#allocation83_spill] sm:$0xff] }
 0x1c7   : > { %19238 = vst [vmem:[#allocation38_spill] sm:$0xff] %v11862_v32  ;;  %v8462_v38 = vunpack.c.h.bf16 %v11857_v18  ;;  %v8465_v60 = vunpack.c.l.bf16 %v9733_v45  ;;  %v19241_v19 = vrot.slane %v11843_v6, 1  ;;  %v19244_v52 = vrot.slane %v19243_v10, 1  ;;  %9070 = vperm.xlu2 %9017, %v10686_v2  }
 0x1c8   : > { %v11884_v40 = vsel %vm1269_vm0, %v2006_v35, %v18439_v53  ;;  %v19247_v5 = vrot.slane %v19246_v37, 2  ;;  %v19249_v62 = vrot.slane %v11846_v63, 2  ;;  %v2482_v53 = vrot.slane %v11869_v39, 2 }
 0x1c9   : > { %19240 = vst [vmem:[#allocation261_spill] sm:$0xff] %v11884_v40  ;;  %v11889_v27 = vsel %vm1269_vm0, %v19241_v19, %v1699_v28  ;;  %v11894_v49 = vsel %vm1269_vm0, %v1699_v28, %v19244_v52  ;;  %v2397_v19 = vmul.f32 %v8883_v46, %v19112_v3  ;;  %v11908_v40 = vpack.i.bf16 %v8465_v60, %v8462_v38  ;;  %v8897_v52 = vpop.permute.xlu1 %8896 }
 0x1ca   : > { %19242 = vst [vmem:[#allocation262_spill] sm:$0xff] %v11889_v27  ;;  %v11899_v45 = vsel %vm2236_vm1, %v2522_v24, %v19247_v5  ;;  %v11904_v35 = vsel %vm2236_vm1, %v19249_v62, %v2522_v24  ;;  %v9452_v10 = vunpack.i.h.bf16 %v9450_v21  ;;  %v9451_v27 = vunpack.i.l.bf16 %v9450_v21  ;;  %9055 = vperm.xlu1 %9023, %v9837_v36  }
 0x1cb   : > { %19245 = vst [vmem:[#allocation81_spill] sm:$0xff] %v11894_v49  ;;  %v8949_v28 = vunpack.i.h.bf16 %v8947_v41  ;;  %v1660_v37 = vsel %vm1269_vm0, %v1657_v23, %v1659_v47  ;;  %9571 = vperm.xlu0 %9417, %v11908_v40   ;;  %v19252_v24 = vrot.slane %v11611_v14, 1  ;;  %v19256_v21 = vrot.slane %v11614_v4, 2 }
 0x1cc   : > { %19248 = vst [vmem:[#allocation83_spill] sm:$0xff] %v11899_v45  ;;  %v8948_v45 = vunpack.i.l.bf16 %v8947_v41  ;;  %v11919_v46 = vmul.f32 %v9452_v10, %v11813_v59  ;;  %v11922_v60 = vmul.f32 %v9452_v10, %v11816_v51  ;;  %v11925_v39 = vmul.f32 %v9451_v27, %v11813_v59 }
 0x1cd   : > { %19250 = vst [vmem:[#allocation263_spill] sm:$0xff] %v11904_v35  ;;  %v11916_v62 = vsel %vm1269_vm0, %v1659_v47, %v19252_v24  ;;  %v11931_v41 = vsel %vm2236_vm1, %v2482_v53, %v19256_v21  ;;  %v11934_v14 = vmul.f32 %v9451_v27, %v11816_v51  ;;  %v2387_v47 = vmul.f32 %v8949_v28, %v19112_v3  ;;  %v11945_v21 = vld [vmem:[%s9785_s17 + $0x88] sm:$0xff]  }
 0x1ce   : > { %19251 = vst [vmem:[#allocation264_spill] sm:$0xff] %v11908_v40  ;;  %v8899_v38 = vunpack.i.h.bf16 %v8897_v52  ;;  %v19258_v10 = vrot.slane %v11513_v58, 1  ;;  %v1757_v5 = vadd.f32 %v1660_v37, %v11053_v1  ;;  %v18444_v35 = vrot.slane %v11919_v46, 1 }
 0x1cf   : > { %19253 = vst [vmem:[#allocation265_spill] sm:$0xff] %v11916_v62  ;;  %v18445_v4 = vrot.slane %v11925_v39, 1  ;;  %v2480_v49 = vrot.slane %v2397_v19, 2  ;;  %v2461_v27 = vrot.slane %v2387_v47, 2  ;;  %v11948_v28 = vmul.f32 %v8948_v45, %v19104_v16  ;;  %v9455_v19 = vpop.permute.xlu0 %9454  ;;  %9080 = vperm.xlu2 %9017, %v11541_v43  }
 0x1d0   : > { %19254 = vst [vmem:[#allocation266_spill] sm:$0xff] %v11919_v46  ;;  %v1658_v24 = vsel %vm1269_vm0, %v19258_v10, %v1657_v23  ;;  %v11958_v1 = vmul.f32 %v8948_v45, %v19112_v3  ;;  %v8898_v37 = vunpack.i.l.bf16 %v8897_v52  ;;  %v19260_v62 = vrot.slane %v11670_v31, 2 }
 0x1d1   : > { %19255 = vst [vmem:[#allocation267_spill] sm:$0xff] %v11922_v60  ;;  %v2028_v23 = vsel %vm1269_vm0, %v18445_v4, %v18444_v35  ;;  %v8474_v58 = vunpack.c.h.bf16 %v11945_v21  ;;  %v2404_v36 = vmul.f32 %v8899_v38, %v19112_v3  ;;  %v9734_v4 = vld [vmem:[%s9785_s17 + $0x90] sm:$0xff]   ;;  %v11971_v52 = vadd.f32 %v1658_v24, %v11319_v12  ;;  %v19269_v12 = vld [vmem:[#allocation49_spill] sm:$0xff] }
 0x1d2   : > { %19257 = vst [vmem:[#allocation268_spill] sm:$0xff] %v11931_v41  ;;  %v1581_v41 = vmul.f32 %v8899_v38, %v19104_v16  ;;  %v2125_v10 = vadd.f32 %v2028_v23, %v1757_v5  ;;  %v11964_v40 = vsel %vm2236_vm1, %v2461_v27, %v19260_v62  ;;  %v1580_v35 = vmul.f32 %v8898_v37, %v19104_v16  ;;  %v19262_v5 = vld [vmem:[#allocation186_spill] sm:$0xff] }
 0x1d3   : > { %19259 = vst [vmem:[#allocation269_spill] sm:$0xff] %v11945_v21  ;;  %v8477_v45 = vunpack.c.l.bf16 %v9734_v4  ;;  %v2403_v47 = vmul.f32 %v8898_v37, %v19112_v3  ;;  %v9457_v31 = vunpack.i.h.bf16 %v9455_v19  ;;  %v19263_v62 = vrot.slane %v11527_v26, 2 }
 0x1d4   : > { %19261 = vst [vmem:[#allocation270_spill] sm:$0xff] %v11964_v40  ;;  %v1671_v18 = vrot.slane %v1581_v41, 1  ;;  %v2356_v23 = vadd.f32 %v19262_v5, %v2125_v10  ;;  %v2483_v41 = vsel %vm2236_vm1, %v2480_v49, %v2482_v53  ;;  %v1669_v38 = vrot.slane %v1580_v35, 1  ;;  %v8912_v35 = vpop.permute.xlu1 %8911 }
 0x1d5   : > { %v11978_v27 = vsel %vm2236_vm1, %v19263_v62, %v2480_v49  ;;  %v11981_v40 = vpack.i.bf16 %v8477_v45, %v8474_v58  ;;  %v11986_v24 = vmul.f32 %v9457_v31, %v11813_v59  ;;  %v9456_v10 = vunpack.i.l.bf16 %v9455_v19  ;;  %v8959_v58 = vpop.permute.xlu2 %8958 }
 0x1d6   : > { %v19266_v37 = vrot.slane %v11922_v60, 2  ;;  %v19267_v26 = vrot.slane %v11934_v14, 2  ;;  %v2494_v62 = vrot.slane %v2404_v36, 2  ;;  %v1672_v53 = vsel %vm1269_vm0, %v1669_v38, %v1671_v18 }
 0x1d7   : > { %19264 = vst [vmem:[#allocation186_spill] sm:$0xff] %v11981_v40  ;;  %9586 = vperm.xlu0 %9417, %v11981_v40   ;;  %v11996_v49 = vmul.f32 %v9457_v31, %v11816_v51  ;;  %v2580_v45 = vadd.f32 %v2483_v41, %v2356_v23  ;;  %v19270_v4 = vrot.slane %v19269_v12, 1  ;;  %v1763_v60 = vadd.f32 %v1672_v53, %v19271_v7 }
 0x1d8   : > { %19265 = vst [vmem:[#allocation271_spill] sm:$0xff] %v11986_v24  ;;  %v2707_v5 = vsel %vm2236_vm1, %v19267_v26, %v19266_v37  ;;  %v2492_v46 = vrot.slane %v2403_v47, 2  ;;  %v18456_v37 = vrot.slane %v11986_v24, 1  ;;  %v12004_v36 = vmul.f32 %v9456_v10, %v11813_v59  ;;  %v19272_v47 = vld [vmem:[#allocation9_spill] sm:$0xff] }
 0x1d9   : > { %19268 = vst [vmem:[#allocation272_spill] sm:$0xff] %v11996_v49  ;;  %v1670_v19 = vsel %vm1269_vm0, %v19270_v4, %v1669_v38  ;;  %v12007_v26 = vmul.f32 %v9456_v10, %v11816_v51  ;;  %v8914_v31 = vunpack.i.h.bf16 %v8912_v35  ;;  %v8913_v40 = vunpack.i.l.bf16 %v8912_v35  ;;  %9065 = vperm.xlu1 %9023, %v19272_v47  }
 0x1da   : > { %v8961_v34 = vunpack.i.h.bf16 %v8959_v58  ;;  %v18457_v41 = vrot.slane %v12004_v36, 1  ;;  %v8960_v7 = vunpack.i.l.bf16 %v8959_v58  ;;  %v19274_v23 = vrot.slane %v11650_v9, 1 }
 0x1db   : > { %v1587_v4 = vmul.f32 %v8914_v31, %v19104_v16  ;;  %v2410_v12 = vmul.f32 %v8914_v31, %v19112_v3  ;;  %v1586_v10 = vmul.f32 %v8913_v40, %v19104_v16  ;;  %v12023_v35 = vmul.f32 %v8913_v40, %v19112_v3 }
 0x1dc   : > { %v2040_v53 = vsel %vm1269_vm0, %v18457_v41, %v18456_v37  ;;  %v12026_v38 = vmul.f32 %v8961_v34, %v11813_v59  ;;  %v12029_v58 = vmul.f32 %v8961_v34, %v11816_v51  ;;  %v12034_v31 = vsel %vm1269_vm0, %v1671_v18, %v19274_v23  ;;  %v19278_v41 = vld [vmem:[#allocation51_spill] sm:$0xff] }
 0x1dd   : > { %19275 = vst [vmem:[#allocation202_spill] sm:$0xff] %v12034_v31  ;;  %v2131_v2 = vadd.f32 %v2040_v53, %v1763_v60  ;;  %v1683_v24 = vrot.slane %v1587_v4, 1  ;;  %v19276_v37 = vrot.slane %v11661_v54, 2  ;;  %v19279_v32 = vrot.slane %v19278_v41, 2  ;;  %v19281_v23 = vld [vmem:[#allocation3_spill] sm:$0xff]  ;;  %v9460_v41 = vpop.permute.xlu0 %9459  ;;  %v8969_v21 = vpop.permute.xlu2 %8968 }
 0x1de   : > { %19273 = vst [vmem:[#allocation49_spill] sm:$0xff] %v12029_v58  ;;  %v2495_v34 = vsel %vm2236_vm1, %v2492_v46, %v2494_v62  ;;  %v12049_v9 = vmul.f32 %v8960_v7, %v11813_v59  ;;  %v12052_v18 = vadd.f32 %v2707_v5, %v2580_v45  ;;  %v12055_v60 = vadd.f32 %v1670_v19, %v11530_v20  ;;  %v8927_v45 = vpop.permute.xlu1 %8926  ;;  %v19284_v20 = vld [vmem:[#allocation201_spill] sm:$0xff]  ;;  %v19293_v31 = vld [vmem:[#allocation11_spill] sm:$0xff] }
 0x1df   : > { %v12040_v40 = vsel %vm2236_vm1, %v2494_v62, %v19276_v37  ;;  %v12045_v56 = vsel %vm2236_vm1, %v19279_v32, %v2492_v46  ;;  %9590 = vset.pattern.permute.xlu0 %v19141_v33  ;;  %v1681_v54 = vrot.slane %v1586_v10, 1  ;;  %v19282_v32 = vrot.slane %v11996_v49, 2 }
 0x1e0   : > { %19277 = vst [vmem:[#allocation273_spill] sm:$0xff] %v12040_v40  ;;  %9592 = vperm.xlu0 %9590, %v19281_v23   ;;  %v19283_v46 = vrot.slane %v12007_v26, 2  ;;  %v2506_v4 = vrot.slane %v2410_v12, 2  ;;  %v2504_v53 = vrot.slane %v12023_v35, 2  ;;  %v18461_v5 = vrot.slane %v12029_v58, 2 }
 0x1e1   : > { %19280 = vst [vmem:[#allocation51_spill] sm:$0xff] %v12052_v18  ;;  %v2362_v19 = vadd.f32 %v19284_v20, %v2131_v2  ;;  %v19285_v10 = vrot.slane %v11731_v22, 1  ;;  %v18458_v23 = vrot.slane %v12049_v9, 1  ;;  %v12074_v37 = vmul.f32 %v8960_v7, %v11816_v51  ;;  %9075 = vperm.xlu1 %9023, %v19293_v31  }
 0x1e2   : > { %v2719_v62 = vsel %vm2236_vm1, %v19283_v46, %v19282_v32  ;;  %v9462_v40 = vunpack.i.h.bf16 %v9460_v41  ;;  %v9461_v32 = vunpack.i.l.bf16 %v9460_v41  ;;  %v1684_v12 = vsel %vm1269_vm0, %v1681_v54, %v1683_v24 }
 0x1e3   : > { %v12070_v47 = vsel %vm1269_vm0, %v1683_v24, %v19285_v10  ;;  %v19287_v35 = vrot.slane %v12026_v38, 1  ;;  %v8929_v46 = vunpack.i.h.bf16 %v8927_v45  ;;  %v19288_v24 = vrot.slane %v11748_v57, 2 }
 0x1e4   : > { %19286 = vst [vmem:[#allocation3_spill] sm:$0xff] %v12070_v47  ;;  %v12085_v10 = vmul.f32 %v9462_v40, %v11813_v59  ;;  %v12088_v7 = vmul.f32 %v9462_v40, %v11816_v51  ;;  %v12091_v41 = vmul.f32 %v9461_v32, %v11813_v59  ;;  %v12108_v47 = vmul.f32 %v9461_v32, %v11816_v51  ;;  %v19295_v32 = vld [vmem:[#allocation53_spill] sm:$0xff] }
 0x1e5   : > { %v2016_v2 = vsel %vm1269_vm0, %v18458_v23, %v19287_v35  ;;  %v12097_v35 = vsel %vm2236_vm1, %v2506_v4, %v19288_v24  ;;  %v19290_v23 = vld [vmem:[#allocation56_spill] sm:$0xff]  ;;  %v8970_v31 = vunpack.i.l.bf16 %v8969_v21  ;;  %v2586_v43 = vadd.f32 %v2495_v34, %v2362_v19 }
 0x1e6   : > { %v2119_v20 = vadd.f32 %v2016_v2, %v11480_v50  ;;  %19289 = vst [vmem:[#allocation201_spill] sm:$0xff] %v12097_v35  ;;  %v19291_v22 = vrot.slane %v19290_v23, 1  ;;  %v19292_v2 = vrot.slane %v12074_v37, 2  ;;  %v18465_v24 = vrot.slane %v12085_v10, 1 }
 0x1e7   : > { %v18466_v23 = vrot.slane %v12091_v41, 1  ;;  %v2507_v49 = vsel %vm2236_vm1, %v2504_v53, %v2506_v4  ;;  %v12140_v34 = vmul.f32 %v8970_v31, %v11816_v51  ;;  %v19298_v4 = vrot.slane %v12088_v7, 2 }
 0x1e8   : > { %v1682_v50 = vsel %vm1269_vm0, %v19291_v22, %v1681_v54  ;;  %v2695_v40 = vsel %vm2236_vm1, %v19292_v2, %v18461_v5  ;;  %v2350_v57 = vadd.f32 %v11260_v8, %v2119_v20  ;;  %v1593_v54 = vmul.f32 %v8929_v46, %v19104_v16  ;;  %v19294_v22 = vld [vmem:[#allocation210_spill] sm:$0xff]  ;;  %v19297_v2 = vld [vmem:[#allocation211_spill] sm:$0xff] }
 0x1e9   : > { %v1769_v35 = vadd.f32 %v1684_v12, %v19294_v22  ;;  %v8928_v5 = vunpack.i.l.bf16 %v8927_v45  ;;  %v2052_v8 = vsel %vm1269_vm0, %v18466_v23, %v18465_v24  ;;  %v8971_v20 = vunpack.i.h.bf16 %v8969_v21  ;;  %v19302_v23 = vld [vmem:[#allocation61_spill] sm:$0xff] }
 0x1ea   : > { %v2574_v18 = vadd.f32 %v19295_v32, %v2350_v57  ;;  %v12126_v12 = vmul.f32 %v8929_v46, %v19112_v3  ;;  %v1695_v45 = vrot.slane %v1593_v54, 1  ;;  %v12137_v21 = vmul.f32 %v8970_v31, %v11813_v59 }
 0x1eb   : > { %v2137_v58 = vadd.f32 %v2052_v8, %v1769_v35  ;;  %v12131_v57 = vmul.f32 %v8928_v5, %v19104_v16  ;;  %v1941_v32 = vmul.f32 %v8971_v20, %v11813_v59  ;;  %v2620_v24 = vmul.f32 %v8971_v20, %v11816_v51 }
 0x1ec   : > { %v12128_v22 = vadd.f32 %v2695_v40, %v2574_v18  ;;  %v19299_v18 = vrot.slane %v12108_v47, 2  ;;  %v19300_v40 = vmov 1   ;;  %v18468_v8 = vrot.slane %v12140_v34, 2 }
 0x1ed   : > { %v2368_v33 = vadd.f32 %v19297_v2, %v2137_v58  ;;  %v1693_v46 = vrot.slane %v12131_v57, 1  ;;  %v2023_v35 = vrot.slane %v1941_v32, 1  ;;  %9090 = vset.pattern.permute.xlu2 %v19300_v40  ;;  %v2702_v54 = vrot.slane %v2620_v24, 2  ;;  %9084 = vset.pattern.permute.xlu1 %v19300_v40 }
 0x1ee   : > { %19296 = vst [vmem:[#allocation56_spill] sm:$0xff] %v12128_v22  ;;  %v2731_v19 = vsel %vm2236_vm1, %v19299_v18, %v19298_v4  ;;  %v18467_v2 = vrot.slane %v12137_v21, 1  ;;  %v12152_v31 = vadd.f32 %v2719_v62, %v2586_v43  ;;  %v12155_v20 = vadd.f32 %v1682_v50, %v11617_v55 }
 0x1ef   : > { %v2592_v58 = vadd.f32 %v2507_v49, %v2368_v33  ;;  %v19303_v4 = vrot.slane %v19302_v23, 2  ;;  %v2415_v32 = vmul.f32 %v8928_v5, %v19112_v3  ;;  %v19304_v33 = vld [vmem:[#allocation13_spill] sm:$0xff]  ;;  %v9465_v49 = vpop.permute.xlu0 %9464  ;;  %v19306_v18 = vrot.slane %v11843_v6, 1 }
 0x1f0   : > { %19301 = vst [vmem:[#allocation210_spill] sm:$0xff] %v12152_v31  ;;  %9597 = vperm.xlu0 %9590, %v19304_v33   ;;  %v2518_v55 = vrot.slane %v12126_v12, 2  ;;  %v2024_v62 = vsel %vm1269_vm0, %v18467_v2, %v2023_v35  ;;  %v19308_v5 = vrot.slane %v11925_v39, 1  ;;  %v2703_v6 = vsel %vm2236_vm1, %v18468_v8, %v2702_v54 }
 0x1f1   : > { %v12160_v57 = vsel %vm2236_vm1, %v19303_v4, %v2504_v53  ;;  %v12164_v24 = vadd.f32 %v2731_v19, %v2592_v58  ;;  %v12169_v43 = vsel %vm1269_vm0, %v1695_v45, %v19306_v18  ;;  %v8942_v53 = vpop.permute.xlu1 %8941  ;;  %v2123_v23 = vadd.f32 %v2024_v62, %v11569_v11 }
 0x1f2   : > { %19307 = vst [vmem:[#allocation211_spill] sm:$0xff] %v12169_v43  ;;  %v2026_v50 = vsel %vm1269_vm0, %v2023_v35, %v19308_v5  ;;  %v19309_v19 = vrot.slane %v11934_v14, 2  ;;  %v1696_v12 = vsel %vm1269_vm0, %v1693_v46, %v1695_v45  ;;  %v9467_v18 = vunpack.i.h.bf16 %v9465_v49  ;;  %v8517_v43 = vld [vmem:[%s9785_s17 + $0x10] sm:$0xff]  }
 0x1f3   : > { %19305 = vst [vmem:[#allocation53_spill] sm:$0xff] %v12164_v24  ;;  %v2124_v4 = vadd.f32 %v2026_v50, %v11971_v52  ;;  %v9466_v2 = vunpack.i.l.bf16 %v9465_v49  ;;  %v2516_v39 = vrot.slane %v2415_v32, 2  ;;  %v2354_v35 = vadd.f32 %v11364_v25, %v2123_v23  ;;  %v19334_v24 = vld [vmem:[#allocation62_spill] sm:$0xff] }
 0x1f4   : > { %v2705_v58 = vsel %vm2236_vm1, %v2702_v54, %v19309_v19  ;;  %v8944_v5 = vunpack.i.h.bf16 %v8942_v53  ;;  %v8943_v11 = vunpack.i.l.bf16 %v8942_v53  ;;  %v12191_v8 = vmul.f32 %v9467_v18, %v11813_v59 }
 0x1f5   : > { %v2355_v62 = vadd.f32 %v11300_v0, %v2124_v4  ;;  %v12194_v14 = vmul.f32 %v9467_v18, %v11816_v51  ;;  %v12197_v45 = vmul.f32 %v9466_v2, %v11813_v59  ;;  %v1775_v52 = vadd.f32 %v1696_v12, %v11288_v15 }
 0x1f6   : > { %v2578_v54 = vadd.f32 %v11603_v48, %v2354_v35  ;;  %v12202_v32 = vmul.f32 %v9466_v2, %v11816_v51  ;;  %v8349_v25 = vunpack.c.l.bf16 %v8517_v43  ;;  %v18469_v0 = vrot.slane %v12191_v8, 1  ;;  %v8979_v48 = vpop.permute.xlu2 %8978  ;;  %v19315_v35 = vld [vmem:[#allocation71_spill] sm:$0xff] }
 0x1f7   : > { %19310 = vst [vmem:[#allocation61_spill] sm:$0xff] %v12194_v14  ;;  %v2579_v49 = vadd.f32 %v11978_v27, %v2355_v62  ;;  %v18470_v53 = vrot.slane %v12197_v45, 1  ;;  %v8350_v50 = vunpack.c.h.bf16 %v8517_v43  ;;  %v12211_v4 = vmul.f32 %v8944_v5, %v19104_v16 }
 0x1f8   : > { %v12207_v23 = vadd.f32 %v2703_v6, %v2578_v54  ;;  %v12214_v15 = vmul.f32 %v8944_v5, %v19112_v3  ;;  %v1598_v6 = vmul.f32 %v8943_v11, %v19104_v16  ;;  %v19313_v12 = vrot.slane %v11846_v63, 2 }
 0x1f9   : > { %v12216_v2 = vadd.f32 %v2705_v58, %v2579_v49  ;;  %v2064_v27 = vsel %vm1269_vm0, %v18470_v53, %v18469_v0  ;;  %v19316_v5 = vrot.slane %v19315_v35, 1  ;;  %v12234_v54 = vmul.f32 %v8943_v11, %v19112_v3  ;;  %v19317_v49 = vld [vmem:[#allocation72_spill] sm:$0xff]  ;;  %v19320_v35 = vld [vmem:[#allocation250_spill] sm:$0xff] }
 0x1fa   : > { %19311 = vst [vmem:[#allocation13_spill] sm:$0xff] %v12207_v23  ;;  %v12228_v18 = vsel %vm2236_vm1, %v2518_v55, %v19313_v12  ;;  %v2143_v62 = vadd.f32 %v2064_v27, %v1775_v52  ;;  %v19318_v19 = vrot.slane %v19317_v49, 2  ;;  %v1705_v53 = vrot.slane %v1598_v6, 1 }
 0x1fb   : > { %19312 = vst [vmem:[#allocation274_spill] sm:$0xff] %v12216_v2  ;;  %v1694_v58 = vsel %vm1269_vm0, %v19316_v5, %v1693_v46  ;;  %v12241_v16 = vpack.i.bf16 %v8350_v50, %v8349_v25  ;;  %v8981_v63 = vunpack.i.h.bf16 %v8979_v48  ;;  %v18472_v12 = vrot.slane %v12211_v4, 1  ;;  %v19323_v50 = vld [vmem:[#allocation222_spill] sm:$0xff]  ;;  %v19326_v5 = vld [vmem:[#allocation157_spill] sm:$0xff] }
 0x1fc   : > { %19314 = vst [vmem:[#allocation275_spill] sm:$0xff] %v12228_v18  ;;  %v12239_v0 = vsel %vm2236_vm1, %v19318_v19, %v2516_v39  ;;  %v8980_v43 = vunpack.i.l.bf16 %v8979_v48  ;;  %v9470_v18 = vpop.permute.xlu0 %9469  ;;  %v12245_v40 = vadd.f32 %v1694_v58, %v19320_v35  ;;  %v12248_v46 = vsel %vm2236_vm1, %v2516_v39, %v2518_v55  ;;  %v19324_v48 = vld [vmem:[#allocation80_spill] sm:$0xff]  ;;  %9086 = vperm.xlu1 %9084, %v19326_v5  }
 0x1fd   : > { %19319 = vst [vmem:[#allocation71_spill] sm:$0xff] %v12241_v16  ;;  %v19321_v3 = vrot.slane %v12194_v14, 2  ;;  %v19322_v11 = vrot.slane %v12202_v32, 2  ;;  %v18473_v25 = vrot.slane %v12214_v15, 2  ;;  %9092 = vperm.xlu2 %9090, %v12241_v16   ;;  %v12260_v19 = vadd.f32 %v19323_v50, %v2143_v62  ;;  %v19327_v62 = vld [vmem:[#allocation14_spill] sm:$0xff] }
 0x1fe   : > { %v19325_v27 = vrot.slane %v19324_v48, 1  ;;  %v1947_v39 = vmul.f32 %v8981_v63, %v11813_v59  ;;  %v2626_v58 = vmul.f32 %v8981_v63, %v11816_v51  ;;  %v12272_v49 = vmul.f32 %v8980_v43, %v11813_v59  ;;  %9602 = vperm.xlu0 %9590, %v19327_v62  }
 0x1ff   : > { %v12255_v52 = vsel %vm2236_vm1, %v19322_v11, %v19321_v3  ;;  %v12275_v35 = vmul.f32 %v8980_v43, %v11816_v51  ;;  %v9472_v3 = vunpack.i.h.bf16 %v9470_v18  ;;  %v1708_v11 = vsel %vm1269_vm0, %v1705_v53, %v18472_v12 }
 0x200   : > { %v12265_v6 = vsel %vm1269_vm0, %v19325_v27, %v1705_v53  ;;  %v2035_v50 = vrot.slane %v1947_v39, 1  ;;  %v9471_v48 = vunpack.i.l.bf16 %v9470_v18  ;;  %v2714_v27 = vrot.slane %v2626_v58, 2  ;;  %v8989_v58 = vpop.permute.xlu2 %8988 }
 0x201   : > { %v18477_v5 = vrot.slane %v12272_v49, 1  ;;  %v12284_v55 = vmul.f32 %v9472_v3, %v11813_v59  ;;  %v19328_v43 = vrot.slane %v12234_v54, 2  ;;  %v19329_v23 = vrot.slane %v12004_v36, 1 }
 0x202   : > { %v12295_v18 = vmul.f32 %v9472_v3, %v11816_v51  ;;  %v12298_v39 = vmul.f32 %v9471_v48, %v11813_v59  ;;  %v19331_v2 = vrot.slane %v12275_v35, 2  ;;  %v19332_v36 = vrot.slane %v12007_v26, 2  ;;  %v8953_v3 = vpop.permute.xlu1 %8952 }
 0x203   : > { %v2531_v62 = vsel %vm2236_vm1, %v19328_v43, %v18473_v25  ;;  %v2038_v53 = vsel %vm1269_vm0, %v2035_v50, %v19329_v23  ;;  %v2036_v12 = vsel %vm1269_vm0, %v18477_v5, %v2035_v50  ;;  %v19333_v25 = vld [vmem:[#allocation32_spill] sm:$0xff]  ;;  %v18479_v31 = vrot.slane %v12284_v55, 1  ;;  %v19335_v50 = vld [vmem:[#allocation237_spill] sm:$0xff] }
 0x204   : > { %19330 = vst [vmem:[#allocation72_spill] sm:$0xff] %v12295_v18  ;;  %v2130_v63 = vadd.f32 %v2038_v53, %v12055_v60  ;;  %v2715_v43 = vsel %vm2236_vm1, %v19331_v2, %v2714_v27  ;;  %v2717_v23 = vsel %vm2236_vm1, %v2714_v27, %v19332_v36  ;;  %v1781_v22 = vadd.f32 %v1708_v11, %v19333_v25  ;;  %v19336_v53 = vld [vmem:[#allocation238_spill] sm:$0xff]  ;;  %v19337_v36 = vld [vmem:[#allocation64_spill] sm:$0xff] }
 0x205   : > { %v2129_v16 = vadd.f32 %v2036_v12, %v19334_v24  ;;  %v18480_v14 = vrot.slane %v12298_v39, 1  ;;  %v12316_v60 = vmul.f32 %v9471_v48, %v11816_v51  ;;  %9107 = vperm.xlu2 %9090, %v11739_v30   ;;  %v8991_v2 = vunpack.i.h.bf16 %v8989_v58  ;;  %v19338_v30 = vld [vmem:[#allocation247_spill] sm:$0xff] }
 0x206   : > { %v2361_v5 = vadd.f32 %v19335_v50, %v2130_v63  ;;  %v8990_v26 = vunpack.i.l.bf16 %v8989_v58  ;;  %v8955_v12 = vunpack.i.h.bf16 %v8953_v3  ;;  %9102 = vperm.xlu1 %9084, %v19338_v30   ;;  %v19342_v11 = vrot.slane %v12091_v41, 1 }
 0x207   : > { %v2360_v27 = vadd.f32 %v19336_v53, %v2129_v16  ;;  %v2076_v24 = vsel %vm1269_vm0, %v18480_v14, %v18479_v31  ;;  %v1953_v48 = vmul.f32 %v8991_v2, %v11813_v59  ;;  %v2632_v58 = vmul.f32 %v8991_v2, %v11816_v51  ;;  %v19341_v14 = vld [vmem:[#allocation31_spill] sm:$0xff] }
 0x208   : > { %v2585_v25 = vadd.f32 %v12045_v56, %v2361_v5  ;;  %v2149_v63 = vadd.f32 %v2076_v24, %v1781_v22  ;;  %v12331_v16 = vmul.f32 %v8990_v26, %v11813_v59  ;;  %v12334_v53 = vmul.f32 %v8990_v26, %v11816_v51 }
 0x209   : > { %v2584_v50 = vadd.f32 %v19337_v36, %v2360_v27  ;;  %v2047_v5 = vrot.slane %v1953_v48, 1  ;;  %v1935_v22 = vmul.f32 %v8955_v12, %v11813_v59  ;;  %v2726_v27 = vrot.slane %v2632_v58, 2 }
 0x20a   : > { %v12337_v31 = vadd.f32 %v2717_v23, %v2585_v25  ;;  %v18482_v2 = vrot.slane %v12331_v16, 1  ;;  %v18481_v36 = vrot.slane %v12334_v53, 2  ;;  %v2380_v26 = vadd.f32 %v19341_v14, %v2149_v63 }
 0x20b   : > { %v12341_v24 = vadd.f32 %v2715_v43, %v2584_v50  ;;  %v2050_v23 = vsel %vm1269_vm0, %v2047_v5, %v19342_v11  ;;  %v2011_v25 = vrot.slane %v1935_v22, 1  ;;  %v2614_v56 = vmul.f32 %v8955_v12, %v11816_v51  ;;  %v19344_v11 = vld [vmem:[#allocation70_spill] sm:$0xff] }
 0x20c   : > { %19339 = vst [vmem:[#allocation250_spill] sm:$0xff] %v12337_v31  ;;  %v2048_v43 = vsel %vm1269_vm0, %v18482_v2, %v2047_v5  ;;  %v2136_v48 = vadd.f32 %v2050_v23, %v12155_v20  ;;  %v2727_v50 = vsel %vm2236_vm1, %v18481_v36, %v2726_v27  ;;  %v19343_v58 = vrot.slane %v12108_v47, 2  ;;  %v19349_v47 = vld [vmem:[#allocation239_spill] sm:$0xff] }
 0x20d   : > { %19340 = vst [vmem:[#allocation222_spill] sm:$0xff] %v12341_v24  ;;  %v2598_v41 = vadd.f32 %v12248_v46, %v12260_v19  ;;  %v2135_v63 = vadd.f32 %v2048_v43, %v19344_v11  ;;  %v19345_v12 = vrot.slane %v12049_v9, 1  ;;  %v2690_v5 = vrot.slane %v2614_v56, 2  ;;  %v19350_v46 = vld [vmem:[#allocation41_spill] sm:$0xff] }
 0x20e   : > { %v2729_v14 = vsel %vm2236_vm1, %v2726_v27, %v19343_v58  ;;  %v19347_v20 = vrot.slane %v12295_v18, 2  ;;  %v19348_v23 = vrot.slane %v12316_v60, 2  ;;  %v2367_v2 = vadd.f32 %v19349_v47, %v2136_v48  ;;  %v8522_v58 = vld [vmem:[%s9785_s17 + $0x38] sm:$0xff]   ;;  %v19356_v48 = vld [vmem:[#allocation75_spill] sm:$0xff]  ;;  %v19359_v47 = vld [vmem:[#allocation60_spill] sm:$0xff]  ;;  %9112 = vperm.xlu1 %9084, %v10457_v42  }
 0x20f   : > { %v12366_v22 = vsel %vm1269_vm0, %v2011_v25, %v19345_v12  ;;  %v8954_v27 = vunpack.i.l.bf16 %v8953_v3  ;;  %v2604_v24 = vadd.f32 %v2531_v62, %v2380_v26  ;;  %v2366_v19 = vadd.f32 %v19350_v46, %v2135_v63  ;;  %v19353_v11 = vld [vmem:[#allocation45_spill] sm:$0xff]  ;;  %v9475_v12 = vpop.permute.xlu0 %9474  ;;  %v19355_v62 = vld [vmem:[#allocation15_spill] sm:$0xff]  ;;  %v19357_v63 = vld [vmem:[#allocation46_spill] sm:$0xff] }
 0x210   : > { %19346 = vst [vmem:[#allocation80_spill] sm:$0xff] %v12366_v22  ;;  %v2755_v36 = vsel %vm2236_vm1, %v19348_v23, %v19347_v20  ;;  %v19351_v43 = vrot.slane %v12074_v37, 2  ;;  %v12382_v56 = vperm.slane %v19353_v11, 2  ;;  %v2591_v22 = vadd.f32 %v12160_v57, %v2367_v2  ;;  %9607 = vperm.xlu0 %9590, %v19355_v62   ;;  %v8999_v57 = vpop.permute.xlu2 %8998  ;;  %v19370_v2 = vld [vmem:[#allocation82_spill] sm:$0xff] }
 0x211   : > { %v12386_v20 = vmul.f32 %v8954_v27, %v11813_v59  ;;  %v12389_v3 = vmul.f32 %v8954_v27, %v11816_v51  ;;  %v9477_v26 = vunpack.i.h.bf16 %v9475_v12  ;;  %v2590_v37 = vadd.f32 %v19356_v48, %v2366_v19 }
 0x212   : > { %v12379_v9 = vsel %vm2236_vm1, %v2690_v5, %v19351_v43  ;;  %19354 = vst [vmem:[#allocation14_spill] sm:$0xff] %v12382_v56  ;;  %v12394_v23 = vperm.slane %v19357_v63, 2  ;;  %v12397_v46 = vperm.slane %v19359_v47, 2  ;;  %v8369_v43 = vunpack.c.l.bf16 %v8522_v58 }
 0x213   : > { %19352 = vst [vmem:[#allocation157_spill] sm:$0xff] %v12379_v9  ;;  %v12399_v9 = vadd.f32 %v2729_v14, %v2591_v22  ;;  %v8370_v27 = vunpack.c.h.bf16 %v8522_v58  ;;  %v19362_v31 = vrot.slane %v11948_v28, 1  ;;  %v19363_v62 = vrot.slane %v12211_v4, 1 }
 0x214   : > { %19358 = vst [vmem:[#allocation32_spill] sm:$0xff] %v12394_v23  ;;  %v19365_v48 = vrot.slane %v11958_v1, 2  ;;  %v19366_v30 = vrot.slane %v12214_v15, 2  ;;  %v12417_v14 = vadd.f32 %v2727_v50, %v2590_v37  ;;  %v9476_v22 = vunpack.i.l.bf16 %v9475_v12  ;;  %v8964_v12 = vpop.permute.xlu1 %8963 }
 0x215   : > { %19360 = vst [vmem:[#allocation62_spill] sm:$0xff] %v12397_v46  ;;  %v12408_v19 = vsel %vm1269_vm0, %v19363_v62, %v19362_v31  ;;  %v19369_v58 = vrot.slane %v12234_v54, 2  ;;  %v19371_v28 = vrot.slane %v19370_v2, 2  ;;  %v19372_v31 = vrot.slane %v12386_v20, 1 }
 0x216   : > { %19361 = vst [vmem:[#allocation237_spill] sm:$0xff] %v12399_v9  ;;  %v12415_v18 = vsel %vm2236_vm1, %v19366_v30, %v19365_v48  ;;  %v19374_v15 = vrot.slane %v12389_v3, 2  ;;  %v12437_v50 = vmul.f32 %v9477_v26, %v12382_v56  ;;  %v12440_v54 = vadd.f32 %v12255_v52, %v2598_v41 }
 0x217   : > { %19364 = vst [vmem:[#allocation238_spill] sm:$0xff] %v12408_v19  ;;  %v12424_v4 = vsel %vm2236_vm1, %v19371_v28, %v19369_v58  ;;  %v12429_v1 = vsel %vm1269_vm0, %v19372_v31, %v2011_v25  ;;  %v12444_v37 = vadd.f32 %v12265_v6, %v11780_v17  ;;  %v12446_v2 = vadd.f32 %v2755_v36, %v2604_v24 }
 0x218   : > { %19367 = vst [vmem:[#allocation64_spill] sm:$0xff] %v12415_v18  ;;  %v12434_v30 = vsel %vm2236_vm1, %v19374_v15, %v2690_v5  ;;  %v12449_v25 = vmul.f32 %v9477_v26, %v12394_v23  ;;  %v12452_v62 = vmul.f32 %v9477_v26, %v12397_v46  ;;  %v12454_v5 = vpack.i.bf16 %v8370_v27, %v8369_v43 }
 0x219   : > { %19368 = vst [vmem:[#allocation31_spill] sm:$0xff] %v12417_v14  ;;  %v9001_v48 = vunpack.i.h.bf16 %v8999_v57  ;;  %v9000_v58 = vunpack.i.l.bf16 %v8999_v57  ;;  %v12457_v28 = vmul.f32 %v9476_v22, %v12382_v56  ;;  %v8966_v52 = vunpack.i.h.bf16 %v8964_v12 }
 0x21a   : > { %19373 = vst [vmem:[#allocation70_spill] sm:$0xff] %v12429_v1  ;;  %v8965_v41 = vunpack.i.l.bf16 %v8964_v12  ;;  %9117 = vperm.xlu2 %9090, %v12454_v5   ;;  %v4508_v31 = vmul.f32 %v9476_v22, %v12394_v23  ;;  %v19379_v1 = vrot.slane %v12197_v45, 1  ;;  %v19380_v14 = vrot.slane %v12202_v32, 2 }
 0x21b   : > { %19375 = vst [vmem:[#allocation239_spill] sm:$0xff] %v12434_v30  ;;  %v1959_v6 = vmul.f32 %v9001_v48, %v11813_v59  ;;  %v2638_v24 = vmul.f32 %v9001_v48, %v11816_v51  ;;  %v12464_v36 = vmul.f32 %v9000_v58, %v11813_v59  ;;  %v12467_v26 = vmul.f32 %v9000_v58, %v11816_v51 }
 0x21c   : > { %19376 = vst [vmem:[#allocation41_spill] sm:$0xff] %v12437_v50  ;;  %v1939_v43 = vmul.f32 %v8966_v52, %v11813_v59  ;;  %v2618_v57 = vmul.f32 %v8966_v52, %v11816_v51  ;;  %v1938_v27 = vmul.f32 %v8965_v41, %v11813_v59 }
 0x21d   : > { %19377 = vst [vmem:[#allocation45_spill] sm:$0xff] %v12449_v25  ;;  %v2059_v15 = vrot.slane %v1959_v6, 1  ;;  %v2738_v12 = vrot.slane %v2638_v24, 2  ;;  %v18485_v48 = vrot.slane %v12464_v36, 1  ;;  %v18484_v17 = vrot.slane %v12467_v26, 2 }
 0x21e   : > { %19378 = vst [vmem:[#allocation15_spill] sm:$0xff] %v12452_v62  ;;  %v2019_v18 = vrot.slane %v1939_v43, 1  ;;  %v2698_v19 = vrot.slane %v2618_v57, 2  ;;  %v2017_v58 = vrot.slane %v1938_v27, 1  ;;  %v2617_v6 = vmul.f32 %v8965_v41, %v11816_v51  ;;  %v19416_v62 = vld [vmem:[#allocation91_spill] sm:$0xff] }
 0x21f   : > { %v2060_v30 = vsel %vm1269_vm0, %v18485_v48, %v2059_v15  ;;  %v2062_v52 = vsel %vm1269_vm0, %v2059_v15, %v19379_v1  ;;  %v2741_v22 = vsel %vm2236_vm1, %v2738_v12, %v19380_v14  ;;  %v2739_v57 = vsel %vm2236_vm1, %v18484_v17, %v2738_v12  ;;  %v9480_v48 = vpop.permute.xlu0 %9479 }
 0x220   : > { %v2141_v24 = vadd.f32 %v2060_v30, %v11717_v61  ;;  %v2142_v43 = vadd.f32 %v2062_v52, %v12245_v40  ;;  %v19381_v27 = vrot.slane %v12137_v21, 1  ;;  %v19382_v1 = vrot.slane %v12140_v34, 2  ;;  %v19384_v30 = vld [vmem:[#allocation243_spill] sm:$0xff]  ;;  %v19385_v52 = vld [vmem:[#allocation242_spill] sm:$0xff] }
 0x221   : > { %v19383_v14 = vrot.slane %v12026_v38, 1  ;;  %v2020_v61 = vsel %vm1269_vm0, %v2017_v58, %v2019_v18  ;;  %v18486_v34 = vrot.slane %v12449_v25, 3  ;;  %v2696_v38 = vrot.slane %v2617_v6, 2  ;;  %v8525_v6 = vld [vmem:[%s9785_s17 + $0x50] sm:$0xff]  }
 0x222   : > { %v2022_v45 = vsel %vm1269_vm0, %v2019_v18, %v19381_v27  ;;  %v2701_v32 = vsel %vm2236_vm1, %v2698_v19, %v19382_v1  ;;  %v2372_v15 = vadd.f32 %v19384_v30, %v2141_v24  ;;  %v2373_v12 = vadd.f32 %v19385_v52, %v2142_v43  ;;  %v19386_v1 = vld [vmem:[#allocation231_spill] sm:$0xff]  ;;  %v19389_v30 = vld [vmem:[#allocation26_spill] sm:$0xff]  ;;  %v19392_v52 = vld [vmem:[#allocation16_spill] sm:$0xff] }
 0x223   : > { %v2018_v41 = vsel %vm1269_vm0, %v19383_v14, %v2017_v58  ;;  %v2122_v40 = vadd.f32 %v2022_v45, %v11831_v13  ;;  %v2121_v27 = vadd.f32 %v2020_v61, %v11875_v29  ;;  %v19387_v14 = vld [vmem:[#allocation85_spill] sm:$0xff]  ;;  %v19388_v13 = vld [vmem:[#allocation218_spill] sm:$0xff]  ;;  %v9482_v24 = vunpack.i.h.bf16 %v9480_v48  ;;  %9612 = vperm.xlu0 %9590, %v19392_v52  }
 0x224   : > { %v2120_v21 = vadd.f32 %v2018_v41, %v11872_v44  ;;  %v2596_v9 = vadd.f32 %v19387_v14, %v2372_v15  ;;  %v2597_v18 = vadd.f32 %v12239_v0, %v2373_v12  ;;  %v3903_v43 = vrot.slane %v12457_v28, 2  ;;  %v19390_v41 = vld [vmem:[#allocation49_spill] sm:$0xff]  ;;  %v19393_v0 = vld [vmem:[#allocation170_spill] sm:$0xff]  ;;  %v9009_v14 = vpop.permute.xlu2 %9008 }
 0x225   : > { %v2353_v17 = vadd.f32 %v19386_v1, %v2122_v40  ;;  %v4582_v45 = vrot.slane %v4508_v31, 3  ;;  %v19391_v29 = vrot.slane %v19390_v41, 2  ;;  %v2352_v12 = vadd.f32 %v19393_v0, %v2121_v27  ;;  %v19396_v31 = vld [vmem:[#allocation258_spill] sm:$0xff]  ;;  %v19400_v41 = vld [vmem:[#allocation259_spill] sm:$0xff] }
 0x226   : > { %v2351_v58 = vadd.f32 %v19388_v13, %v2120_v21  ;;  %v12518_v40 = vadd.f32 %v2739_v57, %v2596_v9  ;;  %v12520_v15 = vadd.f32 %v2741_v22, %v2597_v18  ;;  %v19394_v21 = vld [vmem:[#allocation38_spill] sm:$0xff]  ;;  %v19395_v28 = vrot.slane %v12386_v20, 1 }
 0x227   : > { %v2577_v44 = vadd.f32 %v19389_v30, %v2353_v17  ;;  %v2697_v61 = vsel %vm2236_vm1, %v19391_v29, %v2696_v38  ;;  %v19397_v17 = vrot.slane %v19396_v31, 1  ;;  %v19399_v30 = vrot.slane %v12389_v3, 2 }
 0x228   : > { %v2575_v1 = vadd.f32 %v19394_v21, %v2351_v58  ;;  %v19401_v29 = vrot.slane %v19400_v41, 2  ;;  %v12544_v20 = vmul.f32 %v9482_v24, %v12382_v56  ;;  %v12547_v18 = vmul.f32 %v9482_v24, %v12394_v23 }
 0x229   : > { %v12529_v13 = vsel %vm1269_vm0, %v19397_v17, %v19395_v28  ;;  %v12539_v57 = vadd.f32 %v2701_v32, %v2577_v44  ;;  %v8381_v58 = vunpack.c.l.bf16 %v8525_v6  ;;  %v19405_v3 = vrot.slane %v12437_v50, 2  ;;  %v8974_v17 = vpop.permute.xlu1 %8973 }
 0x22a   : > { %19398 = vst [vmem:[#allocation75_spill] sm:$0xff] %v12529_v13  ;;  %v12536_v9 = vsel %vm2236_vm1, %v19401_v29, %v19399_v30  ;;  %v12541_v27 = vadd.f32 %v2697_v61, %v2575_v1  ;;  %v12557_v0 = vsel %vm4133_vm2, %v4582_v45, %v18486_v34  ;;  %v8382_v32 = vunpack.c.h.bf16 %v8525_v6  ;;  %v19408_v61 = vld [vmem:[#allocation260_spill] sm:$0xff] }
 0x22b   : > { %19402 = vst [vmem:[#allocation46_spill] sm:$0xff] %v12536_v9  ;;  %v12552_v52 = vsel %vm2236_vm1, %v3903_v43, %v19405_v3  ;;  %v9011_v44 = vunpack.i.h.bf16 %v9009_v14  ;;  %v12560_v21 = vadd.f32 %v19408_v61, %v2352_v12  ;;  %v12563_v1 = vsel %vm2236_vm1, %v2696_v38, %v2698_v19 }
 0x22c   : > { %19403 = vst [vmem:[#allocation60_spill] sm:$0xff] %v12544_v20  ;;  %v9481_v28 = vunpack.i.l.bf16 %v9480_v48  ;;  %v9010_v31 = vunpack.i.l.bf16 %v9009_v14  ;;  %v12565_v30 = vpack.i.bf16 %v8382_v32, %v8381_v58  ;;  %v12572_v3 = vmul.f32 %v9482_v24, %v12397_v46  ;;  %v19410_v14 = vld [vmem:[#allocation90_spill] sm:$0xff] }
 0x22d   : > { %19404 = vst [vmem:[#allocation82_spill] sm:$0xff] %v12547_v18  ;;  %v1965_v43 = vmul.f32 %v9011_v44, %v11813_v59  ;;  %v2644_v29 = vmul.f32 %v9011_v44, %v11816_v51  ;;  %9127 = vperm.xlu1 %9084, %v19410_v14   ;;  %v8976_v58 = vunpack.i.h.bf16 %v8974_v17  ;;  %v19415_v22 = vrot.slane %v12316_v60, 2 }
 0x22e   : > { %19406 = vst [vmem:[#allocation243_spill] sm:$0xff] %v12552_v52  ;;  %v12575_v12 = vmul.f32 %v9010_v31, %v11813_v59  ;;  %9132 = vperm.xlu2 %9090, %v12565_v30   ;;  %v12579_v38 = vmul.f32 %v9010_v31, %v11816_v51  ;;  %v12583_v32 = vmul.f32 %v9481_v28, %v12382_v56  ;;  %v8975_v52 = vunpack.i.l.bf16 %v8974_v17 }
 0x22f   : > { %19407 = vst [vmem:[#allocation242_spill] sm:$0xff] %v12557_v0  ;;  %v2071_v19 = vrot.slane %v1965_v43, 1  ;;  %v2750_v48 = vrot.slane %v2644_v29, 2  ;;  %v12586_v44 = vmul.f32 %v9481_v28, %v12394_v23  ;;  %v12589_v24 = vmul.f32 %v9481_v28, %v12397_v46 }
 0x230   : > { %19409 = vst [vmem:[#allocation231_spill] sm:$0xff] %v12572_v3  ;;  %v18491_v61 = vrot.slane %v12575_v12, 1  ;;  %v19414_v43 = vrot.slane %v12298_v39, 1  ;;  %v18492_v31 = vrot.slane %v12579_v38, 2  ;;  %v1945_v6 = vmul.f32 %v8976_v58, %v11813_v59  ;;  %v9485_v39 = vpop.permute.xlu0 %9484 }
 0x231   : > { %19411 = vst [vmem:[#allocation85_spill] sm:$0xff] %v12583_v32  ;;  %v2753_v34 = vsel %vm2236_vm1, %v2750_v48, %v19415_v22  ;;  %v2624_v0 = vmul.f32 %v8976_v58, %v11816_v51  ;;  %v19417_v22 = vld [vmem:[#allocation246_spill] sm:$0xff]  ;;  %v1944_v13 = vmul.f32 %v8975_v52, %v11813_v59  ;;  %v19419_v58 = vrot.slane %v12272_v49, 1  ;;  %v19424_v49 = vld [vmem:[#allocation96_spill] sm:$0xff] }
 0x232   : > { %19412 = vst [vmem:[#allocation218_spill] sm:$0xff] %v12586_v44  ;;  %v2074_v29 = vsel %vm1269_vm0, %v2071_v19, %v19414_v43  ;;  %v2072_v45 = vsel %vm1269_vm0, %v18491_v61, %v2071_v19  ;;  %v2751_v60 = vsel %vm2236_vm1, %v18492_v31, %v2750_v48  ;;  %v2031_v25 = vrot.slane %v1945_v6, 1  ;;  %v19418_v61 = vld [vmem:[#allocation248_spill] sm:$0xff]  ;;  %v19439_v31 = vld [vmem:[#allocation109_spill] sm:$0xff] }
 0x233   : > { %19413 = vst [vmem:[#allocation26_spill] sm:$0xff] %v12589_v24  ;;  %v2148_v28 = vadd.f32 %v2074_v29, %v12444_v37  ;;  %v2147_v43 = vadd.f32 %v2072_v45, %v19416_v62  ;;  %v2710_v9 = vrot.slane %v2624_v0, 2  ;;  %v2623_v19 = vmul.f32 %v8975_v52, %v11816_v51  ;;  %v19421_v62 = vld [vmem:[#allocation17_spill] sm:$0xff] }
 0x234   : > { %v12616_v17 = vsel %vm1269_vm0, %v2031_v25, %v19419_v58  ;;  %9617 = vperm.xlu0 %9590, %v19421_v62   ;;  %v9487_v45 = vunpack.i.h.bf16 %v9485_v39  ;;  %v9486_v48 = vunpack.i.l.bf16 %v9485_v39  ;;  %v19422_v0 = vrot.slane %v12275_v35, 2 }
 0x235   : > { %v2379_v50 = vadd.f32 %v19417_v22, %v2148_v28  ;;  %v2378_v37 = vadd.f32 %v19418_v61, %v2147_v43  ;;  %19420 = vst [vmem:[#allocation49_spill] sm:$0xff] %v12616_v17  ;;  %v2029_v52 = vrot.slane %v1944_v13, 1  ;;  %v2708_v28 = vrot.slane %v2623_v19, 2  ;;  %v19431_v19 = vld [vmem:[#allocation267_spill] sm:$0xff]  ;;  %9142 = vperm.xlu1 %9084, %v19439_v31  }
 0x236   : > { %v12623_v29 = vsel %vm2236_vm1, %v2710_v9, %v19422_v0  ;;  %v12628_v22 = vmul.f32 %v9487_v45, %v12382_v56  ;;  %v12631_v58 = vmul.f32 %v9487_v45, %v12394_v23  ;;  %v19432_v62 = vrot.slane %v19431_v19, 2  ;;  %v8528_v0 = vld [vmem:[%s9785_s17 + $0x68] sm:$0xff]  }
 0x237   : > { %v2603_v6 = vadd.f32 %v12424_v4, %v2379_v50  ;;  %19423 = vst [vmem:[#allocation16_spill] sm:$0xff] %v12623_v29  ;;  %v2602_v43 = vadd.f32 %v19424_v49, %v2378_v37  ;;  %v19427_v4 = vld [vmem:[#allocation266_spill] sm:$0xff]  ;;  %v12641_v13 = vsel %vm1269_vm0, %v2029_v52, %v2031_v25  ;;  %v8984_v49 = vpop.permute.xlu1 %8983  ;;  %v8393_v19 = vunpack.c.l.bf16 %v8528_v0 }
 0x238   : > { %19425 = vst [vmem:[#allocation170_spill] sm:$0xff] %v12628_v22  ;;  %v19428_v50 = vrot.slane %v19427_v4, 1  ;;  %v12646_v37 = vsel %vm2236_vm1, %v19432_v62, %v2708_v28  ;;  %v12661_v4 = vmul.f32 %v9486_v48, %v12382_v56  ;;  %v8394_v62 = vunpack.c.h.bf16 %v8528_v0  ;;  %v9020_v0 = vpop.permute.xlu2 %9019 }
 0x239   : > { %19426 = vst [vmem:[#allocation38_spill] sm:$0xff] %v12631_v58  ;;  %v12633_v39 = vadd.f32 %v2753_v34, %v2603_v6  ;;  %v12650_v61 = vadd.f32 %v2751_v60, %v2602_v43  ;;  %v12653_v34 = vsel %vm2236_vm1, %v2708_v28, %v2710_v9  ;;  %v12656_v6 = vmul.f32 %v9487_v45, %v12397_v46 }
 0x23a   : > { %v12638_v35 = vsel %vm1269_vm0, %v19428_v50, %v2029_v52  ;;  %19430 = vst [vmem:[#allocation259_spill] sm:$0xff] %v12641_v13  ;;  %v12664_v50 = vmul.f32 %v9486_v48, %v12394_v23  ;;  %v8986_v60 = vunpack.i.h.bf16 %v8984_v49  ;;  %v12669_v45 = vmul.f32 %v9486_v48, %v12397_v46 }
 0x23b   : > { %19429 = vst [vmem:[#allocation258_spill] sm:$0xff] %v12638_v35  ;;  %v8985_v28 = vunpack.i.l.bf16 %v8984_v49  ;;  %v12672_v52 = vpack.i.bf16 %v8394_v62, %v8393_v19  ;;  %v12682_v49 = vperm.slane %v19353_v11, 0  ;;  %v12690_v43 = vperm.slane %v19359_v47, 0 }
 0x23c   : > { %19433 = vst [vmem:[#allocation260_spill] sm:$0xff] %v12646_v37  ;;  %v1951_v29 = vmul.f32 %v8986_v60, %v11813_v59  ;;  %9622 = vperm.xlu0 %9590, %v19304_v33   ;;  %v9490_v37 = vpop.permute.xlu0 %9489  ;;  %v9022_v9 = vunpack.i.h.bf16 %v9020_v0  ;;  %v9021_v17 = vunpack.i.l.bf16 %v9020_v0  ;;  %v19443_v13 = vrot.slane %v12331_v16, 1 }
 0x23d   : > { %19434 = vst [vmem:[#allocation90_spill] sm:$0xff] %v12653_v34  ;;  %v2630_v34 = vmul.f32 %v8986_v60, %v11816_v51  ;;  %v1950_v48 = vmul.f32 %v8985_v28, %v11813_v59  ;;  %9147 = vperm.xlu2 %9090, %v12672_v52   ;;  %v2629_v25 = vmul.f32 %v8985_v28, %v11816_v51  ;;  %v12687_v60 = vperm.slane %v19357_v63, 0 }
 0x23e   : > { %19435 = vst [vmem:[#allocation91_spill] sm:$0xff] %v12656_v6  ;;  %v2043_v19 = vrot.slane %v1951_v29, 1  ;;  %v12712_v11 = vmul.f32 %v9022_v9, %v12682_v49  ;;  %v9492_v16 = vunpack.i.h.bf16 %v9490_v37 }
 0x23f   : > { %19436 = vst [vmem:[#allocation246_spill] sm:$0xff] %v12661_v4  ;;  %v2722_v62 = vrot.slane %v2630_v34, 2  ;;  %v2041_v33 = vrot.slane %v1950_v48, 1  ;;  %v19445_v34 = vrot.slane %v12334_v53, 2  ;;  %v2720_v28 = vrot.slane %v2629_v25, 2  ;;  %v19447_v48 = vld [vmem:[#allocation271_spill] sm:$0xff] }
 0x240   : > { %19437 = vst [vmem:[#allocation248_spill] sm:$0xff] %v12664_v50  ;;  %v12696_v29 = vsel %vm1269_vm0, %v2043_v19, %v19443_v13  ;;  %v19448_v35 = vrot.slane %v19447_v48, 1  ;;  %v19452_v13 = vld [vmem:[#allocation272_spill] sm:$0xff]  ;;  %v12723_v25 = vmul.f32 %v9022_v9, %v12687_v60  ;;  %v8531_v48 = vld [vmem:[%s9785_s17 + $0x80] sm:$0xff]  }
 0x241   : > { %19438 = vst [vmem:[#allocation17_spill] sm:$0xff] %v12669_v45  ;;  %v12701_v63 = vsel %vm2236_vm1, %v2722_v62, %v19445_v34  ;;  %v12709_v0 = vsel %vm1269_vm0, %v2041_v33, %v2043_v19  ;;  %v12720_v34 = vsel %vm2236_vm1, %v2720_v28, %v2722_v62  ;;  %v12729_v19 = vadd.f32 %v12563_v1, %v12560_v21 }
 0x242   : > { %19440 = vst [vmem:[#allocation96_spill] sm:$0xff] %v12682_v49  ;;  %v12706_v47 = vsel %vm1269_vm0, %v19448_v35, %v2041_v33  ;;  %v3093_v35 = vmul.f32 %v9021_v17, %v12682_v49  ;;  %v19457_v33 = vrot.slane %v12544_v20, 2  ;;  %v19459_v62 = vrot.slane %v12547_v18, 3 }
 0x243   : > { %19441 = vst [vmem:[#allocation266_spill] sm:$0xff] %v12687_v60  ;;  %v19463_v21 = vrot.slane %v12572_v3, 4  ;;  %v19464_v1 = vrot.slane %v12589_v24, 4  ;;  %v9491_v3 = vunpack.i.l.bf16 %v9490_v37  ;;  %v9031_v37 = vpop.permute.xlu2 %9030 }
 0x244   : > { %19442 = vst [vmem:[#allocation267_spill] sm:$0xff] %v12690_v43  ;;  %9627 = vperm.xlu0 %9590, %v10457_v42  }
 0x245   : > { %19444 = vst [vmem:[#allocation109_spill] sm:$0xff] %v12696_v29  ;;  %v19453_v29 = vrot.slane %v19452_v13, 2  ;;  %v19458_v13 = vrot.slane %v12583_v32, 2  ;;  %v12753_v20 = vsel %vm4812_vm3, %v19464_v1, %v19463_v21  ;;  %v19470_v21 = vrot.slane %v12631_v58, 3 }
 0x246   : > { %19446 = vst [vmem:[#allocation276_spill] sm:$0xff] %v12701_v63  ;;  %v12765_v63 = vmul.f32 %v9492_v16, %v12382_v56  ;;  %v19471_v1 = vrot.slane %v12664_v50, 3  ;;  %v12784_v58 = vmul.f32 %v9492_v16, %v12394_v23  ;;  %v12787_v50 = vmul.f32 %v9492_v16, %v12397_v46  ;;  %v19481_v16 = vld [vmem:[#allocation130_spill] sm:$0xff] }
 0x247   : > { %19449 = vst [vmem:[#allocation271_spill] sm:$0xff] %v12706_v47  ;;  %v12717_v53 = vsel %vm2236_vm1, %v19453_v29, %v2720_v28  ;;  %v12736_v29 = vsel %vm2236_vm1, %v19458_v13, %v19457_v33  ;;  %v19460_v28 = vrot.slane %v12586_v44, 3  ;;  %v19466_v33 = vrot.slane %v12628_v22, 2  ;;  %v8994_v47 = vpop.permute.xlu1 %8993  ;;  %9157 = vperm.xlu1 %9084, %v19481_v16  }
 0x248   : > { %19450 = vst [vmem:[#allocation277_spill] sm:$0xff] %v12709_v0  ;;  %v19467_v13 = vrot.slane %v12661_v4, 2  ;;  %v8405_v0 = vunpack.c.l.bf16 %v8531_v48 }
 0x249   : > { %19451 = vst [vmem:[#allocation278_spill] sm:$0xff] %v12712_v11 }
 0x24a   : > { %19454 = vst [vmem:[#allocation272_spill] sm:$0xff] %v12717_v53  ;;  %v12746_v53 = vmul.f32 %v9022_v9, %v12690_v43  ;;  %v12760_v18 = vsel %vm2236_vm1, %v19467_v13, %v19466_v33  ;;  %v3167_v9 = vrot.slane %v3093_v35, 2  ;;  %v19473_v33 = vrot.slane %v12656_v6, 4 }
 0x24b   : > { %19455 = vst [vmem:[#allocation279_spill] sm:$0xff] %v12720_v34  ;;  %v12743_v34 = vsel %vm4133_vm2, %v19460_v28, %v19459_v62  ;;  %v4059_v28 = vmul.f32 %v9021_v17, %v12687_v60  ;;  %v19474_v13 = vrot.slane %v12669_v45, 4  ;;  %v8406_v62 = vunpack.c.h.bf16 %v8531_v48 }
 0x24c   : > { %19456 = vst [vmem:[#allocation280_spill] sm:$0xff] %v12723_v25  ;;  %v8996_v6 = vunpack.i.h.bf16 %v8994_v47  ;;  %9632 = vperm.xlu0 %9590, %v19410_v14   ;;  %v19520_v14 = vrot.slane %v12191_v8, 1 }
 0x24d   : > { %19461 = vst [vmem:[#allocation281_spill] sm:$0xff] %v12743_v34  ;;  %v12779_v17 = vsel %vm4812_vm3, %v19474_v13, %v19473_v33  ;;  %v8995_v33 = vunpack.i.l.bf16 %v8994_v47  ;;  %v19479_v13 = vrot.slane %v12712_v11, 2  ;;  %v4134_v35 = vrot.slane %v4059_v28, 3  ;;  %v9495_v11 = vpop.permute.xlu0 %9494 }
 0x24e   : > { %19462 = vst [vmem:[#allocation282_spill] sm:$0xff] %v12746_v53  ;;  %v1957_v53 = vmul.f32 %v8996_v6, %v11813_v59  ;;  %v9032_v47 = vunpack.i.l.bf16 %v9031_v37  ;;  %v12810_v28 = vmul.f32 %v9491_v3, %v12397_v46 }
 0x24f   : > { %19465 = vst [vmem:[#allocation283_spill] sm:$0xff] %v12753_v20  ;;  %v12772_v20 = vsel %vm4133_vm2, %v19471_v1, %v19470_v21  ;;  %v12790_v21 = vmul.f32 %v9491_v3, %v12382_v56  ;;  %v12792_v1 = vpack.i.bf16 %v8406_v62, %v8405_v0  ;;  %v12797_v48 = vsel %vm2236_vm1, %v3167_v9, %v19479_v13  ;;  %v9004_v42 = vpop.permute.xlu1 %9003 }
 0x250   : > { %19468 = vst [vmem:[#allocation284_spill] sm:$0xff] %v12760_v18  ;;  %v2636_v0 = vmul.f32 %v8996_v6, %v11816_v51  ;;  %v1956_v62 = vmul.f32 %v8995_v33, %v11813_v59  ;;  %v12807_v9 = vmul.f32 %v9491_v3, %v12394_v23  ;;  %v2635_v13 = vmul.f32 %v8995_v33, %v11816_v51 }
 0x251   : > { %19469 = vst [vmem:[#allocation285_spill] sm:$0xff] %v12765_v63  ;;  %9162 = vperm.xlu2 %9090, %v12792_v1   ;;  %v2055_v22 = vrot.slane %v1957_v53, 1  ;;  %v12819_v24 = vmul.f32 %v9032_v47, %v12682_v49  ;;  %v19484_v3 = vrot.slane %v12723_v25, 3  ;;  %v19486_v53 = vrot.slane %v12464_v36, 1 }
 0x252   : > { %19472 = vst [vmem:[#allocation286_spill] sm:$0xff] %v12772_v20  ;;  %v2053_v45 = vrot.slane %v1956_v62, 1  ;;  %v2732_v4 = vrot.slane %v2635_v13, 2  ;;  %v12865_v36 = vmul.f32 %v9032_v47, %v12690_v43  ;;  %v19500_v32 = vrot.slane %v12810_v28, 4 }
 0x253   : > { %19475 = vst [vmem:[#allocation287_spill] sm:$0xff] %v12779_v17  ;;  %v9033_v17 = vunpack.i.h.bf16 %v9031_v37  ;;  %v12824_v44 = vsel %vm4133_vm2, %v4134_v35, %v19484_v3  ;;  %v12829_v33 = vsel %vm1269_vm0, %v2055_v22, %v19486_v53  ;;  %v2866_v37 = vld [vmem:[%s9785_s17 + $0x98] sm:$0x1]  ;;  %v18511_v35 = vrot.slane %v12819_v24, 2 }
 0x254   : > { %19476 = vst [vmem:[#allocation288_spill] sm:$0xff] %v12784_v58  ;;  %v12837_v13 = vsel %vm1269_vm0, %v2053_v45, %v2055_v22  ;;  %v4048_v53 = vld [vmem:[%s9785_s17 + $0x98] sm:$0x3]  ;;  %9637 = vperm.xlu0 %9590, %v19439_v31  }
 0x255   : > { %19477 = vst [vmem:[#allocation289_spill] sm:$0xff] %v12787_v50  ;;  %v12814_v6 = vmul.f32 %v9033_v17, %v12682_v49  ;;  %v12855_v22 = vmul.f32 %v9033_v17, %v12687_v60  ;;  %v12858_v25 = vmul.f32 %v9033_v17, %v12690_v43  ;;  %v19496_v17 = vrot.slane %v12784_v58, 3 }
 0x256   : > { %19478 = vst [vmem:[#allocation290_spill] sm:$0xff] %v12790_v21 }
 0x257   : > { %19480 = vst [vmem:[#allocation291_spill] sm:$0xff] %v12797_v48  ;;  %v2734_v48 = vrot.slane %v2636_v0, 2  ;;  %v19488_v0 = vrot.slane %v12467_v26, 2  ;;  %v19492_v26 = vrot.slane %v12765_v63, 2  ;;  %v9497_v63 = vunpack.i.h.bf16 %v9495_v11  ;;  %v9014_v8 = vpop.permute.xlu1 %9013 }
 0x258   : > { %19482 = vst [vmem:[#allocation130_spill] sm:$0xff] %v12807_v9 }
 0x259   : > { %19483 = vst [vmem:[#allocation292_spill] sm:$0xff] %v12810_v28  ;;  %v12834_v62 = vsel %vm2236_vm1, %v2734_v48, %v19488_v0  ;;  %v12843_v3 = vsel %vm2236_vm1, %v2732_v4, %v2734_v48  ;;  %v19493_v0 = vrot.slane %v12790_v21, 2  ;;  %v12862_v48 = vmul.f32 %v9032_v47, %v12687_v60  ;;  %v9500_v28 = vpop.permute.xlu0 %9499 }
 0x25a   : > { %19485 = vst [vmem:[#allocation293_spill] sm:$0xff] %v12824_v44  ;;  %v19499_v47 = vrot.slane %v12787_v50, 4 }
 0x25b   : > { %19487 = vst [vmem:[#allocation294_spill] sm:$0xff] %v12829_v33  ;;  %v12852_v44 = vsel %vm2236_vm1, %v19493_v0, %v19492_v26  ;;  %v9496_v0 = vunpack.i.l.bf16 %v9495_v11  ;;  %v19497_v33 = vrot.slane %v12807_v9, 3  ;;  %v12891_v11 = vmul.f32 %v9497_v63, %v12382_v56 }
 0x25c   : > { %19489 = vst [vmem:[#allocation295_spill] sm:$0xff] %v12834_v62  ;;  %v2906_v62 = vunpack.c.l.bf16 %v2866_v37  ;;  %v19503_v37 = vrot.slane %v12085_v10, 1  ;;  %v19516_v9 = vrot.slane %v12575_v12, 1  ;;  %9642 = vperm.xlu0 %9590, %v19481_v16  }
 0x25d   : > { %19490 = vst [vmem:[#allocation296_spill] sm:$0xff] %v12837_v13  ;;  %v4052_v13 = vunpack.c.l.bf16 %v4048_v53  ;;  %v12877_v21 = vsel %vm4133_vm2, %v19497_v33, %v19496_v17  ;;  %v12927_v50 = vmul.f32 %v9496_v0, %v12397_v46 }
 0x25e   : > { %19491 = vst [vmem:[#allocation297_spill] sm:$0xff] %v12843_v3  ;;  %v19495_v3 = vrot.slane %v12814_v6, 2  ;;  %v12896_v33 = vsel %vm1269_vm0, %v19503_v37, %v2053_v45 }
 0x25f   : > { %19494 = vst [vmem:[#allocation298_spill] sm:$0xff] %v12852_v44  ;;  %v12884_v44 = vsel %vm4812_vm3, %v19500_v32, %v19499_v47  ;;  %v12904_v32 = vmul.f32 %v9497_v63, %v12394_v23  ;;  %v12919_v37 = vpack.i.bf16 %v4052_v13, %v2906_v62  ;;  %v19511_v47 = vld [vmem:[#allocation40_spill] sm:$0xff] }
 0x260   : > { %v3181_v26 = vsel %vm2236_vm1, %v18511_v35, %v19495_v3  ;;  %19498 = vst [vmem:[#allocation299_spill] sm:$0xff] %v12877_v21  ;;  %v19505_v3 = vrot.slane %v12088_v7, 2  ;;  %v12914_v7 = vmul.f32 %v9496_v0, %v12382_v56  ;;  %v9005_v35 = vunpack.i.l.bf16 %v9004_v42  ;;  %9172 = vperm.xlu1 %9084, %v19511_v47  }
 0x261   : > { %19501 = vst [vmem:[#allocation300_spill] sm:$0xff] %v12884_v44  ;;  %v12887_v20 = vadd.f32 %v3181_v26, %v12729_v19  ;;  %v12907_v19 = vmul.f32 %v9497_v63, %v12397_v46  ;;  %v9041_v26 = vpop.permute.xlu2 %9040  ;;  %9177 = vperm.xlu2 %9090, %v12919_v37  }
 0x262   : > { %19502 = vst [vmem:[#allocation301_spill] sm:$0xff] %v12891_v11  ;;  %v12901_v53 = vsel %vm2236_vm1, %v19505_v3, %v2732_v4  ;;  %v12917_v4 = vmul.f32 %v9496_v0, %v12394_v23  ;;  %v9006_v3 = vunpack.i.h.bf16 %v9004_v42  ;;  %v9043_v44 = vunpack.i.h.bf16 %v9041_v26 }
 0x263   : > { %19504 = vst [vmem:[#allocation302_spill] sm:$0xff] %v12896_v33  ;;  %v9042_v45 = vunpack.i.l.bf16 %v9041_v26  ;;  %v1962_v63 = vmul.f32 %v9005_v35, %v11813_v59  ;;  %v2641_v17 = vmul.f32 %v9005_v35, %v11816_v51 }
 0x264   : > { %19506 = vst [vmem:[#allocation303_spill] sm:$0xff] %v12901_v53  ;;  %v1963_v62 = vmul.f32 %v9006_v3, %v11813_v59  ;;  %v2642_v13 = vmul.f32 %v9006_v3, %v11816_v51  ;;  %v12935_v10 = vmul.f32 %v9043_v44, %v12682_v49  ;;  %v12938_v58 = vmul.f32 %v9043_v44, %v12687_v60 }
 0x265   : > { %19507 = vst [vmem:[#allocation304_spill] sm:$0xff] %v12904_v32  ;;  %v2065_v0 = vrot.slane %v1962_v63, 1  ;;  %v12941_v53 = vmul.f32 %v9042_v45, %v12682_v49  ;;  %v2744_v33 = vrot.slane %v2641_v17, 2  ;;  %v12947_v35 = vmul.f32 %v9043_v44, %v12690_v43  ;;  %v19523_v44 = vld [vmem:[#allocation61_spill] sm:$0xff] }
 0x266   : > { %19508 = vst [vmem:[#allocation305_spill] sm:$0xff] %v12907_v19  ;;  %v2067_v26 = vrot.slane %v1963_v62, 1  ;;  %v2746_v47 = vrot.slane %v2642_v13, 2  ;;  %v19518_v63 = vrot.slane %v12579_v38, 2  ;;  %v19524_v42 = vrot.slane %v19523_v44, 2 }
 0x267   : > { %19509 = vst [vmem:[#allocation306_spill] sm:$0xff] %v12914_v7  ;;  %v12962_v17 = vsel %vm1269_vm0, %v19520_v14, %v2065_v0  ;;  %v18517_v38 = vrot.slane %v12941_v53, 2  ;;  %v9501_v44 = vunpack.i.l.bf16 %v9500_v28 }
 0x268   : > { %19510 = vst [vmem:[#allocation307_spill] sm:$0xff] %v12917_v4  ;;  %v12952_v62 = vsel %vm1269_vm0, %v2067_v26, %v19516_v9  ;;  %v12957_v13 = vsel %vm2236_vm1, %v2746_v47, %v19518_v63  ;;  %v12965_v3 = vsel %vm1269_vm0, %v2065_v0, %v2067_v26  ;;  %v12970_v12 = vsel %vm2236_vm1, %v19524_v42, %v2744_v33 }
 0x269   : > { %19512 = vst [vmem:[#allocation40_spill] sm:$0xff] %v12927_v50  ;;  %v12973_v9 = vsel %vm2236_vm1, %v2744_v33, %v2746_v47  ;;  %v12977_v63 = vmul.f32 %v9042_v45, %v12687_v60  ;;  %v12982_v26 = vmul.f32 %v9042_v45, %v12690_v43  ;;  %v9502_v0 = vunpack.i.h.bf16 %v9500_v28  ;;  %v19538_v45 = vld [vmem:[#allocation4_spill] sm:$0xff] }
 0x26a   : > { %19513 = vst [vmem:[#allocation308_spill] sm:$0xff] %v12935_v10  ;;  %v19527_v42 = vrot.slane %v12935_v10, 2  ;;  %v9051_v10 = vpop.permute.xlu2 %9050  ;;  %v19533_v28 = vrot.slane %v12858_v25, 4  ;;  %v19534_v47 = vrot.slane %v12865_v36, 4 }
 0x26b   : > { %19514 = vst [vmem:[#allocation309_spill] sm:$0xff] %v12938_v58 }
 0x26c   : > { %19515 = vst [vmem:[#allocation310_spill] sm:$0xff] %v12947_v35  ;;  %v3189_v33 = vsel %vm2236_vm1, %v18517_v38, %v19527_v42  ;;  %v19531_v42 = vrot.slane %v12862_v48, 3  ;;  %v13009_v14 = vsel %vm4812_vm3, %v19534_v47, %v19533_v28  ;;  %v19543_v47 = vrot.slane %v12917_v4, 3 }
 0x26d   : > { %19517 = vst [vmem:[#allocation311_spill] sm:$0xff] %v12952_v62  ;;  %v19539_v62 = vrot.slane %v12891_v11, 2  ;;  %v13040_v11 = vmul.f32 %v9502_v0, %v12397_v46  ;;  %v13067_v4 = vmul.f32 %v9501_v44, %v12397_v46  ;;  %v19572_v46 = vld [vmem:[#allocation210_spill] sm:$0xff] }
 0x26e   : > { %19519 = vst [vmem:[#allocation312_spill] sm:$0xff] %v12957_v13  ;;  %v19529_v13 = vld [vmem:[#allocation51_spill] sm:$0xff] }
 0x26f   : > { %19521 = vst [vmem:[#allocation313_spill] sm:$0xff] %v12962_v17  ;;  %v19530_v17 = vrot.slane %v12855_v22, 3 }
 0x270   : > { %19522 = vst [vmem:[#allocation314_spill] sm:$0xff] %v12965_v3  ;;  %v9015_v3 = vunpack.i.l.bf16 %v9014_v8 }
 0x271   : > { %19525 = vst [vmem:[#allocation61_spill] sm:$0xff] %v12970_v12  ;;  %v12994_v12 = vadd.f32 %v3189_v33, %v19529_v13  ;;  %v13002_v38 = vsel %vm4133_vm2, %v19531_v42, %v19530_v17  ;;  %v13012_v13 = vmul.f32 %v9502_v0, %v12382_v56  ;;  %v13015_v33 = vmul.f32 %v9502_v0, %v12394_v23 }
 0x272   : > { %19526 = vst [vmem:[#allocation315_spill] sm:$0xff] %v12973_v9  ;;  %v19528_v9 = vmov 2   ;;  %v19540_v17 = vrot.slane %v12914_v7, 2 }
 0x273   : > { %9187 = vset.pattern.permute.xlu2 %v19528_v9  ;;  %9181 = vset.pattern.permute.xlu1 %v19528_v9  ;;  %19532 = vst [vmem:[#allocation51_spill] sm:$0xff] %v13002_v38  ;;  %v19542_v38 = vrot.slane %v12904_v32, 3  ;;  %v19546_v9 = vrot.slane %v12927_v50, 4 }
 0x274   : > { %19535 = vst [vmem:[#allocation316_spill] sm:$0xff] %v13009_v14  ;;  %9189 = vperm.xlu2 %9187, %v19538_v45   ;;  %v13023_v42 = vsel %vm2236_vm1, %v19540_v17, %v19539_v62  ;;  %v19545_v14 = vrot.slane %v12907_v19, 4  ;;  %v19549_v62 = vrot.slane %v12938_v58, 3  ;;  %v19550_v17 = vrot.slane %v12977_v63, 3 }
 0x275   : > { %19536 = vst [vmem:[#allocation317_spill] sm:$0xff] %v13012_v13  ;;  %v13030_v28 = vsel %vm4133_vm2, %v19543_v47, %v19542_v38  ;;  %v13050_v38 = vmul.f32 %v9501_v44, %v12382_v56  ;;  %v13053_v47 = vmul.f32 %v9501_v44, %v12394_v23  ;;  %v9016_v19 = vunpack.i.h.bf16 %v9014_v8  ;;  %v19580_v56 = vld [vmem:[#allocation68_spill] sm:$0xff] }
 0x276   : > { %19537 = vst [vmem:[#allocation318_spill] sm:$0xff] %v13015_v33  ;;  %v13037_v45 = vsel %vm4812_vm3, %v19546_v9, %v19545_v14  ;;  %v13047_v32 = vsel %vm4133_vm2, %v19550_v17, %v19549_v62  ;;  %v19553_v9 = vrot.slane %v12947_v35, 4  ;;  %v19554_v14 = vrot.slane %v12982_v26, 4  ;;  %v19560_v35 = vld [vmem:[#allocation72_spill] sm:$0xff] }
 0x277   : > { %19541 = vst [vmem:[#allocation4_spill] sm:$0xff] %v13023_v42  ;;  %v2647_v58 = vmul.f32 %v9015_v3, %v11816_v51  ;;  %v9053_v62 = vunpack.i.h.bf16 %v9051_v10  ;;  %v9052_v8 = vunpack.i.l.bf16 %v9051_v10  ;;  %v19558_v44 = vrot.slane %v12284_v55, 1  ;;  %v19570_v42 = vld [vmem:[#allocation131_spill] sm:$0xff] }
 0x278   : > { %19544 = vst [vmem:[#allocation319_spill] sm:$0xff] %v13030_v28  ;;  %v13060_v0 = vsel %vm4812_vm3, %v19554_v14, %v19553_v9  ;;  %v2611_v14 = vmul.f32 %v9016_v19, %v11816_v51  ;;  %v19568_v51 = vld [vmem:[#allocation114_spill] sm:$0xff]  ;;  %v13116_v21 = vperm.slane %v19570_v42, 2  ;;  %v19583_v18 = vrot.slane %v13050_v38, 2 }
 0x279   : > { %19547 = vst [vmem:[#allocation320_spill] sm:$0xff] %v13037_v45  ;;  %v1968_v45 = vmul.f32 %v9015_v3, %v11813_v59  ;;  %v2756_v28 = vrot.slane %v2647_v58, 2  ;;  %v13071_v9 = vmul.f32 %v9053_v62, %v12682_v49  ;;  %v13077_v17 = vmul.f32 %v9052_v8, %v12682_v49  ;;  %v9061_v3 = vpop.permute.xlu2 %9060 }
 0x27a   : > { %19548 = vst [vmem:[#allocation321_spill] sm:$0xff] %v13040_v11  ;;  %v13091_v59 = vmul.f32 %v9053_v62, %v12687_v60  ;;  %v13095_v19 = vmul.f32 %v9053_v62, %v12690_v43  ;;  %v2685_v50 = vrot.slane %v2611_v14, 2 }
 0x27b   : > { %19551 = vst [vmem:[#allocation322_spill] sm:$0xff] %v13050_v38  ;;  %v2077_v7 = vrot.slane %v1968_v45, 1  ;;  %v19561_v45 = vrot.slane %v19560_v35, 2  ;;  %v18534_v55 = vrot.slane %v13077_v17, 2  ;;  %v13102_v35 = vmul.f32 %v9052_v8, %v12690_v43 }
 0x27c   : > { %19552 = vst [vmem:[#allocation323_spill] sm:$0xff] %v13053_v47  ;;  %9199 = vperm.xlu2 %9187, %v19580_v56   ;;  %v19591_v38 = vrot.slane %v13067_v4, 4 }
 0x27d   : > { %19555 = vst [vmem:[#allocation324_spill] sm:$0xff] %v13060_v0  ;;  %v13082_v10 = vsel %vm1269_vm0, %v19558_v44, %v2077_v7  ;;  %v13087_v58 = vsel %vm2236_vm1, %v19561_v45, %v2756_v28  ;;  %v13099_v7 = vmul.f32 %v9052_v8, %v12687_v60  ;;  %v9516_v44 = vpop.permute.xlu0 %9515  ;;  %v19565_v28 = vld [vmem:[#allocation113_spill] sm:$0xff] }
 0x27e   : > { %19556 = vst [vmem:[#allocation325_spill] sm:$0xff] %v13067_v4  ;;  %v13105_v45 = vperm.slane %v19565_v28, 2  ;;  %v19574_v28 = vld [vmem:[#allocation71_spill] sm:$0xff]  ;;  %v9518_v14 = vunpack.i.h.bf16 %v9516_v44 }
 0x27f   : > { %19557 = vst [vmem:[#allocation326_spill] sm:$0xff] %v13071_v9  ;;  %9183 = vperm.xlu1 %9181, %v19574_v28  }
 0x280   : > { %19559 = vst [vmem:[#allocation327_spill] sm:$0xff] %v13082_v10  ;;  %v13113_v10 = vperm.slane %v19568_v51, 2  ;;  %v13128_v42 = vmul.f32 %v9518_v14, %v13105_v45  ;;  %v13137_v31 = vmul.f32 %v9518_v14, %v13116_v21 }
 0x281   : > { %19562 = vst [vmem:[#allocation72_spill] sm:$0xff] %v13087_v58  ;;  %v19567_v58 = vrot.slane %v13071_v9, 2  ;;  %v9517_v9 = vunpack.i.l.bf16 %v9516_v44 }
 0x282   : > { %19563 = vst [vmem:[#allocation328_spill] sm:$0xff] %v13091_v59 }
 0x283   : > { %19564 = vst [vmem:[#allocation329_spill] sm:$0xff] %v13095_v19  ;;  %v3201_v62 = vsel %vm2236_vm1, %v18534_v55, %v19567_v58  ;;  %v9063_v55 = vunpack.i.h.bf16 %v9061_v3  ;;  %v13131_v8 = vmul.f32 %v9517_v9, %v13105_v45  ;;  %v13140_v44 = vmul.f32 %v9517_v9, %v13113_v10 }
 0x284   : > { %19566 = vst [vmem:[#allocation330_spill] sm:$0xff] %v13105_v45  ;;  %v13120_v23 = vadd.f32 %v3201_v62, %v19572_v46  ;;  %v9062_v46 = vunpack.i.l.bf16 %v9061_v3  ;;  %v13134_v62 = vmul.f32 %v9518_v14, %v13113_v10  ;;  %v19582_v58 = vrot.slane %v13012_v13, 2 }
 0x285   : > { %19569 = vst [vmem:[#allocation331_spill] sm:$0xff] %v13113_v10  ;;  %v13144_v51 = vmul.f32 %v9063_v55, %v12682_v49  ;;  %v19586_v14 = vrot.slane %v13053_v47, 3  ;;  %v13161_v34 = vmul.f32 %v9517_v9, %v13116_v21  ;;  %v13164_v56 = vmul.f32 %v9063_v55, %v12687_v60 }
 0x286   : > { %19571 = vst [vmem:[#allocation332_spill] sm:$0xff] %v13116_v21  ;;  %v13151_v3 = vsel %vm2236_vm1, %v19583_v18, %v19582_v58  ;;  %v19590_v13 = vrot.slane %v13040_v11, 4  ;;  %v19593_v58 = vrot.slane %v19400_v41, 2  ;;  %v19595_v47 = vrot.slane %v13091_v59, 3 }
 0x287   : > { %19573 = vst [vmem:[#allocation210_spill] sm:$0xff] %v13120_v23  ;;  %v19585_v23 = vrot.slane %v13015_v33, 3  ;;  %v13212_v9 = vmul.f32 %v9063_v55, %v12690_v43 }
 0x288   : > { %19575 = vst [vmem:[#allocation71_spill] sm:$0xff] %v13128_v42  ;;  %v13171_v18 = vsel %vm4812_vm3, %v19591_v38, %v19590_v13  ;;  %v13176_v33 = vsel %vm2236_vm1, %v2685_v50, %v19593_v58  ;;  %v19598_v13 = vrot.slane %v13095_v19, 4  ;;  %v19599_v38 = vrot.slane %v13102_v35, 4 }
 0x289   : > { %19576 = vst [vmem:[#allocation333_spill] sm:$0xff] %v13131_v8  ;;  %v13158_v0 = vsel %vm4133_vm2, %v19586_v14, %v19585_v23  ;;  %v9026_v14 = vpop.permute.xlu1 %9025  ;;  %v13196_v58 = vmul.f32 %v9062_v46, %v12682_v49  ;;  %v19605_v23 = vld [vmem:[#allocation247_spill] sm:$0xff] }
 0x28a   : > { %19577 = vst [vmem:[#allocation334_spill] sm:$0xff] %v13134_v62  ;;  %v13192_v41 = vsel %vm4812_vm3, %v19599_v38, %v19598_v13  ;;  %v9028_v59 = vunpack.i.h.bf16 %v9026_v14  ;;  %v19601_v13 = vrot.slane %v13128_v42, 4  ;;  %v19602_v38 = vrot.slane %v13131_v8, 4  ;;  %9194 = vperm.xlu1 %9181, %v19605_v23  }
 0x28b   : > { %19578 = vst [vmem:[#allocation335_spill] sm:$0xff] %v13137_v31  ;;  %v18544_v19 = vrot.slane %v13196_v58, 2  ;;  %v13221_v42 = vmul.f32 %v9062_v46, %v12687_v60  ;;  %v13229_v23 = vmul.f32 %v9062_v46, %v12690_v43 }
 0x28c   : > { %19579 = vst [vmem:[#allocation336_spill] sm:$0xff] %v13140_v44  ;;  %v13209_v50 = vsel %vm4812_vm3, %v19602_v38, %v19601_v13  ;;  %v3098_v8 = vmul.f32 %v9028_v59, %v12682_v49  ;;  %v4064_v13 = vmul.f32 %v9028_v59, %v12687_v60  ;;  %v19607_v38 = vld [vmem:[#allocation53_spill] sm:$0xff] }
 0x28d   : > { %19581 = vst [vmem:[#allocation68_spill] sm:$0xff] %v13144_v51 }
 0x28e   : > { %19584 = vst [vmem:[#allocation337_spill] sm:$0xff] %v13151_v3  ;;  %v19611_v3 = vrot.slane %v13134_v62, 5  ;;  %v19616_v62 = vrot.slane %v12862_v48, 3  ;;  %v19620_v48 = vrot.slane %v13137_v31, 6  ;;  %v19626_v31 = vrot.slane %v13164_v56, 3 }
 0x28f   : > { %19587 = vst [vmem:[#allocation338_spill] sm:$0xff] %v13158_v0  ;;  %v19596_v0 = vrot.slane %v13099_v7, 3 }
 0x290   : > { %19588 = vst [vmem:[#allocation339_spill] sm:$0xff] %v13161_v34 }
 0x291   : > { %19589 = vst [vmem:[#allocation340_spill] sm:$0xff] %v13164_v56  ;;  %v13185_v11 = vsel %vm4133_vm2, %v19596_v0, %v19595_v47  ;;  %v19606_v47 = vrot.slane %v13144_v51, 2 }
 0x292   : > { %19592 = vst [vmem:[#allocation341_spill] sm:$0xff] %v13171_v18  ;;  %v9027_v18 = vunpack.i.l.bf16 %v9026_v14  ;;  %v4743_v14 = vmul.f32 %v9028_v59, %v12690_v43  ;;  %9204 = vperm.xlu1 %9181, %v12454_v5  }
 0x293   : > { %19594 = vst [vmem:[#allocation342_spill] sm:$0xff] %v13176_v33  ;;  %v9542_v33 = vpop.permute.xlu0 %9541  ;;  %v3213_v0 = vsel %vm2236_vm1, %v18544_v19, %v19606_v47  ;;  %v3176_v47 = vrot.slane %v3098_v8, 2  ;;  %v4143_v19 = vrot.slane %v4064_v13, 3  ;;  %v19615_v13 = vrot.slane %v12819_v24, 2 }
 0x294   : > { %19597 = vst [vmem:[#allocation343_spill] sm:$0xff] %v13185_v11  ;;  %v13226_v55 = vadd.f32 %v3213_v0, %v19607_v38  ;;  %v13237_v51 = vmul.f32 %v9027_v18, %v12687_v60  ;;  %v9544_v4 = vunpack.i.h.bf16 %v9542_v33  ;;  %v19612_v0 = vrot.slane %v13140_v44, 5 }
 0x295   : > { %19600 = vst [vmem:[#allocation344_spill] sm:$0xff] %v13192_v41  ;;  %v4822_v38 = vrot.slane %v4743_v14, 4  ;;  %v3179_v41 = vsel %vm2236_vm1, %v3176_v47, %v19615_v13  ;;  %v13258_v44 = vsel %vm4133_vm2, %v4143_v19, %v19616_v62  ;;  %v19621_v62 = vrot.slane %v13161_v34, 6  ;;  %v19623_v14 = vld [vmem:[#allocation56_spill] sm:$0xff] }
 0x296   : > { %19603 = vst [vmem:[#allocation345_spill] sm:$0xff] %v13209_v50  ;;  %v13233_v50 = vmul.f32 %v9027_v18, %v12682_v49  ;;  %v13244_v46 = vsel %vm6709_vm4, %v19612_v0, %v19611_v3  ;;  %v9071_v3 = vpop.permute.xlu2 %9070  ;;  %v19618_v0 = vrot.slane %v12865_v36, 4  ;;  %v13270_v24 = vadd.f32 %v3179_v41, %v12541_v27  ;;  %v9036_v41 = vpop.permute.xlu1 %9035 }
 0x297   : > { %19604 = vst [vmem:[#allocation346_spill] sm:$0xff] %v13212_v9  ;;  %v13277_v13 = vsel %vm7388_vm5, %v19621_v62, %v19620_v48  ;;  %v9073_v27 = vunpack.i.h.bf16 %v9071_v3  ;;  %v19627_v34 = vrot.slane %v13221_v42, 3  ;;  %v19630_v62 = vrot.slane %v13212_v9, 4 }
 0x298   : > { %19608 = vst [vmem:[#allocation247_spill] sm:$0xff] %v13226_v55  ;;  %v18549_v59 = vrot.slane %v13233_v50, 2  ;;  %v13248_v55 = vmul.f32 %v9027_v18, %v12690_v43  ;;  %v13264_v18 = vsel %vm4812_vm3, %v4822_v38, %v19618_v0  ;;  %v13284_v0 = vmul.f32 %v9544_v4, %v13105_v45 }
 0x299   : > { %19609 = vst [vmem:[#allocation53_spill] sm:$0xff] %v13233_v50  ;;  %v13292_v48 = vsel %vm4133_vm2, %v19627_v34, %v19626_v31  ;;  %v19631_v36 = vrot.slane %v13229_v23, 4  ;;  %v19636_v31 = vld [vmem:[#allocation5_spill] sm:$0xff]  ;;  %v9037_v50 = vunpack.i.l.bf16 %v9036_v41 }
 0x29a   : > { %19610 = vst [vmem:[#allocation347_spill] sm:$0xff] %v13237_v51  ;;  %v3177_v16 = vsel %vm2236_vm1, %v18549_v59, %v3176_v47  ;;  %v9543_v59 = vunpack.i.l.bf16 %v9542_v33  ;;  %v13305_v33 = vmul.f32 %v9544_v4, %v13116_v21  ;;  %9209 = vperm.xlu2 %9187, %v19636_v31   ;;  %v19641_v56 = vrot.slane %v13248_v55, 4  ;;  %9214 = vperm.xlu1 %9181, %v12565_v30  }
 0x29b   : > { %19613 = vst [vmem:[#allocation348_spill] sm:$0xff] %v13244_v46  ;;  %v13280_v8 = vadd.f32 %v3177_v16, %v19623_v14  ;;  %v13295_v16 = vmul.f32 %v9544_v4, %v13113_v10  ;;  %v9072_v14 = vunpack.i.l.bf16 %v9071_v3  ;;  %v13302_v47 = vsel %vm4812_vm3, %v19631_v36, %v19630_v62 }
 0x29c   : > { %19614 = vst [vmem:[#allocation349_spill] sm:$0xff] %v13248_v55  ;;  %v13311_v34 = vmul.f32 %v9543_v59, %v13113_v10  ;;  %v13315_v3 = vmul.f32 %v9543_v59, %v13116_v21  ;;  %v13318_v46 = vmul.f32 %v9073_v27, %v12682_v49  ;;  %v9038_v4 = vunpack.i.h.bf16 %v9036_v41 }
 0x29d   : > { %19617 = vst [vmem:[#allocation350_spill] sm:$0xff] %v13258_v44  ;;  %v13321_v36 = vmul.f32 %v9072_v14, %v12682_v49  ;;  %v19639_v62 = vrot.slane %v13237_v51, 3  ;;  %v13332_v31 = vsel %vm4812_vm3, %v19641_v56, %v4822_v38  ;;  %v13345_v56 = vmul.f32 %v9073_v27, %v12690_v43 }
 0x29e   : > { %19619 = vst [vmem:[#allocation351_spill] sm:$0xff] %v13264_v18  ;;  %v18558_v44 = vrot.slane %v13318_v46, 2  ;;  %v3102_v18 = vmul.f32 %v9038_v4, %v12682_v49  ;;  %v13359_v55 = vmul.f32 %v9072_v14, %v12687_v60  ;;  %v3101_v38 = vmul.f32 %v9037_v50, %v12682_v49 }
 0x29f   : > { %19622 = vst [vmem:[#allocation352_spill] sm:$0xff] %v13277_v13  ;;  %v13308_v13 = vmul.f32 %v9543_v59, %v13105_v45  ;;  %v13327_v9 = vsel %vm4133_vm2, %v19639_v62, %v4143_v19  ;;  %v18559_v51 = vrot.slane %v13321_v36, 2  ;;  %v4068_v59 = vmul.f32 %v9038_v4, %v12687_v60 }
 0x2a0   : > { %19624 = vst [vmem:[#allocation56_spill] sm:$0xff] %v13280_v8 }
 0x2a1   : > { %19625 = vst [vmem:[#allocation353_spill] sm:$0xff] %v13284_v0  ;;  %v3225_v41 = vsel %vm2236_vm1, %v18559_v51, %v18558_v44  ;;  %v4067_v44 = vmul.f32 %v9037_v50, %v12687_v60 }
 0x2a2   : > { %19628 = vst [vmem:[#allocation354_spill] sm:$0xff] %v13292_v48  ;;  %v13356_v19 = vadd.f32 %v3225_v41, %v12440_v54  ;;  %v4746_v48 = vmul.f32 %v9037_v50, %v12690_v43  ;;  %v19646_v41 = vrot.slane %v12941_v53, 2  ;;  %v19651_v50 = vrot.slane %v12814_v6, 2  ;;  %v19652_v54 = vld [vmem:[#allocation274_spill] sm:$0xff]  ;;  %9224 = vperm.xlu1 %9181, %v12672_v52  }
 0x2a3   : > { %19629 = vst [vmem:[#allocation355_spill] sm:$0xff] %v13295_v16  ;;  %v4149_v62 = vrot.slane %v4067_v44, 3 }
 0x2a4   : > { %19632 = vst [vmem:[#allocation356_spill] sm:$0xff] %v13302_v47  ;;  %v13338_v47 = vmul.f32 %v9073_v27, %v12687_v60  ;;  %v4747_v27 = vmul.f32 %v9038_v4, %v12690_v43  ;;  %v19647_v4 = vrot.slane %v12977_v63, 3  ;;  %v19653_v63 = vld [vmem:[#allocation150_spill] sm:$0xff] }
 0x2a5   : > { %19633 = vst [vmem:[#allocation357_spill] sm:$0xff] %v13305_v33  ;;  %9647 = vperm.xlu0 %9590, %v19653_v63  }
 0x2a6   : > { %19634 = vst [vmem:[#allocation358_spill] sm:$0xff] %v13308_v13  ;;  %v4830_v51 = vrot.slane %v4747_v27, 4 }
 0x2a7   : > { %19635 = vst [vmem:[#allocation359_spill] sm:$0xff] %v13311_v34 }
 0x2a8   : > { %19637 = vst [vmem:[#allocation5_spill] sm:$0xff] %v13315_v3 }
 0x2a9   : > { %19638 = vst [vmem:[#allocation360_spill] sm:$0xff] %v13318_v46  ;;  %v3184_v46 = vrot.slane %v3102_v18, 2  ;;  %v9557_v18 = vpop.permute.xlu0 %9556 }
 0x2aa   : > { %19640 = vst [vmem:[#allocation361_spill] sm:$0xff] %v13327_v9  ;;  %v3182_v9 = vrot.slane %v3101_v38, 2  ;;  %9234 = vperm.xlu1 %9181, %v12792_v1  }
 0x2ab   : > { %19642 = vst [vmem:[#allocation362_spill] sm:$0xff] %v13332_v31  ;;  %v4151_v31 = vrot.slane %v4068_v59, 3  ;;  %v19649_v59 = vrot.slane %v12982_v26, 4 }
 0x2ac   : > { %19643 = vst [vmem:[#allocation363_spill] sm:$0xff] %v13338_v47  ;;  %v3183_v38 = vsel %vm2236_vm1, %v19651_v50, %v3182_v9  ;;  %v3185_v53 = vsel %vm2236_vm1, %v3182_v9, %v3184_v46  ;;  %v4828_v9 = vrot.slane %v4746_v48, 4 }
 0x2ad   : > { %19644 = vst [vmem:[#allocation364_spill] sm:$0xff] %v13345_v56  ;;  %v13373_v8 = vsel %vm4133_vm2, %v4151_v31, %v19647_v4  ;;  %v13378_v27 = vsel %vm4812_vm3, %v4830_v51, %v19649_v59  ;;  %v9081_v4 = vpop.permute.xlu2 %9080  ;;  %v13389_v44 = vadd.f32 %v3183_v38, %v12539_v57  ;;  %v19655_v59 = vrot.slane %v12855_v22, 3  ;;  %v9046_v38 = vpop.permute.xlu1 %9045  ;;  %9652 = vperm.xlu0 %9590, %v19574_v28  }
 0x2ae   : > { %19645 = vst [vmem:[#allocation365_spill] sm:$0xff] %v13356_v19  ;;  %v3187_v19 = vsel %vm2236_vm1, %v3184_v46, %v19646_v41  ;;  %v13400_v50 = vsel %vm4133_vm2, %v4149_v62, %v4151_v31  ;;  %v9559_v46 = vunpack.i.h.bf16 %v9557_v18  ;;  %v9083_v63 = vunpack.i.h.bf16 %v9081_v4 }
 0x2af   : > { %19648 = vst [vmem:[#allocation366_spill] sm:$0xff] %v13373_v8  ;;  %v13385_v41 = vadd.f32 %v3187_v19, %v19652_v54  ;;  %v19654_v8 = vld [vmem:[#allocation13_spill] sm:$0xff]  ;;  %v13397_v6 = vsel %vm4133_vm2, %v19655_v59, %v4149_v62  ;;  %v9558_v19 = vunpack.i.l.bf16 %v9557_v18  ;;  %v13403_v54 = vmul.f32 %v9072_v14, %v12690_v43  ;;  %v19663_v62 = vld [vmem:[#allocation7_spill] sm:$0xff] }
 0x2b0   : > { %19650 = vst [vmem:[#allocation367_spill] sm:$0xff] %v13378_v27  ;;  %v13392_v26 = vadd.f32 %v3185_v53, %v19654_v8  ;;  %v9082_v57 = vunpack.i.l.bf16 %v9081_v4  ;;  %v19658_v8 = vrot.slane %v12858_v25, 4  ;;  %v13411_v22 = vsel %vm4812_vm3, %v4828_v9, %v4830_v51  ;;  %9219 = vperm.xlu2 %9187, %v19663_v62  }
 0x2b1   : > { %19656 = vst [vmem:[#allocation274_spill] sm:$0xff] %v13397_v6  ;;  %v13414_v31 = vmul.f32 %v9559_v46, %v13105_v45  ;;  %v13417_v48 = vmul.f32 %v9559_v46, %v13113_v10  ;;  %v19664_v14 = vrot.slane %v13284_v0, 4  ;;  %v19665_v18 = vrot.slane %v13308_v13, 4  ;;  %v9572_v11 = vpop.permute.xlu0 %9571 }
 0x2b2   : > { %19657 = vst [vmem:[#allocation150_spill] sm:$0xff] %v13400_v50  ;;  %v13408_v53 = vsel %vm4812_vm3, %v19658_v8, %v4828_v9  ;;  %v13428_v4 = vmul.f32 %v9559_v46, %v13116_v21  ;;  %v13431_v51 = vmul.f32 %v9558_v19, %v13105_v45  ;;  %v13434_v59 = vmul.f32 %v9558_v19, %v13113_v10 }
 0x2b3   : > { %19659 = vst [vmem:[#allocation13_spill] sm:$0xff] %v13408_v53  ;;  %v13425_v25 = vsel %vm4812_vm3, %v19665_v18, %v19664_v14  ;;  %v19670_v9 = vrot.slane %v13295_v16, 5  ;;  %v19671_v8 = vrot.slane %v13311_v34, 5  ;;  %v13445_v14 = vmul.f32 %v9558_v19, %v13116_v21  ;;  %9244 = vperm.xlu1 %9181, %v12919_v37  }
 0x2b4   : > { %19660 = vst [vmem:[#allocation368_spill] sm:$0xff] %v13411_v22  ;;  %v13448_v46 = vmul.f32 %v9083_v63, %v12682_v49  ;;  %v9048_v18 = vunpack.i.h.bf16 %v9046_v38  ;;  %v19675_v0 = vrot.slane %v13305_v33, 6  ;;  %v19676_v13 = vrot.slane %v13315_v3, 6 }
 0x2b5   : > { %19661 = vst [vmem:[#allocation369_spill] sm:$0xff] %v13414_v31  ;;  %v13442_v62 = vsel %vm6709_vm4, %v19671_v8, %v19670_v9  ;;  %v13460_v9 = vmul.f32 %v9083_v63, %v12687_v60  ;;  %v13466_v33 = vmul.f32 %v9082_v57, %v12682_v49  ;;  %v13472_v34 = vmul.f32 %v9083_v63, %v12690_v43 }
 0x2b6   : > { %19662 = vst [vmem:[#allocation370_spill] sm:$0xff] %v13417_v48  ;;  %v13477_v8 = vmul.f32 %v9082_v57, %v12687_v60  ;;  %v4074_v3 = vmul.f32 %v9048_v18, %v12687_v60  ;;  %v9047_v53 = vunpack.i.l.bf16 %v9046_v38  ;;  %v13489_v16 = vmul.f32 %v9082_v57, %v12690_v43  ;;  %9657 = vperm.xlu0 %9590, %v12454_v5  }
 0x2b7   : > { %19666 = vst [vmem:[#allocation7_spill] sm:$0xff] %v13425_v25  ;;  %v13455_v25 = vsel %vm7388_vm5, %v19676_v13, %v19675_v0  ;;  %v18567_v19 = vrot.slane %v13466_v33, 2  ;;  %v4753_v13 = vmul.f32 %v9048_v18, %v12690_v43  ;;  %v19680_v0 = vrot.slane %v13448_v46, 2 }
 0x2b8   : > { %19667 = vst [vmem:[#allocation371_spill] sm:$0xff] %v13428_v4  ;;  %v13503_v57 = vmul.f32 %v9047_v53, %v12687_v60  ;;  %v9574_v38 = vunpack.i.h.bf16 %v9572_v11 }
 0x2b9   : > { %19668 = vst [vmem:[#allocation372_spill] sm:$0xff] %v13431_v51  ;;  %v3237_v63 = vsel %vm2236_vm1, %v18567_v19, %v19680_v0  ;;  %v4842_v50 = vrot.slane %v4753_v13, 4  ;;  %v13500_v0 = vmul.f32 %v9047_v53, %v12682_v49  ;;  %v19687_v13 = vrot.slane %v13102_v35, 4 }
 0x2ba   : > { %19669 = vst [vmem:[#allocation373_spill] sm:$0xff] %v13434_v59  ;;  %v13493_v22 = vadd.f32 %v3237_v63, %v12446_v2  ;;  %v19685_v2 = vrot.slane %v13099_v7, 3  ;;  %v19689_v63 = vld [vmem:[#allocation250_spill] sm:$0xff]  ;;  %v13520_v19 = vmul.f32 %v9047_v53, %v12690_v43  ;;  %v19691_v35 = vrot.slane %v13338_v47, 3 }
 0x2bb   : > { %19672 = vst [vmem:[#allocation374_spill] sm:$0xff] %v13442_v62  ;;  %v3108_v62 = vmul.f32 %v9048_v18, %v12682_v49  ;;  %v19682_v18 = vrot.slane %v13077_v17, 2  ;;  %v13514_v17 = vsel %vm4812_vm3, %v4842_v50, %v19687_v13  ;;  %v18570_v28 = vrot.slane %v13500_v0, 2 }
 0x2bc   : > { %19673 = vst [vmem:[#allocation375_spill] sm:$0xff] %v13445_v14  ;;  %v19692_v13 = vrot.slane %v13359_v55, 3  ;;  %v19693_v53 = vrot.slane %v13345_v56, 4  ;;  %v19697_v47 = vrot.slane %v13431_v51, 4 }
 0x2bd   : > { %19674 = vst [vmem:[#allocation376_spill] sm:$0xff] %v13448_v46  ;;  %v3196_v6 = vrot.slane %v3108_v62, 2  ;;  %v9056_v62 = vpop.permute.xlu1 %9055 }
 0x2be   : > { %19677 = vst [vmem:[#allocation377_spill] sm:$0xff] %v13455_v25  ;;  %v4163_v25 = vrot.slane %v4074_v3, 3  ;;  %9662 = vperm.xlu0 %9590, %v12565_v30  }
 0x2bf   : > { %19678 = vst [vmem:[#allocation378_spill] sm:$0xff] %v13460_v9  ;;  %v3199_v46 = vsel %vm2236_vm1, %v3196_v6, %v19682_v18  ;;  %v3197_v7 = vsel %vm2236_vm1, %v18570_v28, %v3196_v6  ;;  %v13561_v6 = vmul.f32 %v9574_v38, %v13105_v45  ;;  %v19706_v28 = vrot.slane %v13428_v4, 6 }
 0x2c0   : > { %19679 = vst [vmem:[#allocation379_spill] sm:$0xff] %v13472_v34  ;;  %v13509_v3 = vsel %vm4133_vm2, %v4163_v25, %v19685_v2  ;;  %v13517_v18 = vadd.f32 %v3199_v46, %v19689_v63  ;;  %v13531_v46 = vsel %vm4133_vm2, %v19692_v13, %v19691_v35  ;;  %v19694_v63 = vrot.slane %v13403_v54, 4 }
 0x2c1   : > { %19681 = vst [vmem:[#allocation380_spill] sm:$0xff] %v13493_v22  ;;  %v9573_v2 = vunpack.i.l.bf16 %v9572_v11  ;;  %v19699_v35 = vrot.slane %v13417_v48, 5  ;;  %v19700_v13 = vrot.slane %v13434_v59, 5  ;;  %v19705_v11 = vld [vmem:[#allocation9_spill] sm:$0xff]  ;;  %v19709_v48 = vrot.slane %v13460_v9, 3 }
 0x2c2   : > { %19683 = vst [vmem:[#allocation381_spill] sm:$0xff] %v13500_v0  ;;  %v13538_v27 = vsel %vm4812_vm3, %v19694_v63, %v19693_v53  ;;  %v19702_v53 = vld [vmem:[#allocation222_spill] sm:$0xff]  ;;  %9229 = vperm.xlu2 %9187, %v19705_v11   ;;  %v19715_v4 = vrot.slane %v13503_v57, 3  ;;  %v9057_v59 = vunpack.i.l.bf16 %v9056_v62  ;;  %v19725_v9 = vrot.slane %v13196_v58, 2 }
 0x2c3   : > { %19684 = vst [vmem:[#allocation382_spill] sm:$0xff] %v13503_v57  ;;  %v13555_v56 = vsel %vm6709_vm4, %v19700_v13, %v19699_v35  ;;  %v13558_v63 = vadd.f32 %v3197_v7, %v19702_v53  ;;  %v19710_v35 = vrot.slane %v13477_v8, 3  ;;  %v19712_v7 = vrot.slane %v13472_v34, 4 }
 0x2c4   : > { %19686 = vst [vmem:[#allocation383_spill] sm:$0xff] %v13509_v3  ;;  %v9058_v3 = vunpack.i.h.bf16 %v9056_v62  ;;  %v19713_v53 = vrot.slane %v13489_v16, 4  ;;  %v19726_v62 = vrot.slane %v13221_v42, 3  ;;  %v13630_v51 = vmul.f32 %v9057_v59, %v12690_v43  ;;  %v19733_v42 = vld [vmem:[#allocation54_spill] sm:$0xff] }
 0x2c5   : > { %19688 = vst [vmem:[#allocation384_spill] sm:$0xff] %v13514_v17  ;;  %v19696_v17 = vrot.slane %v13414_v31, 4  ;;  %v13576_v13 = vsel %vm4133_vm2, %v19710_v35, %v19709_v48  ;;  %v13588_v31 = vsel %vm4133_vm2, %v19715_v4, %v4163_v25  ;;  %v13597_v35 = vmul.f32 %v9574_v38, %v13113_v10 }
 0x2c6   : > { %19690 = vst [vmem:[#allocation250_spill] sm:$0xff] %v13520_v19  ;;  %v13583_v11 = vsel %vm4812_vm3, %v19713_v53, %v19712_v7  ;;  %v4080_v7 = vmul.f32 %v9058_v3, %v12687_v60  ;;  %v13602_v53 = vmul.f32 %v9574_v38, %v13116_v21  ;;  %v13605_v25 = vmul.f32 %v9573_v2, %v13105_v45 }
 0x2c7   : > { %19695 = vst [vmem:[#allocation385_spill] sm:$0xff] %v13538_v27  ;;  %v13548_v22 = vsel %vm4812_vm3, %v19697_v47, %v19696_v17  ;;  %v19707_v47 = vrot.slane %v13445_v14, 6  ;;  %v3114_v14 = vmul.f32 %v9058_v3, %v12682_v49  ;;  %v4759_v4 = vmul.f32 %v9058_v3, %v12690_v43  ;;  %9667 = vperm.xlu0 %9590, %v12672_v52  }
 0x2c8   : > { %19698 = vst [vmem:[#allocation386_spill] sm:$0xff] %v13548_v22  ;;  %v13613_v22 = vmul.f32 %v9573_v2, %v13116_v21  ;;  %v13616_v38 = vmul.f32 %v9057_v59, %v12682_v49  ;;  %v19741_v5 = vrot.slane %v13597_v35, 5 }
 0x2c9   : > { %19701 = vst [vmem:[#allocation387_spill] sm:$0xff] %v13555_v56  ;;  %v13569_v17 = vsel %vm7388_vm5, %v19707_v47, %v19706_v28  ;;  %v9093_v28 = vpop.permute.xlu2 %9092  ;;  %v19717_v47 = vrot.slane %v13520_v19, 4  ;;  %v13610_v56 = vmul.f32 %v9573_v2, %v13113_v10  ;;  %v4854_v34 = vrot.slane %v4759_v4, 4  ;;  %v19732_v19 = vld [vmem:[#allocation237_spill] sm:$0xff] }
 0x2ca   : > { %19703 = vst [vmem:[#allocation222_spill] sm:$0xff] %v13558_v63  ;;  %v19730_v2 = vrot.slane %v13229_v23, 4  ;;  %v18583_v58 = vrot.slane %v13616_v38, 2 }
 0x2cb   : > { %19704 = vst [vmem:[#allocation388_spill] sm:$0xff] %v13561_v6  ;;  %v13594_v48 = vsel %vm4812_vm3, %v19717_v47, %v4842_v50  ;;  %v3208_v50 = vrot.slane %v3114_v14, 2  ;;  %v4175_v47 = vrot.slane %v4080_v7, 3  ;;  %v13627_v7 = vmul.f32 %v9057_v59, %v12687_v60  ;;  %v19734_v59 = vld [vmem:[#allocation55_spill] sm:$0xff] }
 0x2cc   : > { %19708 = vst [vmem:[#allocation9_spill] sm:$0xff] %v13569_v17  ;;  %v9095_v17 = vunpack.i.h.bf16 %v9093_v28  ;;  %v13635_v4 = vsel %vm4812_vm3, %v4854_v34, %v19730_v2  ;;  %v19735_v2 = vld [vmem:[#allocation65_spill] sm:$0xff] }
 0x2cd   : > { %19711 = vst [vmem:[#allocation389_spill] sm:$0xff] %v13576_v13  ;;  %v3211_v3 = vsel %vm2236_vm1, %v3208_v50, %v19725_v9  ;;  %v13624_v14 = vsel %vm4133_vm2, %v4175_v47, %v19726_v62  ;;  %v3209_v23 = vsel %vm2236_vm1, %v18583_v58, %v3208_v50  ;;  %v19736_v13 = vld [vmem:[#allocation31_spill] sm:$0xff] }
 0x2ce   : > { %19714 = vst [vmem:[#allocation390_spill] sm:$0xff] %v13583_v11  ;;  %v13639_v9 = vadd.f32 %v3211_v3, %v19732_v19  ;;  %v3464_v57 = vmul.f32 %v9095_v17, %v19733_v42  ;;  %v9587_v11 = vpop.permute.xlu0 %9586  ;;  %v13653_v62 = vadd.f32 %v3209_v23, %v19736_v13  ;;  %v19739_v3 = vrot.slane %v13605_v25, 4 }
 0x2cf   : > { %19716 = vst [vmem:[#allocation391_spill] sm:$0xff] %v13588_v31  ;;  %v9094_v31 = vunpack.i.l.bf16 %v9093_v28  ;;  %v9589_v58 = vunpack.i.h.bf16 %v9587_v11  ;;  %v9588_v13 = vunpack.i.l.bf16 %v9587_v11  ;;  %v19744_v11 = vrot.slane %v13602_v53, 6  ;;  %9672 = vperm.xlu0 %9590, %v12792_v1   ;;  %v19859_v1 = vld [vmem:[#allocation19_spill] sm:$0xff] }
 0x2d0   : > { %19718 = vst [vmem:[#allocation392_spill] sm:$0xff] %v13594_v48  ;;  %v4287_v48 = vmul.f32 %v9095_v17, %v19734_v59  ;;  %v3540_v63 = vrot.slane %v3464_v57, 2  ;;  %v19738_v57 = vrot.slane %v13561_v6, 4 }
 0x2d1   : > { %19719 = vst [vmem:[#allocation393_spill] sm:$0xff] %v13597_v35  ;;  %v13661_v50 = vmul.f32 %v9094_v31, %v19734_v59  ;;  %v13665_v28 = vmul.f32 %v9094_v31, %v19735_v2  ;;  %v9108_v0 = vpop.permute.xlu2 %9107 }
 0x2d2   : > { %19720 = vst [vmem:[#allocation394_spill] sm:$0xff] %v13602_v53  ;;  %v13674_v19 = vsel %vm4812_vm3, %v19739_v3, %v19738_v57  ;;  %v19754_v53 = vrot.slane %v13627_v7, 3 }
 0x2d3   : > { %19721 = vst [vmem:[#allocation395_spill] sm:$0xff] %v13605_v25  ;;  %v19749_v57 = vrot.slane %v13661_v50, 3 }
 0x2d4   : > { %19722 = vst [vmem:[#allocation396_spill] sm:$0xff] %v13610_v56 }
 0x2d5   : > { %19723 = vst [vmem:[#allocation397_spill] sm:$0xff] %v13613_v22 }
 0x2d6   : > { %19724 = vst [vmem:[#allocation398_spill] sm:$0xff] %v13616_v38  ;;  %v13658_v38 = vmul.f32 %v9094_v31, %v19733_v42 }
 0x2d7   : > { %19727 = vst [vmem:[#allocation399_spill] sm:$0xff] %v13624_v14  ;;  %9677 = vperm.xlu0 %9590, %v12919_v37   ;;  %v19884_v37 = vld [vmem:[#allocation164_spill] sm:$0xff] }
 0x2d8   : > { %19728 = vst [vmem:[#allocation400_spill] sm:$0xff] %v13627_v7  ;;  %v19747_v6 = vrot.slane %v13658_v38, 2  ;;  %v9109_v7 = vunpack.i.l.bf16 %v9108_v0 }
 0x2d9   : > { %19729 = vst [vmem:[#allocation401_spill] sm:$0xff] %v13630_v51 }
 0x2da   : > { %19731 = vst [vmem:[#allocation402_spill] sm:$0xff] %v13635_v4  ;;  %v4966_v4 = vmul.f32 %v9095_v17, %v19735_v2  ;;  %v4363_v17 = vrot.slane %v4287_v48, 3  ;;  %v19742_v48 = vrot.slane %v13610_v56, 5  ;;  %v13694_v3 = vsel %vm2236_vm1, %v19747_v6, %v3540_v63  ;;  %v19758_v56 = vld [vmem:[#allocation89_spill] sm:$0xff] }
 0x2db   : > { %19737 = vst [vmem:[#allocation237_spill] sm:$0xff] %v13653_v62  ;;  %v13711_v6 = vsel %vm4133_vm2, %v19754_v53, %v4175_v47  ;;  %v19759_v25 = vrot.slane %v19758_v56, 2  ;;  %v19766_v47 = vld [vmem:[#allocation95_spill] sm:$0xff]  ;;  %v13739_v56 = vmul.f32 %v9589_v58, %v13113_v10 }
 0x2dc   : > { %v5042_v23 = vrot.slane %v4966_v4, 4  ;;  %19740 = vst [vmem:[#allocation54_spill] sm:$0xff] %v13674_v19  ;;  %v13681_v31 = vsel %vm6709_vm4, %v19742_v48, %v19741_v5  ;;  %v19745_v4 = vrot.slane %v13613_v22, 6  ;;  %v13699_v35 = vsel %vm4133_vm2, %v19749_v57, %v4363_v17  ;;  %v19763_v19 = vld [vmem:[#allocation93_spill] sm:$0xff] }
 0x2dd   : > { %19743 = vst [vmem:[#allocation55_spill] sm:$0xff] %v13681_v31  ;;  %v13702_v5 = vmul.f32 %v9589_v58, %v13105_v45  ;;  %v13705_v48 = vmul.f32 %v9588_v13, %v13105_v45  ;;  %v19756_v22 = vrot.slane %v13630_v51, 4  ;;  %v19761_v31 = vrot.slane %v13665_v28, 4 }
 0x2de   : > { %v13688_v14 = vsel %vm7388_vm5, %v19745_v4, %v19744_v11  ;;  %19748 = vst [vmem:[#allocation31_spill] sm:$0xff] %v13694_v3  ;;  %v19753_v11 = vld [vmem:[#allocation11_spill] sm:$0xff]  ;;  %v9066_v4 = vpop.permute.xlu1 %9065  ;;  %v19764_v45 = vrot.slane %v19763_v19, 3  ;;  %v19767_v51 = vrot.slane %v19766_v47, 4  ;;  %v13762_v47 = vmul.f32 %v9588_v13, %v13116_v21 }
 0x2df   : > { %19746 = vst [vmem:[#allocation65_spill] sm:$0xff] %v13688_v14  ;;  %9239 = vperm.xlu2 %9187, %v19753_v11   ;;  %v13716_v57 = vsel %vm4812_vm3, %v19756_v22, %v4854_v34  ;;  %v13721_v14 = vsel %vm2236_vm1, %v3540_v63, %v19759_v25  ;;  %v13726_v11 = vsel %vm4812_vm3, %v19761_v31, %v5042_v23  ;;  %v9068_v63 = vunpack.i.h.bf16 %v9066_v4 }
 0x2e0   : > { %19750 = vst [vmem:[#allocation403_spill] sm:$0xff] %v13699_v35  ;;  %v13731_v53 = vsel %vm4133_vm2, %v4363_v17, %v19764_v45  ;;  %v13736_v34 = vsel %vm4812_vm3, %v5042_v23, %v19767_v51  ;;  %v13742_v22 = vmul.f32 %v9589_v58, %v13116_v21  ;;  %v9067_v25 = vunpack.i.l.bf16 %v9066_v4 }
 0x2e1   : > { %19751 = vst [vmem:[#allocation404_spill] sm:$0xff] %v13702_v5  ;;  %v9110_v31 = vunpack.i.h.bf16 %v9108_v0  ;;  %v13747_v45 = vmul.f32 %v9588_v13, %v13113_v10  ;;  %v3120_v51 = vmul.f32 %v9068_v63, %v12682_v49  ;;  %v13752_v17 = vmul.f32 %v9068_v63, %v12687_v60 }
 0x2e2   : > { %19752 = vst [vmem:[#allocation405_spill] sm:$0xff] %v13705_v48  ;;  %v13755_v58 = vmul.f32 %v9068_v63, %v12690_v43  ;;  %v13758_v23 = vmul.f32 %v9067_v25, %v12682_v49  ;;  %v19774_v4 = vrot.slane %v13702_v5, 4  ;;  %v19775_v13 = vrot.slane %v13705_v48, 4 }
 0x2e3   : > { %19755 = vst [vmem:[#allocation11_spill] sm:$0xff] %v13711_v6  ;;  %v13765_v19 = vmul.f32 %v9110_v31, %v19733_v42  ;;  %v3220_v10 = vrot.slane %v3120_v51, 2  ;;  %v13781_v30 = vmul.f32 %v9110_v31, %v19734_v59  ;;  %v19777_v51 = vmov 0  }
 0x2e4   : > { %19757 = vst [vmem:[#allocation406_spill] sm:$0xff] %v13716_v57  ;;  %v13777_v21 = vsel %vm4812_vm3, %v19775_v13, %v19774_v4  ;;  %v19778_v63 = vrot.slane %v13321_v36, 2  ;;  %v19779_v35 = vrot.slane %v13359_v55, 3  ;;  %v19781_v4 = vrot.slane %v13403_v54, 4  ;;  %v19795_v57 = vld [vmem:[#allocation24_spill] sm:$0xff] }
 0x2e5   : > { %19760 = vst [vmem:[#allocation89_spill] sm:$0xff] %v13721_v14  ;;  %v19782_v13 = vrot.slane %v13755_v58, 4  ;;  %v19784_v48 = vrot.slane %v13758_v23, 2 }
 0x2e6   : > { %19762 = vst [vmem:[#allocation407_spill] sm:$0xff] %v13726_v11  ;;  %v18600_v11 = vrot.slane %v13752_v17, 3 }
 0x2e7   : > { %19765 = vst [vmem:[#allocation93_spill] sm:$0xff] %v13731_v53  ;;  %9248 = vset.pattern.permute.xlu2 %v19777_v51  ;;  %v13799_v0 = vsel %vm4812_vm3, %v19782_v13, %v19781_v4  ;;  %v3221_v36 = vsel %vm2236_vm1, %v19784_v48, %v3220_v10  ;;  %v13814_v4 = vmul.f32 %v9110_v31, %v19735_v2 }
 0x2e8   : > { %19768 = vst [vmem:[#allocation95_spill] sm:$0xff] %v13736_v34  ;;  %v3223_v34 = vsel %vm2236_vm1, %v3220_v10, %v19778_v63  ;;  %v13792_v5 = vsel %vm4133_vm2, %v18600_v11, %v19779_v35  ;;  %v13806_v55 = vadd.f32 %v3221_v36, %v12518_v40  ;;  %v9076_v11 = vpop.permute.xlu1 %9075  ;;  %v13817_v13 = vmul.f32 %v9109_v7, %v19733_v42 }
 0x2e9   : > { %19769 = vst [vmem:[#allocation408_spill] sm:$0xff] %v13739_v56  ;;  %v13809_v35 = vadd.f32 %v3223_v34, %v12520_v15  ;;  %v13820_v10 = vmul.f32 %v9109_v7, %v19734_v59  ;;  %v13823_v40 = vmul.f32 %v9067_v25, %v12687_v60  ;;  %v13826_v15 = vmul.f32 %v9109_v7, %v19735_v2 }
 0x2ea   : > { %19770 = vst [vmem:[#allocation409_spill] sm:$0xff] %v13742_v22  ;;  %v18602_v36 = vrot.slane %v13817_v13, 2  ;;  %v9078_v63 = vunpack.i.h.bf16 %v9076_v11  ;;  %v9077_v14 = vunpack.i.l.bf16 %v9076_v11  ;;  %v19789_v34 = vrot.slane %v13781_v30, 3 }
 0x2eb   : > { %19771 = vst [vmem:[#allocation410_spill] sm:$0xff] %v13747_v45  ;;  %v18603_v31 = vrot.slane %v13820_v10, 3  ;;  %v13849_v53 = vmul.f32 %v9067_v25, %v12690_v43 }
 0x2ec   : > { %19772 = vst [vmem:[#allocation411_spill] sm:$0xff] %v13758_v23  ;;  %v19787_v23 = vld [vmem:[#allocation21_spill] sm:$0xff]  ;;  %v13864_v25 = vmul.f32 %v9077_v14, %v12682_v49 }
 0x2ed   : > { %19773 = vst [vmem:[#allocation412_spill] sm:$0xff] %v13762_v47 }
 0x2ee   : > { %19776 = vst [vmem:[#allocation413_spill] sm:$0xff] %v13777_v21  ;;  %v9593_v21 = vpop.permute.xlu0 %9592 }
 0x2ef   : > { %19780 = vst [vmem:[#allocation414_spill] sm:$0xff] %v13792_v5  ;;  %v9594_v48 = vunpack.i.l.bf16 %v9593_v21  ;;  %v9595_v54 = vunpack.i.h.bf16 %v9593_v21  ;;  %v13844_v5 = vsel %vm4133_vm2, %v18603_v31, %v19789_v34  ;;  %v3126_v21 = vmul.f32 %v9078_v63, %v12682_v49  ;;  %v9118_v31 = vpop.permute.xlu2 %9117 }
 0x2f0   : > { %19783 = vst [vmem:[#allocation415_spill] sm:$0xff] %v13799_v0  ;;  %v19788_v0 = vrot.slane %v13765_v19, 2 }
 0x2f1   : > { %19785 = vst [vmem:[#allocation416_spill] sm:$0xff] %v13806_v55  ;;  %v426_v3 = vmul.f32 %v9594_v48, %v19787_v23  ;;  %v4092_v48 = vmul.f32 %v9078_v63, %v12687_v60  ;;  %v19793_v55 = vrot.slane %v13814_v4, 4  ;;  %v3232_v6 = vrot.slane %v3126_v21, 2 }
 0x2f2   : > { %19786 = vst [vmem:[#allocation417_spill] sm:$0xff] %v13823_v40  ;;  %v3553_v7 = vsel %vm2236_vm1, %v18602_v36, %v19788_v0  ;;  %v19794_v0 = vrot.slane %v13826_v15, 4  ;;  %v19801_v21 = vrot.slane %v13477_v8, 3 }
 0x2f3   : > { %19790 = vst [vmem:[#allocation21_spill] sm:$0xff] %v13844_v5  ;;  %v13852_v11 = vadd.f32 %v3553_v7, %v13392_v26  ;;  %v679_v34 = vadd.f32 %v19795_v57, %v426_v3  ;;  %v4199_v62 = vrot.slane %v4092_v48, 3  ;;  %v4771_v5 = vmul.f32 %v9078_v63, %v12690_v43  ;;  %v19797_v7 = vld [vmem:[#allocation127_spill] sm:$0xff] }
 0x2f4   : > { %19791 = vst [vmem:[#allocation418_spill] sm:$0xff] %v13849_v53  ;;  %v13859_v36 = vsel %vm4812_vm3, %v19794_v0, %v19793_v55  ;;  %v427_v26 = vmul.f32 %v9595_v54, %v19787_v23  ;;  %v13872_v55 = vmul.f32 %v9077_v14, %v12690_v43  ;;  %v19800_v3 = vrot.slane %v13466_v33, 2 }
 0x2f5   : > { %19792 = vst [vmem:[#allocation419_spill] sm:$0xff] %v13852_v11  ;;  %v896_v27 = vadd.f32 %v19797_v7, %v679_v34  ;;  %v13869_v11 = vmul.f32 %v9077_v14, %v12687_v60  ;;  %v13880_v63 = vsel %vm4133_vm2, %v4199_v62, %v19801_v21  ;;  %v4878_v48 = vrot.slane %v4771_v5, 4  ;;  %v19803_v7 = vld [vmem:[#allocation165_spill] sm:$0xff] }
 0x2f6   : > { %19796 = vst [vmem:[#allocation24_spill] sm:$0xff] %v13864_v25  ;;  %v3235_v57 = vsel %vm2236_vm1, %v3232_v6, %v19800_v3  ;;  %v18606_v54 = vrot.slane %v13864_v25, 2  ;;  %v19804_v33 = vrot.slane %v13489_v16, 4  ;;  %v9120_v5 = vunpack.i.h.bf16 %v9118_v31 }
 0x2f7   : > { %19798 = vst [vmem:[#allocation127_spill] sm:$0xff] %v13869_v11  ;;  %v1379_v60 = vadd.f32 %v19803_v7, %v896_v27  ;;  %v13887_v14 = vadd.f32 %v3235_v57, %v12633_v39  ;;  %v19806_v21 = vrot.slane %v13739_v56, 5  ;;  %v19807_v0 = vrot.slane %v13747_v45, 5  ;;  %v19809_v27 = vld [vmem:[#allocation23_spill] sm:$0xff] }
 0x2f8   : > { %19799 = vst [vmem:[#allocation420_spill] sm:$0xff] %v13872_v55  ;;  %v13892_v3 = vsel %vm4812_vm3, %v4878_v48, %v19804_v33  ;;  %v3233_v8 = vsel %vm2236_vm1, %v18606_v54, %v3232_v6  ;;  %v680_v39 = vadd.f32 %v19809_v27, %v427_v26  ;;  %v19810_v57 = vld [vmem:[#allocation255_spill] sm:$0xff]  ;;  %v19813_v54 = vld [vmem:[#allocation18_spill] sm:$0xff]  ;;  %v3474_v56 = vmul.f32 %v9120_v5, %v19733_v42 }
 0x2f9   : > { %19802 = vst [vmem:[#allocation421_spill] sm:$0xff] %v13880_v63  ;;  %v13902_v34 = vsel %vm6709_vm4, %v19807_v0, %v19806_v21  ;;  %v13906_v7 = vadd.f32 %v19810_v57, %v1379_v60  ;;  %v13909_v16 = vadd.f32 %v3233_v8, %v12650_v61  ;;  %9250 = vperm.xlu2 %9248, %v19813_v54   ;;  %v9119_v45 = vunpack.i.l.bf16 %v9118_v31  ;;  %v9598_v0 = vpop.permute.xlu0 %9597 }
 0x2fa   : > { %19805 = vst [vmem:[#allocation165_spill] sm:$0xff] %v13892_v3  ;;  %v13916_v21 = vmul.f32 %v9120_v5, %v19734_v59  ;;  %v13919_v60 = vmul.f32 %v9120_v5, %v19735_v2  ;;  %v19814_v61 = vrot.slane %v13742_v22, 6  ;;  %v19815_v26 = vrot.slane %v13762_v47, 6  ;;  %v19823_v47 = vld [vmem:[#allocation124_spill] sm:$0xff]  ;;  %9260 = vperm.xlu1 %9181, %v19813_v54   ;;  %v19837_v3 = vld [vmem:[#allocation42_spill] sm:$0xff] }
 0x2fb   : > { %19808 = vst [vmem:[#allocation422_spill] sm:$0xff] %v13902_v34  ;;  %v19817_v27 = vrot.slane %v13752_v17, 3  ;;  %v19818_v57 = vrot.slane %v13823_v40, 3  ;;  %v19820_v6 = vrot.slane %v13755_v58, 4  ;;  %v19821_v33 = vrot.slane %v13849_v53, 4  ;;  %v19831_v53 = vld [vmem:[#allocation44_spill] sm:$0xff] }
 0x2fc   : > { %19811 = vst [vmem:[#allocation23_spill] sm:$0xff] %v13906_v7  ;;  %v13926_v8 = vsel %vm7388_vm5, %v19815_v26, %v19814_v61  ;;  %v13943_v22 = vmul.f32 %v9119_v45, %v19733_v42  ;;  %v13946_v61 = vadd.f32 %v19823_v47, %v680_v39  ;;  %v13949_v17 = vmul.f32 %v9119_v45, %v19734_v59  ;;  %v19834_v7 = vld [vmem:[#allocation102_spill] sm:$0xff] }
 0x2fd   : > { %19812 = vst [vmem:[#allocation255_spill] sm:$0xff] %v13909_v16  ;;  %v13933_v31 = vsel %vm4133_vm2, %v19818_v57, %v19817_v27  ;;  %v13940_v5 = vsel %vm4812_vm3, %v19821_v33, %v19820_v6  ;;  %v13952_v26 = vmul.f32 %v9119_v45, %v19735_v2  ;;  %v9600_v58 = vunpack.i.h.bf16 %v9598_v0  ;;  %v5407_v27 = vld [vmem:[%s9785_s17 + $0x14] sm:$0xf]  ;;  %v9133_v57 = vpop.permute.xlu2 %9132 }
 0x2fe   : > { %19816 = vst [vmem:[#allocation18_spill] sm:$0xff] %v13926_v8  ;;  %v19824_v33 = vrot.slane %v13869_v11, 3  ;;  %v19826_v8 = vrot.slane %v13872_v55, 4  ;;  %v3560_v39 = vrot.slane %v3474_v56, 2  ;;  %v18615_v34 = vrot.slane %v13943_v22, 2  ;;  %v19850_v16 = vld [vmem:[#allocation108_spill] sm:$0xff] }
 0x2ff   : > { %19819 = vst [vmem:[#allocation423_spill] sm:$0xff] %v13933_v31  ;;  %v4383_v52 = vrot.slane %v13916_v21, 3  ;;  %v5062_v45 = vrot.slane %v13919_v60, 4  ;;  %v18617_v25 = vrot.slane %v13949_v17, 3  ;;  %v18618_v11 = vrot.slane %v13952_v26, 4  ;;  %v19887_v31 = vld [vmem:[#allocation99_spill] sm:$0xff] }
 0x300   : > { %19822 = vst [vmem:[#allocation424_spill] sm:$0xff] %v13940_v5  ;;  %v13959_v6 = vsel %vm4133_vm2, %v19824_v33, %v4199_v62  ;;  %v13964_v47 = vsel %vm4812_vm3, %v19826_v8, %v4878_v48  ;;  %v13975_v62 = vsel %vm2236_vm1, %v18615_v34, %v3560_v39  ;;  %v5447_v48 = vunpack.c.l.bf16 %v5407_v27  ;;  %v9087_v33 = vpop.permute.xlu1 %9086 }
 0x301   : > { %19825 = vst [vmem:[#allocation124_spill] sm:$0xff] %v13959_v6  ;;  %v9135_v8 = vunpack.i.h.bf16 %v9133_v57  ;;  %v9134_v56 = vunpack.i.l.bf16 %v9133_v57  ;;  %v13980_v54 = vsel %vm4133_vm2, %v18617_v25, %v4383_v52  ;;  %v13985_v21 = vsel %vm4812_vm3, %v18618_v11, %v5062_v45  ;;  %v19843_v6 = vld [vmem:[#allocation106_spill] sm:$0xff] }
 0x302   : > { %19827 = vst [vmem:[#allocation425_spill] sm:$0xff] %v13964_v47  ;;  %v429_v60 = vmul.f32 %v9600_v58, %v19787_v23  ;;  %v9599_v55 = vunpack.i.l.bf16 %v9598_v0  ;;  %v19832_v34 = vunpack.c.l.bf16 %v19831_v53  ;;  %v9089_v53 = vunpack.i.h.bf16 %v9087_v33  ;;  %9269 = vset.pattern.permute.xlu1 %v19777_v51 }
 0x303   : > { %19828 = vst [vmem:[#allocation426_spill] sm:$0xff] %v13975_v62  ;;  %v3480_v27 = vmul.f32 %v9135_v8, %v19733_v42  ;;  %v13994_v57 = vmul.f32 %v9135_v8, %v19734_v59  ;;  %v13997_v25 = vmul.f32 %v9135_v8, %v19735_v2  ;;  %v14003_v11 = vmul.f32 %v9134_v56, %v19734_v59 }
 0x304   : > { %19829 = vst [vmem:[#allocation427_spill] sm:$0xff] %v13980_v54  ;;  %v13990_v40 = vpack.i.bf16 %v19832_v34, %v5447_v48  ;;  %v14000_v54 = vmul.f32 %v9134_v56, %v19733_v42  ;;  %v14006_v0 = vmul.f32 %v9134_v56, %v19735_v2  ;;  %v3462_v43 = vmul.f32 %v9089_v53, %v19733_v42 }
 0x305   : > { %19830 = vst [vmem:[#allocation428_spill] sm:$0xff] %v13985_v21  ;;  %v3572_v34 = vrot.slane %v3480_v27, 2  ;;  %v4395_v58 = vrot.slane %v13994_v57, 3  ;;  %v9088_v21 = vunpack.i.l.bf16 %v9087_v33  ;;  %v18624_v62 = vrot.slane %v14003_v11, 3  ;;  %v9603_v33 = vpop.permute.xlu0 %9602 }
 0x306   : > { %19833 = vst [vmem:[#allocation44_spill] sm:$0xff] %v13990_v40  ;;  %9265 = vperm.xlu2 %9248, %v13990_v40   ;;  %v18623_v8 = vrot.slane %v14000_v54, 2  ;;  %v19835_v56 = vrot.slane %v19834_v7, 2  ;;  %v682_v27 = vadd.f32 %v19837_v3, %v429_v60  ;;  %v428_v57 = vmul.f32 %v9599_v55, %v19787_v23 }
 0x307   : > { %v4285_v48 = vmul.f32 %v9089_v53, %v19734_v59  ;;  %v14032_v7 = vsel %vm4133_vm2, %v18624_v62, %v4395_v58  ;;  %v19841_v3 = vrot.slane %v14006_v0, 4  ;;  %v3536_v60 = vrot.slane %v3462_v43, 2 }
 0x308   : > { %v14018_v47 = vsel %vm2236_vm1, %v3560_v39, %v19835_v56  ;;  %v14027_v49 = vsel %vm2236_vm1, %v18623_v8, %v3572_v34  ;;  %19839 = vst [vmem:[#allocation429_spill] sm:$0xff] %v14032_v7  ;;  %v19840_v39 = vrot.slane %v13997_v25, 4  ;;  %v14042_v51 = vmul.f32 %v9089_v53, %v19735_v2 }
 0x309   : > { %19836 = vst [vmem:[#allocation102_spill] sm:$0xff] %v14018_v47  ;;  %v4359_v56 = vrot.slane %v4285_v48, 3  ;;  %v3461_v8 = vmul.f32 %v9088_v21, %v19733_v42  ;;  %v9148_v47 = vpop.permute.xlu2 %9147  ;;  %v19844_v62 = vrot.slane %v19843_v6, 3  ;;  %v19846_v63 = vrot.slane %v13658_v38, 2 }
 0x30a   : > { %19838 = vst [vmem:[#allocation42_spill] sm:$0xff] %v14027_v49  ;;  %v14039_v55 = vsel %vm4812_vm3, %v19841_v3, %v19840_v39  ;;  %v4284_v49 = vmul.f32 %v9088_v21, %v19734_v59  ;;  %v9605_v43 = vunpack.i.h.bf16 %v9603_v33  ;;  %v19848_v48 = vrot.slane %v13661_v50, 3 }
 0x30b   : > { %19842 = vst [vmem:[#allocation430_spill] sm:$0xff] %v14039_v55  ;;  %v14049_v7 = vsel %vm4133_vm2, %v4383_v52, %v19844_v62  ;;  %v14054_v39 = vsel %vm2236_vm1, %v3536_v60, %v19846_v63  ;;  %v5038_v3 = vrot.slane %v14042_v51, 4  ;;  %v3535_v21 = vrot.slane %v3461_v8, 2  ;;  %v19853_v62 = vld [vmem:[#allocation43_spill] sm:$0xff] }
 0x30c   : > { %19845 = vst [vmem:[#allocation106_spill] sm:$0xff] %v14049_v7  ;;  %v14059_v53 = vsel %vm4133_vm2, %v4359_v56, %v19848_v48  ;;  %v4358_v55 = vrot.slane %v4284_v49, 3  ;;  %v19851_v6 = vrot.slane %v19850_v16, 4  ;;  %v681_v38 = vadd.f32 %v19853_v62, %v428_v57  ;;  %v9103_v7 = vpop.permute.xlu1 %9102  ;;  %v19860_v62 = vld [vmem:[#allocation79_spill] sm:$0xff] }
 0x30d   : > { %19847 = vst [vmem:[#allocation431_spill] sm:$0xff] %v14054_v39  ;;  %v9150_v63 = vunpack.i.h.bf16 %v9148_v47  ;;  %v19854_v39 = vld [vmem:[#allocation78_spill] sm:$0xff]  ;;  %v19855_v48 = vrot.slane %v13665_v28, 4  ;;  %v14078_v49 = vsel %vm2236_vm1, %v3535_v21, %v3536_v60  ;;  %v9604_v8 = vunpack.i.l.bf16 %v9603_v33  ;;  %v19861_v21 = vld [vmem:[#allocation125_spill] sm:$0xff] }
 0x30e   : > { %19849 = vst [vmem:[#allocation432_spill] sm:$0xff] %v14059_v53  ;;  %v14065_v52 = vsel %vm4812_vm3, %v5062_v45, %v19851_v6  ;;  %v14070_v50 = vadd.f32 %v19854_v39, %v682_v27  ;;  %v14081_v16 = vsel %vm4133_vm2, %v4358_v55, %v4359_v56  ;;  %v439_v45 = vmul.f32 %v9605_v43, %v19787_v23 }
 0x30f   : > { %19852 = vst [vmem:[#allocation108_spill] sm:$0xff] %v14065_v52  ;;  %v14075_v51 = vsel %vm4812_vm3, %v5038_v3, %v19855_v48  ;;  %9276 = vperm.xlu2 %9248, %v19859_v1   ;;  %v3486_v57 = vmul.f32 %v9150_v63, %v19733_v42  ;;  %v4309_v27 = vmul.f32 %v9150_v63, %v19734_v59  ;;  %v9149_v39 = vunpack.i.l.bf16 %v9148_v47 }
 0x310   : > { %19856 = vst [vmem:[#allocation43_spill] sm:$0xff] %v14075_v51  ;;  %v14088_v28 = vmul.f32 %v9150_v63, %v19735_v2  ;;  %v9105_v6 = vunpack.i.h.bf16 %v9103_v7  ;;  %v14091_v60 = vadd.f32 %v19860_v62, %v681_v38  ;;  %v19862_v55 = vrot.slane %v19861_v21, 2  ;;  %v19864_v38 = vld [vmem:[#allocation245_spill] sm:$0xff]  ;;  %v19865_v62 = vld [vmem:[#allocation126_spill] sm:$0xff] }
 0x311   : > { %19857 = vst [vmem:[#allocation78_spill] sm:$0xff] %v14078_v49  ;;  %v3584_v33 = vrot.slane %v3486_v57, 2  ;;  %v4407_v43 = vrot.slane %v4309_v27, 3  ;;  %v14100_v1 = vmul.f32 %v9149_v39, %v19733_v42  ;;  %v14103_v63 = vmul.f32 %v9149_v39, %v19734_v59  ;;  %9271 = vperm.xlu1 %9269, %v19864_v38   ;;  %v19876_v49 = vld [vmem:[#allocation67_spill] sm:$0xff] }
 0x312   : > { %19858 = vst [vmem:[#allocation433_spill] sm:$0xff] %v14081_v16  ;;  %v14096_v56 = vsel %vm2236_vm1, %v3572_v34, %v19862_v55  ;;  %v5086_v48 = vrot.slane %v14088_v28, 4  ;;  %v14106_v47 = vmul.f32 %v9149_v39, %v19735_v2  ;;  %v19866_v21 = vrot.slane %v19865_v62, 3  ;;  %v19868_v55 = vld [vmem:[#allocation66_spill] sm:$0xff]  ;;  %v9163_v16 = vpop.permute.xlu2 %9162 }
 0x313   : > { %19863 = vst [vmem:[#allocation79_spill] sm:$0xff] %v14096_v56  ;;  %v438_v57 = vmul.f32 %v9604_v8, %v19787_v23  ;;  %v3468_v27 = vmul.f32 %v9105_v6, %v19733_v42  ;;  %v14117_v28 = vmul.f32 %v9105_v6, %v19734_v59  ;;  %v692_v56 = vadd.f32 %v19868_v55, %v439_v45  ;;  %v8538_v55 = vld [vmem:[%s9785_s17 + $0x38] sm:$0xff]  }
 0x314   : > { %v14112_v34 = vsel %vm4133_vm2, %v4395_v58, %v19866_v21  ;;  %v18625_v39 = vrot.slane %v14100_v1, 2  ;;  %v18626_v52 = vrot.slane %v14103_v63, 3  ;;  %v18627_v51 = vrot.slane %v14106_v47, 4 }
 0x315   : > { %19867 = vst [vmem:[#allocation125_spill] sm:$0xff] %v14112_v34  ;;  %v3548_v62 = vrot.slane %v3468_v27, 2  ;;  %v14125_v21 = vmul.f32 %v9105_v6, %v19735_v2  ;;  %v9104_v8 = vunpack.i.l.bf16 %v9103_v7  ;;  %v9608_v34 = vpop.permute.xlu0 %9607  ;;  %v19872_v6 = vrot.slane %v13817_v13, 2 }
 0x316   : > { %v14130_v53 = vsel %vm2236_vm1, %v18625_v39, %v3584_v33  ;;  %v14135_v45 = vsel %vm4133_vm2, %v18626_v52, %v4407_v43  ;;  %v14140_v27 = vsel %vm4812_vm3, %v18627_v51, %v5086_v48  ;;  %v19873_v58 = vrot.slane %v13820_v10, 3 }
 0x317   : > { %19869 = vst [vmem:[#allocation245_spill] sm:$0xff] %v14130_v53  ;;  %v3551_v7 = vsel %vm2236_vm1, %v3548_v62, %v19872_v6  ;;  %v19874_v39 = vrot.slane %v14117_v28, 3  ;;  %v18630_v52 = vrot.slane %v14125_v21, 4  ;;  %v691_v51 = vadd.f32 %v19876_v49, %v438_v57  ;;  %v19880_v57 = vld [vmem:[#allocation129_spill] sm:$0xff] }
 0x318   : > { %19870 = vst [vmem:[#allocation126_spill] sm:$0xff] %v14135_v45  ;;  %v3467_v45 = vmul.f32 %v9104_v8, %v19733_v42  ;;  %v14160_v13 = vmul.f32 %v9104_v8, %v19734_v59  ;;  %v9610_v10 = vunpack.i.h.bf16 %v9608_v34  ;;  %v19878_v6 = vrot.slane %v13826_v15, 4 }
 0x319   : > { %19871 = vst [vmem:[#allocation66_spill] sm:$0xff] %v14140_v27  ;;  %v14151_v53 = vsel %vm4133_vm2, %v19874_v39, %v19873_v58  ;;  %v14157_v27 = vadd.f32 %v3551_v7, %v13389_v44  ;;  %v8434_v49 = vunpack.c.h.bf16 %v8538_v55  ;;  %v19881_v44 = vrot.slane %v19880_v57, 4 }
 0x31a   : > { %19875 = vst [vmem:[#allocation434_spill] sm:$0xff] %v14151_v53  ;;  %v14168_v39 = vsel %vm4812_vm3, %v18630_v52, %v19878_v6  ;;  %v3546_v58 = vrot.slane %v3467_v45, 2  ;;  %v9609_v53 = vunpack.i.l.bf16 %v9608_v34  ;;  %v19882_v7 = vrot.slane %v13997_v25, 4  ;;  %v19888_v52 = vld [vmem:[#allocation88_spill] sm:$0xff] }
 0x31b   : > { %19877 = vst [vmem:[#allocation67_spill] sm:$0xff] %v14157_v27  ;;  %v19885_v5 = vrot.slane %v19884_v37, 4  ;;  %v14183_v40 = vadd.f32 %v19887_v31, %v692_v56  ;;  %v9165_v6 = vunpack.i.h.bf16 %v9163_v16  ;;  %v19889_v45 = vrot.slane %v19888_v52, 2  ;;  %v19893_v37 = vld [vmem:[#allocation100_spill] sm:$0xff] }
 0x31c   : > { %19879 = vst [vmem:[#allocation435_spill] sm:$0xff] %v14168_v39  ;;  %v14175_v27 = vsel %vm4812_vm3, %v19882_v7, %v19881_v44  ;;  %v3549_v57 = vsel %vm2236_vm1, %v3546_v58, %v3548_v62  ;;  %v14190_v25 = vmul.f32 %v9104_v8, %v19735_v2  ;;  %v19890_v44 = vld [vmem:[#allocation58_spill] sm:$0xff]  ;;  %v8537_v8 = vld [vmem:[%s9785_s17 + $0x30] sm:$0xff]  }
 0x31d   : > { %19883 = vst [vmem:[#allocation129_spill] sm:$0xff] %v14175_v27  ;;  %v14180_v15 = vsel %vm4812_vm3, %v19885_v5, %v5038_v3  ;;  %v3547_v34 = vsel %vm2236_vm1, %v19889_v45, %v3546_v58  ;;  %v19891_v7 = vunpack.c.l.bf16 %v19890_v44  ;;  %v14197_v5 = vadd.f32 %v19893_v37, %v691_v51  ;;  %v19894_v3 = vld [vmem:[#allocation135_spill] sm:$0xff]  ;;  %v19899_v58 = vld [vmem:[#allocation141_spill] sm:$0xff] }
 0x31e   : > { %19886 = vst [vmem:[#allocation164_spill] sm:$0xff] %v14180_v15  ;;  %v19895_v31 = vrot.slane %v19894_v3, 2  ;;  %v14205_v52 = vadd.f32 %v3547_v34, %v13270_v24  ;;  %v14208_v62 = vadd.f32 %v3549_v57, %v12887_v20  ;;  %v19900_v45 = vrot.slane %v19899_v58, 3  ;;  %v19903_v57 = vld [vmem:[#allocation142_spill] sm:$0xff] }
 0x31f   : > { %v14194_v27 = vpack.i.bf16 %v19891_v7, %v8434_v49  ;;  %v4369_v51 = vrot.slane %v14160_v13, 3  ;;  %v445_v44 = vmul.f32 %v9610_v10, %v19787_v23  ;;  %v444_v7 = vmul.f32 %v9609_v53, %v19787_v23 }
 0x320   : > { %v14202_v56 = vsel %vm2236_vm1, %v3584_v33, %v19895_v31  ;;  %19897 = vst [vmem:[#allocation58_spill] sm:$0xff] %v14205_v52  ;;  %v14214_v49 = vsel %vm4133_vm2, %v4407_v43, %v19900_v45  ;;  %v14221_v24 = vmul.f32 %v9165_v6, %v19733_v42  ;;  %v14224_v20 = vmul.f32 %v9165_v6, %v19734_v59  ;;  %v9113_v43 = vpop.permute.xlu1 %9112  ;;  %v19911_v45 = vld [vmem:[#allocation77_spill] sm:$0xff] }
 0x321   : > { %19892 = vst [vmem:[#allocation99_spill] sm:$0xff] %v14194_v27  ;;  %9286 = vperm.xlu2 %9248, %v14194_v27   ;;  %v14227_v33 = vmul.f32 %v9165_v6, %v19735_v2  ;;  %v9164_v34 = vunpack.i.l.bf16 %v9163_v16  ;;  %v19904_v37 = vrot.slane %v19903_v57, 4  ;;  %v5048_v53 = vrot.slane %v14190_v25, 4 }
 0x322   : > { %19896 = vst [vmem:[#allocation88_spill] sm:$0xff] %v14202_v56  ;;  %v8430_v10 = vunpack.c.h.bf16 %v8537_v8  ;;  %v8433_v3 = vunpack.c.l.bf16 %v8538_v55  ;;  %v3596_v31 = vrot.slane %v14221_v24, 2  ;;  %v4419_v58 = vrot.slane %v14224_v20, 3  ;;  %v19910_v20 = vld [vmem:[#allocation76_spill] sm:$0xff] }
 0x323   : > { %19898 = vst [vmem:[#allocation100_spill] sm:$0xff] %v14208_v62  ;;  %v14232_v13 = vsel %vm4812_vm3, %v5086_v48, %v19904_v37  ;;  %v14239_v6 = vmul.f32 %v9164_v34, %v19733_v42  ;;  %v14242_v16 = vmul.f32 %v9164_v34, %v19734_v59  ;;  %v14245_v57 = vmul.f32 %v9164_v34, %v19735_v2  ;;  %v19907_v37 = vld [vmem:[#allocation92_spill] sm:$0xff] }
 0x324   : > { %19901 = vst [vmem:[#allocation135_spill] sm:$0xff] %v14214_v49  ;;  %v14247_v48 = vpack.i.bf16 %v8433_v3, %v8430_v10  ;;  %v9115_v25 = vunpack.i.h.bf16 %v9113_v43  ;;  %v19908_v55 = vrot.slane %v19907_v37, 3  ;;  %v697_v49 = vadd.f32 %v19911_v45, %v444_v7  ;;  %v9613_v37 = vpop.permute.xlu0 %9612 }
 0x325   : > { %19902 = vst [vmem:[#allocation141_spill] sm:$0xff] %v14227_v33  ;;  %v18633_v15 = vrot.slane %v14239_v6, 2  ;;  %v18634_v56 = vrot.slane %v14242_v16, 3  ;;  %v18636_v27 = vrot.slane %v14245_v57, 4  ;;  %v9114_v7 = vunpack.i.l.bf16 %v9113_v43 }
 0x326   : > { %19905 = vst [vmem:[#allocation142_spill] sm:$0xff] %v14232_v13  ;;  %v14252_v24 = vsel %vm4133_vm2, %v19908_v55, %v4369_v51  ;;  %v698_v13 = vadd.f32 %v19910_v20, %v445_v44  ;;  %9281 = vperm.xlu1 %9269, %v14247_v48   ;;  %v3472_v34 = vmul.f32 %v9115_v25, %v19733_v42  ;;  %v8429_v45 = vunpack.c.l.bf16 %v8537_v8 }
 0x327   : > { %19906 = vst [vmem:[#allocation436_spill] sm:$0xff] %v14247_v48  ;;  %v4295_v10 = vmul.f32 %v9115_v25, %v19734_v59  ;;  %v14265_v3 = vsel %vm2236_vm1, %v18633_v15, %v3596_v31  ;;  %v4974_v44 = vmul.f32 %v9115_v25, %v19735_v2  ;;  %v14271_v55 = vsel %vm4133_vm2, %v18634_v56, %v4419_v58 }
 0x328   : > { %19909 = vst [vmem:[#allocation92_spill] sm:$0xff] %v14252_v24  ;;  %v19914_v20 = vrot.slane %v14227_v33, 4  ;;  %v3556_v24 = vrot.slane %v3472_v34, 2  ;;  %v3471_v25 = vmul.f32 %v9114_v7, %v19733_v42  ;;  %v4294_v8 = vmul.f32 %v9114_v7, %v19734_v59 }
 0x329   : > { %19912 = vst [vmem:[#allocation76_spill] sm:$0xff] %v14265_v3  ;;  %v4379_v15 = vrot.slane %v4295_v10, 3  ;;  %v5058_v3 = vrot.slane %v4974_v44, 4  ;;  %v4973_v43 = vmul.f32 %v9114_v7, %v19735_v2  ;;  %v19916_v62 = vrot.slane %v13943_v22, 2 }
 0x32a   : > { %19913 = vst [vmem:[#allocation77_spill] sm:$0xff] %v14271_v55  ;;  %v14278_v39 = vsel %vm4812_vm3, %v18636_v27, %v19914_v20  ;;  %v19918_v55 = vrot.slane %v13949_v17, 3  ;;  %v19920_v20 = vld [vmem:[#allocation2_spill] sm:$0xff]  ;;  %v9615_v44 = vunpack.i.h.bf16 %v9613_v37  ;;  %v19923_v27 = vrot.slane %v13952_v26, 4 }
 0x32b   : > { %19915 = vst [vmem:[#allocation437_spill] sm:$0xff] %v14278_v39  ;;  %v14286_v56 = vsel %vm2236_vm1, %v3556_v24, %v19916_v62  ;;  %v19921_v34 = vunpack.c.h.bf16 %v19920_v20  ;;  %v3554_v7 = vrot.slane %v3471_v25, 2  ;;  %v4377_v22 = vrot.slane %v4294_v8, 3  ;;  %v9178_v62 = vpop.permute.xlu2 %9177 }
 0x32c   : > { %19917 = vst [vmem:[#allocation438_spill] sm:$0xff] %v14286_v56  ;;  %v14291_v33 = vsel %vm4133_vm2, %v4379_v15, %v19918_v55  ;;  %v14300_v39 = vsel %vm4812_vm3, %v5058_v3, %v19923_v27  ;;  %v5056_v52 = vrot.slane %v4973_v43, 4  ;;  %v19925_v56 = vrot.slane %v14117_v28, 3  ;;  %v19927_v55 = vld [vmem:[#allocation94_spill] sm:$0xff]  ;;  %v9128_v43 = vpop.permute.xlu1 %9127 }
 0x32d   : > { %19919 = vst [vmem:[#allocation439_spill] sm:$0xff] %v14291_v33  ;;  %v14295_v10 = vpack.i.bf16 %v8429_v45, %v19921_v34  ;;  %v19928_v33 = vrot.slane %v19927_v55, 4  ;;  %v451_v26 = vmul.f32 %v9615_v44, %v19787_v23  ;;  %v19930_v27 = vrot.slane %v13765_v19, 2  ;;  %v19933_v44 = vld [vmem:[#allocation20_spill] sm:$0xff] }
 0x32e   : > { %19924 = vst [vmem:[#allocation440_spill] sm:$0xff] %v14300_v39  ;;  %v14305_v17 = vsel %vm4133_vm2, %v4369_v51, %v19925_v56  ;;  %v3557_v8 = vsel %vm2236_vm1, %v3554_v7, %v3556_v24  ;;  %v19931_v28 = vrot.slane %v13781_v30, 3  ;;  %v9614_v51 = vunpack.i.l.bf16 %v9613_v37  ;;  %9296 = vperm.xlu2 %9248, %v19933_v44   ;;  %v19936_v37 = vld [vmem:[#allocation115_spill] sm:$0xff]  ;;  %v14378_v44 = vpop.permute.xlu0 %9617 }
 0x32f   : > { %19922 = vst [vmem:[#allocation2_spill] sm:$0xff] %v14295_v10  ;;  %v14310_v45 = vsel %vm4812_vm3, %v19928_v33, %v5048_v53  ;;  %9682 = vperm.xlu0 %9590, %v14295_v10   ;;  %v3555_v25 = vsel %vm2236_vm1, %v19930_v27, %v3554_v7  ;;  %v3654_v20 = vadd.f32 %v3557_v8, %v12994_v12  ;;  %v19932_v34 = vrot.slane %v13814_v4, 4  ;;  %v19939_v12 = vld [vmem:[#allocation149_spill] sm:$0xff]  ;;  %v19942_v8 = vld [vmem:[#allocation152_spill] sm:$0xff] }
 0x330   : > { %19926 = vst [vmem:[#allocation441_spill] sm:$0xff] %v14305_v17  ;;  %v14321_v56 = vsel %vm4133_vm2, %v19931_v28, %v4377_v22  ;;  %v14324_v33 = vadd.f32 %v3555_v25, %v13385_v41  ;;  %v9180_v24 = vunpack.i.h.bf16 %v9178_v62  ;;  %v19934_v30 = vrot.slane %v14125_v21, 4  ;;  %v19937_v41 = vld [vmem:[#allocation117_spill] sm:$0xff] }
 0x331   : > { %19929 = vst [vmem:[#allocation94_spill] sm:$0xff] %v14310_v45  ;;  %v14330_v19 = vsel %vm4812_vm3, %v19932_v34, %v5056_v52  ;;  %v14339_v55 = vadd.f32 %v19936_v37, %v698_v13  ;;  %v14342_v27 = vadd.f32 %v19937_v41, %v697_v49  ;;  %v19940_v25 = vrot.slane %v19939_v12, 2  ;;  %v19945_v37 = vld [vmem:[#allocation86_spill] sm:$0xff] }
 0x332   : > { %v14336_v7 = vsel %vm4812_vm3, %v5048_v53, %v19934_v30  ;;  %v19943_v28 = vrot.slane %v19942_v8, 3  ;;  %v4022_v21 = vadd.f32 %v12736_v29, %v3654_v20  ;;  %v9130_v53 = vunpack.i.h.bf16 %v9128_v43  ;;  %v19980_v45 = vld [vmem:[#allocation286_spill] sm:$0xff] }
 0x333   : > { %19935 = vst [vmem:[#allocation442_spill] sm:$0xff] %v14336_v7  ;;  %v14347_v4 = vsel %vm2236_vm1, %v3596_v31, %v19940_v25  ;;  %v4380_v30 = vsel %vm4133_vm2, %v4377_v22, %v4379_v15  ;;  %v5059_v13 = vsel %vm4812_vm3, %v5056_v52, %v5058_v3  ;;  %v704_v49 = vadd.f32 %v19945_v37, %v451_v26  ;;  %v19946_v25 = vld [vmem:[#allocation251_spill] sm:$0xff]  ;;  %v19947_v3 = vld [vmem:[#allocation6_spill] sm:$0xff] }
 0x334   : > { %19938 = vst [vmem:[#allocation115_spill] sm:$0xff] %v14342_v27  ;;  %v14352_v34 = vsel %vm4133_vm2, %v4419_v58, %v19943_v28  ;;  %v450_v41 = vmul.f32 %v9614_v51, %v19787_v23  ;;  %v4253_v12 = vadd.f32 %v13047_v32, %v4022_v21  ;;  %v14361_v31 = vmul.f32 %v9180_v24, %v19734_v59  ;;  %v19949_v26 = vld [vmem:[#allocation254_spill] sm:$0xff]  ;;  %v20026_v27 = vld [vmem:[#allocation29_spill] sm:$0xff] }
 0x335   : > { %19941 = vst [vmem:[#allocation117_spill] sm:$0xff] %v14347_v4  ;;  %9291 = vperm.xlu1 %9269, %v19946_v25   ;;  %v3478_v58 = vmul.f32 %v9130_v53, %v19733_v42  ;;  %v4301_v29 = vmul.f32 %v9130_v53, %v19734_v59  ;;  %v9179_v20 = vunpack.i.l.bf16 %v9178_v62  ;;  %v14367_v15 = vmul.f32 %v9130_v53, %v19735_v2  ;;  %v19978_v7 = vld [vmem:[#allocation14_spill] sm:$0xff] }
 0x336   : > { %19944 = vst [vmem:[#allocation149_spill] sm:$0xff] %v14352_v34  ;;  %v9129_v52 = vunpack.i.l.bf16 %v9128_v43  ;;  %v19948_v22 = vunpack.c.h.bf16 %v19947_v3  ;;  %v19950_v51 = vunpack.c.l.bf16 %v19949_v26  ;;  %v4477_v32 = vadd.f32 %v4380_v30, %v4253_v12  ;;  %v19953_v30 = vld [vmem:[#allocation87_spill] sm:$0xff] }
 0x337   : > { %v14376_v28 = vmul.f32 %v9180_v24, %v19735_v2  ;;  %v3568_v21 = vrot.slane %v3478_v58, 2  ;;  %v4391_v37 = vrot.slane %v4301_v29, 3  ;;  %v5070_v62 = vrot.slane %v14367_v15, 4 }
 0x338   : > { %v14373_v8 = vpack.i.bf16 %v19950_v51, %v19948_v22  ;;  %v3477_v53 = vmul.f32 %v9129_v52, %v19733_v42  ;;  %v4300_v43 = vmul.f32 %v9129_v52, %v19734_v59  ;;  %v4979_v3 = vmul.f32 %v9129_v52, %v19735_v2  ;;  %v19952_v22 = vld [vmem:[#allocation281_spill] sm:$0xff] }
 0x339   : > { %v4701_v26 = vadd.f32 %v19952_v22, %v4477_v32  ;;  %v703_v12 = vadd.f32 %v19953_v30, %v450_v41  ;;  %v19954_v24 = vrot.slane %v14000_v54, 2  ;;  %v19956_v29 = vrot.slane %v14003_v11, 3  ;;  %v19960_v54 = vld [vmem:[#allocation324_spill] sm:$0xff]  ;;  %v9190_v11 = vpop.permute.xlu2 %9189 }
 0x33a   : > { %19951 = vst [vmem:[#allocation152_spill] sm:$0xff] %v14373_v8  ;;  %9687 = vperm.xlu0 %9590, %v14373_v8   ;;  %v14398_v51 = vmul.f32 %v9179_v20, %v19733_v42  ;;  %v19958_v52 = vrot.slane %v14006_v0, 4  ;;  %v3566_v32 = vrot.slane %v3477_v53, 2  ;;  %v9620_v41 = vunpack.i.h.bf16 %v14378_v44  ;;  %v19961_v30 = vld [vmem:[#allocation132_spill] sm:$0xff] }
 0x33b   : > { %v14390_v58 = vsel %vm2236_vm1, %v3568_v21, %v19954_v24  ;;  %v14395_v15 = vsel %vm4133_vm2, %v4391_v37, %v19956_v29  ;;  %v4932_v22 = vadd.f32 %v19960_v54, %v4701_v26  ;;  %v14408_v24 = vadd.f32 %v19961_v30, %v704_v49  ;;  %v19963_v29 = vld [vmem:[#allocation101_spill] sm:$0xff]  ;;  %v19966_v49 = vld [vmem:[#allocation210_spill] sm:$0xff] }
 0x33c   : > { %19955 = vst [vmem:[#allocation86_spill] sm:$0xff] %v14390_v58  ;;  %v14403_v34 = vsel %vm4812_vm3, %v5070_v62, %v19958_v52  ;;  %v19964_v4 = vrot.slane %v19963_v29, 2  ;;  %v4389_v0 = vrot.slane %v4300_v43, 3  ;;  %v5068_v58 = vrot.slane %v4979_v3, 4  ;;  %v9143_v52 = vpop.permute.xlu1 %9142  ;;  %v19967_v30 = vld [vmem:[#allocation22_spill] sm:$0xff]  ;;  %v19968_v29 = vld [vmem:[#allocation133_spill] sm:$0xff] }
 0x33d   : > { %19957 = vst [vmem:[#allocation6_spill] sm:$0xff] %v14395_v15  ;;  %v3569_v15 = vsel %vm2236_vm1, %v3566_v32, %v3568_v21  ;;  %9306 = vperm.xlu2 %9248, %v19967_v30   ;;  %v14424_v39 = vadd.f32 %v19968_v29, %v703_v12  ;;  %v14428_v21 = vmul.f32 %v9620_v41, %v19787_v23  ;;  %v19973_v12 = vld [vmem:[#allocation105_spill] sm:$0xff]  ;;  %v19981_v17 = vrot.slane %v14100_v1, 2 }
 0x33e   : > { %19959 = vst [vmem:[#allocation254_spill] sm:$0xff] %v14403_v34  ;;  %v3567_v20 = vsel %vm2236_vm1, %v19964_v4, %v3566_v32  ;;  %v14415_v34 = vadd.f32 %v5059_v13, %v4932_v22  ;;  %v3660_v54 = vadd.f32 %v3569_v15, %v19966_v49  ;;  %v19970_v13 = vld [vmem:[#allocation284_spill] sm:$0xff]  ;;  %v9145_v32 = vunpack.i.h.bf16 %v9143_v52  ;;  %v19975_v41 = vld [vmem:[#allocation257_spill] sm:$0xff] }
 0x33f   : > { %19962 = vst [vmem:[#allocation281_spill] sm:$0xff] %v14408_v24  ;;  %v14419_v26 = vadd.f32 %v3567_v20, %v13517_v18  ;;  %v9144_v18 = vunpack.i.l.bf16 %v9143_v52  ;;  %v19971_v22 = vld [vmem:[#allocation104_spill] sm:$0xff]  ;;  %v4392_v49 = vsel %vm4133_vm2, %v4389_v0, %v4391_v37  ;;  %v19974_v29 = vrot.slane %v19973_v12, 4  ;;  %9301 = vperm.xlu1 %9269, %v19975_v41  }
 0x340   : > { %19965 = vst [vmem:[#allocation87_spill] sm:$0xff] %v14415_v34  ;;  %v4028_v43 = vadd.f32 %v19970_v13, %v3660_v54  ;;  %v19972_v20 = vrot.slane %v19971_v22, 3  ;;  %v9192_v4 = vunpack.i.h.bf16 %v9190_v11  ;;  %v19976_v54 = vld [vmem:[#allocation343_spill] sm:$0xff]  ;;  %v3484_v3 = vmul.f32 %v9145_v32, %v19733_v42  ;;  %v19992_v41 = vld [vmem:[#allocation56_spill] sm:$0xff] }
 0x341   : > { %19969 = vst [vmem:[#allocation324_spill] sm:$0xff] %v14424_v39  ;;  %v14441_v53 = vsel %vm4812_vm3, %v19974_v29, %v5068_v58  ;;  %v4307_v52 = vmul.f32 %v9145_v32, %v19734_v59  ;;  %v4986_v22 = vmul.f32 %v9145_v32, %v19735_v2  ;;  %v14450_v37 = vmul.f32 %v9144_v18, %v19734_v59 }
 0x342   : > { %v14435_v15 = vsel %vm4133_vm2, %v19972_v20, %v4389_v0  ;;  %v4259_v13 = vadd.f32 %v19976_v54, %v4028_v43  ;;  %v3483_v20 = vmul.f32 %v9144_v18, %v19733_v42  ;;  %v14453_v0 = vmul.f32 %v9144_v18, %v19735_v2 }
 0x343   : > { %v9191_v12 = vunpack.i.l.bf16 %v9190_v11  ;;  %v3580_v30 = vrot.slane %v3484_v3, 2  ;;  %v4403_v34 = vrot.slane %v4307_v52, 3  ;;  %v5082_v8 = vrot.slane %v4986_v22, 4  ;;  %v19987_v22 = vld [vmem:[#allocation120_spill] sm:$0xff] }
 0x344   : > { %19977 = vst [vmem:[#allocation132_spill] sm:$0xff] %v14453_v0  ;;  %v4483_v29 = vadd.f32 %v4392_v49, %v4259_v13  ;;  %v3578_v43 = vrot.slane %v3483_v20, 2  ;;  %v18639_v54 = vrot.slane %v14450_v37, 3  ;;  %v14458_v32 = vmul.f32 %v9192_v4, %v19978_v7 }
 0x345   : > { %v14464_v18 = vsel %vm2236_vm1, %v3580_v30, %v19981_v17  ;;  %v19983_v11 = vrot.slane %v14103_v63, 3  ;;  %v19985_v49 = vrot.slane %v14106_v47, 4  ;;  %v5071_v52 = vsel %vm4812_vm3, %v5068_v58, %v5070_v62  ;;  %v19989_v17 = vld [vmem:[#allocation344_spill] sm:$0xff]  ;;  %v19991_v47 = vld [vmem:[#allocation247_spill] sm:$0xff] }
 0x346   : > { %19979 = vst [vmem:[#allocation101_spill] sm:$0xff] %v14458_v32  ;;  %v4707_v25 = vadd.f32 %v19980_v45, %v4483_v29  ;;  %v19988_v20 = vrot.slane %v19987_v22, 2  ;;  %v3581_v1 = vsel %vm2236_vm1, %v3578_v43, %v3580_v30  ;;  %v4404_v63 = vsel %vm4133_vm2, %v18639_v54, %v4403_v34  ;;  %v20006_v30 = vld [vmem:[#allocation36_spill] sm:$0xff] }
 0x347   : > { %19982 = vst [vmem:[#allocation210_spill] sm:$0xff] %v14464_v18  ;;  %v14469_v3 = vsel %vm4133_vm2, %v4403_v34, %v19983_v11  ;;  %v14474_v13 = vsel %vm4812_vm3, %v5082_v8, %v19985_v49  ;;  %v3666_v49 = vadd.f32 %v3581_v1, %v19991_v47  ;;  %v19994_v58 = vrot.slane %v14453_v0, 4  ;;  %v19997_v34 = vld [vmem:[#allocation62_spill] sm:$0xff] }
 0x348   : > { %19984 = vst [vmem:[#allocation133_spill] sm:$0xff] %v14469_v3  ;;  %v3579_v45 = vsel %vm2236_vm1, %v19988_v20, %v3578_v43  ;;  %v4938_v29 = vadd.f32 %v19989_v17, %v4707_v25  ;;  %v19995_v43 = vld [vmem:[#allocation32_spill] sm:$0xff]  ;;  %v14499_v54 = vmul.f32 %v9192_v4, %v19997_v34  ;;  %v9623_v25 = vpop.permute.xlu0 %9622  ;;  %v14505_v17 = vmul.f32 %v9191_v12, %v19978_v7 }
 0x349   : > { %19986 = vst [vmem:[#allocation284_spill] sm:$0xff] %v14474_v13  ;;  %v14486_v11 = vadd.f32 %v3579_v45, %v13639_v9  ;;  %v19993_v13 = vld [vmem:[#allocation103_spill] sm:$0xff]  ;;  %v5083_v22 = vsel %vm4812_vm3, %v19994_v58, %v5082_v8  ;;  %v14496_v20 = vmul.f32 %v9192_v4, %v19995_v43  ;;  %v20000_v45 = vld [vmem:[#allocation298_spill] sm:$0xff]  ;;  %v14513_v47 = vmul.f32 %v9191_v12, %v19997_v34  ;;  %v20004_v4 = vld [vmem:[#allocation8_spill] sm:$0xff] }
 0x34a   : > { %v3648_v62 = vadd.f32 %v19993_v13, %v19992_v41  ;;  %19998 = vst [vmem:[#allocation343_spill] sm:$0xff] %v14499_v54  ;;  %v14501_v9 = vadd.f32 %v5071_v52, %v4938_v29  ;;  %v4034_v1 = vadd.f32 %v20000_v45, %v3666_v49  ;;  %v14508_v41 = vmul.f32 %v9191_v12, %v19995_v43  ;;  %v20009_v49 = vld [vmem:[#allocation354_spill] sm:$0xff]  ;;  %v9158_v12 = vpop.permute.xlu1 %9157 }
 0x34b   : > { %19990 = vst [vmem:[#allocation104_spill] sm:$0xff] %v14486_v11  ;;  %v20005_v58 = vunpack.c.h.bf16 %v20004_v4  ;;  %v20007_v52 = vunpack.c.l.bf16 %v20006_v30  ;;  %v9625_v18 = vunpack.i.h.bf16 %v9623_v25  ;;  %v9624_v13 = vunpack.i.l.bf16 %v9623_v25 }
 0x34c   : > { %19996 = vst [vmem:[#allocation105_spill] sm:$0xff] %v14496_v20  ;;  %v4265_v45 = vadd.f32 %v20009_v49, %v4034_v1  ;;  %v18649_v3 = vrot.slane %v14508_v41, 3  ;;  %v20010_v4 = vrot.slane %v14458_v32, 2  ;;  %v20011_v1 = vrot.slane %v14496_v20, 3 }
 0x34d   : > { %19999 = vst [vmem:[#allocation14_spill] sm:$0xff] %v14501_v9  ;;  %v14519_v29 = vpack.i.bf16 %v20007_v52, %v20005_v58  ;;  %v18646_v9 = vrot.slane %v14505_v17, 2  ;;  %v20012_v52 = vld [vmem:[#allocation111_spill] sm:$0xff]  ;;  %v20014_v25 = vrot.slane %v14513_v47, 4  ;;  %v9159_v24 = vunpack.i.l.bf16 %v9158_v12 }
 0x34e   : > { %20001 = vst [vmem:[#allocation286_spill] sm:$0xff] %v14505_v17  ;;  %v4489_v10 = vadd.f32 %v4404_v63, %v4265_v45  ;;  %v4592_v58 = vsel %vm4133_vm2, %v18649_v3, %v20011_v1  ;;  %v1198_v49 = vmul.f32 %v9625_v18, %v20012_v52  ;;  %v20015_v45 = vld [vmem:[#allocation112_spill] sm:$0xff]  ;;  %v1197_v17 = vmul.f32 %v9624_v13, %v20012_v52 }
 0x34f   : > { %20002 = vst [vmem:[#allocation120_spill] sm:$0xff] %v14508_v41  ;;  %9692 = vperm.xlu0 %9590, %v14519_v29   ;;  %v3913_v30 = vsel %vm2236_vm1, %v18646_v9, %v20010_v4  ;;  %v2165_v32 = vmul.f32 %v9625_v18, %v20015_v45  ;;  %v20016_v4 = vld [vmem:[#allocation27_spill] sm:$0xff]  ;;  %v2164_v1 = vmul.f32 %v9624_v13, %v20015_v45  ;;  %v20018_v3 = vld [vmem:[#allocation264_spill] sm:$0xff]  ;;  %v20024_v13 = vld [vmem:[#allocation205_spill] sm:$0xff] }
 0x350   : > { %20003 = vst [vmem:[#allocation344_spill] sm:$0xff] %v14513_v47  ;;  %v4016_v8 = vadd.f32 %v3913_v30, %v3648_v62  ;;  %9316 = vperm.xlu2 %9248, %v20016_v4   ;;  %v20017_v9 = vld [vmem:[#allocation299_spill] sm:$0xff]  ;;  %v1275_v41 = vrot.slane %v1198_v49, 1  ;;  %9311 = vperm.xlu1 %9269, %v20018_v3   ;;  %v9160_v62 = vunpack.i.h.bf16 %v9158_v12  ;;  %v20019_v30 = vld [vmem:[#allocation361_spill] sm:$0xff]  ;;  %v1273_v47 = vrot.slane %v1197_v17, 1  ;;  %v20021_v18 = vld [vmem:[#allocation212_spill] sm:$0xff] }
 0x351   : > { %20008 = vst [vmem:[#allocation247_spill] sm:$0xff] %v14519_v29  ;;  %v20013_v29 = vrot.slane %v14499_v54, 4  ;;  %v4713_v20 = vadd.f32 %v20017_v9, %v4489_v10  ;;  %v2242_v39 = vrot.slane %v2165_v32, 2  ;;  %v20022_v48 = vrot.slane %v20021_v18, 1  ;;  %v20023_v9 = vld [vmem:[#allocation107_spill] sm:$0xff] }
 0x352   : > { %v4247_v54 = vadd.f32 %v20019_v30, %v4016_v8  ;;  %v2240_v4 = vrot.slane %v2164_v1, 2  ;;  %v3490_v10 = vmul.f32 %v9160_v62, %v19733_v42  ;;  %v20025_v11 = vrot.slane %v20024_v13, 2 }
 0x353   : > { %v5271_v63 = vsel %vm4812_vm3, %v20014_v25, %v20013_v29  ;;  %v20020_v29 = vld [vmem:[#allocation356_spill] sm:$0xff]  ;;  %v1278_v0 = vsel %vm1269_vm0, %v1275_v41, %v20022_v48  ;;  %v20027_v8 = vrot.slane %v20026_v27, 1  ;;  %v1276_v17 = vsel %vm1269_vm0, %v1273_v47, %v1275_v41 }
 0x354   : > { %v4944_v25 = vadd.f32 %v20020_v29, %v4713_v20  ;;  %v4471_v49 = vadd.f32 %v20023_v9, %v4247_v54  ;;  %v2245_v3 = vsel %vm2236_vm1, %v2242_v39, %v20025_v11  ;;  %v1381_v48 = vadd.f32 %v1276_v17, %v14091_v60  ;;  %v20029_v54 = vld [vmem:[#allocation160_spill] sm:$0xff]  ;;  %v20031_v9 = vld [vmem:[#allocation253_spill] sm:$0xff] }
 0x355   : > { %v1274_v32 = vsel %vm1269_vm0, %v20027_v8, %v1273_v47  ;;  %v1382_v1 = vadd.f32 %v1278_v0, %v14070_v50  ;;  %v20030_v29 = vrot.slane %v20029_v54, 2  ;;  %v2243_v11 = vsel %vm2236_vm1, %v2240_v4, %v2242_v39  ;;  %v20032_v8 = vld [vmem:[#allocation240_spill] sm:$0xff] }
 0x356   : > { %v14562_v20 = vadd.f32 %v5083_v22, %v4944_v25  ;;  %v1380_v12 = vadd.f32 %v1274_v32, %v13946_v61  ;;  %v4695_v30 = vadd.f32 %v4592_v58, %v4471_v49  ;;  %v3592_v27 = vrot.slane %v3490_v10, 2  ;;  %v20033_v22 = vld [vmem:[#allocation37_spill] sm:$0xff]  ;;  %v20034_v25 = vld [vmem:[#allocation362_spill] sm:$0xff]  ;;  %v20039_v17 = vld [vmem:[#allocation80_spill] sm:$0xff] }
 0x357   : > { %v2241_v18 = vsel %vm2236_vm1, %v20030_v29, %v2240_v4  ;;  %v1749_v41 = vadd.f32 %v20032_v8, %v1381_v48  ;;  %v1750_v47 = vadd.f32 %v20033_v22, %v1382_v1  ;;  %v4313_v61 = vmul.f32 %v9160_v62, %v19734_v59  ;;  %v20037_v4 = vld [vmem:[#allocation75_spill] sm:$0xff]  ;;  %v20038_v49 = vld [vmem:[#allocation70_spill] sm:$0xff] }
 0x358   : > { %20028 = vst [vmem:[#allocation56_spill] sm:$0xff] %v14562_v20  ;;  %v1748_v13 = vadd.f32 %v20031_v9, %v1380_v12  ;;  %v4926_v60 = vadd.f32 %v20034_v25, %v4695_v30  ;;  %v20035_v50 = vrot.slane %v14239_v6, 2  ;;  %v4992_v58 = vmul.f32 %v9160_v62, %v19735_v2  ;;  %v20040_v1 = vld [vmem:[#allocation110_spill] sm:$0xff] }
 0x359   : > { %v3489_v39 = vmul.f32 %v9159_v24, %v19733_v42  ;;  %v2117_v32 = vadd.f32 %v20038_v49, %v1749_v41  ;;  %v2118_v12 = vadd.f32 %v20039_v17, %v1750_v47  ;;  %v4415_v48 = vrot.slane %v4313_v61, 3  ;;  %v20073_v20 = vld [vmem:[#allocation150_spill] sm:$0xff] }
 0x35a   : > { %v14579_v0 = vsel %vm2236_vm1, %v3592_v27, %v20035_v50  ;;  %v2116_v10 = vadd.f32 %v20037_v4, %v1748_v13  ;;  %v5150_v29 = vadd.f32 %v20040_v1, %v4926_v60  ;;  %v5094_v9 = vrot.slane %v4992_v58, 4  ;;  %v9200_v13 = vpop.permute.xlu2 %9199  ;;  %v20046_v60 = vld [vmem:[#allocation134_spill] sm:$0xff] }
 0x35b   : > { %20036 = vst [vmem:[#allocation103_spill] sm:$0xff] %v14579_v0  ;;  %v3590_v30 = vrot.slane %v3489_v39, 2  ;;  %v14588_v6 = vmul.f32 %v9159_v24, %v19734_v59  ;;  %v2348_v22 = vadd.f32 %v2243_v11, %v2117_v32  ;;  %v2349_v25 = vadd.f32 %v2245_v3, %v2118_v12  ;;  %v20048_v3 = vld [vmem:[#allocation69_spill] sm:$0xff] }
 0x35c   : > { %v2347_v8 = vadd.f32 %v2241_v18, %v2116_v10  ;;  %v20041_v62 = vrot.slane %v14242_v16, 3  ;;  %v14595_v41 = vadd.f32 %v5271_v63, %v5150_v29  ;;  %v20044_v47 = vrot.slane %v14245_v57, 4  ;;  %v20049_v16 = vld [vmem:[#allocation241_spill] sm:$0xff]  ;;  %v20050_v10 = vld [vmem:[#allocation39_spill] sm:$0xff]  ;;  %v20052_v29 = vld [vmem:[#allocation46_spill] sm:$0xff] }
 0x35d   : > { %v20047_v58 = vrot.slane %v20046_v60, 2  ;;  %v3593_v18 = vsel %vm2236_vm1, %v3590_v30, %v3592_v27  ;;  %v2572_v4 = vadd.f32 %v20049_v16, %v2348_v22  ;;  %v2573_v49 = vadd.f32 %v20050_v10, %v2349_v25  ;;  %v20051_v32 = vld [vmem:[#allocation365_spill] sm:$0xff]  ;;  %v20053_v27 = vld [vmem:[#allocation239_spill] sm:$0xff] }
 0x35e   : > { %v14593_v50 = vsel %vm4133_vm2, %v4415_v48, %v20041_v62  ;;  %20043 = vst [vmem:[#allocation62_spill] sm:$0xff] %v14595_v41  ;;  %v14600_v61 = vsel %vm4812_vm3, %v5094_v9, %v20044_v47  ;;  %v2571_v11 = vadd.f32 %v20048_v3, %v2347_v8  ;;  %v3672_v57 = vadd.f32 %v3593_v18, %v20051_v32  ;;  %v20054_v8 = vld [vmem:[#allocation157_spill] sm:$0xff]  ;;  %v20074_v41 = vld [vmem:[#allocation366_spill] sm:$0xff] }
 0x35f   : > { %20042 = vst [vmem:[#allocation32_spill] sm:$0xff] %v14593_v50  ;;  %v3591_v39 = vsel %vm2236_vm1, %v20047_v58, %v3590_v30  ;;  %v18656_v17 = vrot.slane %v14588_v6, 3  ;;  %v14615_v12 = vmul.f32 %v9159_v24, %v19735_v2  ;;  %v9202_v1 = vunpack.i.h.bf16 %v9200_v13  ;;  %v20057_v58 = vld [vmem:[#allocation4_spill] sm:$0xff] }
 0x360   : > { %20045 = vst [vmem:[#allocation298_spill] sm:$0xff] %v14600_v61  ;;  %v14610_v63 = vadd.f32 %v3591_v39, %v13809_v35  ;;  %v14618_v62 = vadd.f32 %v20052_v29, %v2571_v11  ;;  %v14621_v30 = vadd.f32 %v20053_v27, %v2572_v4  ;;  %v14624_v22 = vadd.f32 %v20054_v8, %v2573_v49  ;;  %v20055_v35 = vld [vmem:[#allocation97_spill] sm:$0xff]  ;;  %v20058_v27 = vld [vmem:[#allocation10_spill] sm:$0xff] }
 0x361   : > { %v9201_v25 = vunpack.i.l.bf16 %v9200_v13  ;;  %v14628_v47 = vadd.f32 %v20055_v35, %v14428_v21  ;;  %v20056_v60 = vunpack.i.l.bf16 %v14378_v44  ;;  %v4040_v39 = vadd.f32 %v20057_v58, %v3672_v57  ;;  %v20060_v8 = vld [vmem:[#allocation269_spill] sm:$0xff] }
 0x362   : > { %v18655_v18 = vrot.slane %v14615_v12, 4  ;;  %v3838_v3 = vmul.f32 %v9202_v1, %v19978_v7  ;;  %v4517_v11 = vmul.f32 %v9202_v1, %v19995_v43  ;;  %v5196_v16 = vmul.f32 %v9202_v1, %v19997_v34 }
 0x363   : > { %v14633_v24 = vmul.f32 %v20056_v60, %v19787_v23  ;;  %v14641_v13 = vmul.f32 %v9201_v25, %v19978_v7  ;;  %v4271_v21 = vadd.f32 %v13531_v46, %v4040_v39  ;;  %v4416_v23 = vsel %vm4133_vm2, %v18656_v17, %v4415_v48  ;;  %v20063_v39 = vld [vmem:[#allocation85_spill] sm:$0xff] }
 0x364   : > { %v5095_v44 = vsel %vm4812_vm3, %v18655_v18, %v5094_v9  ;;  %v14651_v4 = vmul.f32 %v9201_v25, %v19995_v43  ;;  %v3920_v10 = vrot.slane %v3838_v3, 2  ;;  %v4599_v49 = vrot.slane %v4517_v11, 3  ;;  %v9628_v9 = vpop.permute.xlu0 %9627 }
 0x365   : > { %v5278_v32 = vrot.slane %v5196_v16, 4  ;;  %v18657_v57 = vrot.slane %v14641_v13, 2  ;;  %v4495_v1 = vadd.f32 %v4416_v23, %v4271_v21  ;;  %v14656_v46 = vmul.f32 %v9201_v25, %v19997_v34  ;;  %v20065_v16 = vld [vmem:[#allocation218_spill] sm:$0xff] }
 0x366   : > { %v20059_v48 = vunpack.c.h.bf16 %v20058_v27  ;;  %v20061_v35 = vunpack.c.l.bf16 %v20060_v8  ;;  %v20064_v3 = vrot.slane %v20063_v39, 2  ;;  %v20066_v21 = vrot.slane %v20065_v16, 3  ;;  %v20067_v23 = vld [vmem:[#allocation26_spill] sm:$0xff]  ;;  %v20069_v8 = vld [vmem:[#allocation319_spill] sm:$0xff] }
 0x367   : > { %v3921_v58 = vsel %vm2236_vm1, %v18657_v57, %v3920_v10  ;;  %v20068_v18 = vrot.slane %v20067_v23, 4  ;;  %v20071_v57 = vrot.slane %v14651_v4, 3  ;;  %v9629_v16 = vunpack.i.l.bf16 %v9628_v9 }
 0x368   : > { %v14662_v60 = vpack.i.bf16 %v20061_v35, %v20059_v48  ;;  %v3923_v11 = vsel %vm2236_vm1, %v3920_v10, %v20064_v3  ;;  %v4602_v25 = vsel %vm4133_vm2, %v4599_v49, %v20066_v21  ;;  %v4719_v48 = vadd.f32 %v20069_v8, %v4495_v1  ;;  %v20070_v35 = vld [vmem:[#allocation419_spill] sm:$0xff]  ;;  %v20072_v21 = vld [vmem:[#allocation385_spill] sm:$0xff]  ;;  %v9173_v8 = vpop.permute.xlu1 %9172 }
 0x369   : > { %v5281_v27 = vsel %vm4812_vm3, %v5278_v32, %v20068_v18  ;;  %v4020_v17 = vadd.f32 %v3921_v58, %v20070_v35  ;;  %v4021_v29 = vadd.f32 %v3923_v11, %v14324_v33  ;;  %v4600_v39 = vsel %vm4133_vm2, %v20071_v57, %v4599_v49  ;;  %v20075_v11 = vld [vmem:[#allocation33_spill] sm:$0xff] }
 0x36a   : > { %20062 = vst [vmem:[#allocation8_spill] sm:$0xff] %v14662_v60  ;;  %9697 = vperm.xlu0 %9590, %v14662_v60   ;;  %v18658_v10 = vrot.slane %v14656_v46, 4  ;;  %v9630_v3 = vunpack.i.h.bf16 %v9628_v9  ;;  %v4950_v23 = vadd.f32 %v20072_v21, %v4719_v48  ;;  %v1207_v57 = vmul.f32 %v9629_v16, %v20012_v52  ;;  %9326 = vperm.xlu2 %9248, %v20075_v11   ;;  %v20077_v48 = vld [vmem:[#allocation21_spill] sm:$0xff] }
 0x36b   : > { %v4251_v18 = vadd.f32 %v20073_v20, %v4020_v17  ;;  %v4252_v1 = vadd.f32 %v20074_v41, %v4021_v29  ;;  %v2174_v41 = vmul.f32 %v9629_v16, %v20015_v45  ;;  %v20078_v17 = vld [vmem:[#allocation186_spill] sm:$0xff]  ;;  %v9174_v0 = vunpack.i.l.bf16 %v9173_v8  ;;  %v20079_v60 = vld [vmem:[#allocation233_spill] sm:$0xff] }
 0x36c   : > { %v5279_v33 = vsel %vm4812_vm3, %v18658_v10, %v5278_v32  ;;  %v1208_v58 = vmul.f32 %v9630_v3, %v20012_v52  ;;  %v2175_v49 = vmul.f32 %v9630_v3, %v20015_v45  ;;  %v14694_v9 = vadd.f32 %v5095_v44, %v4950_v23  ;;  %9321 = vperm.xlu1 %9269, %v20078_v17   ;;  %v20081_v23 = vld [vmem:[#allocation235_spill] sm:$0xff] }
 0x36d   : > { %v4475_v35 = vadd.f32 %v20077_v48, %v4251_v18  ;;  %v4476_v20 = vadd.f32 %v14321_v56, %v4252_v1  ;;  %v1293_v21 = vrot.slane %v1207_v57, 1  ;;  %v9175_v10 = vunpack.i.h.bf16 %v9173_v8  ;;  %v20083_v1 = vld [vmem:[#allocation174_spill] sm:$0xff] }
 0x36e   : > { %20076 = vst [vmem:[#allocation36_spill] sm:$0xff] %v14694_v9  ;;  %v1295_v29 = vrot.slane %v1208_v58, 1  ;;  %v2262_v32 = vrot.slane %v2175_v49, 2  ;;  %v2260_v50 = vrot.slane %v2174_v41, 2  ;;  %v20080_v11 = vrot.slane %v20079_v60, 1  ;;  %v20085_v49 = vld [vmem:[#allocation368_spill] sm:$0xff] }
 0x36f   : > { %v4699_v61 = vadd.f32 %v4600_v39, %v4475_v35  ;;  %v4700_v3 = vadd.f32 %v4602_v25, %v4476_v20  ;;  %v20082_v18 = vrot.slane %v20081_v23, 2  ;;  %v20084_v16 = vrot.slane %v20083_v1, 1  ;;  %v20086_v39 = vld [vmem:[#allocation367_spill] sm:$0xff]  ;;  %v20087_v35 = vld [vmem:[#allocation28_spill] sm:$0xff] }
 0x370   : > { %v1298_v44 = vsel %vm1269_vm0, %v1295_v29, %v20080_v11  ;;  %v1296_v58 = vsel %vm1269_vm0, %v1293_v21, %v1295_v29  ;;  %v20088_v20 = vld [vmem:[#allocation175_spill] sm:$0xff]  ;;  %v3496_v1 = vmul.f32 %v9175_v10, %v19733_v42 }
 0x371   : > { %v2265_v56 = vsel %vm2236_vm1, %v2262_v32, %v20082_v18  ;;  %v1294_v48 = vsel %vm1269_vm0, %v20084_v16, %v1293_v21  ;;  %v4930_v57 = vadd.f32 %v20085_v49, %v4699_v61  ;;  %v4931_v25 = vadd.f32 %v20086_v39, %v4700_v3  ;;  %v20090_v21 = vld [vmem:[#allocation265_spill] sm:$0xff]  ;;  %v20091_v16 = vld [vmem:[#allocation50_spill] sm:$0xff]  ;;  %v20092_v49 = vld [vmem:[#allocation59_spill] sm:$0xff] }
 0x372   : > { %v1390_v8 = vadd.f32 %v1294_v48, %v20087_v35  ;;  %v1391_v60 = vadd.f32 %v1296_v58, %v14197_v5  ;;  %v1392_v11 = vadd.f32 %v1298_v44, %v14183_v40  ;;  %v20089_v41 = vrot.slane %v20088_v20, 2  ;;  %v20098_v35 = vld [vmem:[#allocation49_spill] sm:$0xff] }
 0x373   : > { %v2263_v18 = vsel %vm2236_vm1, %v2260_v50, %v2262_v32  ;;  %v5154_v29 = vadd.f32 %v13859_v36, %v4930_v57  ;;  %v5155_v61 = vadd.f32 %v14330_v19, %v4931_v25  ;;  %v3604_v58 = vrot.slane %v3496_v1, 2  ;;  %v20096_v36 = vld [vmem:[#allocation258_spill] sm:$0xff]  ;;  %v20097_v19 = vld [vmem:[#allocation259_spill] sm:$0xff] }
 0x374   : > { %v2261_v23 = vsel %vm2236_vm1, %v20089_v41, %v2260_v50  ;;  %v1758_v3 = vadd.f32 %v20090_v21, %v1390_v8  ;;  %v1759_v48 = vadd.f32 %v20091_v16, %v1391_v60  ;;  %v1760_v5 = vadd.f32 %v20092_v49, %v1392_v11  ;;  %v20107_v49 = vld [vmem:[#allocation52_spill] sm:$0xff] }
 0x375   : > { %v4319_v40 = vmul.f32 %v9175_v10, %v19734_v59  ;;  %v4998_v44 = vmul.f32 %v9175_v10, %v19735_v2  ;;  %v20093_v39 = vmov 1   ;;  %v14728_v50 = vadd.f32 %v5279_v33, %v5154_v29  ;;  %v9210_v29 = vpop.permute.xlu2 %9209 }
 0x376   : > { %9336 = vset.pattern.permute.xlu2 %v20093_v39  ;;  %v14730_v32 = vadd.f32 %v5281_v27, %v5155_v61  ;;  %v2126_v57 = vadd.f32 %v20096_v36, %v1758_v3  ;;  %v2127_v25 = vadd.f32 %v20097_v19, %v1759_v48  ;;  %9330 = vset.pattern.permute.xlu1 %v20093_v39  ;;  %v20099_v60 = vrot.slane %v14398_v51, 2 }
 0x377   : > { %20094 = vst [vmem:[#allocation354_spill] sm:$0xff] %v14728_v50  ;;  %v2128_v8 = vadd.f32 %v20098_v35, %v1760_v5  ;;  %v4427_v10 = vrot.slane %v4319_v40, 3  ;;  %v5106_v20 = vrot.slane %v4998_v44, 4  ;;  %9338 = vperm.xlu2 %9336, %v19864_v38   ;;  %v3495_v41 = vmul.f32 %v9174_v0, %v19733_v42  ;;  %v20108_v44 = vld [vmem:[#allocation260_spill] sm:$0xff]  ;;  %v20138_v50 = vld [vmem:[#allocation390_spill] sm:$0xff] }
 0x378   : > { %20095 = vst [vmem:[#allocation111_spill] sm:$0xff] %v14730_v32  ;;  %v14739_v11 = vsel %vm2236_vm1, %v3604_v58, %v20099_v60  ;;  %v2357_v33 = vadd.f32 %v2261_v23, %v2126_v57  ;;  %v2358_v27 = vadd.f32 %v2263_v18, %v2127_v25  ;;  %v14744_v1 = vmul.f32 %v9174_v0, %v19734_v59  ;;  %v20105_v23 = vld [vmem:[#allocation268_spill] sm:$0xff]  ;;  %v20106_v18 = vld [vmem:[#allocation249_spill] sm:$0xff]  ;;  %v20110_v57 = vld [vmem:[#allocation90_spill] sm:$0xff] }
 0x379   : > { %20100 = vst [vmem:[#allocation112_spill] sm:$0xff] %v14739_v11  ;;  %v2359_v61 = vadd.f32 %v2265_v56, %v2128_v8  ;;  %v20101_v21 = vrot.slane %v14361_v31, 3  ;;  %v20103_v3 = vrot.slane %v14376_v28, 4  ;;  %v14757_v38 = vmul.f32 %v9174_v0, %v19735_v2  ;;  %v20112_v0 = vld [vmem:[#allocation147_spill] sm:$0xff]  ;;  %v20114_v8 = vld [vmem:[#allocation98_spill] sm:$0xff] }
 0x37a   : > { %v2581_v42 = vadd.f32 %v20105_v23, %v2357_v33  ;;  %v2582_v59 = vadd.f32 %v20106_v18, %v2358_v27  ;;  %v3602_v48 = vrot.slane %v3495_v41, 2  ;;  %v18662_v56 = vrot.slane %v14744_v1, 3  ;;  %v20115_v33 = vld [vmem:[#allocation16_spill] sm:$0xff]  ;;  %v5442_v18 = vld [vmem:[%s9785_s17 + $0xa0] sm:$0x3] }
 0x37b   : > { %v14749_v51 = vsel %vm4133_vm2, %v4427_v10, %v20101_v21  ;;  %v14754_v16 = vsel %vm4812_vm3, %v5106_v20, %v20103_v3  ;;  %v2583_v31 = vadd.f32 %v20107_v49, %v2359_v61  ;;  %v18661_v5 = vrot.slane %v14757_v38, 4  ;;  %v20119_v3 = vld [vmem:[#allocation121_spill] sm:$0xff]  ;;  %v20145_v11 = vld [vmem:[#allocation34_spill] sm:$0xff] }
 0x37c   : > { %20102 = vst [vmem:[#allocation299_spill] sm:$0xff] %v14749_v51  ;;  %v9212_v40 = vunpack.i.h.bf16 %v9210_v29  ;;  %v9211_v28 = vunpack.i.l.bf16 %v9210_v29  ;;  %v14765_v36 = vadd.f32 %v20108_v44, %v2581_v42  ;;  %v14768_v2 = vadd.f32 %v20110_v57, %v2582_v59  ;;  %v20117_v29 = vld [vmem:[#allocation380_spill] sm:$0xff]  ;;  %v20121_v59 = vld [vmem:[#allocation337_spill] sm:$0xff] }
 0x37d   : > { %20104 = vst [vmem:[#allocation361_spill] sm:$0xff] %v14754_v16  ;;  %v20113_v19 = vrot.slane %v20112_v0, 2  ;;  %v3605_v35 = vsel %vm2236_vm1, %v3602_v48, %v3604_v58  ;;  %v14776_v60 = vadd.f32 %v20114_v8, %v14633_v24  ;;  %v14779_v27 = vadd.f32 %v20115_v33, %v2583_v31  ;;  %v20122_v31 = vld [vmem:[#allocation222_spill] sm:$0xff]  ;;  %v20123_v44 = vld [vmem:[#allocation116_spill] sm:$0xff] }
 0x37e   : > { %20109 = vst [vmem:[#allocation356_spill] sm:$0xff] %v14765_v36  ;;  %v3678_v61 = vadd.f32 %v3605_v35, %v20117_v29  ;;  %v20118_v21 = vrot.slane %v14450_v37, 3  ;;  %v20120_v23 = vrot.slane %v20119_v3, 3  ;;  %v4428_v24 = vsel %vm4133_vm2, %v18662_v56, %v4427_v10 }
 0x37f   : > { %20111 = vst [vmem:[#allocation212_spill] sm:$0xff] %v14768_v2  ;;  %v3603_v25 = vsel %vm2236_vm1, %v20113_v19, %v3602_v48  ;;  %v5107_v58 = vsel %vm4812_vm3, %v18661_v5, %v5106_v20  ;;  %v4523_v37 = vmul.f32 %v9212_v40, %v19995_v43  ;;  %v5202_v49 = vmul.f32 %v9212_v40, %v19997_v34 }
 0x380   : > { %20116 = vst [vmem:[#allocation107_spill] sm:$0xff] %v14779_v27  ;;  %v14782_v41 = vadd.f32 %v3603_v25, %v13887_v14  ;;  %v14790_v42 = vsel %vm4133_vm2, %v20120_v23, %v20118_v21  ;;  %v3844_v14 = vmul.f32 %v9212_v40, %v19978_v7  ;;  %v4046_v48 = vadd.f32 %v20121_v59, %v3678_v61  ;;  %v20124_v25 = vld [vmem:[#allocation389_spill] sm:$0xff]  ;;  %v20125_v61 = vld [vmem:[#allocation246_spill] sm:$0xff]  ;;  %v9633_v59 = vpop.permute.xlu0 %9632 }
 0x381   : > { %v3658_v57 = vadd.f32 %v20123_v44, %v20122_v31  ;;  %v14806_v19 = vmul.f32 %v9211_v28, %v19978_v7  ;;  %v14809_v10 = vmul.f32 %v9211_v28, %v19995_v43  ;;  %v14812_v20 = vmul.f32 %v9211_v28, %v19997_v34  ;;  %v20127_v44 = vld [vmem:[#allocation248_spill] sm:$0xff]  ;;  %v20230_v27 = vld [vmem:[#allocation306_spill] sm:$0xff] }
 0x382   : > { %v3932_v0 = vrot.slane %v3844_v14, 2  ;;  %v4277_v35 = vadd.f32 %v20124_v25, %v4046_v48  ;;  %v4611_v8 = vrot.slane %v4523_v37, 3  ;;  %v5290_v33 = vrot.slane %v5202_v49, 4  ;;  %v20129_v37 = vld [vmem:[#allocation17_spill] sm:$0xff]  ;;  %v9220_v25 = vpop.permute.xlu2 %9219 }
 0x383   : > { %v5482_v29 = vunpack.c.l.bf16 %v5442_v18  ;;  %v18663_v40 = vrot.slane %v14806_v19, 2  ;;  %v20126_v21 = vrot.slane %v20125_v61, 2  ;;  %v18665_v23 = vrot.slane %v14809_v10, 3 }
 0x384   : > { %v18666_v14 = vrot.slane %v14812_v20, 4  ;;  %v4501_v31 = vadd.f32 %v4428_v24, %v4277_v35  ;;  %v20128_v5 = vrot.slane %v20127_v44, 3  ;;  %v20130_v18 = vrot.slane %v20129_v37, 4  ;;  %v20131_v24 = vld [vmem:[#allocation30_spill] sm:$0xff] }
 0x385   : > { %v3935_v3 = vsel %vm2236_vm1, %v3932_v0, %v20126_v21  ;;  %v3933_v61 = vsel %vm2236_vm1, %v18663_v40, %v3932_v0  ;;  %v4612_v21 = vsel %vm4133_vm2, %v18665_v23, %v4611_v8  ;;  %v20132_v35 = vunpack.c.h.bf16 %v20131_v24  ;;  %v20137_v23 = vld [vmem:[#allocation137_spill] sm:$0xff] }
 0x386   : > { %v4027_v28 = vadd.f32 %v3935_v3, %v14419_v26  ;;  %v4614_v48 = vsel %vm4133_vm2, %v4611_v8, %v20128_v5  ;;  %v5293_v49 = vsel %vm4812_vm3, %v5290_v33, %v20130_v18  ;;  %v5291_v26 = vsel %vm4812_vm3, %v18666_v14, %v5290_v33  ;;  %v20134_v3 = vld [vmem:[#allocation338_spill] sm:$0xff]  ;;  %v20135_v18 = vld [vmem:[#allocation383_spill] sm:$0xff]  ;;  %v20136_v8 = vld [vmem:[#allocation237_spill] sm:$0xff] }
 0x387   : > { %v14839_v5 = vpack.i.bf16 %v5482_v29, %v20132_v35  ;;  %v4725_v44 = vadd.f32 %v20134_v3, %v4501_v31  ;;  %v4026_v37 = vadd.f32 %v3933_v61, %v3658_v57  ;;  %v9635_v9 = vunpack.i.h.bf16 %v9633_v59  ;;  %v20139_v14 = vld [vmem:[#allocation391_spill] sm:$0xff] }
 0x388   : > { %v4258_v56 = vadd.f32 %v20135_v18, %v4027_v28  ;;  %v9634_v0 = vunpack.i.l.bf16 %v9633_v59  ;;  %v9222_v40 = vunpack.i.h.bf16 %v9220_v25  ;;  %v9221_v39 = vunpack.i.l.bf16 %v9220_v25  ;;  %v20141_v35 = vld [vmem:[#allocation119_spill] sm:$0xff]  ;;  %v20142_v18 = vld [vmem:[#allocation384_spill] sm:$0xff] }
 0x389   : > { %20133 = vst [vmem:[#allocation205_spill] sm:$0xff] %v14839_v5  ;;  %9702 = vperm.xlu0 %9590, %v14839_v5   ;;  %v3664_v16 = vadd.f32 %v20137_v23, %v20136_v8  ;;  %v4956_v33 = vadd.f32 %v20138_v50, %v4725_v44  ;;  %v4257_v24 = vadd.f32 %v20139_v14, %v4026_v37 }
 0x38a   : > { %v4482_v29 = vadd.f32 %v14435_v15, %v4258_v56  ;;  %v1214_v31 = vmul.f32 %v9635_v9, %v20012_v52  ;;  %v2181_v57 = vmul.f32 %v9635_v9, %v20015_v45  ;;  %v1213_v28 = vmul.f32 %v9634_v0, %v20012_v52  ;;  %v20143_v9 = vld [vmem:[#allocation35_spill] sm:$0xff] }
 0x38b   : > { %v2180_v61 = vmul.f32 %v9634_v0, %v20015_v45  ;;  %v3850_v59 = vmul.f32 %v9222_v40, %v19978_v7  ;;  %v14854_v25 = vadd.f32 %v5107_v58, %v4956_v33  ;;  %v4481_v23 = vadd.f32 %v20141_v35, %v4257_v24  ;;  %v20147_v24 = vld [vmem:[#allocation187_spill] sm:$0xff] }
 0x38c   : > { %v4706_v3 = vadd.f32 %v4614_v48, %v4482_v29  ;;  %v1307_v50 = vrot.slane %v1214_v31, 1  ;;  %v2274_v44 = vrot.slane %v2181_v57, 2  ;;  %v1305_v14 = vrot.slane %v1213_v28, 1  ;;  %v20149_v57 = vld [vmem:[#allocation392_spill] sm:$0xff]  ;;  %v20151_v35 = vld [vmem:[#allocation115_spill] sm:$0xff] }
 0x38d   : > { %20140 = vst [vmem:[#allocation29_spill] sm:$0xff] %v14854_v25  ;;  %v2272_v37 = vrot.slane %v2180_v61, 2  ;;  %v3944_v15 = vrot.slane %v3850_v59, 2  ;;  %v4705_v56 = vadd.f32 %v4612_v21, %v4481_v23  ;;  %v20144_v32 = vrot.slane %v20143_v9, 1  ;;  %v20150_v59 = vld [vmem:[#allocation162_spill] sm:$0xff] }
 0x38e   : > { %v4937_v8 = vadd.f32 %v20142_v18, %v4706_v3  ;;  %v4529_v0 = vmul.f32 %v9222_v40, %v19995_v43  ;;  %v20146_v58 = vrot.slane %v20145_v11, 2  ;;  %v20148_v48 = vrot.slane %v20147_v24, 1  ;;  %v20152_v3 = vld [vmem:[#allocation57_spill] sm:$0xff]  ;;  %v20153_v18 = vld [vmem:[#allocation188_spill] sm:$0xff] }
 0x38f   : > { %v1310_v51 = vsel %vm1269_vm0, %v1307_v50, %v20144_v32  ;;  %v1308_v31 = vsel %vm1269_vm0, %v1305_v14, %v1307_v50  ;;  %v4936_v28 = vadd.f32 %v20149_v57, %v4705_v56  ;;  %v20154_v9 = vrot.slane %v20153_v18, 2  ;;  %v20155_v50 = vld [vmem:[#allocation123_spill] sm:$0xff] }
 0x390   : > { %v2277_v33 = vsel %vm2236_vm1, %v2274_v44, %v20146_v58  ;;  %v1306_v29 = vsel %vm1269_vm0, %v20148_v48, %v1305_v14  ;;  %v1398_v21 = vadd.f32 %v1310_v51, %v14339_v55  ;;  %v5161_v61 = vadd.f32 %v14441_v53, %v4937_v8  ;;  %v20157_v51 = vld [vmem:[#allocation202_spill] sm:$0xff]  ;;  %v20158_v53 = vld [vmem:[#allocation84_spill] sm:$0xff] }
 0x391   : > { %v1396_v32 = vadd.f32 %v1306_v29, %v20150_v59  ;;  %v1397_v23 = vadd.f32 %v1308_v31, %v20151_v35  ;;  %v2273_v58 = vsel %vm2236_vm1, %v20154_v9, %v2272_v37  ;;  %v2275_v24 = vsel %vm2236_vm1, %v2272_v37, %v2274_v44  ;;  %v20159_v29 = vld [vmem:[#allocation109_spill] sm:$0xff]  ;;  %v20160_v59 = vld [vmem:[#allocation290_spill] sm:$0xff] }
 0x392   : > { %v1766_v11 = vadd.f32 %v20152_v3, %v1398_v21  ;;  %v4623_v48 = vrot.slane %v4529_v0, 3  ;;  %v5160_v14 = vadd.f32 %v20155_v50, %v4936_v28  ;;  %v14880_v55 = vadd.f32 %v5293_v49, %v5161_v61  ;;  %v20163_v49 = vld [vmem:[#allocation271_spill] sm:$0xff]  ;;  %v20164_v28 = vld [vmem:[#allocation277_spill] sm:$0xff] }
 0x393   : > { %v1764_v56 = vadd.f32 %v20157_v51, %v1396_v32  ;;  %v1765_v8 = vadd.f32 %v20158_v53, %v1397_v23  ;;  %v14886_v31 = vmul.f32 %v9222_v40, %v19997_v34  ;;  %v14889_v21 = vmul.f32 %v9221_v39, %v19978_v7  ;;  %v20165_v32 = vld [vmem:[#allocation104_spill] sm:$0xff]  ;;  %v20166_v51 = vld [vmem:[#allocation399_spill] sm:$0xff] }
 0x394   : > { %20156 = vst [vmem:[#allocation160_spill] sm:$0xff] %v14880_v55  ;;  %v2134_v57 = vadd.f32 %v20159_v29, %v1766_v11  ;;  %v20161_v35 = vrot.slane %v20160_v59, 2  ;;  %v14894_v37 = vadd.f32 %v5291_v26, %v5160_v14  ;;  %v14902_v18 = vmul.f32 %v9221_v39, %v19995_v43  ;;  %v20167_v14 = vld [vmem:[#allocation130_spill] sm:$0xff]  ;;  %v20171_v59 = vld [vmem:[#allocation252_spill] sm:$0xff] }
 0x395   : > { %v2132_v0 = vadd.f32 %v20163_v49, %v1764_v56  ;;  %v2133_v61 = vadd.f32 %v20164_v28, %v1765_v8  ;;  %v5302_v11 = vrot.slane %v14886_v31, 4  ;;  %v18668_v40 = vrot.slane %v14889_v21, 2  ;;  %v20169_v8 = vld [vmem:[#allocation63_spill] sm:$0xff]  ;;  %v20172_v28 = vld [vmem:[#allocation132_spill] sm:$0xff] }
 0x396   : > { %v3947_v44 = vsel %vm2236_vm1, %v3944_v15, %v20161_v35  ;;  %20162 = vst [vmem:[#allocation253_spill] sm:$0xff] %v14894_v37  ;;  %v2365_v3 = vadd.f32 %v2277_v33, %v2134_v57  ;;  %v20168_v53 = vrot.slane %v20167_v14, 3  ;;  %v18667_v57 = vrot.slane %v14902_v18, 3 }
 0x397   : > { %v4033_v23 = vadd.f32 %v3947_v44, %v20165_v32  ;;  %v2363_v9 = vadd.f32 %v2273_v58, %v2132_v0  ;;  %v2364_v50 = vadd.f32 %v2275_v24, %v2133_v61  ;;  %v3945_v33 = vsel %vm2236_vm1, %v18668_v40, %v3944_v15  ;;  %v20170_v58 = vld [vmem:[#allocation273_spill] sm:$0xff]  ;;  %v9184_v0 = vpop.permute.xlu1 %9183  ;;  %v20174_v32 = vld [vmem:[#allocation128_spill] sm:$0xff] }
 0x398   : > { %v4626_v56 = vsel %vm4133_vm2, %v4623_v48, %v20168_v53  ;;  %v2589_v29 = vadd.f32 %v20169_v8, %v2365_v3  ;;  %v14914_v31 = vmul.f32 %v9221_v39, %v19997_v34  ;;  %v4032_v44 = vadd.f32 %v3945_v33, %v3664_v16  ;;  %v20176_v15 = vld [vmem:[#allocation276_spill] sm:$0xff]  ;;  %v20184_v8 = vld [vmem:[#allocation279_spill] sm:$0xff] }
 0x399   : > { %v4264_v26 = vadd.f32 %v20166_v51, %v4033_v23  ;;  %v2587_v24 = vadd.f32 %v20170_v58, %v2363_v9  ;;  %v2588_v35 = vadd.f32 %v20171_v59, %v2364_v50  ;;  %v20173_v61 = vrot.slane %v20172_v28, 4  ;;  %v20178_v9 = vld [vmem:[#allocation292_spill] sm:$0xff]  ;;  %v14934_v50 = vld [vmem:[%s9785_s17 + $0xa0] sm:$0x7] }
 0x39a   : > { %v20175_v23 = vrot.slane %v20174_v32, 4  ;;  %v14925_v51 = vadd.f32 %v20176_v15, %v2589_v29  ;;  %v4624_v39 = vsel %vm4133_vm2, %v18667_v57, %v4623_v48  ;;  %v20179_v14 = vrot.slane %v20178_v9, 4  ;;  %20180 = vst [vmem:[#allocation37_spill] sm:$0xff] %v14934_v50  ;;  %v20186_v29 = vld [vmem:[#allocation11_spill] sm:$0xff]  ;;  %v20187_v32 = vld [vmem:[#allocation138_spill] sm:$0xff] }
 0x39b   : > { %v4488_v49 = vadd.f32 %v14790_v42, %v4264_v26  ;;  %v14937_v42 = vld [vmem:[%s9785_s17 + $0x10] sm:$0x8]  ;;  %v14943_v33 = vadd.f32 %v20184_v8, %v2588_v35  ;;  %v4263_v58 = vadd.f32 %v20186_v29, %v4032_v44  ;;  %v9186_v48 = vunpack.i.h.bf16 %v9184_v0  ;;  %v20188_v15 = vld [vmem:[#allocation402_spill] sm:$0xff] }
 0x39c   : > { %v5081_v3 = vsel %vm4812_vm3, %v20175_v23, %v20173_v61  ;;  %20177 = vst [vmem:[#allocation240_spill] sm:$0xff] %v14925_v51  ;;  %v5305_v16 = vsel %vm4812_vm3, %v5302_v11, %v20179_v14  ;;  %v20182_v26 = vld [vmem:[#allocation272_spill] sm:$0xff]  ;;  %v9185_v61 = vunpack.i.l.bf16 %v9184_v0  ;;  %v20193_v14 = vld [vmem:[#allocation145_spill] sm:$0xff] }
 0x39d   : > { %20181 = vst [vmem:[#allocation362_spill] sm:$0xff] %v14937_v42  ;;  %v14940_v53 = vadd.f32 %v20182_v26, %v2587_v24  ;;  %v4712_v59 = vadd.f32 %v4626_v56, %v4488_v49  ;;  %v4487_v23 = vadd.f32 %v20187_v32, %v4263_v58  ;;  %v20189_v24 = vld [vmem:[#allocation44_spill] sm:$0xff]  ;;  %v14953_v35 = vmul.f32 %v9186_v48, %v19978_v7 }
 0x39e   : > { %20185 = vst [vmem:[#allocation70_spill] sm:$0xff] %v14943_v33  ;;  %9332 = vperm.xlu1 %9330, %v20189_v24   ;;  %v14956_v44 = vmul.f32 %v9186_v48, %v19995_v43  ;;  %v14959_v56 = vmul.f32 %v9186_v48, %v19997_v34  ;;  %v14962_v49 = vmul.f32 %v9185_v61, %v19978_v7  ;;  %v20194_v32 = vrot.slane %v14588_v6, 3  ;;  %v20203_v6 = vld [vmem:[#allocation143_spill] sm:$0xff] }
 0x39f   : > { %20183 = vst [vmem:[#allocation75_spill] sm:$0xff] %v14940_v53  ;;  %v4943_v9 = vadd.f32 %v20188_v15, %v4712_v59  ;;  %v4711_v0 = vadd.f32 %v4624_v39, %v4487_v23  ;;  %v14965_v8 = vmul.f32 %v9185_v61, %v19995_v43  ;;  %v14968_v29 = vmul.f32 %v9185_v61, %v19997_v34  ;;  %v20190_v15 = vld [vmem:[#allocation406_spill] sm:$0xff]  ;;  %v9638_v23 = vpop.permute.xlu0 %9637  ;;  %v20192_v61 = vld [vmem:[#allocation144_spill] sm:$0xff] }
 0x3a0   : > { %v18669_v58 = vrot.slane %v14953_v35, 2  ;;  %v14985_v28 = vadd.f32 %v20193_v14, %v14776_v60  ;;  %v20195_v59 = vld [vmem:[#allocation136_spill] sm:$0xff] }
 0x3a1   : > { %v5167_v26 = vadd.f32 %v5081_v3, %v4943_v9  ;;  %v4942_v40 = vadd.f32 %v20190_v15, %v4711_v0  ;;  %v14981_v9 = vadd.f32 %v20192_v61, %v14628_v47  ;;  %v20196_v48 = vrot.slane %v20195_v59, 3  ;;  %v9230_v47 = vpop.permute.xlu2 %9229  ;;  %v20201_v3 = vld [vmem:[#allocation148_spill] sm:$0xff] }
 0x3a2   : > { %v20197_v0 = vrot.slane %v14615_v12, 4  ;;  %v20200_v61 = vrot.slane %v14744_v1, 3  ;;  %v20202_v60 = vrot.slane %v20201_v3, 3  ;;  %v20207_v3 = vrot.slane %v14914_v31, 4 }
 0x3a3   : > { %v14975_v57 = vadd.f32 %v5305_v16, %v5167_v26  ;;  %v14992_v16 = vsel %vm4133_vm2, %v20196_v48, %v20194_v32  ;;  %v20198_v26 = vld [vmem:[#allocation139_spill] sm:$0xff]  ;;  %v5166_v59 = vadd.f32 %v20203_v6, %v4942_v40  ;;  %v20204_v32 = vrot.slane %v14962_v49, 2 }
 0x3a4   : > { %v20199_v15 = vrot.slane %v20198_v26, 4  ;;  %v15006_v14 = vsel %vm4133_vm2, %v20202_v60, %v20200_v61  ;;  %v20205_v48 = vrot.slane %v14956_v44, 3  ;;  %v5303_v26 = vsel %vm4812_vm3, %v20207_v3, %v5302_v11 }
 0x3a5   : > { %20191 = vst [vmem:[#allocation80_spill] sm:$0xff] %v14975_v57  ;;  %v15014_v12 = vsel %vm2236_vm1, %v20204_v32, %v18669_v58  ;;  %v20208_v40 = vrot.slane %v14959_v56, 4  ;;  %v20211_v60 = vunpack.c.l.bf16 %v14934_v50  ;;  %v20212_v6 = vunpack.c.l.bf16 %v14937_v42  ;;  %v20218_v57 = vld [vmem:[#allocation47_spill] sm:$0xff] }
 0x3a6   : > { %v14999_v39 = vsel %vm4812_vm3, %v20199_v15, %v20197_v0  ;;  %v20206_v0 = vrot.slane %v14965_v8, 3  ;;  %v20209_v15 = vrot.slane %v14968_v29, 4  ;;  %v9640_v58 = vunpack.i.h.bf16 %v9638_v23 }
 0x3a7   : > { %v15037_v32 = vpack.i.bf16 %v20212_v6, %v20211_v60  ;;  %v9232_v25 = vunpack.i.h.bf16 %v9230_v47  ;;  %v9231_v37 = vunpack.i.l.bf16 %v9230_v47  ;;  %v20217_v6 = vld [vmem:[#allocation436_spill] sm:$0xff]  ;;  %v20219_v55 = vrot.slane %v20218_v57, 1 }
 0x3a8   : > { %v15021_v1 = vsel %vm4133_vm2, %v20206_v0, %v20205_v48  ;;  %v15031_v61 = vsel %vm4812_vm3, %v20209_v15, %v20208_v40  ;;  %v15039_v48 = vadd.f32 %v5303_v26, %v5166_v59  ;;  %v9639_v0 = vunpack.i.l.bf16 %v9638_v23  ;;  %v20215_v40 = vld [vmem:[#allocation416_spill] sm:$0xff]  ;;  %v20216_v15 = vld [vmem:[#allocation146_spill] sm:$0xff]  ;;  %9353 = vperm.xlu2 %9336, %v20217_v6  }
 0x3a9   : > { %20210 = vst [vmem:[#allocation110_spill] sm:$0xff] %v15031_v61  ;;  %9717 = vperm.xlu0 %9590, %v15037_v32   ;;  %v1220_v11 = vmul.f32 %v9640_v58, %v20012_v52  ;;  %v2187_v3 = vmul.f32 %v9640_v58, %v20015_v45  ;;  %v3670_v61 = vadd.f32 %v20216_v15, %v20215_v40  ;;  %v20220_v6 = vld [vmem:[#allocation12_spill] sm:$0xff] }
 0x3aa   : > { %20213 = vst [vmem:[#allocation134_spill] sm:$0xff] %v15037_v32  ;;  %v1219_v50 = vmul.f32 %v9639_v0, %v20012_v52  ;;  %v2186_v60 = vmul.f32 %v9639_v0, %v20015_v45  ;;  %v3856_v59 = vmul.f32 %v9232_v25, %v19978_v7  ;;  %v4535_v23 = vmul.f32 %v9232_v25, %v19995_v43 }
 0x3ab   : > { %20214 = vst [vmem:[#allocation69_spill] sm:$0xff] %v15039_v48  ;;  %v1319_v26 = vrot.slane %v1220_v11, 1  ;;  %v2286_v42 = vrot.slane %v2187_v3, 2  ;;  %v5214_v32 = vmul.f32 %v9232_v25, %v19997_v34  ;;  %v15053_v58 = vmul.f32 %v9231_v37, %v19978_v7  ;;  %v20222_v3 = vld [vmem:[#allocation198_spill] sm:$0xff] }
 0x3ac   : > { %v1317_v47 = vrot.slane %v1219_v50, 1  ;;  %v2284_v48 = vrot.slane %v2186_v60, 2  ;;  %v3956_v40 = vrot.slane %v3856_v59, 2  ;;  %v4635_v15 = vrot.slane %v4535_v23, 3  ;;  %v20224_v60 = vld [vmem:[#allocation281_spill] sm:$0xff]  ;;  %v20225_v23 = vld [vmem:[#allocation199_spill] sm:$0xff] }
 0x3ad   : > { %v1322_v0 = vsel %vm1269_vm0, %v1319_v26, %v20219_v55  ;;  %v20221_v24 = vrot.slane %v20220_v6, 2  ;;  %v5314_v53 = vrot.slane %v5214_v32, 4  ;;  %v18675_v11 = vrot.slane %v15053_v58, 2  ;;  %v20227_v55 = vld [vmem:[#allocation169_spill] sm:$0xff]  ;;  %v20228_v6 = vld [vmem:[#allocation324_spill] sm:$0xff] }
 0x3ae   : > { %v20223_v25 = vrot.slane %v20222_v3, 1  ;;  %v1320_v50 = vsel %vm1269_vm0, %v1317_v47, %v1319_v26  ;;  %v1404_v59 = vadd.f32 %v1322_v0, %v20224_v60  ;;  %v20226_v5 = vrot.slane %v20225_v23, 2  ;;  %v20229_v3 = vld [vmem:[#allocation73_spill] sm:$0xff]  ;;  %v20233_v23 = vld [vmem:[#allocation256_spill] sm:$0xff] }
 0x3af   : > { %v2289_v33 = vsel %vm2236_vm1, %v2286_v42, %v20221_v24  ;;  %v1403_v36 = vadd.f32 %v1320_v50, %v20228_v6  ;;  %v2287_v24 = vsel %vm2236_vm1, %v2284_v48, %v2286_v42  ;;  %v3957_v32 = vsel %vm2236_vm1, %v18675_v11, %v3956_v40 }
 0x3b0   : > { %v1318_v51 = vsel %vm1269_vm0, %v20223_v25, %v1317_v47  ;;  %v2285_v57 = vsel %vm2236_vm1, %v20226_v5, %v2284_v48  ;;  %v1772_v25 = vadd.f32 %v20229_v3, %v1404_v59  ;;  %v20231_v26 = vrot.slane %v20230_v27, 2  ;;  %v20232_v5 = vld [vmem:[#allocation3_spill] sm:$0xff]  ;;  %v20237_v59 = vld [vmem:[#allocation294_spill] sm:$0xff] }
 0x3b1   : > { %v1402_v2 = vadd.f32 %v1318_v51, %v20227_v55  ;;  %v4038_v0 = vadd.f32 %v3957_v32, %v3670_v61  ;;  %v15081_v60 = vmul.f32 %v9231_v37, %v19995_v43  ;;  %v1771_v50 = vadd.f32 %v20233_v23, %v1403_v36  ;;  %v20234_v48 = vld [vmem:[#allocation307_spill] sm:$0xff]  ;;  %v20240_v36 = vld [vmem:[#allocation296_spill] sm:$0xff] }
 0x3b2   : > { %v3959_v47 = vsel %vm2236_vm1, %v3956_v40, %v20231_v26  ;;  %v20235_v55 = vrot.slane %v20234_v48, 3  ;;  %v20236_v11 = vmov 2   ;;  %v2140_v27 = vadd.f32 %v20237_v59, %v1772_v25  ;;  %v20238_v3 = vld [vmem:[#allocation423_spill] sm:$0xff]  ;;  %v20242_v23 = vld [vmem:[#allocation40_spill] sm:$0xff]  ;;  %v20244_v25 = vld [vmem:[#allocation154_spill] sm:$0xff] }
 0x3b3   : > { %v1770_v51 = vadd.f32 %v20232_v5, %v1402_v2  ;;  %v4039_v42 = vadd.f32 %v3959_v47, %v14610_v63  ;;  %9728 = vset.pattern.permute.xlu0 %v20236_v11  ;;  %v4269_v40 = vadd.f32 %v20238_v3, %v4038_v0  ;;  %v18676_v61 = vrot.slane %v15081_v60, 3  ;;  %v20239_v2 = vld [vmem:[#allocation302_spill] sm:$0xff]  ;;  %v9195_v11 = vpop.permute.xlu1 %9194 }
 0x3b4   : > { %v4638_v6 = vsel %vm4133_vm2, %v4635_v15, %v20235_v55  ;;  %v15094_v32 = vmul.f32 %v9231_v37, %v19997_v34  ;;  %v2139_v5 = vadd.f32 %v20240_v36, %v1771_v50  ;;  %v20241_v63 = vld [vmem:[#allocation414_spill] sm:$0xff]  ;;  %v20243_v48 = vrot.slane %v20242_v23, 4  ;;  %v20247_v23 = vld [vmem:[#allocation25_spill] sm:$0xff] }
 0x3b5   : > { %v2138_v26 = vadd.f32 %v20239_v2, %v1770_v51  ;;  %v4270_v47 = vadd.f32 %v20241_v63, %v4039_v42  ;;  %v2371_v17 = vadd.f32 %v2289_v33, %v2140_v27  ;;  %v4493_v59 = vadd.f32 %v20244_v25, %v4269_v40  ;;  %v20245_v2 = vld [vmem:[#allocation74_spill] sm:$0xff]  ;;  %v20246_v27 = vld [vmem:[#allocation201_spill] sm:$0xff] }
 0x3b6   : > { %v5317_v55 = vsel %vm4812_vm3, %v5314_v53, %v20243_v48  ;;  %v4636_v0 = vsel %vm4133_vm2, %v18676_v61, %v4635_v15  ;;  %v18677_v37 = vrot.slane %v15094_v32, 4  ;;  %v2370_v51 = vadd.f32 %v2287_v24, %v2139_v5  ;;  %v20248_v15 = vld [vmem:[#allocation2_spill] sm:$0xff] }
 0x3b7   : > { %v2369_v3 = vadd.f32 %v2285_v57, %v2138_v26  ;;  %v4494_v50 = vadd.f32 %v14992_v16, %v4270_v47  ;;  %v2595_v42 = vadd.f32 %v20245_v2, %v2371_v17  ;;  %v4717_v36 = vadd.f32 %v4636_v0, %v4493_v59  ;;  %9348 = vperm.xlu1 %9330, %v20248_v15   ;;  %v20249_v57 = vld [vmem:[#allocation295_spill] sm:$0xff]  ;;  %v20251_v16 = vld [vmem:[#allocation424_spill] sm:$0xff]  ;;  %v20254_v59 = vld [vmem:[#allocation297_spill] sm:$0xff] }
 0x3b8   : > { %v5315_v63 = vsel %vm4812_vm3, %v18677_v37, %v5314_v53  ;;  %v9197_v33 = vunpack.i.h.bf16 %v9195_v11  ;;  %v2594_v48 = vadd.f32 %v20247_v23, %v2370_v51  ;;  %v9196_v61 = vunpack.i.l.bf16 %v9195_v11  ;;  %v20252_v47 = vld [vmem:[#allocation303_spill] sm:$0xff] }
 0x3b9   : > { %v2593_v40 = vadd.f32 %v20246_v27, %v2369_v3  ;;  %v4718_v25 = vadd.f32 %v4638_v6, %v4494_v50  ;;  %v15116_v24 = vadd.f32 %v20249_v57, %v2595_v42  ;;  %v4948_v26 = vadd.f32 %v20251_v16, %v4717_v36  ;;  %v20256_v3 = vld [vmem:[#allocation415_spill] sm:$0xff]  ;;  %v9643_v16 = vpop.permute.xlu0 %9642 }
 0x3ba   : > { %v3836_v17 = vmul.f32 %v9197_v33, %v19978_v7  ;;  %v4515_v5 = vmul.f32 %v9197_v33, %v19995_v43  ;;  %v15125_v0 = vadd.f32 %v20254_v59, %v2594_v48  ;;  %v5194_v51 = vmul.f32 %v9197_v33, %v19997_v34  ;;  %v20257_v11 = vld [vmem:[#allocation155_spill] sm:$0xff] }
 0x3bb   : > { %20250 = vst [vmem:[#allocation241_spill] sm:$0xff] %v15116_v24  ;;  %v15122_v53 = vadd.f32 %v20252_v47, %v2593_v40  ;;  %v4949_v6 = vadd.f32 %v20256_v3, %v4718_v25  ;;  %v5172_v50 = vadd.f32 %v20257_v11, %v4948_v26  ;;  %v3835_v36 = vmul.f32 %v9196_v61, %v19978_v7  ;;  %v20263_v3 = vld [vmem:[#allocation67_spill] sm:$0xff] }
 0x3bc   : > { %20255 = vst [vmem:[#allocation365_spill] sm:$0xff] %v15125_v0  ;;  %v3916_v2 = vrot.slane %v3836_v17, 2  ;;  %v4595_v42 = vrot.slane %v4515_v5, 3  ;;  %v5274_v23 = vrot.slane %v5194_v51, 4  ;;  %v4514_v57 = vmul.f32 %v9196_v61, %v19995_v43 }
 0x3bd   : > { %20253 = vst [vmem:[#allocation39_spill] sm:$0xff] %v15122_v53  ;;  %v5173_v27 = vadd.f32 %v14999_v39, %v4949_v6  ;;  %v5193_v40 = vmul.f32 %v9196_v61, %v19997_v34  ;;  %v15134_v48 = vadd.f32 %v5315_v63, %v5172_v50  ;;  %v20259_v25 = vrot.slane %v14641_v13, 2  ;;  %v20264_v63 = vld [vmem:[#allocation101_spill] sm:$0xff] }
 0x3be   : > { %v20260_v26 = vrot.slane %v14651_v4, 3  ;;  %v3914_v5 = vrot.slane %v3835_v36, 2  ;;  %v20262_v39 = vrot.slane %v14656_v46, 4  ;;  %v4593_v6 = vrot.slane %v4514_v57, 3  ;;  %v20267_v36 = vld [vmem:[#allocation100_spill] sm:$0xff]  ;;  %v20269_v46 = vld [vmem:[#allocation105_spill] sm:$0xff] }
 0x3bf   : > { %20258 = vst [vmem:[#allocation46_spill] sm:$0xff] %v15134_v48  ;;  %v3919_v33 = vsel %vm2236_vm1, %v3916_v2, %v20259_v25  ;;  %v15142_v47 = vadd.f32 %v5317_v55, %v5173_v27  ;;  %v20265_v51 = vrot.slane %v20264_v63, 2  ;;  %v5272_v50 = vrot.slane %v5193_v40, 4  ;;  %v20266_v25 = vld [vmem:[#allocation58_spill] sm:$0xff] }
 0x3c0   : > { %v4598_v17 = vsel %vm4133_vm2, %v4595_v42, %v20260_v26  ;;  %v5277_v59 = vsel %vm4812_vm3, %v5274_v23, %v20262_v39  ;;  %v4019_v61 = vadd.f32 %v3919_v33, %v20263_v3  ;;  %v3917_v11 = vsel %vm2236_vm1, %v3914_v5, %v3916_v2  ;;  %v20268_v27 = vld [vmem:[#allocation274_spill] sm:$0xff]  ;;  %v9240_v33 = vpop.permute.xlu2 %9239  ;;  %v20271_v3 = vld [vmem:[#allocation343_spill] sm:$0xff] }
 0x3c1   : > { %20261 = vst [vmem:[#allocation239_spill] sm:$0xff] %v15142_v47  ;;  %v3915_v13 = vsel %vm2236_vm1, %v20265_v51, %v3914_v5  ;;  %v9645_v4 = vunpack.i.h.bf16 %v9643_v16  ;;  %v4018_v55 = vadd.f32 %v3917_v11, %v20267_v36  ;;  %v20270_v48 = vrot.slane %v20269_v46, 3  ;;  %v20273_v5 = vld [vmem:[#allocation350_spill] sm:$0xff]  ;;  %v20274_v11 = vld [vmem:[#allocation51_spill] sm:$0xff] }
 0x3c2   : > { %v4017_v26 = vadd.f32 %v3915_v13, %v20266_v25  ;;  %v4250_v37 = vadd.f32 %v20268_v27, %v4019_v61  ;;  %v4596_v57 = vsel %vm4133_vm2, %v4593_v6, %v4595_v42  ;;  %v20272_v63 = vrot.slane %v20271_v3, 4  ;;  %v20275_v61 = vld [vmem:[#allocation434_spill] sm:$0xff]  ;;  %v20276_v42 = vld [vmem:[#allocation92_spill] sm:$0xff]  ;;  %v20277_v3 = vld [vmem:[#allocation441_spill] sm:$0xff] }
 0x3c3   : > { %v4594_v39 = vsel %vm4133_vm2, %v20270_v48, %v4593_v6  ;;  %v5275_v2 = vsel %vm4812_vm3, %v5272_v50, %v5274_v23  ;;  %v1226_v40 = vmul.f32 %v9645_v4, %v20012_v52  ;;  %v4249_v25 = vadd.f32 %v20274_v11, %v4018_v55  ;;  %v20278_v23 = vld [vmem:[#allocation48_spill] sm:$0xff] }
 0x3c4   : > { %v5273_v51 = vsel %vm4812_vm3, %v20272_v63, %v5272_v50  ;;  %v4248_v13 = vadd.f32 %v20273_v5, %v4017_v26  ;;  %v4474_v36 = vadd.f32 %v20275_v61, %v4250_v37  ;;  %v2193_v27 = vmul.f32 %v9645_v4, %v20015_v45  ;;  %v20280_v37 = vld [vmem:[#allocation251_spill] sm:$0xff]  ;;  %v20281_v5 = vld [vmem:[#allocation13_spill] sm:$0xff]  ;;  %v20282_v11 = vld [vmem:[#allocation244_spill] sm:$0xff] }
 0x3c5   : > { %v1331_v48 = vrot.slane %v1226_v40, 1  ;;  %v9644_v46 = vunpack.i.l.bf16 %v9643_v16  ;;  %v9242_v47 = vunpack.i.h.bf16 %v9240_v33  ;;  %v4473_v15 = vadd.f32 %v20277_v3, %v4249_v25  ;;  %9363 = vperm.xlu2 %9336, %v20280_v37   ;;  %v20284_v3 = vld [vmem:[#allocation351_spill] sm:$0xff] }
 0x3c6   : > { %v4472_v6 = vadd.f32 %v20276_v42, %v4248_v13  ;;  %v4698_v63 = vadd.f32 %v4598_v17, %v4474_v36  ;;  %v2298_v0 = vrot.slane %v2193_v27, 2  ;;  %v20279_v50 = vrot.slane %v20278_v23, 1  ;;  %v20286_v37 = vld [vmem:[#allocation435_spill] sm:$0xff] }
 0x3c7   : > { %v1225_v26 = vmul.f32 %v9644_v46, %v20012_v52  ;;  %v2192_v55 = vmul.f32 %v9644_v46, %v20015_v45  ;;  %v3862_v4 = vmul.f32 %v9242_v47, %v19978_v7  ;;  %v4697_v40 = vadd.f32 %v4596_v57, %v4473_v15  ;;  %v20285_v46 = vld [vmem:[#allocation316_spill] sm:$0xff] }
 0x3c8   : > { %v1334_v53 = vsel %vm1269_vm0, %v1331_v48, %v20279_v50  ;;  %v4696_v16 = vadd.f32 %v4594_v39, %v4472_v6  ;;  %v4929_v13 = vadd.f32 %v20281_v5, %v4698_v63  ;;  %v20283_v25 = vrot.slane %v20282_v11, 2  ;;  %v20287_v15 = vld [vmem:[#allocation216_spill] sm:$0xff]  ;;  %v20289_v5 = vld [vmem:[#allocation81_spill] sm:$0xff] }
 0x3c9   : > { %v1329_v61 = vrot.slane %v1225_v26, 1  ;;  %v1410_v36 = vadd.f32 %v1334_v53, %v14981_v9  ;;  %v2296_v27 = vrot.slane %v2192_v55, 2  ;;  %v3968_v42 = vrot.slane %v3862_v4, 2  ;;  %v20290_v11 = vld [vmem:[#allocation217_spill] sm:$0xff]  ;;  %v20292_v55 = vld [vmem:[#allocation94_spill] sm:$0xff] }
 0x3ca   : > { %v2301_v17 = vsel %vm2236_vm1, %v2298_v0, %v20283_v25  ;;  %v4927_v23 = vadd.f32 %v20284_v3, %v4696_v16  ;;  %v4928_v50 = vadd.f32 %v20285_v46, %v4697_v40  ;;  %v5153_v24 = vadd.f32 %v20286_v37, %v4929_v13  ;;  %v20293_v16 = vld [vmem:[#allocation442_spill] sm:$0xff]  ;;  %v20296_v37 = vld [vmem:[#allocation311_spill] sm:$0xff] }
 0x3cb   : > { %v4541_v39 = vmul.f32 %v9242_v47, %v19995_v43  ;;  %v20288_v57 = vrot.slane %v20287_v15, 1  ;;  %v1332_v63 = vsel %vm1269_vm0, %v1329_v61, %v1331_v48  ;;  %v1778_v26 = vadd.f32 %v20289_v5, %v1410_v36  ;;  %v20295_v13 = vld [vmem:[#allocation178_spill] sm:$0xff]  ;;  %v20298_v5 = vld [vmem:[#allocation211_spill] sm:$0xff] }
 0x3cc   : > { %v20291_v9 = vrot.slane %v20290_v11, 2  ;;  %v5151_v4 = vadd.f32 %v20292_v55, %v4927_v23  ;;  %v5152_v40 = vadd.f32 %v20293_v16, %v4928_v50  ;;  %v15196_v25 = vadd.f32 %v5277_v59, %v5153_v24  ;;  %v20299_v50 = vld [vmem:[#allocation262_spill] sm:$0xff]  ;;  %v20301_v55 = vld [vmem:[#allocation156_spill] sm:$0xff] }
 0x3cd   : > { %v1330_v6 = vsel %vm1269_vm0, %v20288_v57, %v1329_v61  ;;  %v1409_v46 = vadd.f32 %v1332_v63, %v14985_v28  ;;  %v2146_v15 = vadd.f32 %v20296_v37, %v1778_v26  ;;  %v2299_v48 = vsel %vm2236_vm1, %v2296_v27, %v2298_v0  ;;  %v20302_v63 = vld [vmem:[#allocation313_spill] sm:$0xff]  ;;  %v20303_v0 = vld [vmem:[#allocation322_spill] sm:$0xff] }
 0x3ce   : > { %v2297_v53 = vsel %vm2236_vm1, %v20291_v9, %v2296_v27  ;;  %20294 = vst [vmem:[#allocation157_spill] sm:$0xff] %v15196_v25  ;;  %v1408_v3 = vadd.f32 %v1330_v6, %v20295_v13  ;;  %v4647_v61 = vrot.slane %v4541_v39, 3  ;;  %v15202_v36 = vadd.f32 %v5273_v51, %v5151_v4  ;;  %v20300_v6 = vld [vmem:[#allocation255_spill] sm:$0xff] }
 0x3cf   : > { %v15204_v57 = vadd.f32 %v5275_v2, %v5152_v40  ;;  %v5220_v23 = vmul.f32 %v9242_v47, %v19997_v34  ;;  %v1777_v24 = vadd.f32 %v20299_v50, %v1409_v46  ;;  %v2377_v59 = vadd.f32 %v2301_v17, %v2146_v15  ;;  %v20305_v2 = vld [vmem:[#allocation323_spill] sm:$0xff]  ;;  %v20307_v40 = vld [vmem:[#allocation314_spill] sm:$0xff]  ;;  %v9205_v50 = vpop.permute.xlu1 %9204 }
 0x3d0   : > { %v1776_v11 = vadd.f32 %v20298_v5, %v1408_v3  ;;  %v9241_v9 = vunpack.i.l.bf16 %v9240_v33  ;;  %v3676_v28 = vadd.f32 %v20301_v55, %v20300_v6  ;;  %v20304_v27 = vrot.slane %v20303_v0, 2  ;;  %v20308_v13 = vld [vmem:[#allocation83_spill] sm:$0xff]  ;;  %v20309_v5 = vld [vmem:[#allocation325_spill] sm:$0xff]  ;;  %v20311_v6 = vld [vmem:[#allocation312_spill] sm:$0xff] }
 0x3d1   : > { %20297 = vst [vmem:[#allocation97_spill] sm:$0xff] %v15204_v57  ;;  %v5326_v16 = vrot.slane %v5220_v23, 4  ;;  %v20306_v39 = vrot.slane %v20305_v2, 3  ;;  %v2145_v47 = vadd.f32 %v20307_v40, %v1777_v24  ;;  %v2601_v3 = vadd.f32 %v20308_v13, %v2377_v59  ;;  %v20316_v40 = vld [vmem:[#allocation61_spill] sm:$0xff] }
 0x3d2   : > { %v2144_v26 = vadd.f32 %v20302_v63, %v1776_v11  ;;  %v3971_v51 = vsel %vm2236_vm1, %v3968_v42, %v20304_v27  ;;  %v15221_v33 = vmul.f32 %v9241_v9, %v19978_v7  ;;  %v15225_v37 = vmul.f32 %v9241_v9, %v19995_v43  ;;  %v20313_v63 = vld [vmem:[#allocation421_spill] sm:$0xff]  ;;  %v20315_v27 = vld [vmem:[#allocation263_spill] sm:$0xff] }
 0x3d3   : > { %v4650_v4 = vsel %vm4133_vm2, %v4647_v61, %v20306_v39  ;;  %v4045_v17 = vadd.f32 %v3971_v51, %v14782_v41  ;;  %v15228_v15 = vmul.f32 %v9241_v9, %v19997_v34  ;;  %v20310_v11 = vrot.slane %v20309_v5, 4  ;;  %v9648_v5 = vpop.permute.xlu0 %9647 }
 0x3d4   : > { %v2375_v46 = vadd.f32 %v2297_v53, %v2144_v26  ;;  %v2376_v24 = vadd.f32 %v2299_v48, %v2145_v47  ;;  %v15234_v59 = vadd.f32 %v20311_v6, %v2601_v3  ;;  %v18680_v55 = vrot.slane %v15221_v33, 2  ;;  %v20314_v53 = vld [vmem:[#allocation275_spill] sm:$0xff]  ;;  %v20321_v6 = vld [vmem:[#allocation153_spill] sm:$0xff] }
 0x3d5   : > { %v5329_v23 = vsel %vm4812_vm3, %v5326_v16, %v20310_v11  ;;  %v4276_v41 = vadd.f32 %v20313_v63, %v4045_v17  ;;  %v18679_v0 = vrot.slane %v15225_v37, 3  ;;  %v18678_v9 = vrot.slane %v15228_v15, 4  ;;  %v20319_v11 = vld [vmem:[#allocation315_spill] sm:$0xff] }
 0x3d6   : > { %20312 = vst [vmem:[#allocation4_spill] sm:$0xff] %v15234_v59  ;;  %v2599_v26 = vadd.f32 %v20314_v53, %v2375_v46  ;;  %v2600_v51 = vadd.f32 %v20315_v27, %v2376_v24  ;;  %v3969_v2 = vsel %vm2236_vm1, %v18680_v55, %v3968_v42  ;;  %v9207_v39 = vunpack.i.h.bf16 %v9205_v50  ;;  %v20318_v46 = vld [vmem:[#allocation99_spill] sm:$0xff] }
 0x3d7   : > { %v4500_v48 = vadd.f32 %v15006_v14, %v4276_v41  ;;  %v4044_v13 = vadd.f32 %v3969_v2, %v3676_v28  ;;  %v4648_v3 = vsel %vm4133_vm2, %v18679_v0, %v4647_v61  ;;  %v5327_v17 = vsel %vm4812_vm3, %v18678_v9, %v5326_v16  ;;  %9358 = vperm.xlu1 %9330, %v20318_v46   ;;  %v20323_v61 = vld [vmem:[#allocation141_spill] sm:$0xff]  ;;  %v20326_v16 = vld [vmem:[#allocation124_spill] sm:$0xff]  ;;  %v20328_v2 = vld [vmem:[#allocation151_spill] sm:$0xff] }
 0x3d8   : > { %v15247_v47 = vadd.f32 %v20316_v40, %v2599_v26  ;;  %v15257_v42 = vadd.f32 %v20319_v11, %v2600_v51  ;;  %v15260_v24 = vmul.f32 %v9207_v39, %v19978_v7  ;;  %v15263_v28 = vmul.f32 %v9207_v39, %v19995_v43  ;;  %v20330_v11 = vld [vmem:[#allocation165_spill] sm:$0xff] }
 0x3d9   : > { %v4724_v14 = vadd.f32 %v4650_v4, %v4500_v48  ;;  %v20322_v63 = vrot.slane %v20321_v6, 4  ;;  %v20324_v41 = vrot.slane %v20323_v61, 4  ;;  %v4275_v26 = vadd.f32 %v20326_v16, %v4044_v13  ;;  %v20331_v61 = vld [vmem:[#allocation158_spill] sm:$0xff] }
 0x3da   : > { %20317 = vst [vmem:[#allocation10_spill] sm:$0xff] %v15247_v47  ;;  %v15274_v27 = vmul.f32 %v9207_v39, %v19997_v34  ;;  %v9206_v51 = vunpack.i.l.bf16 %v9205_v50  ;;  %v20327_v4 = vrot.slane %v14757_v38, 4  ;;  %v20329_v48 = vrot.slane %v20328_v2, 4  ;;  %v20336_v38 = vld [vmem:[#allocation425_spill] sm:$0xff] }
 0x3db   : > { %20320 = vst [vmem:[#allocation269_spill] sm:$0xff] %v15257_v42  ;;  %v15270_v53 = vsel %vm4812_vm3, %v20324_v41, %v20322_v63  ;;  %v4955_v9 = vadd.f32 %v20330_v11, %v4724_v14  ;;  %v9650_v6 = vunpack.i.h.bf16 %v9648_v5  ;;  %v9649_v0 = vunpack.i.l.bf16 %v9648_v5  ;;  %v20413_v42 = vld [vmem:[#allocation242_spill] sm:$0xff] }
 0x3dc   : > { %20325 = vst [vmem:[#allocation85_spill] sm:$0xff] %v15270_v53  ;;  %v5105_v40 = vsel %vm4812_vm3, %v20329_v48, %v20327_v4  ;;  %v4499_v55 = vadd.f32 %v20331_v61, %v4275_v26  ;;  %v3841_v13 = vmul.f32 %v9206_v51, %v19978_v7  ;;  %v4520_v39 = vmul.f32 %v9206_v51, %v19995_v43  ;;  %v20332_v4 = vld [vmem:[#allocation286_spill] sm:$0xff] }
 0x3dd   : > { %v5179_v41 = vadd.f32 %v5105_v40, %v4955_v9  ;;  %v5199_v16 = vmul.f32 %v9206_v51, %v19997_v34  ;;  %v20333_v2 = vrot.slane %v20332_v4, 2  ;;  %v20334_v14 = vrot.slane %v14953_v35, 2  ;;  %v20337_v51 = vld [vmem:[#allocation60_spill] sm:$0xff] }
 0x3de   : > { %v4723_v26 = vadd.f32 %v4648_v3, %v4499_v55  ;;  %v3926_v48 = vrot.slane %v3841_v13, 2  ;;  %v4605_v11 = vrot.slane %v4520_v39, 3  ;;  %v2162_v9 = vmul.f32 %v9650_v6, %v20015_v45  ;;  %v20340_v3 = vld [vmem:[#allocation82_spill] sm:$0xff]  ;;  %v9215_v6 = vpop.permute.xlu1 %9214 }
 0x3df   : > { %v15294_v5 = vsel %vm2236_vm1, %v20334_v14, %v20333_v2  ;;  %v15296_v61 = vadd.f32 %v5329_v23, %v5179_v41  ;;  %v5284_v63 = vrot.slane %v5199_v16, 4  ;;  %v1231_v40 = vmul.f32 %v9649_v0, %v20012_v52  ;;  %v20343_v41 = vld [vmem:[#allocation231_spill] sm:$0xff] }
 0x3e0   : > { %v4954_v50 = vadd.f32 %v20336_v38, %v4723_v26  ;;  %v20338_v25 = vrot.slane %v20337_v51, 2  ;;  %v20339_v35 = vrot.slane %v15260_v24, 2  ;;  %v20341_v23 = vrot.slane %v20340_v3, 3  ;;  %v20347_v26 = vld [vmem:[#allocation159_spill] sm:$0xff]  ;;  %v20349_v3 = vld [vmem:[#allocation261_spill] sm:$0xff] }
 0x3e1   : > { %20335 = vst [vmem:[#allocation218_spill] sm:$0xff] %v15296_v61  ;;  %v20342_v52 = vrot.slane %v15263_v28, 3  ;;  %v20344_v38 = vrot.slane %v20343_v41, 4  ;;  %v20345_v16 = vrot.slane %v15274_v27, 4  ;;  %v2237_v14 = vrot.slane %v2162_v9, 2  ;;  %v20351_v61 = vld [vmem:[#allocation120_spill] sm:$0xff] }
 0x3e2   : > { %v15304_v4 = vsel %vm2236_vm1, %v20338_v25, %v3926_v48  ;;  %v15309_v55 = vsel %vm2236_vm1, %v3926_v48, %v20339_v35  ;;  %v15314_v13 = vsel %vm4133_vm2, %v20341_v23, %v4605_v11  ;;  %v5178_v48 = vadd.f32 %v20347_v26, %v4954_v50  ;;  %v20348_v35 = vld [vmem:[#allocation23_spill] sm:$0xff]  ;;  %v20355_v50 = vld [vmem:[#allocation229_spill] sm:$0xff] }
 0x3e3   : > { %v15319_v39 = vsel %vm4133_vm2, %v4605_v11, %v20342_v52  ;;  %v15324_v25 = vsel %vm4812_vm3, %v20344_v38, %v5284_v63  ;;  %v15329_v2 = vsel %vm4812_vm3, %v5284_v63, %v20345_v16  ;;  %v1341_v51 = vrot.slane %v1231_v40, 1 }
 0x3e4   : > { %20346 = vst [vmem:[#allocation26_spill] sm:$0xff] %v15329_v2  ;;  %v2115_v23 = vadd.f32 %v20349_v3, %v20348_v35  ;;  %v2198_v11 = vmul.f32 %v9649_v0, %v20015_v45  ;;  %v20350_v52 = vrot.slane %v20029_v54, 2  ;;  %v9217_v38 = vunpack.i.h.bf16 %v9215_v6  ;;  %v20357_v45 = vld [vmem:[#allocation200_spill] sm:$0xff]  ;;  %v20358_v54 = vld [vmem:[#allocation257_spill] sm:$0xff]  ;;  %v20364_v3 = vld [vmem:[#allocation270_spill] sm:$0xff] }
 0x3e5   : > { %v20352_v57 = vrot.slane %v20351_v61, 3  ;;  %v20353_v53 = vrot.slane %v14956_v44, 3  ;;  %v15345_v9 = vadd.f32 %v5327_v17, %v5178_v48  ;;  %v20356_v40 = vrot.slane %v20355_v50, 1  ;;  %9378 = vperm.xlu2 %9336, %v20358_v54   ;;  %v20366_v50 = vld [vmem:[#allocation41_spill] sm:$0xff] }
 0x3e6   : > { %v2239_v41 = vsel %vm2236_vm1, %v2237_v14, %v20350_v52  ;;  %v20359_v14 = vld [vmem:[#allocation152_spill] sm:$0xff]  ;;  %v3848_v61 = vmul.f32 %v9217_v38, %v19978_v7  ;;  %v4527_v44 = vmul.f32 %v9217_v38, %v19995_v43  ;;  %v9216_v35 = vunpack.i.l.bf16 %v9215_v6  ;;  %v20368_v6 = vld [vmem:[#allocation238_spill] sm:$0xff] }
 0x3e7   : > { %v15343_v63 = vsel %vm4133_vm2, %v20353_v53, %v20352_v57  ;;  %20354 = vst [vmem:[#allocation319_spill] sm:$0xff] %v15345_v9  ;;  %v1342_v16 = vsel %vm1269_vm0, %v20356_v40, %v1341_v51  ;;  %v2346_v26 = vadd.f32 %v2239_v41, %v2115_v23  ;;  %9373 = vperm.xlu1 %9330, %v20359_v14   ;;  %v20360_v57 = vld [vmem:[#allocation344_spill] sm:$0xff]  ;;  %v20362_v17 = vrot.slane %v14959_v56, 4 }
 0x3e8   : > { %v1414_v0 = vadd.f32 %v1342_v16, %v20357_v45  ;;  %v20361_v53 = vrot.slane %v20360_v57, 4  ;;  %v2308_v51 = vrot.slane %v2198_v11, 2  ;;  %v5206_v52 = vmul.f32 %v9217_v38, %v19997_v34  ;;  %v20369_v57 = vld [vmem:[#allocation342_spill] sm:$0xff] }
 0x3e9   : > { %v2570_v23 = vadd.f32 %v20364_v3, %v2346_v26  ;;  %v20365_v41 = vrot.slane %v14962_v49, 2  ;;  %v20367_v40 = vrot.slane %v20366_v50, 2  ;;  %v3940_v54 = vrot.slane %v3848_v61, 2  ;;  %v20371_v49 = vld [vmem:[#allocation45_spill] sm:$0xff] }
 0x3ea   : > { %v15360_v48 = vsel %vm4812_vm3, %v20362_v17, %v20361_v53  ;;  %v1782_v45 = vadd.f32 %v20368_v6, %v1414_v0  ;;  %v3847_v56 = vmul.f32 %v9216_v35, %v19978_v7  ;;  %v4619_v17 = vrot.slane %v4527_v44, 3  ;;  %v20374_v6 = vld [vmem:[#allocation230_spill] sm:$0xff]  ;;  %v20376_v44 = vld [vmem:[#allocation291_spill] sm:$0xff] }
 0x3eb   : > { %20363 = vst [vmem:[#allocation419_spill] sm:$0xff] %v15360_v48  ;;  %v15369_v16 = vsel %vm2236_vm1, %v20367_v40, %v20365_v41  ;;  %v2794_v53 = vadd.f32 %v20369_v57, %v2570_v23  ;;  %v4526_v11 = vmul.f32 %v9216_v35, %v19995_v43  ;;  %v5205_v26 = vmul.f32 %v9216_v35, %v19997_v34  ;;  %v20373_v41 = vld [vmem:[#allocation327_spill] sm:$0xff]  ;;  %v15388_v35 = vpop.permute.xlu2 %9250 }
 0x3ec   : > { %v20370_v38 = vrot.slane %v14965_v8, 3  ;;  %v20372_v3 = vrot.slane %v20371_v49, 3  ;;  %v2150_v40 = vadd.f32 %v20373_v41, %v1782_v45  ;;  %v5298_v0 = vrot.slane %v5206_v52, 4  ;;  %v20378_v49 = vld [vmem:[#allocation15_spill] sm:$0xff]  ;;  %v20380_v52 = vld [vmem:[#allocation170_spill] sm:$0xff] }
 0x3ed   : > { %v3938_v61 = vrot.slane %v3847_v56, 2  ;;  %v20375_v9 = vrot.slane %v20374_v6, 2  ;;  %v3276_v57 = vadd.f32 %v20376_v44, %v2794_v53  ;;  %v4617_v2 = vrot.slane %v4526_v11, 3  ;;  %v20382_v53 = vld [vmem:[#allocation78_spill] sm:$0xff] }
 0x3ee   : > { %v15381_v50 = vsel %vm4133_vm2, %v20372_v3, %v20370_v38  ;;  %v5296_v48 = vrot.slane %v5205_v26, 4  ;;  %v20377_v8 = vrot.slane %v14968_v29, 4  ;;  %v20379_v14 = vrot.slane %v20378_v49, 4  ;;  %v20383_v26 = vld [vmem:[#allocation38_spill] sm:$0xff]  ;;  %v20421_v49 = vld [vmem:[#allocation431_spill] sm:$0xff] }
 0x3ef   : > { %v2309_v23 = vsel %vm2236_vm1, %v20375_v9, %v2308_v51  ;;  %v20381_v56 = vrot.slane %v20380_v52, 2  ;;  %v15403_v9 = vsel %vm2236_vm1, %v3938_v61, %v3940_v54  ;;  %v9653_v51 = vpop.permute.xlu0 %9652  ;;  %v3644_v11 = vadd.f32 %v20382_v53, %v3276_v57  ;;  %v20390_v57 = vld [vmem:[#allocation64_spill] sm:$0xff]  ;;  %v20393_v53 = vld [vmem:[#allocation243_spill] sm:$0xff] }
 0x3f0   : > { %v15395_v38 = vsel %vm4812_vm3, %v20379_v14, %v20377_v8  ;;  %v2381_v45 = vadd.f32 %v2309_v23, %v2150_v40  ;;  %v20384_v41 = vrot.slane %v20383_v26, 3  ;;  %v15412_v14 = vsel %vm4133_vm2, %v4617_v2, %v4619_v17  ;;  %v20385_v40 = vld [vmem:[#allocation91_spill] sm:$0xff] }
 0x3f1   : > { %v15400_v3 = vsel %vm2236_vm1, %v20381_v56, %v3938_v61  ;;  %v20386_v6 = vrot.slane %v20385_v40, 4  ;;  %v20388_v44 = vrot.slane %v14806_v19, 2  ;;  %v20389_v61 = vrot.slane %v15260_v24, 2 }
 0x3f2   : > { %v15409_v29 = vsel %vm4133_vm2, %v20384_v41, %v4617_v2  ;;  %v15427_v52 = vadd.f32 %v20390_v57, %v2381_v45  ;;  %v15430_v56 = vsel %vm4812_vm3, %v5296_v48, %v5298_v0  ;;  %v9252_v2 = vunpack.i.l.bf16 %v15388_v35 }
 0x3f3   : > { %v15417_v23 = vsel %vm4812_vm3, %v20386_v6, %v5296_v48  ;;  %v15424_v8 = vsel %vm2236_vm1, %v20389_v61, %v20388_v44  ;;  %20392 = vst [vmem:[#allocation366_spill] sm:$0xff] %v15430_v56  ;;  %v4012_v26 = vadd.f32 %v20393_v53, %v3644_v11  ;;  %v9655_v41 = vunpack.i.h.bf16 %v9653_v51  ;;  %v20399_v61 = vld [vmem:[#allocation267_spill] sm:$0xff]  ;;  %v20400_v56 = vld [vmem:[#allocation293_spill] sm:$0xff]  ;;  %v20401_v53 = vld [vmem:[#allocation96_spill] sm:$0xff] }
 0x3f4   : > { %20387 = vst [vmem:[#allocation385_spill] sm:$0xff] %v15417_v23  ;;  %v9654_v40 = vunpack.i.l.bf16 %v9653_v51  ;;  %v20394_v6 = vrot.slane %v14809_v10, 3  ;;  %v20395_v19 = vrot.slane %v15263_v28, 3  ;;  %v20396_v44 = vrot.slane %v14812_v20, 4  ;;  %v20402_v23 = vld [vmem:[#allocation266_spill] sm:$0xff] }
 0x3f5   : > { %20391 = vst [vmem:[#allocation150_spill] sm:$0xff] %v15427_v52  ;;  %v20397_v45 = vrot.slane %v15274_v27, 4  ;;  %v4738_v57 = vmul.f32 %v9252_v2, %v20399_v61  ;;  %v4243_v11 = vadd.f32 %v20400_v56, %v4012_v26  ;;  %v3096_v51 = vmul.f32 %v9655_v41, %v20401_v53  ;;  %v20406_v26 = vld [vmem:[#allocation247_spill] sm:$0xff] }
 0x3f6   : > { %v15439_v24 = vsel %vm4133_vm2, %v20395_v19, %v20394_v6  ;;  %v4062_v10 = vmul.f32 %v9655_v41, %v20402_v23  ;;  %v15453_v28 = vmul.f32 %v9655_v41, %v20399_v61  ;;  %v20403_v6 = vld [vmem:[#allocation264_spill] sm:$0xff]  ;;  %v20404_v20 = vrot.slane %v14889_v21, 2  ;;  %v20405_v19 = vld [vmem:[#allocation113_spill] sm:$0xff]  ;;  %9388 = vperm.xlu1 %9330, %v20406_v26  }
 0x3f7   : > { %v15446_v48 = vsel %vm4812_vm3, %v20397_v45, %v20396_v44  ;;  %9393 = vperm.xlu2 %9336, %v20403_v6   ;;  %v15462_v44 = vperm.slane %v20405_v19, 0  ;;  %v4813_v2 = vrot.slane %v4738_v57, 4  ;;  %v3095_v56 = vmul.f32 %v9654_v40, %v20401_v53  ;;  %v20411_v19 = vld [vmem:[#allocation282_spill] sm:$0xff] }
 0x3f8   : > { %20398 = vst [vmem:[#allocation21_spill] sm:$0xff] %v15446_v48  ;;  %v15459_v27 = vsel %vm2236_vm1, %v3940_v54, %v20404_v20  ;;  %v20407_v45 = vrot.slane %v14902_v18, 3  ;;  %v20408_v6 = vrot.slane %v14914_v31, 4  ;;  %v20410_v54 = vld [vmem:[#allocation433_spill] sm:$0xff]  ;;  %v3172_v48 = vrot.slane %v3096_v51, 2  ;;  %v20416_v51 = vld [vmem:[#allocation278_spill] sm:$0xff] }
 0x3f9   : > { %v4467_v20 = vadd.f32 %v20410_v54, %v4243_v11  ;;  %v20412_v52 = vrot.slane %v20411_v19, 4  ;;  %v3170_v46 = vrot.slane %v3095_v56, 2  ;;  %v4061_v26 = vmul.f32 %v9654_v40, %v20402_v23  ;;  %v9225_v11 = vpop.permute.xlu1 %9224 }
 0x3fa   : > { %v15469_v41 = vsel %vm4133_vm2, %v4619_v17, %v20407_v45  ;;  %v15474_v21 = vsel %vm4812_vm3, %v5298_v0, %v20408_v6  ;;  %v4740_v18 = vmul.f32 %v9654_v40, %v20399_v61  ;;  %v20414_v45 = vld [vmem:[#allocation53_spill] sm:$0xff]  ;;  %v4139_v0 = vrot.slane %v4062_v10, 3  ;;  %v20419_v10 = vld [vmem:[#allocation114_spill] sm:$0xff] }
 0x3fb   : > { %20409 = vst [vmem:[#allocation233_spill] sm:$0xff] %v15474_v21  ;;  %v4815_v57 = vsel %vm4812_vm3, %v4813_v2, %v20412_v52  ;;  %v4691_v17 = vadd.f32 %v20413_v42, %v4467_v20  ;;  %v20415_v47 = vrot.slane %v20414_v45, 2  ;;  %v4818_v6 = vrot.slane %v15453_v28, 4  ;;  %v20420_v28 = vld [vmem:[#allocation89_spill] sm:$0xff] }
 0x3fc   : > { %v20417_v54 = vrot.slane %v20416_v51, 2  ;;  %v3173_v52 = vsel %vm2236_vm1, %v3170_v46, %v3172_v48  ;;  %v4137_v56 = vrot.slane %v4061_v26, 3  ;;  %v15497_v45 = vperm.slane %v20419_v10, 0 }
 0x3fd   : > { %v3175_v31 = vsel %vm2236_vm1, %v3172_v48, %v20415_v47  ;;  %v15492_v40 = vadd.f32 %v4815_v57, %v4691_v17  ;;  %v3278_v20 = vadd.f32 %v3173_v52, %v14621_v30  ;;  %v4816_v47 = vrot.slane %v4740_v18, 4  ;;  %v20422_v48 = vld [vmem:[#allocation31_spill] sm:$0xff] }
 0x3fe   : > { %v3171_v21 = vsel %vm2236_vm1, %v20417_v54, %v3170_v46  ;;  %v3279_v2 = vadd.f32 %v3175_v31, %v14624_v22  ;;  %v4140_v51 = vsel %vm4133_vm2, %v4137_v56, %v4139_v0  ;;  %v9227_v54 = vunpack.i.h.bf16 %v9225_v11  ;;  %v20424_v31 = vld [vmem:[#allocation347_spill] sm:$0xff] }
 0x3ff   : > { %20418 = vst [vmem:[#allocation235_spill] sm:$0xff] %v15492_v40  ;;  %v3277_v42 = vadd.f32 %v3171_v21, %v14618_v62  ;;  %v3646_v22 = vadd.f32 %v20422_v48, %v3278_v20  ;;  %v20423_v26 = vrot.slane %v20411_v19, 4  ;;  %v4819_v62 = vsel %vm4812_vm3, %v4816_v47, %v4818_v6  ;;  %v20426_v20 = vld [vmem:[#allocation280_spill] sm:$0xff]  ;;  %v20466_v40 = vld [vmem:[#allocation426_spill] sm:$0xff] }
 0x400   : > { %v3647_v59 = vadd.f32 %v20420_v28, %v3279_v2  ;;  %v9253_v30 = vunpack.i.h.bf16 %v15388_v35  ;;  %v3854_v18 = vmul.f32 %v9227_v54, %v19978_v7  ;;  %v4533_v17 = vmul.f32 %v9227_v54, %v19995_v43 }
 0x401   : > { %v3645_v46 = vadd.f32 %v20421_v49, %v3277_v42  ;;  %v4817_v57 = vsel %vm4812_vm3, %v20423_v26, %v4816_v47  ;;  %v20425_v52 = vrot.slane %v20424_v31, 3  ;;  %v4014_v19 = vadd.f32 %v15014_v12, %v3646_v22  ;;  %v20429_v22 = vld [vmem:[#allocation432_spill] sm:$0xff] }
 0x402   : > { %v4015_v21 = vadd.f32 %v15294_v5, %v3647_v59  ;;  %v9226_v42 = vunpack.i.l.bf16 %v9225_v11  ;;  %v20427_v10 = vrot.slane %v20426_v20, 3  ;;  %v3952_v28 = vrot.slane %v3854_v18, 2  ;;  %v20428_v11 = vld [vmem:[#allocation93_spill] sm:$0xff]  ;;  %v20430_v18 = vld [vmem:[#allocation403_spill] sm:$0xff] }
 0x403   : > { %v4142_v49 = vsel %vm4133_vm2, %v4139_v0, %v20425_v52  ;;  %v4013_v2 = vadd.f32 %v15369_v16, %v3645_v46  ;;  %v15520_v59 = vmul.f32 %v9227_v54, %v19997_v34  ;;  %v4245_v48 = vadd.f32 %v4140_v51, %v4014_v19  ;;  %v9266_v52 = vpop.permute.xlu2 %9265  ;;  %v20431_v20 = vld [vmem:[#allocation349_spill] sm:$0xff] }
 0x404   : > { %v4138_v47 = vsel %vm4133_vm2, %v20427_v10, %v4137_v56  ;;  %v4246_v35 = vadd.f32 %v4142_v49, %v4015_v21  ;;  %v15523_v26 = vmul.f32 %v9226_v42, %v19978_v7  ;;  %v15526_v0 = vmul.f32 %v9226_v42, %v19995_v43 }
 0x405   : > { %v4244_v5 = vadd.f32 %v4138_v47, %v4013_v2  ;;  %v5669_v12 = vmul.f32 %v9253_v30, %v15462_v44  ;;  %v6635_v16 = vmul.f32 %v9253_v30, %v15497_v45  ;;  %v4631_v56 = vrot.slane %v4533_v17, 3 }
 0x406   : > { %v4470_v46 = vadd.f32 %v20428_v11, %v4246_v35  ;;  %v4469_v54 = vadd.f32 %v20430_v18, %v4245_v48  ;;  %v18683_v31 = vrot.slane %v15523_v26, 2  ;;  %v18682_v51 = vrot.slane %v15526_v0, 3 }
 0x407   : > { %v4468_v21 = vadd.f32 %v20429_v22, %v4244_v5  ;;  %v18684_v2 = vrot.slane %v15520_v59, 4  ;;  %v15538_v19 = vmul.f32 %v9226_v42, %v19997_v34  ;;  %v9268_v30 = vunpack.i.h.bf16 %v9266_v52 }
 0x408   : > { %v4694_v49 = vadd.f32 %v15343_v63, %v4470_v46  ;;  %v20432_v10 = vrot.slane %v20431_v20, 4  ;;  %v4693_v35 = vadd.f32 %v15021_v1, %v4469_v54  ;;  %v15548_v5 = vsel %vm2236_vm1, %v18683_v31, %v3952_v28 }
 0x409   : > { %v4692_v47 = vadd.f32 %v15381_v50, %v4468_v21  ;;  %20433 = vst [vmem:[#allocation174_spill] sm:$0xff] %v15548_v5  ;;  %v15553_v42 = vsel %vm4133_vm2, %v18682_v51, %v4631_v56  ;;  %v18681_v48 = vrot.slane %v15538_v19, 4  ;;  %v9267_v11 = vunpack.i.l.bf16 %v9266_v52  ;;  %v20436_v21 = vld [vmem:[#allocation95_spill] sm:$0xff]  ;;  %v20447_v51 = vld [vmem:[#allocation186_spill] sm:$0xff] }
 0x40a   : > { %v4821_v17 = vsel %vm4812_vm3, %v4818_v6, %v20432_v10  ;;  %20434 = vst [vmem:[#allocation368_spill] sm:$0xff] %v15553_v42  ;;  %v5743_v46 = vrot.slane %v5669_v12, 4  ;;  %v4924_v22 = vadd.f32 %v4819_v62, %v4693_v35  ;;  %v15557_v50 = vmul.f32 %v9268_v30, %v15462_v44  ;;  %v9658_v12 = vpop.permute.xlu0 %9657  ;;  %v20441_v52 = vld [vmem:[#allocation407_spill] sm:$0xff]  ;;  %9408 = vperm.xlu2 %9336, %v20447_v51   ;;  %v20462_v42 = vld [vmem:[#allocation356_spill] sm:$0xff]  ;;  %v20464_v5 = vld [vmem:[#allocation102_spill] sm:$0xff] }
 0x40b   : > { %v4925_v63 = vadd.f32 %v4821_v17, %v4694_v49  ;;  %v4923_v6 = vadd.f32 %v4817_v57, %v4692_v47  ;;  %v6710_v1 = vrot.slane %v6635_v16, 5  ;;  %v15567_v54 = vsel %vm4812_vm3, %v18681_v48, %v18684_v2  ;;  %v20439_v49 = vld [vmem:[#allocation131_spill] sm:$0xff] }
 0x40c   : > { %20435 = vst [vmem:[#allocation367_spill] sm:$0xff] %v15557_v50  ;;  %v15570_v20 = vperm.slane %v20439_v49, 0  ;;  %v20440_v57 = vld [vmem:[#allocation43_spill] sm:$0xff]  ;;  %v15574_v10 = vadd.f32 %v20441_v52, %v4924_v22  ;;  %v20443_v16 = vrot.slane %v15053_v58, 2  ;;  %v20445_v47 = vrot.slane %v15081_v60, 3 }
 0x40d   : > { %v15560_v18 = vadd.f32 %v20436_v21, %v4925_v63  ;;  %20438 = vst [vmem:[#allocation175_spill] sm:$0xff] %v15567_v54  ;;  %v5147_v62 = vadd.f32 %v20440_v57, %v4923_v6  ;;  %v18685_v63 = vrot.slane %v15557_v50, 4  ;;  %v15588_v21 = vmul.f32 %v9268_v30, %v15497_v45 }
 0x40e   : > { %20442 = vst [vmem:[#allocation265_spill] sm:$0xff] %v15574_v10  ;;  %v15579_v17 = vsel %vm2236_vm1, %v3952_v28, %v20443_v16  ;;  %v15584_v35 = vsel %vm4133_vm2, %v4631_v56, %v20445_v47  ;;  %v5670_v6 = vmul.f32 %v9267_v11, %v15462_v44  ;;  %v15592_v22 = vmul.f32 %v9267_v11, %v15497_v45  ;;  %v20461_v10 = vld [vmem:[#allocation107_spill] sm:$0xff] }
 0x40f   : > { %20437 = vst [vmem:[#allocation28_spill] sm:$0xff] %v15560_v18  ;;  %v5371_v58 = vadd.f32 %v15395_v38, %v5147_v62  ;;  %v9660_v49 = vunpack.i.h.bf16 %v9658_v12  ;;  %v9659_v28 = vunpack.i.l.bf16 %v9658_v12  ;;  %v15596_v57 = vmul.f32 %v9268_v30, %v15570_v20 }
 0x410   : > { %20444 = vst [vmem:[#allocation50_spill] sm:$0xff] %v15579_v17  ;;  %v5744_v60 = vrot.slane %v5670_v6, 4  ;;  %v18687_v56 = vrot.slane %v15592_v22, 5  ;;  %v20450_v6 = vld [vmem:[#allocation8_spill] sm:$0xff]  ;;  %v15620_v51 = vmul.f32 %v9267_v11, %v15570_v20  ;;  %v20457_v11 = vld [vmem:[#allocation250_spill] sm:$0xff] }
 0x411   : > { %20446 = vst [vmem:[#allocation59_spill] sm:$0xff] %v15584_v35  ;;  %v3106_v52 = vmul.f32 %v9660_v49, %v20401_v53  ;;  %v4072_v16 = vmul.f32 %v9660_v49, %v20402_v23  ;;  %v4751_v47 = vmul.f32 %v9660_v49, %v20399_v61  ;;  %v3105_v48 = vmul.f32 %v9659_v28, %v20401_v53  ;;  %v9235_v49 = vpop.permute.xlu1 %9234  ;;  %v20465_v17 = vld [vmem:[#allocation438_spill] sm:$0xff] }
 0x412   : > { %v15606_v12 = vsel %vm4812_vm3, %v5743_v46, %v5744_v60  ;;  %v5747_v30 = vsel %vm4812_vm3, %v5744_v60, %v18685_v63  ;;  %v15614_v62 = vsel %vm6709_vm4, %v6710_v1, %v18687_v56  ;;  %9403 = vperm.xlu1 %9330, %v20450_v6   ;;  %20452 = vst [vmem:[#allocation268_spill] sm:$0xff] %v15620_v51  ;;  %v20453_v63 = vld [vmem:[#allocation381_spill] sm:$0xff]  ;;  %v20455_v56 = vld [vmem:[#allocation382_spill] sm:$0xff]  ;;  %v20458_v6 = vrot.slane %v20457_v11, 4 }
 0x413   : > { %20448 = vst [vmem:[#allocation258_spill] sm:$0xff] %v15606_v12  ;;  %v15617_v31 = vadd.f32 %v5747_v30, %v5371_v58  ;;  %v3192_v38 = vrot.slane %v3106_v52, 2  ;;  %v4159_v46 = vrot.slane %v4072_v16, 3  ;;  %v4838_v2 = vrot.slane %v4751_v47, 4  ;;  %v20459_v16 = vld [vmem:[#allocation308_spill] sm:$0xff] }
 0x414   : > { %20449 = vst [vmem:[#allocation259_spill] sm:$0xff] %v15614_v62  ;;  %v3190_v54 = vrot.slane %v3105_v48, 2  ;;  %v4071_v18 = vmul.f32 %v9659_v28, %v20402_v23  ;;  %v4750_v60 = vmul.f32 %v9659_v28, %v20399_v61  ;;  %v20454_v50 = vrot.slane %v20453_v63, 2  ;;  %v20463_v12 = vld [vmem:[#allocation212_spill] sm:$0xff] }
 0x415   : > { %20451 = vst [vmem:[#allocation49_spill] sm:$0xff] %v15617_v31  ;;  %v20456_v62 = vrot.slane %v20455_v56, 3  ;;  %v9237_v30 = vunpack.i.h.bf16 %v9235_v49  ;;  %v9236_v31 = vunpack.i.l.bf16 %v9235_v49  ;;  %v4841_v52 = vsel %vm4812_vm3, %v4838_v2, %v20458_v6 }
 0x416   : > { %v3195_v1 = vsel %vm2236_vm1, %v3192_v38, %v20454_v50  ;;  %v20460_v48 = vrot.slane %v20459_v16, 2  ;;  %v3193_v28 = vsel %vm2236_vm1, %v3190_v54, %v3192_v38  ;;  %v4157_v35 = vrot.slane %v4071_v18, 3  ;;  %v20467_v38 = vld [vmem:[#allocation309_spill] sm:$0xff] }
 0x417   : > { %v4162_v58 = vsel %vm4133_vm2, %v4159_v46, %v20456_v62  ;;  %v3289_v63 = vadd.f32 %v3195_v1, %v20461_v10  ;;  %v3288_v56 = vadd.f32 %v3193_v28, %v20463_v12  ;;  %v4836_v62 = vrot.slane %v4750_v60, 4  ;;  %v20470_v60 = vld [vmem:[#allocation310_spill] sm:$0xff] }
 0x418   : > { %v3191_v47 = vsel %vm2236_vm1, %v20460_v48, %v3190_v54  ;;  %v3860_v11 = vmul.f32 %v9237_v30, %v19978_v7  ;;  %v4539_v6 = vmul.f32 %v9237_v30, %v19995_v43  ;;  %v5218_v16 = vmul.f32 %v9237_v30, %v19997_v34 }
 0x419   : > { %v3287_v50 = vadd.f32 %v3191_v47, %v20462_v42  ;;  %v3657_v49 = vadd.f32 %v20464_v5, %v3289_v63  ;;  %v3656_v54 = vadd.f32 %v20466_v40, %v3288_v56  ;;  %v20468_v10 = vrot.slane %v20467_v38, 3  ;;  %v9277_v38 = vpop.permute.xlu2 %9276 }
 0x41a   : > { %v4160_v12 = vsel %vm4133_vm2, %v4157_v35, %v4159_v46  ;;  %v20469_v18 = vmov 2   ;;  %v20471_v1 = vrot.slane %v20470_v60, 4  ;;  %v4839_v30 = vsel %vm4812_vm3, %v4836_v62, %v4838_v2 }
 0x41b   : > { %v3655_v48 = vadd.f32 %v20465_v17, %v3287_v50  ;;  %v4158_v42 = vsel %vm4133_vm2, %v20468_v10, %v4157_v35  ;;  %9508 = vset.pattern.permute.xlu2 %v20469_v18  ;;  %v4025_v5 = vadd.f32 %v15424_v8, %v3657_v49  ;;  %v3964_v28 = vrot.slane %v3860_v11, 2 }
 0x41c   : > { %v4837_v47 = vsel %vm4812_vm3, %v20471_v1, %v4836_v62  ;;  %v4024_v40 = vadd.f32 %v15309_v55, %v3656_v54  ;;  %v4643_v63 = vrot.slane %v4539_v6, 3  ;;  %v5322_v50 = vrot.slane %v5218_v16, 4  ;;  %v20477_v54 = vld [vmem:[#allocation439_spill] sm:$0xff] }
 0x41d   : > { %v4023_v17 = vadd.f32 %v15304_v4, %v3655_v48  ;;  %v4256_v56 = vadd.f32 %v4162_v58, %v4025_v5  ;;  %v20472_v35 = vrot.slane %v15221_v33, 2  ;;  %v3859_v8 = vmul.f32 %v9236_v31, %v19978_v7  ;;  %v20476_v33 = vld [vmem:[#allocation106_spill] sm:$0xff] }
 0x41e   : > { %v4538_v49 = vmul.f32 %v9236_v31, %v19995_v43  ;;  %v4255_v2 = vadd.f32 %v4160_v12, %v4024_v40  ;;  %v20473_v62 = vrot.slane %v15225_v37, 3  ;;  %v20474_v55 = vrot.slane %v15228_v15, 4 }
 0x41f   : > { %v15661_v46 = vsel %vm2236_vm1, %v3964_v28, %v20472_v35  ;;  %v4254_v10 = vadd.f32 %v4158_v42, %v4023_v17  ;;  %v4480_v11 = vadd.f32 %v20476_v33, %v4256_v56  ;;  %v3962_v6 = vrot.slane %v3859_v8, 2  ;;  %v20478_v42 = vld [vmem:[#allocation427_spill] sm:$0xff]  ;;  %v20479_v17 = vld [vmem:[#allocation301_spill] sm:$0xff]  ;;  %v20481_v35 = vld [vmem:[#allocation304_spill] sm:$0xff] }
 0x420   : > { %v15668_v4 = vsel %vm4133_vm2, %v4643_v63, %v20473_v62  ;;  %v15673_v58 = vsel %vm4812_vm3, %v5322_v50, %v20474_v55  ;;  %v4641_v16 = vrot.slane %v4538_v49, 3  ;;  %v5217_v48 = vmul.f32 %v9236_v31, %v19997_v34 }
 0x421   : > { %20475 = vst [vmem:[#allocation249_spill] sm:$0xff] %v15673_v58  ;;  %v4478_v5 = vadd.f32 %v20477_v54, %v4254_v10  ;;  %v4479_v12 = vadd.f32 %v20478_v42, %v4255_v2  ;;  %v9279_v60 = vunpack.i.h.bf16 %v9277_v38  ;;  %v15679_v37 = vunpack.i.l.bf16 %v9277_v38  ;;  %v20511_v58 = vld [vmem:[#allocation400_spill] sm:$0xff] }
 0x422   : > { %v4704_v1 = vadd.f32 %v15439_v24, %v4480_v11  ;;  %v20480_v15 = vrot.slane %v20479_v17, 2  ;;  %v15688_v56 = vsel %vm2236_vm1, %v3962_v6, %v3964_v28  ;;  %v20482_v8 = vrot.slane %v20481_v35, 3 }
 0x423   : > { %v4702_v49 = vadd.f32 %v15314_v13, %v4478_v5  ;;  %v4703_v38 = vadd.f32 %v15319_v39, %v4479_v12  ;;  %v15698_v10 = vsel %vm4133_vm2, %v4641_v16, %v4643_v63  ;;  %v5320_v24 = vrot.slane %v5217_v48, 4  ;;  %v9663_v63 = vpop.permute.xlu0 %9662 }
 0x424   : > { %v15685_v40 = vsel %vm2236_vm1, %v20480_v15, %v3962_v6  ;;  %v15693_v31 = vsel %vm4133_vm2, %v20482_v8, %v4641_v16  ;;  %v18689_v2 = vrot.slane %v15596_v57, 6  ;;  %v18688_v62 = vrot.slane %v15620_v51, 6  ;;  %v20483_v6 = vld [vmem:[#allocation305_spill] sm:$0xff]  ;;  %v20498_v8 = vld [vmem:[#allocation428_spill] sm:$0xff] }
 0x425   : > { %v4935_v55 = vadd.f32 %v4841_v52, %v4704_v1  ;;  %v15703_v28 = vmul.f32 %v9279_v60, %v15462_v44  ;;  %v4933_v33 = vadd.f32 %v4837_v47, %v4702_v49  ;;  %v4934_v11 = vadd.f32 %v4839_v30, %v4703_v38  ;;  %v20491_v47 = vld [vmem:[#allocation285_spill] sm:$0xff]  ;;  %v20494_v1 = vld [vmem:[#allocation288_spill] sm:$0xff] }
 0x426   : > { %v20484_v54 = vrot.slane %v20483_v6, 4  ;;  %v15711_v39 = vsel %vm4812_vm3, %v5320_v24, %v5322_v50  ;;  %v20487_v16 = vrot.slane %v15094_v32, 4  ;;  %v20488_v48 = vrot.slane %v15520_v59, 4  ;;  %v20496_v32 = vld [vmem:[#allocation108_spill] sm:$0xff] }
 0x427   : > { %20486 = vst [vmem:[#allocation260_spill] sm:$0xff] %v15711_v39  ;;  %v20490_v5 = vrot.slane %v15523_v26, 2  ;;  %v20492_v30 = vrot.slane %v20491_v47, 2  ;;  %v20493_v12 = vrot.slane %v15526_v0, 3  ;;  %v20495_v50 = vrot.slane %v20494_v1, 3  ;;  %v20497_v59 = vld [vmem:[#allocation440_spill] sm:$0xff]  ;;  %v9245_v0 = vpop.permute.xlu1 %9244 }
 0x428   : > { %v15708_v13 = vsel %vm4812_vm3, %v20484_v54, %v5320_v24  ;;  %v15718_v52 = vsel %vm4812_vm3, %v20488_v48, %v20487_v16  ;;  %v15735_v15 = vadd.f32 %v20496_v32, %v4935_v55  ;;  %v15738_v35 = vadd.f32 %v20497_v59, %v4933_v33  ;;  %v20500_v16 = vld [vmem:[#allocation289_spill] sm:$0xff]  ;;  %v20518_v39 = vld [vmem:[#allocation328_spill] sm:$0xff] }
 0x429   : > { %20485 = vst [vmem:[#allocation52_spill] sm:$0xff] %v15708_v13  ;;  %v15725_v42 = vsel %vm2236_vm1, %v20492_v30, %v20490_v5  ;;  %v15732_v17 = vsel %vm4133_vm2, %v20495_v50, %v20493_v12  ;;  %v15741_v26 = vadd.f32 %v20498_v8, %v4934_v11  ;;  %v18690_v49 = vrot.slane %v15703_v28, 4  ;;  %v20520_v13 = vld [vmem:[#allocation79_spill] sm:$0xff] }
 0x42a   : > { %20489 = vst [vmem:[#allocation90_spill] sm:$0xff] %v15718_v52  ;;  %v15746_v38 = vmul.f32 %v15679_v37, %v15462_v44  ;;  %v15749_v24 = vmul.f32 %v9279_v60, %v15497_v45  ;;  %v9665_v6 = vunpack.i.h.bf16 %v9663_v63  ;;  %v9664_v54 = vunpack.i.l.bf16 %v9663_v63 }
 0x42b   : > { %v20499_v55 = vrot.slane %v15538_v19, 4  ;;  %v20501_v33 = vrot.slane %v20500_v16, 4  ;;  %v20503_v11 = vrot.slane %v15588_v21, 5  ;;  %v20504_v5 = vrot.slane %v15592_v22, 5  ;;  %v20507_v22 = vld [vmem:[#allocation205_spill] sm:$0xff] }
 0x42c   : > { %v15770_v63 = vsel %vm7388_vm5, %v18688_v62, %v18689_v2  ;;  %v18691_v19 = vrot.slane %v15746_v38, 4  ;;  %v3112_v30 = vmul.f32 %v9665_v6, %v20401_v53  ;;  %v4078_v12 = vmul.f32 %v9665_v6, %v20402_v23  ;;  %9504 = vperm.xlu1 %9330, %v20507_v22  }
 0x42d   : > { %v15756_v48 = vsel %vm4812_vm3, %v20501_v33, %v20499_v55  ;;  %v15763_v47 = vsel %vm6709_vm4, %v20504_v5, %v20503_v11  ;;  %20506 = vst [vmem:[#allocation16_spill] sm:$0xff] %v15770_v63  ;;  %v15776_v1 = vmul.f32 %v9665_v6, %v20399_v61  ;;  %v9247_v50 = vunpack.i.h.bf16 %v9245_v0  ;;  %v20509_v63 = vld [vmem:[#allocation398_spill] sm:$0xff] }
 0x42e   : > { %20502 = vst [vmem:[#allocation147_spill] sm:$0xff] %v15756_v48  ;;  %v15780_v32 = vmul.f32 %v9279_v60, %v15570_v20  ;;  %v5755_v59 = vsel %vm4812_vm3, %v18691_v19, %v18690_v49  ;;  %v3111_v8 = vmul.f32 %v9664_v54, %v20401_v53  ;;  %v4077_v55 = vmul.f32 %v9664_v54, %v20402_v23 }
 0x42f   : > { %20505 = vst [vmem:[#allocation98_spill] sm:$0xff] %v15763_v47  ;;  %v15791_v6 = vadd.f32 %v5755_v59, %v15202_v36  ;;  %v3204_v33 = vrot.slane %v3112_v30, 2  ;;  %v4171_v11 = vrot.slane %v4078_v12, 3  ;;  %v4756_v62 = vmul.f32 %v9664_v54, %v20399_v61  ;;  %v20513_v12 = vld [vmem:[#allocation326_spill] sm:$0xff]  ;;  %v20515_v54 = vld [vmem:[#allocation240_spill] sm:$0xff] }
 0x430   : > { %v3202_v5 = vrot.slane %v3111_v8, 2  ;;  %v4169_v60 = vrot.slane %v4077_v55, 3  ;;  %v9246_v2 = vunpack.i.l.bf16 %v9245_v0  ;;  %v20510_v47 = vrot.slane %v20509_v63, 2  ;;  %v20516_v55 = vld [vmem:[#allocation75_spill] sm:$0xff] }
 0x431   : > { %20508 = vst [vmem:[#allocation380_spill] sm:$0xff] %v15791_v6  ;;  %v4850_v19 = vrot.slane %v15776_v1, 4  ;;  %v4544_v51 = vmul.f32 %v9247_v50, %v19995_v43  ;;  %v5223_v16 = vmul.f32 %v9247_v50, %v19997_v34  ;;  %v20512_v36 = vrot.slane %v20511_v58, 3  ;;  %v20517_v6 = vld [vmem:[#allocation70_spill] sm:$0xff] }
 0x432   : > { %v3207_v49 = vsel %vm2236_vm1, %v3204_v33, %v20510_v47  ;;  %v20514_v59 = vrot.slane %v20513_v12, 2  ;;  %v3205_v0 = vsel %vm2236_vm1, %v3202_v5, %v3204_v33  ;;  %v20519_v43 = vrot.slane %v20518_v39, 3  ;;  %v20522_v33 = vld [vmem:[#allocation42_spill] sm:$0xff]  ;;  %v20523_v39 = vld [vmem:[#allocation329_spill] sm:$0xff] }
 0x433   : > { %v4174_v30 = vsel %vm4133_vm2, %v4171_v11, %v20512_v36  ;;  %v3295_v63 = vadd.f32 %v3207_v49, %v20515_v54  ;;  %v3294_v1 = vadd.f32 %v3205_v0, %v20517_v6  ;;  %v4172_v58 = vsel %vm4133_vm2, %v4169_v60, %v4171_v11 }
 0x434   : > { %v3203_v8 = vsel %vm2236_vm1, %v20514_v59, %v3202_v5  ;;  %v4170_v50 = vsel %vm4133_vm2, %v20519_v43, %v4169_v60  ;;  %v4848_v52 = vrot.slane %v4756_v62, 4  ;;  %v4653_v12 = vrot.slane %v4544_v51, 3  ;;  %v20521_v59 = vld [vmem:[#allocation86_spill] sm:$0xff]  ;;  %9519 = vset.pattern.permute.xlu1 %v20469_v18 }
 0x435   : > { %v3293_v47 = vadd.f32 %v3203_v8, %v20516_v55  ;;  %v3663_v36 = vadd.f32 %v20520_v13, %v3295_v63  ;;  %v5332_v22 = vrot.slane %v5223_v16, 4  ;;  %v3662_v5 = vadd.f32 %v20522_v33, %v3294_v1  ;;  %v20525_v13 = vld [vmem:[#allocation318_spill] sm:$0xff]  ;;  %v20530_v63 = vld [vmem:[#allocation44_spill] sm:$0xff]  ;;  %v9287_v55 = vpop.permute.xlu2 %9286 }
 0x436   : > { %v3865_v49 = vmul.f32 %v9246_v2, %v19978_v7  ;;  %v20524_v8 = vrot.slane %v20523_v39, 4  ;;  %v4851_v11 = vsel %vm4812_vm3, %v4848_v52, %v4850_v19  ;;  %v20526_v62 = vrot.slane %v20525_v13, 3  ;;  %v20527_v2 = vld [vmem:[#allocation321_spill] sm:$0xff]  ;;  %9510 = vperm.xlu2 %9508, %v20530_v63  }
 0x437   : > { %v3661_v48 = vadd.f32 %v20521_v59, %v3293_v47  ;;  %v4031_v6 = vadd.f32 %v15459_v27, %v3663_v36  ;;  %v4030_v60 = vadd.f32 %v15403_v9, %v3662_v5  ;;  %v20528_v54 = vrot.slane %v20527_v2, 4  ;;  %v9668_v47 = vpop.permute.xlu0 %9667  ;;  %v20536_v13 = vld [vmem:[#allocation401_spill] sm:$0xff] }
 0x438   : > { %v4849_v0 = vsel %vm4812_vm3, %v20524_v8, %v4848_v52  ;;  %v15827_v51 = vsel %vm4133_vm2, %v20526_v62, %v4653_v12  ;;  %v3974_v7 = vrot.slane %v3865_v49, 2  ;;  %v9289_v1 = vunpack.i.h.bf16 %v9287_v55  ;;  %v20531_v12 = vld [vmem:[#allocation317_spill] sm:$0xff] }
 0x439   : > { %v4029_v16 = vadd.f32 %v15400_v3, %v3661_v48  ;;  %v15834_v27 = vsel %vm4812_vm3, %v20528_v54, %v5332_v22  ;;  %v4262_v52 = vadd.f32 %v4174_v30, %v4031_v6  ;;  %v9288_v43 = vunpack.i.l.bf16 %v9287_v55  ;;  %v20533_v30 = vld [vmem:[#allocation125_spill] sm:$0xff]  ;;  %v20534_v6 = vld [vmem:[#allocation6_spill] sm:$0xff] }
 0x43a   : > { %20529 = vst [vmem:[#allocation121_spill] sm:$0xff] %v15834_v27  ;;  %v5381_v36 = vadd.f32 %v15324_v25, %v15738_v35  ;;  %v15841_v3 = vmul.f32 %v15679_v37, %v15497_v45  ;;  %v4261_v48 = vadd.f32 %v4172_v58, %v4030_v60  ;;  %v20532_v59 = vrot.slane %v20531_v12, 2  ;;  %v20535_v58 = vld [vmem:[#allocation429_spill] sm:$0xff] }
 0x43b   : > { %v4260_v9 = vadd.f32 %v4170_v50, %v4029_v16  ;;  %v15850_v33 = vmul.f32 %v15679_v37, %v15570_v20  ;;  %v4486_v5 = vadd.f32 %v20533_v30, %v4262_v52  ;;  %v15854_v49 = vmul.f32 %v9289_v1, %v15462_v44 }
 0x43c   : > { %v15846_v22 = vsel %vm2236_vm1, %v20532_v59, %v3974_v7  ;;  %v9670_v25 = vunpack.i.h.bf16 %v9668_v47  ;;  %v18694_v35 = vrot.slane %v15780_v32, 6  ;;  %v4485_v39 = vadd.f32 %v20535_v58, %v4261_v48  ;;  %v9261_v58 = vpop.permute.xlu1 %9260 }
 0x43d   : > { %v4484_v50 = vadd.f32 %v20534_v6, %v4260_v9  ;;  %v15860_v8 = vmul.f32 %v9288_v43, %v15462_v44  ;;  %v20537_v62 = vrot.slane %v20536_v13, 4  ;;  %v4710_v16 = vadd.f32 %v15469_v41, %v4486_v5  ;;  %v9297_v18 = vpop.permute.xlu2 %9296 }
 0x43e   : > { %v18693_v60 = vrot.slane %v15854_v49, 4  ;;  %v15868_v7 = vmul.f32 %v9289_v1, %v15497_v45  ;;  %v4709_v54 = vadd.f32 %v15412_v14, %v4485_v39  ;;  %v15874_v55 = vmul.f32 %v9288_v43, %v15497_v45  ;;  %v20538_v14 = vld [vmem:[#allocation129_spill] sm:$0xff] }
 0x43f   : > { %v4853_v37 = vsel %vm4812_vm3, %v4850_v19, %v20537_v62  ;;  %v4708_v2 = vadd.f32 %v15409_v29, %v4484_v50  ;;  %v18695_v63 = vrot.slane %v15860_v8, 4  ;;  %v18697_v52 = vrot.slane %v15841_v3, 5 }
 0x440   : > { %v18696_v19 = vrot.slane %v15850_v33, 6  ;;  %v4941_v9 = vadd.f32 %v4853_v37, %v4710_v16  ;;  %v3118_v41 = vmul.f32 %v9670_v25, %v20401_v53  ;;  %v4940_v12 = vadd.f32 %v4851_v11, %v4709_v54  ;;  %v20545_v16 = vld [vmem:[#allocation411_spill] sm:$0xff] }
 0x441   : > { %v4939_v48 = vadd.f32 %v4849_v0, %v4708_v2  ;;  %v15880_v59 = vmul.f32 %v9289_v1, %v15570_v20  ;;  %v5767_v29 = vsel %vm4812_vm3, %v18695_v63, %v18693_v60  ;;  %v4084_v50 = vmul.f32 %v9670_v25, %v20402_v23  ;;  %v20541_v0 = vld [vmem:[#allocation254_spill] sm:$0xff]  ;;  %v20550_v60 = vld [vmem:[#allocation88_spill] sm:$0xff] }
 0x442   : > { %v15888_v30 = vadd.f32 %v20538_v14, %v4941_v9  ;;  %v15890_v5 = vadd.f32 %v5767_v29, %v5381_v36  ;;  %v3216_v6 = vrot.slane %v3118_v41, 2  ;;  %v20542_v1 = vld [vmem:[#allocation430_spill] sm:$0xff]  ;;  %v18699_v13 = vrot.slane %v15868_v7, 5  ;;  %v20548_v29 = vld [vmem:[#allocation241_spill] sm:$0xff] }
 0x443   : > { %v15894_v11 = vadd.f32 %v20541_v0, %v4939_v48  ;;  %v15897_v39 = vadd.f32 %v20542_v1, %v4940_v12  ;;  %v18700_v62 = vrot.slane %v15874_v55, 5  ;;  %v20543_v37 = vrot.slane %v15749_v24, 5 }
 0x444   : > { %20539 = vst [vmem:[#allocation337_spill] sm:$0xff] %v15888_v30  ;;  %v20546_v2 = vrot.slane %v20545_v16, 2  ;;  %v4763_v9 = vmul.f32 %v9670_v25, %v20399_v61  ;;  %v9669_v41 = vunpack.i.l.bf16 %v9668_v47  ;;  %v15917_v48 = vsel %vm7388_vm5, %v18696_v19, %v18694_v35  ;;  %v20564_v30 = vld [vmem:[#allocation418_spill] sm:$0xff] }
 0x445   : > { %20540 = vst [vmem:[#allocation222_spill] sm:$0xff] %v15890_v5  ;;  %v15906_v36 = vsel %vm6709_vm4, %v18697_v52, %v20543_v37  ;;  %v9262_v0 = vunpack.i.l.bf16 %v9261_v58  ;;  %v4183_v1 = vrot.slane %v4084_v50, 3  ;;  %v15929_v47 = vsel %vm6709_vm4, %v18700_v62, %v18699_v13  ;;  %v20552_v50 = vld [vmem:[#allocation164_spill] sm:$0xff]  ;;  %v20554_v13 = vld [vmem:[#allocation417_spill] sm:$0xff] }
 0x446   : > { %20544 = vst [vmem:[#allocation116_spill] sm:$0xff] %v15906_v36  ;;  %v3219_v54 = vsel %vm2236_vm1, %v3216_v6, %v20546_v2  ;;  %v3117_v37 = vmul.f32 %v9669_v41, %v20401_v53  ;;  %v4083_v16 = vmul.f32 %v9669_v41, %v20402_v23  ;;  %v4762_v25 = vmul.f32 %v9669_v41, %v20399_v61  ;;  %v20553_v41 = vld [vmem:[#allocation50_spill] sm:$0xff] }
 0x447   : > { %20547 = vst [vmem:[#allocation389_spill] sm:$0xff] %v15917_v48  ;;  %v3301_v14 = vadd.f32 %v3219_v54, %v20548_v29  ;;  %v15932_v2 = vmul.f32 %v9288_v43, %v15570_v20  ;;  %v20551_v29 = vld [vmem:[#allocation235_spill] sm:$0xff]  ;;  %v4862_v63 = vrot.slane %v4763_v9, 4  ;;  %v9263_v36 = vunpack.i.h.bf16 %v9261_v58  ;;  %v20559_v58 = vld [vmem:[#allocation365_spill] sm:$0xff] }
 0x448   : > { %20549 = vst [vmem:[#allocation246_spill] sm:$0xff] %v15929_v47  ;;  %v5146_v35 = vadd.f32 %v20552_v50, %v20551_v29  ;;  %v3214_v19 = vrot.slane %v3117_v37, 2  ;;  %v4181_v52 = vrot.slane %v4083_v16, 3  ;;  %v4860_v12 = vrot.slane %v4762_v25, 4  ;;  %v20556_v47 = vld [vmem:[#allocation68_spill] sm:$0xff]  ;;  %v20558_v16 = vld [vmem:[#allocation39_spill] sm:$0xff] }
 0x449   : > { %v3669_v54 = vadd.f32 %v20550_v60, %v3301_v14  ;;  %v5187_v5 = vmul.f32 %v9262_v0, %v19997_v34  ;;  %v20555_v62 = vrot.slane %v20554_v13, 3  ;;  %v20557_v27 = vrot.slane %v20556_v47, 2  ;;  %v20560_v0 = vld [vmem:[#allocation2_spill] sm:$0xff] }
 0x44a   : > { %v3217_v14 = vsel %vm2236_vm1, %v3214_v19, %v3216_v6  ;;  %v4184_v9 = vsel %vm4133_vm2, %v4181_v52, %v4183_v1  ;;  %9526 = vperm.xlu2 %9508, %v20560_v0   ;;  %v4863_v13 = vsel %vm4812_vm3, %v4860_v12, %v4862_v63  ;;  %v9299_v29 = vunpack.i.h.bf16 %v9297_v18  ;;  %v20561_v50 = vld [vmem:[#allocation210_spill] sm:$0xff]  ;;  %v20563_v6 = vld [vmem:[#allocation135_spill] sm:$0xff] }
 0x44b   : > { %v4037_v48 = vadd.f32 %v20553_v41, %v3669_v54  ;;  %v4186_v43 = vsel %vm4133_vm2, %v4183_v1, %v20555_v62  ;;  %v3215_v60 = vsel %vm2236_vm1, %v20557_v27, %v3214_v19  ;;  %v3300_v54 = vadd.f32 %v3217_v14, %v20559_v58  ;;  %v20562_v41 = vld [vmem:[#allocation245_spill] sm:$0xff]  ;;  %v20571_v0 = vld [vmem:[#allocation59_spill] sm:$0xff] }
 0x44c   : > { %v3299_v25 = vadd.f32 %v3215_v60, %v20558_v16  ;;  %v5261_v62 = vrot.slane %v5187_v5, 4  ;;  %v9298_v47 = vunpack.i.l.bf16 %v9297_v18  ;;  %v20565_v37 = vrot.slane %v20564_v30, 4  ;;  %v20566_v16 = vld [vmem:[#allocation330_spill] sm:$0xff]  ;;  %v20572_v30 = vld [vmem:[#allocation19_spill] sm:$0xff] }
 0x44d   : > { %v4268_v34 = vadd.f32 %v4186_v43, %v4037_v48  ;;  %v3668_v19 = vadd.f32 %v20562_v41, %v3300_v54  ;;  %v15959_v14 = vmul.f32 %v9263_v36, %v20566_v16  ;;  %v20568_v48 = vld [vmem:[#allocation15_spill] sm:$0xff]  ;;  %v15965_v5 = vmul.f32 %v9299_v29, %v15462_v44  ;;  %9521 = vperm.xlu1 %9519, %v20572_v30  }
 0x44e   : > { %v3667_v27 = vadd.f32 %v20561_v50, %v3299_v25  ;;  %v4865_v60 = vsel %vm4812_vm3, %v4862_v63, %v20565_v37  ;;  %v20569_v43 = vrot.slane %v20568_v48, 4  ;;  %v20570_v25 = vld [vmem:[#allocation174_spill] sm:$0xff]  ;;  %v9673_v63 = vpop.permute.xlu0 %9672  ;;  %v20573_v37 = vld [vmem:[#allocation340_spill] sm:$0xff]  ;;  %v20575_v48 = vld [vmem:[#allocation331_spill] sm:$0xff] }
 0x44f   : > { %v4492_v1 = vadd.f32 %v20563_v6, %v4268_v34  ;;  %20567 = vst [vmem:[#allocation248_spill] sm:$0xff] %v15959_v14  ;;  %v4036_v54 = vadd.f32 %v20570_v25, %v3668_v19  ;;  %v20574_v41 = vrot.slane %v20573_v37, 3  ;;  %v15975_v16 = vmul.f32 %v9263_v36, %v20575_v48  ;;  %v20582_v37 = vld [vmem:[#allocation133_spill] sm:$0xff]  ;;  %v20598_v14 = vld [vmem:[#allocation360_spill] sm:$0xff] }
 0x450   : > { %v5263_v58 = vsel %vm4812_vm3, %v5261_v62, %v20569_v43  ;;  %v4035_v18 = vadd.f32 %v15725_v42, %v3667_v27  ;;  %v18701_v62 = vrot.slane %v15965_v5, 4  ;;  %v15979_v43 = vmul.f32 %v9298_v47, %v15462_v44 }
 0x451   : > { %v4716_v34 = vadd.f32 %v20571_v0, %v4492_v1  ;;  %v5370_v50 = vadd.f32 %v5263_v58, %v5146_v35  ;;  %v4182_v6 = vsel %vm4133_vm2, %v20574_v41, %v4181_v52  ;;  %20576 = vst [vmem:[#allocation17_spill] sm:$0xff] %v15975_v16  ;;  %v4267_v27 = vadd.f32 %v4184_v9, %v4036_v54  ;;  %v20577_v1 = vld [vmem:[#allocation258_spill] sm:$0xff] }
 0x452   : > { %v4266_v42 = vadd.f32 %v4182_v6, %v4035_v18  ;;  %v20579_v58 = vrot.slane %v15880_v59, 6  ;;  %v20580_v25 = vrot.slane %v15932_v2, 6  ;;  %v18702_v0 = vrot.slane %v15979_v43, 4  ;;  %v20583_v18 = vld [vmem:[#allocation126_spill] sm:$0xff] }
 0x453   : > { %v4947_v19 = vadd.f32 %v4865_v60, %v4716_v34  ;;  %v15982_v35 = vadd.f32 %v20577_v1, %v5370_v50  ;;  %v9675_v30 = vunpack.i.h.bf16 %v9673_v63  ;;  %v4491_v9 = vadd.f32 %v20583_v18, %v4267_v27  ;;  %v20584_v60 = vld [vmem:[#allocation142_spill] sm:$0xff]  ;;  %v20589_v18 = vld [vmem:[#allocation160_spill] sm:$0xff] }
 0x454   : > { %v15989_v52 = vsel %vm7388_vm5, %v20580_v25, %v20579_v58  ;;  %v4490_v41 = vadd.f32 %v20582_v37, %v4266_v42  ;;  %v9674_v34 = vunpack.i.l.bf16 %v9673_v63  ;;  %v20586_v50 = vld [vmem:[#allocation346_spill] sm:$0xff]  ;;  %v5775_v25 = vsel %vm4812_vm3, %v18702_v0, %v18701_v62  ;;  %v20588_v37 = vld [vmem:[#allocation368_spill] sm:$0xff] }
 0x455   : > { %20578 = vst [vmem:[#allocation30_spill] sm:$0xff] %v15982_v35  ;;  %v15996_v54 = vadd.f32 %v20584_v60, %v4947_v19  ;;  %v20587_v6 = vrot.slane %v20586_v50, 4  ;;  %v3124_v42 = vmul.f32 %v9675_v30, %v20401_v53  ;;  %v4715_v19 = vadd.f32 %v20588_v37, %v4491_v9  ;;  %v20591_v9 = vld [vmem:[#allocation24_spill] sm:$0xff] }
 0x456   : > { %20581 = vst [vmem:[#allocation338_spill] sm:$0xff] %v15989_v52  ;;  %v4714_v27 = vadd.f32 %v15732_v17, %v4490_v41  ;;  %v16011_v63 = vadd.f32 %v5775_v25, %v20589_v18  ;;  %v4090_v60 = vmul.f32 %v9675_v30, %v20402_v23  ;;  %v16018_v50 = vmul.f32 %v9299_v29, %v15570_v20 }
 0x457   : > { %20585 = vst [vmem:[#allocation383_spill] sm:$0xff] %v15996_v54  ;;  %v4861_v1 = vsel %vm4812_vm3, %v20587_v6, %v4860_v12  ;;  %v16015_v12 = vmul.f32 %v9299_v29, %v15497_v45  ;;  %v3228_v6 = vrot.slane %v3124_v42, 2  ;;  %v4769_v58 = vmul.f32 %v9675_v30, %v20399_v61  ;;  %v20593_v42 = vld [vmem:[#allocation284_spill] sm:$0xff]  ;;  %v20595_v30 = vld [vmem:[#allocation66_spill] sm:$0xff] }
 0x458   : > { %20590 = vst [vmem:[#allocation237_spill] sm:$0xff] %v16011_v63  ;;  %v4945_v36 = vadd.f32 %v4861_v1, %v4714_v27  ;;  %v4946_v62 = vadd.f32 %v4863_v13, %v4715_v19  ;;  %v16022_v17 = vmul.f32 %v9298_v47, %v15497_v45  ;;  %v3123_v41 = vmul.f32 %v9674_v34, %v20401_v53  ;;  %v9307_v63 = vpop.permute.xlu2 %9306 }
 0x459   : > { %v20592_v25 = vrot.slane %v20591_v9, 2  ;;  %v4195_v18 = vrot.slane %v4090_v60, 3  ;;  %v4089_v0 = vmul.f32 %v9674_v34, %v20402_v23  ;;  %v4768_v29 = vmul.f32 %v9674_v34, %v20399_v61  ;;  %v20597_v9 = vld [vmem:[#allocation4_spill] sm:$0xff] }
 0x45a   : > { %v16031_v52 = vadd.f32 %v20593_v42, %v4945_v36  ;;  %v16034_v13 = vadd.f32 %v20595_v30, %v4946_v62  ;;  %v4874_v1 = vrot.slane %v4769_v58, 4  ;;  %v3226_v27 = vrot.slane %v3123_v41, 2  ;;  %v20600_v42 = vld [vmem:[#allocation10_spill] sm:$0xff]  ;;  %v20601_v62 = vld [vmem:[#allocation269_spill] sm:$0xff] }
 0x45b   : > { %v3231_v37 = vsel %vm2236_vm1, %v3228_v6, %v20592_v25  ;;  %v16037_v19 = vmul.f32 %v9298_v47, %v15570_v20  ;;  %v4193_v25 = vrot.slane %v4089_v0, 3  ;;  %v4872_v60 = vrot.slane %v4768_v29, 4  ;;  %v20602_v58 = vld [vmem:[#allocation117_spill] sm:$0xff] }
 0x45c   : > { %20594 = vst [vmem:[#allocation137_spill] sm:$0xff] %v16031_v52  ;;  %v3307_v16 = vadd.f32 %v3231_v37, %v20597_v9  ;;  %v20599_v48 = vrot.slane %v20598_v14, 2  ;;  %v3229_v35 = vsel %vm2236_vm1, %v3226_v27, %v3228_v6  ;;  %v9309_v36 = vunpack.i.h.bf16 %v9307_v63  ;;  %v20605_v37 = vld [vmem:[#allocation364_spill] sm:$0xff]  ;;  %v20607_v6 = vld [vmem:[#allocation99_spill] sm:$0xff] }
 0x45d   : > { %20596 = vst [vmem:[#allocation390_spill] sm:$0xff] %v16034_v13  ;;  %v3306_v30 = vadd.f32 %v3229_v35, %v20601_v62  ;;  %v20603_v13 = vld [vmem:[#allocation363_spill] sm:$0xff]  ;;  %v4196_v0 = vsel %vm4133_vm2, %v4193_v25, %v4195_v18  ;;  %v20606_v29 = vrot.slane %v20605_v37, 4  ;;  %9536 = vperm.xlu2 %9508, %v20607_v6   ;;  %v9272_v37 = vpop.permute.xlu1 %9271 }
 0x45e   : > { %v3227_v34 = vsel %vm2236_vm1, %v20599_v48, %v3226_v27  ;;  %v3675_v41 = vadd.f32 %v20602_v58, %v3307_v16  ;;  %v20604_v47 = vrot.slane %v20603_v13, 3  ;;  %v4875_v48 = vsel %vm4812_vm3, %v4872_v60, %v4874_v1  ;;  %v20609_v16 = vld [vmem:[#allocation103_spill] sm:$0xff]  ;;  %v20610_v13 = vld [vmem:[#allocation76_spill] sm:$0xff] }
 0x45f   : > { %v3305_v54 = vadd.f32 %v3227_v34, %v20600_v42  ;;  %v4873_v14 = vsel %vm4812_vm3, %v20606_v29, %v4872_v60  ;;  %v16057_v27 = vmul.f32 %v9309_v36, %v15462_v44  ;;  %v3674_v34 = vadd.f32 %v20610_v13, %v3306_v30 }
 0x460   : > { %v4194_v52 = vsel %vm4133_vm2, %v20604_v47, %v4193_v25  ;;  %v4043_v42 = vadd.f32 %v15661_v46, %v3675_v41  ;;  %v20611_v25 = vld [vmem:[#allocation127_spill] sm:$0xff]  ;;  %v16067_v47 = vmul.f32 %v9309_v36, %v15497_v45  ;;  %v9308_v60 = vunpack.i.l.bf16 %v9307_v63  ;;  %v20617_v46 = vld [vmem:[#allocation32_spill] sm:$0xff]  ;;  %v20618_v41 = vld [vmem:[#allocation77_spill] sm:$0xff] }
 0x461   : > { %20608 = vst [vmem:[#allocation391_spill] sm:$0xff] %v16057_v27  ;;  %v3673_v9 = vadd.f32 %v20609_v16, %v3305_v54  ;;  %v20612_v62 = vrot.slane %v20611_v25, 3  ;;  %v4042_v35 = vadd.f32 %v15688_v56, %v3674_v34  ;;  %v20613_v16 = vld [vmem:[#allocation436_spill] sm:$0xff]  ;;  %v20614_v25 = vld [vmem:[#allocation149_spill] sm:$0xff]  ;;  %v9274_v29 = vunpack.i.h.bf16 %v9272_v37 }
 0x462   : > { %9531 = vperm.xlu1 %9519, %v20613_v16  }
 0x463   : > { %v4198_v58 = vsel %vm4133_vm2, %v4195_v18, %v20612_v62  ;;  %v4041_v6 = vadd.f32 %v15685_v40, %v3673_v9  ;;  %v16076_v18 = vmul.f32 %v9308_v60, %v15462_v44  ;;  %v4273_v13 = vadd.f32 %v4196_v0, %v4042_v35  ;;  %v20615_v40 = vld [vmem:[#allocation420_spill] sm:$0xff] }
 0x464   : > { %v4274_v54 = vadd.f32 %v4198_v58, %v4043_v42  ;;  %v20616_v9 = vrot.slane %v20615_v40, 4  ;;  %v16085_v42 = vmul.f32 %v9309_v36, %v15570_v20  ;;  %v16092_v0 = vmul.f32 %v9274_v29, %v15462_v44 }
 0x465   : > { %v4272_v63 = vadd.f32 %v4194_v52, %v4041_v6  ;;  %v18705_v58 = vrot.slane %v16076_v18, 4  ;;  %v4497_v16 = vadd.f32 %v20618_v41, %v4273_v13  ;;  %v20619_v35 = vrot.slane %v16057_v27, 4  ;;  %v20624_v27 = vld [vmem:[#allocation85_spill] sm:$0xff] }
 0x466   : > { %v4498_v62 = vadd.f32 %v20614_v25, %v4274_v54  ;;  %v4877_v56 = vsel %vm4812_vm3, %v4874_v1, %v20616_v9  ;;  %v16100_v36 = vmul.f32 %v9308_v60, %v15497_v45  ;;  %v16103_v6 = vmul.f32 %v9274_v29, %v15497_v45  ;;  %v20622_v9 = vld [vmem:[#allocation265_spill] sm:$0xff] }
 0x467   : > { %v4496_v30 = vadd.f32 %v20617_v46, %v4272_v63  ;;  %v5787_v1 = vsel %vm4812_vm3, %v18705_v58, %v20619_v35  ;;  %v9273_v54 = vunpack.i.l.bf16 %v9272_v37  ;;  %v20620_v63 = vld [vmem:[#allocation80_spill] sm:$0xff]  ;;  %v5750_v25 = vrot.slane %v16092_v0, 4  ;;  %v20623_v35 = vld [vmem:[#allocation110_spill] sm:$0xff] }
 0x468   : > { %v4722_v52 = vadd.f32 %v15668_v4, %v4498_v62  ;;  %v4721_v4 = vadd.f32 %v15698_v10, %v4497_v16  ;;  %v16108_v13 = vadd.f32 %v5787_v1, %v20620_v63  ;;  %v18708_v62 = vrot.slane %v16103_v6, 5 }
 0x469   : > { %v4720_v46 = vadd.f32 %v15693_v31, %v4496_v30  ;;  %v16113_v40 = vmul.f32 %v9274_v29, %v15570_v20  ;;  %v5372_v58 = vadd.f32 %v20623_v35, %v20622_v9  ;;  %v16121_v10 = vmul.f32 %v9308_v60, %v15570_v20  ;;  %v9678_v30 = vpop.permute.xlu0 %9677  ;;  %v20630_v60 = vld [vmem:[#allocation437_spill] sm:$0xff] }
 0x46a   : > { %v4953_v41 = vadd.f32 %v4877_v56, %v4722_v52  ;;  %20621 = vst [vmem:[#allocation119_spill] sm:$0xff] %v16108_v13  ;;  %v4952_v37 = vadd.f32 %v4875_v48, %v4721_v4  ;;  %v20626_v56 = vrot.slane %v15746_v38, 4  ;;  %v20627_v52 = vrot.slane %v15841_v3, 5  ;;  %v20632_v38 = vld [vmem:[#allocation62_spill] sm:$0xff] }
 0x46b   : > { %v4951_v34 = vadd.f32 %v4873_v14, %v4720_v46  ;;  %v18707_v14 = vrot.slane %v16113_v40, 6  ;;  %v5672_v48 = vmul.f32 %v9273_v54, %v15462_v44  ;;  %v16145_v3 = vmul.f32 %v9273_v54, %v15497_v45 }
 0x46c   : > { %v16118_v31 = vadd.f32 %v20624_v27, %v4953_v41  ;;  %v5753_v16 = vsel %vm4812_vm3, %v5750_v25, %v20626_v56  ;;  %v16131_v29 = vsel %vm6709_vm4, %v18708_v62, %v20627_v52  ;;  %v20629_v27 = vld [vmem:[#allocation298_spill] sm:$0xff]  ;;  %v16139_v1 = vadd.f32 %v20630_v60, %v4952_v37  ;;  %v20637_v60 = vld [vmem:[#allocation367_spill] sm:$0xff] }
 0x46d   : > { %20628 = vst [vmem:[#allocation35_spill] sm:$0xff] %v16131_v29  ;;  %v16136_v0 = vadd.f32 %v20629_v27, %v4951_v34  ;;  %v16142_v46 = vadd.f32 %v5753_v16, %v20632_v38  ;;  %v20633_v4 = vrot.slane %v15850_v33, 6  ;;  %v5748_v63 = vrot.slane %v5672_v48, 4  ;;  %v20635_v56 = vld [vmem:[#allocation150_spill] sm:$0xff]  ;;  %v20636_v16 = vld [vmem:[#allocation72_spill] sm:$0xff] }
 0x46e   : > { %20625 = vst [vmem:[#allocation384_spill] sm:$0xff] %v16118_v31  ;;  %v16155_v34 = vmul.f32 %v9273_v54, %v15570_v20  ;;  %v9680_v9 = vunpack.i.h.bf16 %v9678_v30  ;;  %v9679_v37 = vunpack.i.l.bf16 %v9678_v30  ;;  %v2829_v52 = vadd.f32 %v20636_v16, %v20635_v56  ;;  %v20671_v31 = vld [vmem:[#allocation239_spill] sm:$0xff] }
 0x46f   : > { %20631 = vst [vmem:[#allocation34_spill] sm:$0xff] %v16139_v1  ;;  %v16152_v41 = vsel %vm7388_vm5, %v18707_v14, %v20633_v4  ;;  %v20638_v33 = vrot.slane %v20637_v60, 4  ;;  %v9317_v14 = vpop.permute.xlu2 %9316  ;;  %v20640_v30 = vrot.slane %v16145_v3, 5  ;;  %v20641_v56 = vrot.slane %v15588_v21, 5  ;;  %v20643_v60 = vld [vmem:[#allocation152_spill] sm:$0xff] }
 0x470   : > { %20634 = vst [vmem:[#allocation187_spill] sm:$0xff] %v16152_v41  ;;  %v18709_v4 = vrot.slane %v16155_v34, 6  ;;  %v4095_v48 = vmul.f32 %v9680_v9, %v20402_v23  ;;  %9551 = vperm.xlu2 %9508, %v20643_v60   ;;  %v20645_v23 = vrot.slane %v16022_v17, 5  ;;  %v3129_v60 = vmul.f32 %v9679_v37, %v20401_v53  ;;  %v20664_v41 = vld [vmem:[#allocation379_spill] sm:$0xff] }
 0x471   : > { %v5749_v38 = vsel %vm4812_vm3, %v20638_v33, %v5748_v63  ;;  %v16175_v16 = vsel %vm6709_vm4, %v20641_v56, %v20640_v30  ;;  %v20644_v33 = vrot.slane %v16015_v12, 5  ;;  %v4774_v30 = vmul.f32 %v9680_v9, %v20399_v61  ;;  %v9282_v56 = vpop.permute.xlu1 %9281  ;;  %v20655_v61 = vld [vmem:[#allocation378_spill] sm:$0xff] }
 0x472   : > { %v16168_v35 = vadd.f32 %v5749_v38, %v5372_v58  ;;  %20642 = vst [vmem:[#allocation162_spill] sm:$0xff] %v16175_v16  ;;  %v20647_v58 = vrot.slane %v15596_v57, 6  ;;  %v4205_v21 = vrot.slane %v4095_v48, 3  ;;  %v9319_v62 = vunpack.i.h.bf16 %v9317_v14 }
 0x473   : > { %v16183_v27 = vsel %vm6709_vm4, %v20645_v23, %v20644_v33  ;;  %v9318_v54 = vunpack.i.l.bf16 %v9317_v14  ;;  %v20649_v13 = vrot.slane %v16018_v50, 6  ;;  %v20650_v33 = vrot.slane %v16037_v19, 6 }
 0x474   : > { %20639 = vst [vmem:[#allocation392_spill] sm:$0xff] %v16168_v35  ;;  %v16190_v38 = vsel %vm7388_vm5, %v20647_v58, %v18709_v4  ;;  %v20652_v57 = vrot.slane %v16067_v47, 5  ;;  %v20653_v58 = vrot.slane %v16100_v36, 5  ;;  %v20656_v9 = vrot.slane %v20655_v61, 3  ;;  %v9683_v35 = vpop.permute.xlu0 %9682 }
 0x475   : > { %20646 = vst [vmem:[#allocation115_spill] sm:$0xff] %v16183_v27  ;;  %v16199_v23 = vsel %vm7388_vm5, %v20650_v33, %v20649_v13  ;;  %v4884_v37 = vrot.slane %v4774_v30, 4  ;;  %v20657_v14 = vrot.slane %v16085_v42, 6  ;;  %v20658_v4 = vrot.slane %v16121_v10, 6 }
 0x476   : > { %20648 = vst [vmem:[#allocation57_spill] sm:$0xff] %v16190_v38  ;;  %v16206_v48 = vsel %vm6709_vm4, %v20653_v58, %v20652_v57  ;;  %v4206_v53 = vsel %vm4133_vm2, %v20656_v9, %v4205_v21  ;;  %v3238_v13 = vrot.slane %v3129_v60, 2  ;;  %v16219_v33 = vmul.f32 %v9319_v62, %v15462_v44  ;;  %v20662_v58 = vld [vmem:[#allocation28_spill] sm:$0xff] }
 0x477   : > { %20651 = vst [vmem:[#allocation188_spill] sm:$0xff] %v16199_v23  ;;  %v16216_v27 = vsel %vm7388_vm5, %v20658_v4, %v20657_v14  ;;  %v20661_v23 = vld [vmem:[#allocation20_spill] sm:$0xff]  ;;  %v9284_v57 = vunpack.i.h.bf16 %v9282_v56  ;;  %v20665_v21 = vrot.slane %v20664_v41, 4  ;;  %v16228_v9 = vmul.f32 %v9319_v62, %v15497_v45 }
 0x478   : > { %20654 = vst [vmem:[#allocation123_spill] sm:$0xff] %v16206_v48  ;;  %9546 = vperm.xlu1 %9519, %v20661_v23   ;;  %v20663_v48 = vld [vmem:[#allocation419_spill] sm:$0xff]  ;;  %v16231_v4 = vmul.f32 %v9318_v54, %v15462_v44  ;;  %v5751_v60 = vsel %vm4812_vm3, %v5748_v63, %v5750_v25  ;;  %v20666_v14 = vld [vmem:[#allocation376_spill] sm:$0xff]  ;;  %v18710_v29 = vrot.slane %v16219_v33, 4  ;;  %v9283_v38 = vunpack.i.l.bf16 %v9282_v56 }
 0x479   : > { %20659 = vst [vmem:[#allocation202_spill] sm:$0xff] %v16216_v27  ;;  %v5373_v61 = vadd.f32 %v20663_v48, %v20662_v58  ;;  %v4885_v30 = vsel %vm4812_vm3, %v20665_v21, %v4884_v37  ;;  %v20667_v27 = vrot.slane %v20666_v14, 2  ;;  %v16239_v41 = vmul.f32 %v9319_v62, %v15570_v20 }
 0x47a   : > { %20660 = vst [vmem:[#allocation84_spill] sm:$0xff] %v16219_v33  ;;  %v18711_v37 = vrot.slane %v16231_v4, 4  ;;  %v16243_v58 = vmul.f32 %v9318_v54, %v15497_v45  ;;  %v5679_v21 = vmul.f32 %v9284_v57, %v15462_v44  ;;  %v16247_v25 = vmul.f32 %v9284_v57, %v15497_v45 }
 0x47b   : > { %v3239_v23 = vsel %vm2236_vm1, %v20667_v27, %v3238_v13  ;;  %v16250_v63 = vmul.f32 %v9284_v57, %v15570_v20  ;;  %v20668_v27 = vld [vmem:[#allocation87_spill] sm:$0xff]  ;;  %v16262_v16 = vmul.f32 %v9318_v54, %v15570_v20  ;;  %v6644_v62 = vmul.f32 %v9283_v38, %v15497_v45 }
 0x47c   : > { %v3311_v48 = vadd.f32 %v3239_v23, %v2829_v52  ;;  %v20669_v13 = vld [vmem:[#allocation283_spill] sm:$0xff]  ;;  %v20670_v52 = vld [vmem:[#allocation112_spill] sm:$0xff]  ;;  %v5799_v23 = vsel %vm4812_vm3, %v18711_v37, %v18710_v29  ;;  %v5762_v1 = vrot.slane %v5679_v21, 4  ;;  %v7323_v29 = vmul.f32 %v9283_v38, %v15570_v20 }
 0x47d   : > { %v5380_v56 = vadd.f32 %v20669_v13, %v20668_v27  ;;  %v16265_v57 = vadd.f32 %v5799_v23, %v20671_v31  ;;  %v6729_v27 = vrot.slane %v16247_v25, 5  ;;  %v20673_v54 = vrot.slane %v15860_v8, 4 }
 0x47e   : > { %v3679_v14 = vadd.f32 %v20670_v52, %v3311_v48  ;;  %v7408_v48 = vrot.slane %v16250_v63, 6  ;;  %v5678_v52 = vmul.f32 %v9283_v38, %v15462_v44  ;;  %v20674_v31 = vrot.slane %v15874_v55, 5 }
 0x47f   : > { %20672 = vst [vmem:[#allocation109_spill] sm:$0xff] %v16265_v57  ;;  %v5765_v37 = vsel %vm4812_vm3, %v5762_v1, %v20673_v54  ;;  %v20676_v25 = vrot.slane %v15932_v2, 6  ;;  %v6727_v8 = vrot.slane %v6644_v62, 5  ;;  %v20679_v2 = vld [vmem:[#allocation299_spill] sm:$0xff] }
 0x480   : > { %v4047_v13 = vadd.f32 %v15846_v22, %v3679_v14  ;;  %v16279_v21 = vsel %vm6709_vm4, %v6729_v27, %v20674_v31  ;;  %v9685_v22 = vunpack.i.h.bf16 %v9683_v35  ;;  %v5760_v57 = vrot.slane %v5678_v52, 4  ;;  %v20680_v52 = vld [vmem:[#allocation111_spill] sm:$0xff] }
 0x481   : > { %20675 = vst [vmem:[#allocation290_spill] sm:$0xff] %v16279_v21  ;;  %v16284_v63 = vsel %vm7388_vm5, %v7408_v48, %v20676_v25  ;;  %v16287_v38 = vadd.f32 %v5765_v37, %v5380_v56 }
 0x482   : > { %20677 = vst [vmem:[#allocation271_spill] sm:$0xff] %v16284_v63  ;;  %v4278_v14 = vadd.f32 %v4206_v53, %v4047_v13  ;;  %v5677_v54 = vmul.f32 %v9685_v22, %v15462_v44  ;;  %v16291_v55 = vmul.f32 %v9685_v22, %v15497_v45  ;;  %v16294_v31 = vmul.f32 %v9685_v22, %v15570_v20 }
 0x483   : > { %20678 = vst [vmem:[#allocation277_spill] sm:$0xff] %v16287_v38  ;;  %v5763_v25 = vsel %vm4812_vm3, %v5760_v57, %v5762_v1  ;;  %v7406_v63 = vrot.slane %v7323_v29, 6  ;;  %v9684_v53 = vunpack.i.l.bf16 %v9683_v35  ;;  %v9327_v1 = vpop.permute.xlu2 %9326  ;;  %v16324_v13 = vadd.f32 %v5751_v60, %v5373_v61 }
 0x484   : > { %v4502_v21 = vadd.f32 %v20679_v2, %v4278_v14  ;;  %v16300_v37 = vadd.f32 %v5763_v25, %v20680_v52  ;;  %v5758_v56 = vrot.slane %v5677_v54, 4  ;;  %v18713_v62 = vrot.slane %v16291_v55, 5  ;;  %v20683_v25 = vld [vmem:[#allocation354_spill] sm:$0xff] }
 0x485   : > { %v18714_v38 = vrot.slane %v16294_v31, 6  ;;  %v5676_v22 = vmul.f32 %v9684_v53, %v15462_v44  ;;  %v16307_v14 = vmul.f32 %v9684_v53, %v15497_v45  ;;  %v7321_v29 = vmul.f32 %v9684_v53, %v15570_v20 }
 0x486   : > { %20681 = vst [vmem:[#allocation104_spill] sm:$0xff] %v16300_v37  ;;  %v4726_v23 = vadd.f32 %v15827_v51, %v4502_v21  ;;  %v5761_v35 = vsel %vm4812_vm3, %v5758_v56, %v5760_v57  ;;  %v16314_v54 = vsel %vm6709_vm4, %v18713_v62, %v6727_v8  ;;  %v20686_v57 = vld [vmem:[#allocation247_spill] sm:$0xff]  ;;  %v9329_v33 = vunpack.i.h.bf16 %v9327_v1  ;;  %v20687_v62 = vld [vmem:[#allocation361_spill] sm:$0xff] }
 0x487   : > { %20682 = vst [vmem:[#allocation399_spill] sm:$0xff] %v16314_v54  ;;  %v16317_v51 = vadd.f32 %v5761_v35, %v20683_v25  ;;  %v16322_v21 = vsel %vm7388_vm5, %v18714_v38, %v7406_v63  ;;  %v5756_v52 = vrot.slane %v5676_v22, 4  ;;  %9566 = vperm.xlu2 %9508, %v20686_v57   ;;  %v9328_v37 = vunpack.i.l.bf16 %v9327_v1  ;;  %v20693_v1 = vld [vmem:[#allocation97_spill] sm:$0xff] }
 0x488   : > { %v4957_v2 = vadd.f32 %v4885_v30, %v4726_v23  ;;  %20685 = vst [vmem:[#allocation63_spill] sm:$0xff] %v16322_v21  ;;  %v20688_v30 = vrot.slane %v15703_v28, 4  ;;  %v6723_v35 = vrot.slane %v16307_v14, 5  ;;  %v20689_v25 = vrot.slane %v16103_v6, 5  ;;  %v9292_v14 = vpop.permute.xlu1 %9291 }
 0x489   : > { %20684 = vst [vmem:[#allocation130_spill] sm:$0xff] %v16317_v51  ;;  %v20690_v61 = vrot.slane %v16145_v3, 5  ;;  %v20691_v53 = vrot.slane %v16113_v40, 6  ;;  %v20692_v22 = vrot.slane %v16155_v34, 6  ;;  %v5759_v28 = vsel %vm4812_vm3, %v5756_v52, %v5758_v56 }
 0x48a   : > { %v16329_v54 = vadd.f32 %v20687_v62, %v4957_v2  ;;  %v5757_v23 = vsel %vm4812_vm3, %v20688_v30, %v5756_v52  ;;  %v20695_v6 = vrot.slane %v16228_v9, 5  ;;  %v20696_v3 = vrot.slane %v16243_v58, 5 }
 0x48b   : > { %v16340_v60 = vsel %vm6709_vm4, %v20690_v61, %v20689_v25  ;;  %v16347_v62 = vsel %vm7388_vm5, %v20692_v22, %v20691_v53  ;;  %v16351_v2 = vadd.f32 %v5757_v23, %v20693_v1  ;;  %v20698_v40 = vrot.slane %v16239_v41, 6  ;;  %v20702_v23 = vld [vmem:[#allocation22_spill] sm:$0xff]  ;;  %v20704_v1 = vld [vmem:[#allocation157_spill] sm:$0xff] }
 0x48c   : > { %v16358_v57 = vsel %vm6709_vm4, %v20696_v3, %v20695_v6  ;;  %v20699_v34 = vrot.slane %v16262_v16, 6  ;;  %v16368_v56 = vsel %vm6709_vm4, %v6727_v8, %v6729_v27  ;;  %v16371_v52 = vmul.f32 %v9329_v33, %v15462_v44  ;;  %9561 = vperm.xlu1 %9519, %v20702_v23  }
 0x48d   : > { %20694 = vst [vmem:[#allocation273_spill] sm:$0xff] %v16351_v2  ;;  %v16375_v25 = vsel %vm7388_vm5, %v7406_v63, %v7408_v48  ;;  %v7402_v61 = vrot.slane %v7321_v29, 6  ;;  %v16378_v53 = vmul.f32 %v9329_v33, %v15497_v45  ;;  %v16381_v22 = vmul.f32 %v9328_v37, %v15462_v44 }
 0x48e   : > { %20697 = vst [vmem:[#allocation252_spill] sm:$0xff] %v16358_v57  ;;  %v16365_v30 = vsel %vm7388_vm5, %v20699_v34, %v20698_v40  ;;  %v16384_v6 = vadd.f32 %v5759_v28, %v20704_v1  ;;  %v20706_v27 = vrot.slane %v15749_v24, 5  ;;  %v18715_v3 = vrot.slane %v16371_v52, 4  ;;  %v20708_v1 = vld [vmem:[#allocation26_spill] sm:$0xff] }
 0x48f   : > { %20700 = vst [vmem:[#allocation132_spill] sm:$0xff] %v16365_v30  ;;  %v9294_v40 = vunpack.i.h.bf16 %v9292_v14  ;;  %v16393_v48 = vmul.f32 %v9329_v33, %v15570_v20  ;;  %v18716_v63 = vrot.slane %v16381_v22, 4  ;;  %v16397_v29 = vmul.f32 %v9328_v37, %v15497_v45  ;;  %v20709_v30 = vld [vmem:[#allocation21_spill] sm:$0xff] }
 0x490   : > { %20701 = vst [vmem:[#allocation128_spill] sm:$0xff] %v16368_v56  ;;  %v16389_v8 = vsel %vm6709_vm4, %v20706_v27, %v6723_v35  ;;  %v9293_v34 = vunpack.i.l.bf16 %v9292_v14  ;;  %v5382_v27 = vadd.f32 %v20708_v1, %v15741_v26  ;;  %v16413_v14 = vmul.f32 %v9328_v37, %v15570_v20 }
 0x491   : > { %20703 = vst [vmem:[#allocation276_spill] sm:$0xff] %v16375_v25  ;;  %v5683_v28 = vmul.f32 %v9294_v40, %v15462_v44  ;;  %v6649_v23 = vmul.f32 %v9294_v40, %v15497_v45  ;;  %v16402_v24 = vmul.f32 %v9294_v40, %v15570_v20  ;;  %v5811_v33 = vsel %vm4812_vm3, %v18716_v63, %v18715_v3  ;;  %v9688_v25 = vpop.permute.xlu0 %9687  ;;  %v20710_v40 = vld [vmem:[#allocation218_spill] sm:$0xff] }
 0x492   : > { %20705 = vst [vmem:[#allocation292_spill] sm:$0xff] %v16384_v6  ;;  %v5383_v57 = vadd.f32 %v20709_v30, %v15735_v15  ;;  %v16418_v21 = vadd.f32 %v5811_v33, %v20710_v40  ;;  %v6648_v3 = vmul.f32 %v9293_v34, %v15497_v45  ;;  %v16425_v37 = vmul.f32 %v9293_v34, %v15570_v20 }
 0x493   : > { %20707 = vst [vmem:[#allocation272_spill] sm:$0xff] %v16389_v8  ;;  %v5770_v56 = vrot.slane %v5683_v28, 4  ;;  %v6737_v26 = vrot.slane %v6649_v23, 5  ;;  %v18717_v1 = vrot.slane %v16402_v24, 6  ;;  %v5682_v8 = vmul.f32 %v9293_v34, %v15462_v44  ;;  %v20717_v34 = vld [vmem:[#allocation253_spill] sm:$0xff] }
 0x494   : > { %20711 = vst [vmem:[#allocation279_spill] sm:$0xff] %v16418_v21  ;;  %v20712_v63 = vrot.slane %v15979_v43, 4  ;;  %v20713_v30 = vrot.slane %v16022_v17, 5  ;;  %v20715_v23 = vrot.slane %v16037_v19, 6  ;;  %v9690_v40 = vunpack.i.h.bf16 %v9688_v25 }
 0x495   : > { %v5768_v38 = vrot.slane %v5682_v8, 4  ;;  %v6735_v43 = vrot.slane %v6648_v3, 5  ;;  %v20718_v17 = vrot.slane %v16291_v55, 5  ;;  %v20720_v19 = vrot.slane %v15780_v32, 6 }
 0x496   : > { %v5773_v15 = vsel %vm4812_vm3, %v5770_v56, %v20712_v63  ;;  %v16433_v28 = vsel %vm6709_vm4, %v6737_v26, %v20713_v30  ;;  %v16440_v33 = vsel %vm7388_vm5, %v18717_v1, %v20715_v23  ;;  %v7414_v63 = vrot.slane %v16425_v37, 6  ;;  %v20722_v1 = vld [vmem:[#allocation14_spill] sm:$0xff] }
 0x497   : > { %20714 = vst [vmem:[#allocation11_spill] sm:$0xff] %v16433_v28  ;;  %v16443_v21 = vadd.f32 %v5773_v15, %v20717_v34  ;;  %v16449_v30 = vsel %vm6709_vm4, %v6723_v35, %v20718_v17  ;;  %v16454_v28 = vsel %vm7388_vm5, %v20720_v19, %v7402_v61  ;;  %v9689_v23 = vunpack.i.l.bf16 %v9688_v25 }
 0x498   : > { %20716 = vst [vmem:[#allocation138_spill] sm:$0xff] %v16440_v33  ;;  %v20723_v33 = vld [vmem:[#allocation287_spill] sm:$0xff]  ;;  %v20724_v15 = vrot.slane %v16294_v31, 6  ;;  %v20726_v55 = vrot.slane %v15854_v49, 4  ;;  %v20727_v32 = vrot.slane %v15868_v7, 5  ;;  %v20730_v31 = vrot.slane %v15880_v59, 6 }
 0x499   : > { %20719 = vst [vmem:[#allocation402_spill] sm:$0xff] %v16449_v30  ;;  %v5386_v8 = vadd.f32 %v20723_v33, %v20722_v1  ;;  %v5687_v1 = vmul.f32 %v9690_v40, %v15462_v44  ;;  %v9302_v33 = vpop.permute.xlu1 %9301  ;;  %v20732_v49 = vrot.slane %v16378_v53, 5  ;;  %v20733_v19 = vrot.slane %v16397_v29, 5  ;;  %v20735_v59 = vld [vmem:[#allocation385_spill] sm:$0xff] }
 0x49a   : > { %20721 = vst [vmem:[#allocation406_spill] sm:$0xff] %v16454_v28  ;;  %v16461_v3 = vsel %vm7388_vm5, %v7402_v61, %v20724_v15  ;;  %v5769_v35 = vsel %vm4812_vm3, %v20726_v55, %v5768_v38  ;;  %v16470_v34 = vsel %vm6709_vm4, %v20727_v32, %v6735_v43  ;;  %v16478_v61 = vsel %vm7388_vm5, %v20730_v31, %v7414_v63  ;;  %v20736_v28 = vld [vmem:[#allocation366_spill] sm:$0xff] }
 0x49b   : > { %20725 = vst [vmem:[#allocation144_spill] sm:$0xff] %v16461_v3  ;;  %v16473_v17 = vadd.f32 %v5769_v35, %v5382_v27  ;;  %v16486_v7 = vsel %vm6709_vm4, %v20733_v19, %v20732_v49  ;;  %v5771_v15 = vsel %vm4812_vm3, %v5768_v38, %v5770_v56  ;;  %v16490_v27 = vmul.f32 %v9690_v40, %v15497_v45 }
 0x49c   : > { %20728 = vst [vmem:[#allocation145_spill] sm:$0xff] %v16470_v34  ;;  %v5387_v55 = vadd.f32 %v20735_v59, %v15894_v11  ;;  %v5686_v35 = vmul.f32 %v9689_v23, %v15462_v44  ;;  %v6652_v32 = vmul.f32 %v9689_v23, %v15497_v45  ;;  %v7331_v31 = vmul.f32 %v9689_v23, %v15570_v20  ;;  %v20740_v59 = vld [vmem:[#allocation8_spill] sm:$0xff]  ;;  %v20742_v34 = vld [vmem:[#allocation233_spill] sm:$0xff]  ;;  %v20743_v23 = vld [vmem:[#allocation27_spill] sm:$0xff] }
 0x49d   : > { %20729 = vst [vmem:[#allocation136_spill] sm:$0xff] %v16473_v17  ;;  %v9304_v25 = vunpack.i.h.bf16 %v9302_v33  ;;  %v9303_v37 = vunpack.i.l.bf16 %v9302_v33  ;;  %v5388_v49 = vadd.f32 %v20736_v28, %v15897_v39  ;;  %v20737_v19 = vrot.slane %v16393_v48, 6  ;;  %9581 = vperm.xlu2 %9508, %v20740_v59   ;;  %9576 = vperm.xlu1 %9519, %v20743_v23  }
 0x49e   : > { %20731 = vst [vmem:[#allocation139_spill] sm:$0xff] %v16478_v61  ;;  %v20738_v38 = vrot.slane %v16413_v14, 6  ;;  %v5776_v11 = vrot.slane %v5686_v35, 4  ;;  %v20741_v61 = vld [vmem:[#allocation337_spill] sm:$0xff]  ;;  %v16514_v17 = vadd.f32 %v5771_v15, %v5383_v57  ;;  %v7332_v35 = vmul.f32 %v9690_v40, %v15570_v20 }
 0x49f   : > { %20734 = vst [vmem:[#allocation148_spill] sm:$0xff] %v16486_v7  ;;  %v5778_v7 = vrot.slane %v5687_v1, 4  ;;  %v5389_v3 = vadd.f32 %v20742_v34, %v20741_v61  ;;  %v5689_v33 = vmul.f32 %v9304_v25, %v15462_v44  ;;  %v6655_v39 = vmul.f32 %v9304_v25, %v15497_v45  ;;  %v9339_v61 = vpop.permute.xlu2 %9338 }
 0x4a0   : > { %v16504_v56 = vsel %vm7388_vm5, %v20738_v38, %v20737_v19  ;;  %v7334_v28 = vmul.f32 %v9304_v25, %v15570_v20  ;;  %v5688_v30 = vmul.f32 %v9303_v37, %v15462_v44  ;;  %v16517_v1 = vsel %vm6709_vm4, %v6735_v43, %v6737_v26 }
 0x4a1   : > { %20739 = vst [vmem:[#allocation143_spill] sm:$0xff] %v16504_v56  ;;  %v20744_v19 = vrot.slane %v15965_v5, 4  ;;  %v6745_v38 = vrot.slane %v16490_v27, 5  ;;  %v6743_v23 = vrot.slane %v6652_v32, 5  ;;  %v7422_v25 = vrot.slane %v7331_v31, 6 }
 0x4a2   : > { %v5782_v56 = vrot.slane %v5689_v33, 4  ;;  %v6749_v6 = vrot.slane %v6655_v39, 5  ;;  %v7428_v57 = vrot.slane %v7334_v28, 6  ;;  %v5780_v15 = vrot.slane %v5688_v30, 4  ;;  %v20753_v39 = vld [vmem:[#allocation69_spill] sm:$0xff] }
 0x4a3   : > { %v5777_v34 = vsel %vm4812_vm3, %v20744_v19, %v5776_v11  ;;  %v5779_v26 = vsel %vm4812_vm3, %v5776_v11, %v5778_v7  ;;  %v6654_v43 = vmul.f32 %v9303_v37, %v15497_v45  ;;  %v7333_v40 = vmul.f32 %v9303_v37, %v15570_v20 }
 0x4a4   : > { %v16524_v59 = vadd.f32 %v5777_v34, %v5386_v8  ;;  %v9341_v5 = vunpack.i.h.bf16 %v9339_v61  ;;  %v20746_v19 = vrot.slane %v16076_v18, 4  ;;  %v20747_v8 = vrot.slane %v16100_v36, 5 }
 0x4a5   : > { %v20749_v32 = vrot.slane %v16121_v10, 6  ;;  %v5781_v31 = vsel %vm4812_vm3, %v5778_v7, %v5780_v15  ;;  %v20751_v11 = vrot.slane %v16402_v24, 6  ;;  %v7424_v18 = vrot.slane %v7332_v35, 6 }
 0x4a6   : > { %20745 = vst [vmem:[#allocation416_spill] sm:$0xff] %v16524_v59  ;;  %v5785_v2 = vsel %vm4812_vm3, %v5782_v56, %v20746_v19  ;;  %v16535_v27 = vsel %vm6709_vm4, %v6749_v6, %v20747_v8  ;;  %v16548_v33 = vadd.f32 %v5781_v31, %v5388_v49  ;;  %v20754_v28 = vrot.slane %v16015_v12, 5  ;;  %v20757_v19 = vld [vmem:[#allocation118_spill] sm:$0xff]  ;;  %v9693_v12 = vpop.permute.xlu0 %9692 }
 0x4a7   : > { %20748 = vst [vmem:[#allocation146_spill] sm:$0xff] %v16535_v27  ;;  %v16540_v30 = vsel %vm7388_vm5, %v7428_v57, %v20749_v32  ;;  %v16546_v37 = vsel %vm7388_vm5, %v7414_v63, %v20751_v11  ;;  %v16551_v36 = vadd.f32 %v5785_v2, %v20753_v39  ;;  %v16559_v34 = vsel %vm6709_vm4, %v6743_v23, %v6745_v38  ;;  %v20761_v11 = vld [vmem:[#allocation122_spill] sm:$0xff] }
 0x4a8   : > { %20750 = vst [vmem:[#allocation47_spill] sm:$0xff] %v16540_v30  ;;  %v16556_v10 = vsel %vm6709_vm4, %v20754_v28, %v6743_v23  ;;  %v6747_v7 = vrot.slane %v6654_v43, 5  ;;  %v6041_v24 = vmul.f32 %v9341_v5, %v20757_v19  ;;  %v16562_v8 = vadd.f32 %v5779_v26, %v5387_v55  ;;  %v20762_v23 = vld [vmem:[#allocation140_spill] sm:$0xff] }
 0x4a9   : > { %20752 = vst [vmem:[#allocation12_spill] sm:$0xff] %v16548_v33  ;;  %v20759_v63 = vrot.slane %v16018_v50, 6  ;;  %v5783_v2 = vsel %vm4812_vm3, %v5780_v15, %v5782_v56  ;;  %v9340_v35 = vunpack.i.l.bf16 %v9339_v61  ;;  %v7426_v32 = vrot.slane %v7333_v40, 6  ;;  %v20765_v40 = vld [vmem:[#allocation171_spill] sm:$0xff] }
 0x4aa   : > { %20755 = vst [vmem:[#allocation198_spill] sm:$0xff] %v16556_v10  ;;  %v6118_v31 = vrot.slane %v6041_v24, 4  ;;  %v16571_v39 = vmul.f32 %v9341_v5, %v20761_v11  ;;  %v16574_v43 = vmul.f32 %v9341_v5, %v20762_v23  ;;  %v16577_v55 = vsel %vm7388_vm5, %v7422_v25, %v7424_v18 }
 0x4ab   : > { %20756 = vst [vmem:[#allocation281_spill] sm:$0xff] %v16559_v34  ;;  %v16567_v49 = vsel %vm7388_vm5, %v20759_v63, %v7422_v25  ;;  %v16580_v50 = vmul.f32 %v9340_v35, %v20757_v19  ;;  %v16583_v26 = vmul.f32 %v9340_v35, %v20761_v11  ;;  %v16586_v56 = vmul.f32 %v9340_v35, %v20762_v23  ;;  %v20775_v34 = vld [vmem:[#allocation205_spill] sm:$0xff] }
 0x4ac   : > { %20758 = vst [vmem:[#allocation199_spill] sm:$0xff] %v16562_v8  ;;  %v16588_v61 = vadd.f32 %v5783_v2, %v5389_v3  ;;  %v16591_v15 = vsel %vm6709_vm4, %v6745_v38, %v6747_v7  ;;  %v20766_v5 = vrot.slane %v20765_v40, 4  ;;  %v9695_v25 = vunpack.i.h.bf16 %v9693_v12  ;;  %9712 = vperm.xlu2 %9508, %v20775_v34  }
 0x4ad   : > { %20760 = vst [vmem:[#allocation169_spill] sm:$0xff] %v16567_v49  ;;  %v16597_v24 = vsel %vm6709_vm4, %v6747_v7, %v6749_v6  ;;  %v18718_v63 = vrot.slane %v16580_v50, 4  ;;  %v9694_v35 = vunpack.i.l.bf16 %v9693_v12  ;;  %v16604_v3 = vsel %vm7388_vm5, %v7424_v18, %v7426_v32  ;;  %v20770_v12 = vld [vmem:[#allocation300_spill] sm:$0xff]  ;;  %v9312_v18 = vpop.permute.xlu1 %9311 }
 0x4ae   : > { %20763 = vst [vmem:[#allocation324_spill] sm:$0xff] %v16577_v55  ;;  %v6121_v28 = vsel %vm4812_vm3, %v6118_v31, %v20766_v5  ;;  %v16607_v38 = vsel %vm7388_vm5, %v7426_v32, %v7428_v57  ;;  %v6941_v2 = vrot.slane %v16571_v39, 5  ;;  %v7620_v40 = vrot.slane %v16574_v43, 6  ;;  %v20769_v5 = vld [vmem:[#allocation56_spill] sm:$0xff]  ;;  %v20771_v43 = vld [vmem:[#allocation137_spill] sm:$0xff] }
 0x4af   : > { %20764 = vst [vmem:[#allocation73_spill] sm:$0xff] %v16591_v15  ;;  %v16601_v30 = vadd.f32 %v6121_v28, %v16142_v46  ;;  %v6119_v6 = vsel %vm4812_vm3, %v18718_v63, %v6118_v31  ;;  %v5392_v28 = vadd.f32 %v20770_v12, %v20769_v5  ;;  %v5693_v57 = vmul.f32 %v9695_v25, %v15462_v44  ;;  %v20772_v31 = vld [vmem:[#allocation147_spill] sm:$0xff]  ;;  %v20773_v12 = vld [vmem:[#allocation345_spill] sm:$0xff] }
 0x4b0   : > { %20768 = vst [vmem:[#allocation3_spill] sm:$0xff] %v16604_v3  ;;  %v6223_v27 = vadd.f32 %v6119_v6, %v16324_v13  ;;  %v16621_v32 = vmul.f32 %v9695_v25, %v15497_v45  ;;  %v16624_v39 = vmul.f32 %v9695_v25, %v15570_v20  ;;  %v5393_v63 = vadd.f32 %v20772_v31, %v20771_v43  ;;  %v20776_v43 = vld [vmem:[#allocation33_spill] sm:$0xff] }
 0x4b1   : > { %20767 = vst [vmem:[#allocation306_spill] sm:$0xff] %v16601_v30  ;;  %v5692_v7 = vmul.f32 %v9694_v35, %v15462_v44  ;;  %v6658_v46 = vmul.f32 %v9694_v35, %v15497_v45  ;;  %v7337_v5 = vmul.f32 %v9694_v35, %v15570_v20  ;;  %v9314_v13 = vunpack.i.h.bf16 %v9312_v18  ;;  %9707 = vperm.xlu1 %9519, %v20776_v43  }
 0x4b2   : > { %v6591_v49 = vadd.f32 %v20773_v12, %v6223_v27  ;;  %v20774_v6 = vrot.slane %v16583_v26, 5  ;;  %v9313_v27 = vunpack.i.l.bf16 %v9312_v18  ;;  %v9354_v12 = vpop.permute.xlu2 %9353  ;;  %v20777_v15 = vrot.slane %v16586_v56, 6 }
 0x4b3   : > { %v5788_v30 = vrot.slane %v5692_v7, 4  ;;  %v6755_v55 = vrot.slane %v6658_v46, 5  ;;  %v7434_v25 = vrot.slane %v7337_v5, 6  ;;  %v5695_v31 = vmul.f32 %v9314_v13, %v15462_v44  ;;  %v20778_v46 = vld [vmem:[#allocation391_spill] sm:$0xff] }
 0x4b4   : > { %v6942_v10 = vsel %vm6709_vm4, %v20774_v6, %v6941_v2  ;;  %v6822_v3 = vadd.f32 %v16340_v60, %v6591_v49  ;;  %v16640_v35 = vmul.f32 %v9314_v13, %v15497_v45  ;;  %v7621_v6 = vsel %vm7388_vm5, %v20777_v15, %v7620_v40 }
 0x4b5   : > { %v5790_v7 = vrot.slane %v5693_v57, 4  ;;  %v20779_v5 = vrot.slane %v20778_v46, 4  ;;  %v20780_v34 = vrot.slane %v16067_v47, 5  ;;  %v6757_v8 = vrot.slane %v16621_v32, 5  ;;  %v20785_v47 = vld [vmem:[#allocation348_spill] sm:$0xff]  ;;  %v20789_v32 = vld [vmem:[#allocation90_spill] sm:$0xff] }
 0x4b6   : > { %v7046_v43 = vadd.f32 %v6942_v10, %v6822_v3  ;;  %v20783_v18 = vrot.slane %v16085_v42, 6  ;;  %v5794_v15 = vrot.slane %v5695_v31, 4  ;;  %v6761_v57 = vrot.slane %v16640_v35, 5  ;;  %v20788_v3 = vld [vmem:[#allocation383_spill] sm:$0xff] }
 0x4b7   : > { %v5789_v60 = vsel %vm4812_vm3, %v20779_v5, %v5788_v30  ;;  %v16651_v49 = vsel %vm6709_vm4, %v20780_v34, %v6755_v55  ;;  %v7340_v46 = vmul.f32 %v9314_v13, %v15570_v20  ;;  %v9356_v5 = vunpack.i.h.bf16 %v9354_v12  ;;  %v20786_v34 = vld [vmem:[#allocation390_spill] sm:$0xff] }
 0x4b8   : > { %20781 = vst [vmem:[#allocation256_spill] sm:$0xff] %v16651_v49  ;;  %v16654_v59 = vadd.f32 %v5789_v60, %v5392_v28  ;;  %v16659_v33 = vsel %vm7388_vm5, %v20783_v18, %v7434_v25  ;;  %v7270_v51 = vadd.f32 %v20785_v47, %v7046_v43  ;;  %v20787_v49 = vld [vmem:[#allocation175_spill] sm:$0xff]  ;;  %v5395_v28 = vadd.f32 %v20789_v32, %v20788_v3  ;;  %v20793_v3 = vld [vmem:[#allocation46_spill] sm:$0xff] }
 0x4b9   : > { %20784 = vst [vmem:[#allocation294_spill] sm:$0xff] %v16659_v33  ;;  %v5394_v10 = vadd.f32 %v20787_v49, %v20786_v34  ;;  %v5694_v60 = vmul.f32 %v9313_v27, %v15462_v44  ;;  %v20790_v42 = vrot.slane %v16231_v4, 4  ;;  %v20791_v31 = vrot.slane %v16243_v58, 5  ;;  %v20794_v33 = vld [vmem:[#allocation172_spill] sm:$0xff] }
 0x4ba   : > { %20782 = vst [vmem:[#allocation307_spill] sm:$0xff] %v16654_v59  ;;  %v7440_v13 = vrot.slane %v7340_v46, 6  ;;  %v6660_v43 = vmul.f32 %v9313_v27, %v15497_v45  ;;  %v7501_v47 = vadd.f32 %v16347_v62, %v7270_v51  ;;  %v7436_v49 = vrot.slane %v16624_v39, 6  ;;  %v16698_v62 = vld [vmem:[%s18227_s2] ss:$0 sm:$0xff] }
 0x4bb   : > { %v5797_v18 = vsel %vm4812_vm3, %v5794_v15, %v20790_v42  ;;  %v16675_v35 = vsel %vm6709_vm4, %v6761_v57, %v20791_v31  ;;  %v5792_v34 = vrot.slane %v5694_v60, 4  ;;  %v20795_v4 = vrot.slane %v20794_v33, 5  ;;  %v20799_v33 = vld [vmem:[#allocation173_spill] sm:$0xff]  ;;  %v9698_v60 = vpop.permute.xlu0 %9697 }
 0x4bc   : > { %20792 = vst [vmem:[#allocation423_spill] sm:$0xff] %v16675_v35  ;;  %v16681_v32 = vadd.f32 %v5797_v18, %v20793_v3  ;;  %v5791_v58 = vsel %vm4812_vm3, %v5788_v30, %v5790_v7  ;;  %v20797_v31 = vrot.slane %v16262_v16, 6  ;;  %v7339_v51 = vmul.f32 %v9313_v27, %v15570_v20  ;;  %v20802_v18 = vld [vmem:[#allocation37_spill] sm:$0xff]  ;;  %v20813_v35 = vld [vmem:[#allocation320_spill] sm:$0xff] }
 0x4bd   : > { %v16686_v42 = vsel %vm6709_vm4, %v6941_v2, %v20795_v4  ;;  %v20800_v39 = vrot.slane %v20799_v33, 6  ;;  %v7725_v30 = vadd.f32 %v7621_v6, %v7501_v47  ;;  %v5793_v16 = vsel %vm4812_vm3, %v5790_v7, %v5792_v34 }
 0x4be   : > { %20796 = vst [vmem:[#allocation302_spill] sm:$0xff] %v16686_v42  ;;  %v16692_v46 = vsel %vm7388_vm5, %v7440_v13, %v20797_v31  ;;  %v20803_v3 = vunpack.c.l.bf16 %v20802_v18  ;;  %v20804_v27 = vmov 1   ;;  %v16710_v4 = vsel %vm6709_vm4, %v6755_v55, %v6757_v8 }
 0x4bf   : > { %20798 = vst [vmem:[#allocation296_spill] sm:$0xff] %v16692_v46  ;;  %v16703_v2 = vsel %vm7388_vm5, %v7620_v40, %v20800_v39  ;;  %9721 = vset.pattern.permute.xlu1 %v20804_v27  ;;  %v16712_v31 = vadd.f32 %v5793_v16, %v5394_v10  ;;  %v6759_v46 = vrot.slane %v6660_v43, 5  ;;  %v16715_v33 = vmul.f32 %v9356_v5, %v20757_v19  ;;  %v20808_v40 = vld [vmem:[#allocation352_spill] sm:$0xff] }
 0x4c0   : > { %20801 = vst [vmem:[#allocation414_spill] sm:$0xff] %v16703_v2  ;;  %7080 = vperm.xlu2 %9508, %v20803_v3   ;;  %v7949_v39 = vadd.f32 %v20808_v40, %v7725_v30  ;;  %v16718_v6 = vadd.f32 %v5791_v58, %v5393_v63  ;;  %v16721_v7 = vsel %vm7388_vm5, %v7434_v25, %v7436_v49  ;;  %v7438_v18 = vrot.slane %v7339_v51, 6  ;;  %v20812_v27 = vld [vmem:[#allocation36_spill] sm:$0xff]  ;;  %v9322_v40 = vpop.permute.xlu1 %9321 }
 0x4c1   : > { %20805 = vst [vmem:[#allocation40_spill] sm:$0xff] %v16710_v4  ;;  %v5795_v47 = vsel %vm4812_vm3, %v5792_v34, %v5794_v15  ;;  %v16726_v55 = vmul.f32 %v9356_v5, %v20761_v11  ;;  %v9355_v10 = vunpack.i.l.bf16 %v9354_v12  ;;  %v9700_v16 = vunpack.i.h.bf16 %v9698_v60  ;;  %v20814_v63 = vld [vmem:[#allocation52_spill] sm:$0xff]  ;;  %v20821_v4 = vld [vmem:[#allocation34_spill] sm:$0xff] }
 0x4c2   : > { %20806 = vst [vmem:[#allocation154_spill] sm:$0xff] %v16712_v31  ;;  %v7989_v43 = vadd.f32 %v16698_v62, %v7949_v39  ;;  %v9699_v3 = vunpack.i.l.bf16 %v9698_v60  ;;  %v5398_v30 = vadd.f32 %v20813_v35, %v20812_v27  ;;  %v16733_v58 = vadd.f32 %v20814_v63, %v16136_v0 }
 0x4c3   : > { %20807 = vst [vmem:[#allocation74_spill] sm:$0xff] %v16715_v33  ;;  %v16735_v25 = vadd.f32 %v5795_v47, %v5395_v28  ;;  %v16738_v15 = vsel %vm6709_vm4, %v6757_v8, %v6759_v46  ;;  %v18719_v34 = vrot.slane %v16715_v33, 4  ;;  %v16742_v12 = vmul.f32 %v9355_v10, %v20757_v19 }
 0x4c4   : > { %20809 = vst [vmem:[#allocation201_spill] sm:$0xff] %v16718_v6  ;;  %v8025_v51 = vmax.f32 %v7989_v43, 0.0  ;;  %v16745_v60 = vsel %vm6709_vm4, %v6759_v46, %v6761_v57  ;;  %v16748_v35 = vmul.f32 %v9355_v10, %v20761_v11  ;;  %v5699_v0 = vmul.f32 %v9700_v16, %v15462_v44 }
 0x4c5   : > { %20810 = vst [vmem:[#allocation25_spill] sm:$0xff] %v16721_v7  ;;  %v16757_v8 = vsel %vm7388_vm5, %v7436_v49, %v7438_v18  ;;  %v16760_v28 = vmul.f32 %v9356_v5, %v20762_v23  ;;  %v18720_v57 = vrot.slane %v16742_v12, 4  ;;  %v5698_v46 = vmul.f32 %v9699_v3, %v15462_v44  ;;  %v20819_v7 = vld [vmem:[#allocation84_spill] sm:$0xff] }
 0x4c6   : > { %20811 = vst [vmem:[#allocation295_spill] sm:$0xff] %v16726_v55  ;;  %v8061_v39 = vpack.c.bf16 %v8025_v51, %v8025_v51  ;;  %v16765_v47 = vsel %vm7388_vm5, %v7438_v18, %v7440_v13  ;;  %v16769_v27 = vmul.f32 %v9355_v10, %v20762_v23  ;;  %v16777_v49 = vmul.f32 %v9700_v16, %v15497_v45  ;;  %v20817_v13 = vld [vmem:[#allocation104_spill] sm:$0xff] }
 0x4c7   : > { %20815 = vst [vmem:[#allocation424_spill] sm:$0xff] %v16738_v15  ;;  %v6131_v5 = vsel %vm4812_vm3, %v18720_v57, %v18719_v34  ;;  %v16780_v63 = vmul.f32 %v9700_v16, %v15570_v20  ;;  %v5800_v51 = vrot.slane %v5698_v46, 4  ;;  %v5802_v43 = vrot.slane %v5699_v0, 4  ;;  %v20822_v16 = vld [vmem:[#allocation260_spill] sm:$0xff] }
 0x4c8   : > { %20816 = vst [vmem:[#allocation303_spill] sm:$0xff] %v16757_v8  ;;  %v16785_v18 = vadd.f32 %v6131_v5, %v20817_v13  ;;  %v9324_v2 = vunpack.i.h.bf16 %v9322_v40  ;;  %v20820_v34 = vrot.slane %v20819_v7, 4  ;;  %v9323_v8 = vunpack.i.l.bf16 %v9322_v40  ;;  %v20824_v10 = vld [vmem:[#allocation384_spill] sm:$0xff] }
 0x4c9   : > { %8098 = vst.msk [vmem:[%s16754_s15 + $0xc] sm:$0xf] %vm8094_vm6, %v8061_v39  ;;  %v5400_v15 = vadd.f32 %v20822_v16, %v20821_v4  ;;  %v6664_v5 = vmul.f32 %v9699_v3, %v15497_v45  ;;  %v7343_v13 = vmul.f32 %v9699_v3, %v15570_v20  ;;  %v20826_v4 = vrot.slane %v16726_v55, 5 }
 0x4ca   : > { %20818 = vst [vmem:[#allocation297_spill] sm:$0xff] %v16785_v18  ;;  %v5801_v57 = vsel %vm4812_vm3, %v20820_v34, %v5800_v51  ;;  %v5701_v0 = vmul.f32 %v9324_v2, %v15462_v44  ;;  %v6667_v42 = vmul.f32 %v9324_v2, %v15497_v45  ;;  %v7346_v7 = vmul.f32 %v9324_v2, %v15570_v20  ;;  %v20825_v34 = vld [vmem:[#allocation249_spill] sm:$0xff]  ;;  %v9364_v18 = vpop.permute.xlu2 %9363 }
 0x4cb   : > { %v16795_v39 = vadd.f32 %v5801_v57, %v5398_v30  ;;  %v5401_v40 = vadd.f32 %v20825_v34, %v20824_v10  ;;  %v20827_v16 = vrot.slane %v16748_v35, 5  ;;  %v6769_v57 = vrot.slane %v16777_v49, 5 }
 0x4cc   : > { %v7448_v3 = vrot.slane %v16780_v63, 6  ;;  %v5803_v46 = vsel %vm4812_vm3, %v5800_v51, %v5802_v43  ;;  %v6773_v6 = vrot.slane %v6667_v42, 5  ;;  %v7452_v2 = vrot.slane %v7346_v7, 6 }
 0x4cd   : > { %20823 = vst [vmem:[#allocation415_spill] sm:$0xff] %v16795_v39  ;;  %v16809_v30 = vsel %vm6709_vm4, %v20827_v16, %v20826_v4  ;;  %v5806_v39 = vrot.slane %v5701_v0, 4  ;;  %v5700_v59 = vmul.f32 %v9323_v8, %v15462_v44  ;;  %v6767_v10 = vrot.slane %v6664_v5, 5  ;;  %v20834_v5 = vld [vmem:[#allocation319_spill] sm:$0xff] }
 0x4ce   : > { %20828 = vst [vmem:[#allocation155_spill] sm:$0xff] %v16809_v30  ;;  %v7446_v34 = vrot.slane %v7343_v13, 6  ;;  %v6666_v31 = vmul.f32 %v9323_v8, %v15497_v45  ;;  %v9366_v55 = vunpack.i.h.bf16 %v9364_v18  ;;  %v20829_v33 = vrot.slane %v16381_v22, 4 }
 0x4cf   : > { %v20830_v49 = vrot.slane %v16397_v29, 5  ;;  %v20832_v51 = vrot.slane %v16413_v14, 6  ;;  %v5804_v0 = vrot.slane %v5700_v59, 4  ;;  %v7345_v7 = vmul.f32 %v9323_v8, %v15570_v20 }
 0x4d0   : > { %v5809_v4 = vsel %vm4812_vm3, %v5806_v39, %v20829_v33  ;;  %v6051_v22 = vmul.f32 %v9366_v55, %v20757_v19  ;;  %v9365_v16 = vunpack.i.l.bf16 %v9364_v18  ;;  %v20835_v33 = vrot.slane %v16760_v28, 6 }
 0x4d1   : > { %v16822_v63 = vsel %vm6709_vm4, %v6773_v6, %v20830_v49  ;;  %v16827_v42 = vsel %vm7388_vm5, %v7452_v2, %v20832_v51  ;;  %v16830_v13 = vadd.f32 %v5809_v4, %v20834_v5  ;;  %v20836_v29 = vrot.slane %v16769_v27, 6 }
 0x4d2   : > { %20831 = vst [vmem:[#allocation67_spill] sm:$0xff] %v16822_v63  ;;  %v16842_v14 = vadd.f32 %v5803_v46, %v16733_v58  ;;  %v5805_v59 = vsel %vm4812_vm3, %v5802_v43, %v5804_v0  ;;  %v6874_v4 = vmul.f32 %v9366_v55, %v20761_v11  ;;  %v20838_v51 = vrot.slane %v16228_v9, 5 }
 0x4d3   : > { %20833 = vst [vmem:[#allocation101_spill] sm:$0xff] %v16827_v42  ;;  %v16839_v49 = vsel %vm7388_vm5, %v20836_v29, %v20835_v33  ;;  %v16852_v18 = vsel %vm6709_vm4, %v6767_v10, %v6769_v57  ;;  %v5807_v5 = vsel %vm4812_vm3, %v5804_v0, %v5806_v39  ;;  %v16855_v42 = vadd.f32 %v5805_v59, %v5400_v15  ;;  %v9703_v29 = vpop.permute.xlu0 %9702  ;;  %v20844_v0 = vld [vmem:[#allocation180_spill] sm:$0xff] }
 0x4d4   : > { %20837 = vst [vmem:[#allocation58_spill] sm:$0xff] %v16839_v49  ;;  %v16849_v8 = vsel %vm6709_vm4, %v20838_v51, %v6767_v10  ;;  %v20841_v33 = vrot.slane %v16239_v41, 6  ;;  %v16863_v43 = vsel %vm7388_vm5, %v7446_v34, %v7448_v3  ;;  %v6771_v46 = vrot.slane %v6666_v31, 5 }
 0x4d5   : > { %20839 = vst [vmem:[#allocation100_spill] sm:$0xff] %v16849_v8  ;;  %v6138_v9 = vrot.slane %v6051_v22, 4  ;;  %v7450_v51 = vrot.slane %v7345_v7, 6  ;;  %v7553_v63 = vmul.f32 %v9366_v55, %v20762_v23  ;;  %v16867_v10 = vmul.f32 %v9365_v16, %v20757_v19  ;;  %v9379_v8 = vpop.permute.xlu2 %9378 }
 0x4d6   : > { %20840 = vst [vmem:[#allocation274_spill] sm:$0xff] %v16852_v18  ;;  %v16860_v58 = vsel %vm7388_vm5, %v20841_v33, %v7446_v34  ;;  %v16870_v15 = vmul.f32 %v9365_v16, %v20761_v11  ;;  %v16872_v39 = vadd.f32 %v5807_v5, %v5401_v40  ;;  %v6961_v41 = vrot.slane %v6874_v4, 5  ;;  %v20848_v40 = vld [vmem:[#allocation134_spill] sm:$0xff]  ;;  %v20849_v5 = vld [vmem:[#allocation29_spill] sm:$0xff] }
 0x4d7   : > { %20842 = vst [vmem:[#allocation105_spill] sm:$0xff] %v16860_v58  ;;  %v20845_v59 = vrot.slane %v20844_v0, 4  ;;  %v9705_v7 = vunpack.i.h.bf16 %v9703_v29  ;;  %v16883_v33 = vsel %vm6709_vm4, %v6769_v57, %v6771_v46  ;;  %v16886_v58 = vsel %vm6709_vm4, %v6771_v46, %v6773_v6  ;;  %9723 = vperm.xlu1 %9721, %v20848_v40   ;;  %v20850_v0 = vld [vmem:[#allocation341_spill] sm:$0xff] }
 0x4d8   : > { %20843 = vst [vmem:[#allocation343_spill] sm:$0xff] %v16863_v43  ;;  %v18723_v55 = vrot.slane %v16870_v15, 5  ;;  %v9704_v4 = vunpack.i.l.bf16 %v9703_v29  ;;  %v16892_v31 = vsel %vm7388_vm5, %v7448_v3, %v7450_v51  ;;  %v20853_v6 = vld [vmem:[#allocation121_spill] sm:$0xff]  ;;  %v7640_v40 = vrot.slane %v7553_v63, 6  ;;  %v9333_v63 = vpop.permute.xlu1 %9332 }
 0x4d9   : > { %v6141_v34 = vsel %vm4812_vm3, %v6138_v9, %v20845_v59  ;;  %20847 = vst [vmem:[#allocation51_spill] sm:$0xff] %v16883_v33  ;;  %v5404_v59 = vadd.f32 %v20850_v0, %v20849_v5  ;;  %v16902_v46 = vadd.f32 %v20853_v6, %v16329_v54  ;;  %v16906_v5 = vmul.f32 %v9365_v16, %v20762_v23  ;;  %v20857_v6 = vld [vmem:[#allocation7_spill] sm:$0xff]  ;;  %v20904_v33 = vld [vmem:[#allocation214_spill] sm:$0xff] }
 0x4da   : > { %v16879_v22 = vadd.f32 %v6141_v34, %v16443_v21  ;;  %20851 = vst [vmem:[#allocation434_spill] sm:$0xff] %v16892_v31  ;;  %v16895_v21 = vsel %vm7388_vm5, %v7450_v51, %v7452_v2  ;;  %v20852_v34 = vrot.slane %v16867_v10, 4  ;;  %v5704_v3 = vmul.f32 %v9704_v4, %v15462_v44  ;;  %v20854_v51 = vld [vmem:[#allocation181_spill] sm:$0xff] }
 0x4db   : > { %v6962_v2 = vsel %vm6709_vm4, %v18723_v55, %v6961_v41  ;;  %v20855_v0 = vrot.slane %v20854_v51, 5  ;;  %v5705_v54 = vmul.f32 %v9705_v7, %v15462_v44  ;;  %v16920_v16 = vmul.f32 %v9704_v4, %v15497_v45  ;;  %v20858_v7 = vld [vmem:[#allocation182_spill] sm:$0xff] }
 0x4dc   : > { %20846 = vst [vmem:[#allocation350_spill] sm:$0xff] %v16879_v22  ;;  %v6139_v57 = vsel %vm4812_vm3, %v20852_v34, %v6138_v9  ;;  %v9381_v34 = vunpack.i.h.bf16 %v9379_v8  ;;  %v9380_v22 = vunpack.i.l.bf16 %v9379_v8  ;;  %v20864_v44 = vld [vmem:[#allocation194_spill] sm:$0xff] }
 0x4dd   : > { %v6233_v29 = vadd.f32 %v6139_v57, %v16514_v17  ;;  %v16915_v9 = vsel %vm6709_vm4, %v6961_v41, %v20855_v0  ;;  %v5812_v57 = vrot.slane %v5704_v3, 4  ;;  %v9335_v41 = vunpack.i.h.bf16 %v9333_v63 }
 0x4de   : > { %20856 = vst [vmem:[#allocation92_spill] sm:$0xff] %v16915_v9  ;;  %v6057_v49 = vmul.f32 %v9381_v34, %v20757_v19  ;;  %v6880_v55 = vmul.f32 %v9381_v34, %v20761_v11  ;;  %v16925_v51 = vmul.f32 %v9381_v34, %v20762_v23  ;;  %v20859_v9 = vrot.slane %v20858_v7, 6 }
 0x4df   : > { %v6601_v17 = vadd.f32 %v20857_v6, %v6233_v29  ;;  %v20861_v3 = vrot.slane %v16371_v52, 4  ;;  %v5814_v6 = vrot.slane %v5705_v54, 4  ;;  %v16940_v34 = vmul.f32 %v9704_v4, %v15570_v20  ;;  %v20866_v4 = vld [vmem:[#allocation362_spill] sm:$0xff] }
 0x4e0   : > { %v16932_v29 = vsel %vm7388_vm5, %v7640_v40, %v20859_v9  ;;  %v6150_v43 = vrot.slane %v6057_v49, 4  ;;  %v16944_v7 = vmul.f32 %v9380_v22, %v20757_v19  ;;  %v20863_v9 = vmov 2  }
 0x4e1   : > { %v6832_v0 = vadd.f32 %v16517_v1, %v6601_v17  ;;  %20860 = vst [vmem:[#allocation441_spill] sm:$0xff] %v16932_v29  ;;  %v5813_v8 = vsel %vm4812_vm3, %v20861_v3, %v5812_v57  ;;  %v6973_v1 = vrot.slane %v6880_v55, 5  ;;  %v7652_v17 = vrot.slane %v16925_v51, 6  ;;  %9727 = vset.pattern.permute.xlu1 %v20863_v9  ;;  %v20870_v9 = vld [vmem:[#allocation196_spill] sm:$0xff] }
 0x4e2   : > { %v16937_v30 = vadd.f32 %v5813_v8, %v5404_v59  ;;  %20862 = vst [vmem:[#allocation48_spill] sm:$0xff] %v16940_v34  ;;  %v20865_v3 = vrot.slane %v20864_v44, 4  ;;  %v16952_v54 = vmul.f32 %v9380_v22, %v20761_v11  ;;  %v6039_v49 = vmul.f32 %v9335_v41, %v20757_v19 }
 0x4e3   : > { %v7056_v31 = vadd.f32 %v6962_v2, %v6832_v0  ;;  %v20867_v55 = vunpack.c.l.bf16 %v20866_v4  ;;  %v20868_v2 = vld [vmem:[#allocation374_spill] sm:$0xff]  ;;  %v18724_v0 = vrot.slane %v16944_v7, 4  ;;  %v20871_v52 = vrot.slane %v20870_v9, 5  ;;  %v20874_v4 = vld [vmem:[#allocation197_spill] sm:$0xff] }
 0x4e4   : > { %v6153_v59 = vsel %vm4812_vm3, %v6150_v43, %v20865_v3  ;;  %v20873_v3 = vrot.slane %v16906_v5, 6  ;;  %v16982_v9 = vmul.f32 %v9380_v22, %v20762_v23  ;;  %v20878_v18 = vrot.slane %v16920_v16, 5 }
 0x4e5   : > { %7759 = vperm.xlu1 %9727, %v20867_v55   ;;  %v7280_v51 = vadd.f32 %v20868_v2, %v7056_v31  ;;  %v16960_v8 = vadd.f32 %v6153_v59, %v16551_v36  ;;  %v16965_v44 = vsel %vm6709_vm4, %v6973_v1, %v20871_v52  ;;  %v20875_v55 = vrot.slane %v20874_v4, 6 }
 0x4e6   : > { %20872 = vst [vmem:[#allocation13_spill] sm:$0xff] %v16965_v44  ;;  %v7641_v29 = vsel %vm7388_vm5, %v20873_v3, %v7640_v40  ;;  %v6114_v2 = vrot.slane %v6039_v49, 4  ;;  %v6151_v59 = vsel %vm4812_vm3, %v18724_v0, %v6150_v43  ;;  %v9718_v40 = vpop.permute.xlu0 %9717  ;;  %v5815_v3 = vsel %vm4812_vm3, %v5812_v57, %v5814_v6  ;;  %v20881_v6 = vld [vmem:[#allocation386_spill] sm:$0xff] }
 0x4e7   : > { %20869 = vst [vmem:[#allocation251_spill] sm:$0xff] %v16960_v8  ;;  %v16974_v31 = vsel %vm7388_vm5, %v7652_v17, %v20875_v55  ;;  %v7511_v36 = vadd.f32 %v16546_v37, %v7280_v51  ;;  %v6239_v4 = vadd.f32 %v6151_v59, %v16588_v61  ;;  %v20877_v55 = vrot.slane %v16580_v50, 4  ;;  %v20882_v59 = vld [vmem:[#allocation392_spill] sm:$0xff] }
 0x4e8   : > { %20876 = vst [vmem:[#allocation244_spill] sm:$0xff] %v16974_v31  ;;  %v6862_v37 = vmul.f32 %v9335_v41, %v20761_v11  ;;  %v20879_v43 = vrot.slane %v16378_v53, 5  ;;  %v16998_v22 = vmul.f32 %v9335_v41, %v20762_v23  ;;  %v9334_v57 = vunpack.i.l.bf16 %v9333_v63  ;;  %v9394_v31 = vpop.permute.xlu2 %9393 }
 0x4e9   : > { %v6117_v49 = vsel %vm4812_vm3, %v6114_v2, %v20877_v55  ;;  %v7735_v51 = vadd.f32 %v7641_v29, %v7511_v36  ;;  %v6607_v61 = vadd.f32 %v20881_v6, %v6239_v4  ;;  %v9720_v55 = vunpack.i.h.bf16 %v9718_v40  ;;  %v20883_v29 = vld [vmem:[#allocation377_spill] sm:$0xff] }
 0x4ea   : > { %v16995_v0 = vsel %vm6709_vm4, %v20879_v43, %v20878_v18  ;;  %v17002_v50 = vadd.f32 %v6117_v49, %v20882_v59  ;;  %v9719_v52 = vunpack.i.l.bf16 %v9718_v40  ;;  %v20884_v44 = vrot.slane %v16952_v54, 5 }
 0x4eb   : > { %20880 = vst [vmem:[#allocation351_spill] sm:$0xff] %v16995_v0  ;;  %v7959_v36 = vadd.f32 %v20883_v29, %v7735_v51  ;;  %v18725_v18 = vrot.slane %v16982_v9, 6  ;;  %v6038_v41 = vmul.f32 %v9334_v57, %v20757_v19  ;;  %v17011_v63 = vadd.f32 %v5815_v3, %v16902_v46  ;;  %v20890_v29 = vld [vmem:[#allocation161_spill] sm:$0xff]  ;;  %v9349_v51 = vpop.permute.xlu1 %9348 }
 0x4ec   : > { %v6974_v53 = vsel %vm6709_vm4, %v20884_v44, %v6973_v1  ;;  %v6838_v4 = vadd.f32 %v16597_v24, %v6607_v61  ;;  %v6937_v49 = vrot.slane %v6862_v37, 5  ;;  %v6861_v43 = vmul.f32 %v9334_v57, %v20761_v11 }
 0x4ed   : > { %20885 = vst [vmem:[#allocation316_spill] sm:$0xff] %v17011_v63  ;;  %v7999_v40 = vadd.f32 %v16698_v62, %v7959_v36  ;;  %v6112_v6 = vrot.slane %v6038_v41, 4  ;;  %v17018_v59 = vmul.f32 %v9334_v57, %v20762_v23  ;;  %v20887_v1 = vrot.slane %v16940_v34, 6 }
 0x4ee   : > { %v20888_v44 = vrot.slane %v16393_v48, 6  ;;  %v7062_v3 = vadd.f32 %v6974_v53, %v6838_v4  ;;  %v17028_v24 = vmul.f32 %v9720_v55, %v15570_v20  ;;  %v17031_v37 = vmul.f32 %v9719_v52, %v15497_v45  ;;  %v20894_v4 = vld [vmem:[#allocation30_spill] sm:$0xff] }
 0x4ef   : > { %20886 = vst [vmem:[#allocation435_spill] sm:$0xff] %v17018_v59  ;;  %v8035_v61 = vmax.f32 %v7999_v40, 0.0  ;;  %v7653_v57 = vsel %vm7388_vm5, %v18725_v18, %v7652_v17  ;;  %v20891_v36 = vrot.slane %v20890_v29, 4  ;;  %v6935_v41 = vrot.slane %v6861_v43, 5 }
 0x4f0   : > { %v17025_v46 = vsel %vm7388_vm5, %v20888_v44, %v20887_v1  ;;  %v20892_v1 = vld [vmem:[#allocation387_spill] sm:$0xff]  ;;  %v20893_v53 = vrot.slane %v16583_v26, 5  ;;  %v6115_v45 = vsel %vm4812_vm3, %v6112_v6, %v6114_v2  ;;  %v20895_v29 = vrot.slane %v16586_v56, 6  ;;  %v20898_v56 = vld [vmem:[#allocation49_spill] sm:$0xff] }
 0x4f1   : > { %20889 = vst [vmem:[#allocation216_spill] sm:$0xff] %v17025_v46  ;;  %v6113_v48 = vsel %vm4812_vm3, %v20891_v36, %v6112_v6  ;;  %v7286_v44 = vadd.f32 %v20892_v1, %v7062_v3  ;;  %v8071_v17 = vpack.c.bf16 %v8035_v61, %v8035_v61  ;;  %v20896_v18 = vrot.slane %v16998_v22, 6  ;;  %v20899_v1 = vld [vmem:[#allocation163_spill] sm:$0xff]  ;;  %v20902_v46 = vld [vmem:[#allocation213_spill] sm:$0xff] }
 0x4f2   : > { %v17043_v55 = vsel %vm6709_vm4, %v6937_v49, %v20893_v53  ;;  %v17047_v40 = vadd.f32 %v6113_v48, %v20894_v4  ;;  %v17058_v26 = vmul.f32 %v9719_v52, %v15570_v20  ;;  %v7389_v2 = vrot.slane %v17028_v24, 6 }
 0x4f3   : > { %v17054_v43 = vsel %vm7388_vm5, %v20896_v18, %v20895_v29  ;;  %v7517_v36 = vadd.f32 %v16607_v38, %v7286_v44  ;;  %v6781_v6 = vrot.slane %v17031_v37, 5  ;;  %v9396_v48 = vunpack.i.h.bf16 %v9394_v31  ;;  %8108 = vst.msk [vmem:[%s16754_s15 + $0x34] sm:$0xf] %vm8094_vm6, %v8071_v17  ;;  %v9409_v44 = vpop.permute.xlu2 %9408 }
 0x4f4   : > { %20897 = vst [vmem:[#allocation81_spill] sm:$0xff] %v17058_v26  ;;  %v17066_v61 = vadd.f32 %v6115_v45, %v20898_v56  ;;  %v20900_v18 = vrot.slane %v20899_v1, 5  ;;  %v9395_v4 = vunpack.i.l.bf16 %v9394_v31  ;;  %v9351_v20 = vunpack.i.h.bf16 %v9349_v51 }
 0x4f5   : > { %v7741_v52 = vadd.f32 %v7653_v57, %v7517_v36  ;;  %v17074_v38 = vsel %vm6709_vm4, %v6935_v41, %v6937_v49  ;;  %v6063_v24 = vmul.f32 %v9396_v48, %v20757_v19  ;;  %v6886_v37 = vmul.f32 %v9396_v48, %v20761_v11  ;;  %v20901_v57 = vld [vmem:[#allocation9_spill] sm:$0xff] }
 0x4f6   : > { %v17071_v53 = vsel %vm6709_vm4, %v20900_v18, %v6935_v41  ;;  %v7565_v17 = vmul.f32 %v9396_v48, %v20762_v23  ;;  %v17080_v45 = vmul.f32 %v9395_v4, %v20757_v19  ;;  %v17083_v29 = vmul.f32 %v9395_v4, %v20761_v11 }
 0x4f7   : > { %v17086_v31 = vmul.f32 %v9395_v4, %v20762_v23  ;;  %v7965_v36 = vadd.f32 %v20901_v57, %v7741_v52  ;;  %v6162_v49 = vrot.slane %v6063_v24, 4  ;;  %v6985_v41 = vrot.slane %v6886_v37, 5 }
 0x4f8   : > { %v6045_v56 = vmul.f32 %v9351_v20, %v20757_v19  ;;  %v7664_v1 = vrot.slane %v7565_v17, 6  ;;  %v18727_v18 = vrot.slane %v17080_v45, 4  ;;  %v9350_v3 = vunpack.i.l.bf16 %v9349_v51 }
 0x4f9   : > { %v9411_v48 = vunpack.i.h.bf16 %v9409_v44  ;;  %v8005_v34 = vadd.f32 %v16698_v62, %v7965_v36  ;;  %v20903_v0 = vrot.slane %v20902_v46, 4  ;;  %v20905_v4 = vrot.slane %v20904_v33, 5  ;;  %v20908_v33 = vld [vmem:[#allocation215_spill] sm:$0xff] }
 0x4fa   : > { %v6126_v52 = vrot.slane %v6045_v56, 4  ;;  %v6163_v24 = vsel %vm4812_vm3, %v18727_v18, %v6162_v49  ;;  %v20909_v57 = vrot.slane %v20908_v33, 6  ;;  %v20911_v56 = vrot.slane %v16742_v12, 4 }
 0x4fb   : > { %v6165_v8 = vsel %vm4812_vm3, %v6162_v49, %v20903_v0  ;;  %v17098_v63 = vsel %vm6709_vm4, %v6985_v41, %v20905_v4  ;;  %v8041_v46 = vmax.f32 %v8005_v34, 0.0  ;;  %v6245_v0 = vadd.f32 %v6163_v24, %v16735_v25  ;;  %v20912_v34 = vld [vmem:[#allocation130_spill] sm:$0xff] }
 0x4fc   : > { %20906 = vst [vmem:[#allocation217_spill] sm:$0xff] %v17098_v63  ;;  %v17104_v37 = vadd.f32 %v6165_v8, %v16681_v32  ;;  %v17112_v36 = vsel %vm7388_vm5, %v7664_v1, %v20909_v57  ;;  %v6129_v49 = vsel %vm4812_vm3, %v6126_v52, %v20911_v56  ;;  %v6868_v32 = vmul.f32 %v9351_v20, %v20761_v11  ;;  %v20914_v24 = vld [vmem:[#allocation54_spill] sm:$0xff] }
 0x4fd   : > { %20910 = vst [vmem:[#allocation442_spill] sm:$0xff] %v17112_v36  ;;  %v17119_v8 = vmul.f32 %v9351_v20, %v20762_v23  ;;  %v6044_v4 = vmul.f32 %v9350_v3, %v20757_v19  ;;  %v17123_v18 = vadd.f32 %v6129_v49, %v20912_v34  ;;  %v8077_v25 = vpack.c.bf16 %v8041_v46, %v8041_v46 }
 0x4fe   : > { %20907 = vst [vmem:[#allocation94_spill] sm:$0xff] %v17104_v37  ;;  %v6613_v33 = vadd.f32 %v20914_v24, %v6245_v0  ;;  %v6867_v57 = vmul.f32 %v9350_v3, %v20761_v11  ;;  %v7546_v17 = vmul.f32 %v9350_v3, %v20762_v23  ;;  %v6949_v12 = vrot.slane %v6868_v32, 5  ;;  %v20917_v0 = vld [vmem:[#allocation268_spill] sm:$0xff]  ;;  %v20953_v37 = vld [vmem:[#allocation74_spill] sm:$0xff] }
 0x4ff   : > { %20913 = vst [vmem:[#allocation178_spill] sm:$0xff] %v17123_v18  ;;  %v7628_v56 = vrot.slane %v17119_v8, 6  ;;  %v6124_v51 = vrot.slane %v6044_v4, 4  ;;  %v6069_v36 = vmul.f32 %v9411_v48, %v20757_v19  ;;  %v20915_v20 = vrot.slane %v16998_v22, 6 }
 0x500   : > { %8114 = vst.msk [vmem:[%s16754_s15 + $0x4c] sm:$0xf] %vm8094_vm6, %v8077_v25  ;;  %v20916_v49 = vrot.slane %v17018_v59, 6  ;;  %v20918_v34 = vrot.slane %v20917_v0, 6  ;;  %v6844_v3 = vadd.f32 %v16745_v60, %v6613_v33  ;;  %v17146_v32 = vmul.f32 %v9411_v48, %v20761_v11  ;;  %v20931_v33 = vld [vmem:[#allocation273_spill] sm:$0xff] }
 0x501   : > { %v20920_v8 = vrot.slane %v16920_v16, 5  ;;  %v20922_v22 = vrot.slane %v17083_v29, 5 }
 0x502   : > { %v17137_v46 = vsel %vm7388_vm5, %v20916_v49, %v20915_v20  ;;  %v17142_v24 = vsel %vm7388_vm5, %v7389_v2, %v20918_v34  ;;  %v20923_v20 = vrot.slane %v16748_v35, 5  ;;  %v20925_v2 = vrot.slane %v16769_v27, 6  ;;  %v20928_v34 = vld [vmem:[#allocation166_spill] sm:$0xff]  ;;  %v9359_v35 = vpop.permute.xlu1 %9358 }
 0x503   : > { %20919 = vst [vmem:[#allocation311_spill] sm:$0xff] %v17142_v24  ;;  %v17151_v4 = vsel %vm6709_vm4, %v20920_v8, %v6781_v6  ;;  %v6986_v25 = vsel %vm6709_vm4, %v20922_v22, %v6985_v41  ;;  %v20927_v6 = vrot.slane %v17086_v31, 6  ;;  %v20929_v8 = vrot.slane %v20928_v34, 4 }
 0x504   : > { %20921 = vst [vmem:[#allocation211_spill] sm:$0xff] %v17151_v4  ;;  %v17159_v49 = vsel %vm6709_vm4, %v6949_v12, %v20923_v20  ;;  %v17164_v60 = vsel %vm7388_vm5, %v7628_v56, %v20925_v2  ;;  %v7068_v16 = vadd.f32 %v6986_v25, %v6844_v3  ;;  %v6127_v22 = vsel %vm4812_vm3, %v6124_v51, %v6126_v52  ;;  %v20930_v4 = vld [vmem:[#allocation55_spill] sm:$0xff] }
 0x505   : > { %20924 = vst [vmem:[#allocation262_spill] sm:$0xff] %v17159_v49  ;;  %v7665_v0 = vsel %vm7388_vm5, %v20927_v6, %v7664_v1  ;;  %v6125_v41 = vsel %vm4812_vm3, %v20929_v8, %v6124_v51  ;;  %v6947_v20 = vrot.slane %v6867_v57, 5  ;;  %v7626_v24 = vrot.slane %v7546_v17, 6  ;;  %v20933_v1 = vld [vmem:[#allocation226_spill] sm:$0xff] }
 0x506   : > { %20926 = vst [vmem:[#allocation255_spill] sm:$0xff] %v17164_v60  ;;  %v6174_v27 = vrot.slane %v6069_v36, 4  ;;  %v7292_v2 = vadd.f32 %v20930_v4, %v7068_v16  ;;  %v6997_v59 = vrot.slane %v17146_v32, 5  ;;  %v7571_v3 = vmul.f32 %v9411_v48, %v20762_v23  ;;  %v20936_v48 = vld [vmem:[#allocation292_spill] sm:$0xff]  ;;  %v20937_v32 = vld [vmem:[#allocation227_spill] sm:$0xff] }
 0x507   : > { %v9410_v25 = vunpack.i.l.bf16 %v9409_v44  ;;  %v17178_v26 = vadd.f32 %v6125_v41, %v20931_v33  ;;  %v20934_v6 = vrot.slane %v20933_v1, 4  ;;  %v9361_v8 = vunpack.i.h.bf16 %v9359_v35 }
 0x508   : > { %v9360_v63 = vunpack.i.l.bf16 %v9359_v35  ;;  %v7523_v52 = vadd.f32 %v16765_v47, %v7292_v2  ;;  %v7676_v51 = vrot.slane %v7571_v3, 6  ;;  %v17191_v44 = vadd.f32 %v6127_v22, %v20936_v48  ;;  %v20943_v3 = vld [vmem:[#allocation167_spill] sm:$0xff] }
 0x509   : > { %20932 = vst [vmem:[#allocation156_spill] sm:$0xff] %v17178_v26  ;;  %v6177_v34 = vsel %vm4812_vm3, %v6174_v27, %v20934_v6  ;;  %v17185_v17 = vmul.f32 %v9410_v25, %v20757_v19  ;;  %v17194_v57 = vmul.f32 %v9410_v25, %v20761_v11  ;;  %v20938_v4 = vrot.slane %v20937_v32, 5 }
 0x50a   : > { %v17188_v36 = vadd.f32 %v6177_v34, %v16830_v13  ;;  %v6049_v47 = vmul.f32 %v9361_v8, %v20757_v19  ;;  %v7747_v16 = vadd.f32 %v7665_v0, %v7523_v52  ;;  %v17204_v35 = vmul.f32 %v9410_v25, %v20762_v23  ;;  %v20940_v13 = vld [vmem:[#allocation228_spill] sm:$0xff]  ;;  %v20946_v52 = vld [vmem:[#allocation65_spill] sm:$0xff] }
 0x50b   : > { %v17199_v33 = vsel %vm6709_vm4, %v6997_v59, %v20938_v4  ;;  %v18730_v41 = vrot.slane %v17185_v17, 4  ;;  %v20941_v2 = vrot.slane %v20940_v13, 6  ;;  %v20944_v1 = vrot.slane %v20943_v3, 5 }
 0x50c   : > { %20935 = vst [vmem:[#allocation313_spill] sm:$0xff] %v17188_v36  ;;  %v6134_v34 = vrot.slane %v6049_v47, 4  ;;  %v6872_v48 = vmul.f32 %v9361_v8, %v20761_v11  ;;  %v7551_v0 = vmul.f32 %v9361_v8, %v20762_v23  ;;  %v7971_v32 = vadd.f32 %v20946_v52, %v7747_v16  ;;  %v9374_v8 = vpop.permute.xlu1 %9373 }
 0x50d   : > { %20939 = vst [vmem:[#allocation322_spill] sm:$0xff] %v17199_v33  ;;  %v17209_v22 = vsel %vm7388_vm5, %v7676_v51, %v20941_v2  ;;  %v17214_v6 = vsel %vm6709_vm4, %v20944_v1, %v6947_v20  ;;  %v17220_v25 = vsel %vm6709_vm4, %v6947_v20, %v6949_v12  ;;  %v6175_v4 = vsel %vm4812_vm3, %v18730_v41, %v6174_v27  ;;  %v20947_v2 = vld [vmem:[#allocation168_spill] sm:$0xff]  ;;  %v9511_v20 = vpop.permute.xlu2 %9510 }
 0x50e   : > { %20942 = vst [vmem:[#allocation323_spill] sm:$0xff] %v17209_v22  ;;  %v6048_v13 = vmul.f32 %v9360_v63, %v20757_v19  ;;  %v20948_v3 = vrot.slane %v20947_v2, 6  ;;  %v6251_v47 = vadd.f32 %v6175_v4, %v16872_v39  ;;  %v20950_v16 = vrot.slane %v16867_v10, 4  ;;  %v20951_v22 = vld [vmem:[#allocation413_spill] sm:$0xff]  ;;  %v20952_v39 = vld [vmem:[#allocation136_spill] sm:$0xff] }
 0x50f   : > { %20945 = vst [vmem:[#allocation314_spill] sm:$0xff] %v17214_v6  ;;  %v8011_v52 = vadd.f32 %v16698_v62, %v7971_v32  ;;  %v17238_v27 = vsel %vm7388_vm5, %v7626_v24, %v7628_v56  ;;  %v6957_v33 = vrot.slane %v6872_v48, 5  ;;  %v7636_v36 = vrot.slane %v7551_v0, 6  ;;  %v20956_v48 = vld [vmem:[#allocation277_spill] sm:$0xff]  ;;  %v20984_v6 = vld [vmem:[#allocation199_spill] sm:$0xff] }
 0x510   : > { %v17229_v1 = vsel %vm7388_vm5, %v20948_v3, %v7626_v24  ;;  %v6137_v12 = vsel %vm4812_vm3, %v6134_v34, %v20950_v16  ;;  %v6132_v2 = vrot.slane %v6048_v13, 4  ;;  %v6619_v3 = vadd.f32 %v20951_v22, %v6251_v47 }
 0x511   : > { %20949 = vst [vmem:[#allocation83_spill] sm:$0xff] %v17229_v1  ;;  %v17243_v4 = vadd.f32 %v6137_v12, %v20952_v39  ;;  %v8047_v10 = vmax.f32 %v8011_v52, 0.0  ;;  %v20954_v16 = vrot.slane %v20953_v37, 4  ;;  %v6871_v56 = vmul.f32 %v9360_v63, %v20761_v11 }
 0x512   : > { %v9513_v24 = vunpack.i.h.bf16 %v9511_v20  ;;  %v6850_v41 = vadd.f32 %v16886_v58, %v6619_v3  ;;  %v20955_v13 = vrot.slane %v17194_v57, 5  ;;  %v7550_v47 = vmul.f32 %v9360_v63, %v20762_v23 }
 0x513   : > { %v6133_v32 = vsel %vm4812_vm3, %v20954_v16, %v6132_v2  ;;  %v8083_v12 = vpack.c.bf16 %v8047_v10, %v8047_v10  ;;  %v20958_v37 = vrot.slane %v17204_v35, 6  ;;  %v9376_v39 = vunpack.i.h.bf16 %v9374_v8 }
 0x514   : > { %v6998_v22 = vsel %vm6709_vm4, %v20955_v13, %v6997_v59  ;;  %v17254_v0 = vadd.f32 %v6133_v32, %v20956_v48  ;;  %v9375_v16 = vunpack.i.l.bf16 %v9374_v8  ;;  %v20959_v49 = vrot.slane %v16870_v15, 5  ;;  %v20962_v15 = vld [vmem:[#allocation422_spill] sm:$0xff] }
 0x515   : > { %v7677_v52 = vsel %vm7388_vm5, %v20958_v37, %v7676_v51  ;;  %v7074_v60 = vadd.f32 %v6998_v22, %v6850_v41  ;;  %v20960_v59 = vrot.slane %v16906_v5, 6  ;;  %v6135_v63 = vsel %vm4812_vm3, %v6132_v2, %v6134_v34  ;;  %8120 = vst.msk [vmem:[%s16754_s15 + $0x64] sm:$0xf] %vm8094_vm6, %v8083_v12  ;;  %v20961_v41 = vld [vmem:[#allocation330_spill] sm:$0xff] }
 0x516   : > { %20957 = vst [vmem:[#allocation325_spill] sm:$0xff] %v17254_v0  ;;  %v17263_v58 = vsel %vm6709_vm4, %v6957_v33, %v20959_v49  ;;  %v6955_v10 = vrot.slane %v6871_v56, 5  ;;  %v6055_v51 = vmul.f32 %v9376_v39, %v20757_v19  ;;  %v6878_v8 = vmul.f32 %v9376_v39, %v20761_v11  ;;  %v20963_v48 = vld [vmem:[#allocation222_spill] sm:$0xff]  ;;  %v20982_v0 = vld [vmem:[#allocation333_spill] sm:$0xff] }
 0x517   : > { %v17268_v3 = vsel %vm7388_vm5, %v7636_v36, %v20960_v59  ;;  %v6407_v32 = vmul.f32 %v9513_v24, %v20961_v41  ;;  %v7298_v13 = vadd.f32 %v20962_v15, %v7074_v60  ;;  %v7634_v49 = vrot.slane %v7550_v47, 6  ;;  %v20964_v47 = vld [vmem:[#allocation295_spill] sm:$0xff] }
 0x518   : > { %v17278_v22 = vmul.f32 %v9376_v39, %v20762_v23  ;;  %v6054_v5 = vmul.f32 %v9375_v16, %v20757_v19  ;;  %v17282_v37 = vadd.f32 %v6135_v63, %v20963_v48  ;;  %v6146_v34 = vrot.slane %v6055_v51, 4 }
 0x519   : > { %v6969_v2 = vrot.slane %v6878_v8, 5  ;;  %v6877_v56 = vmul.f32 %v9375_v16, %v20761_v11  ;;  %v7529_v12 = vadd.f32 %v16895_v21, %v7298_v13  ;;  %v17288_v60 = vmul.f32 %v9375_v16, %v20762_v23  ;;  %v20970_v16 = vld [vmem:[#allocation176_spill] sm:$0xff] }
 0x51a   : > { %v6144_v18 = vrot.slane %v6054_v5, 4  ;;  %v20965_v39 = vrot.slane %v20964_v47, 5  ;;  %v17296_v63 = vsel %vm6709_vm4, %v6955_v10, %v6957_v33  ;;  %v20967_v51 = vrot.slane %v16944_v7, 4 }
 0x51b   : > { %v6482_v48 = vrot.slane %v6407_v32, 4  ;;  %v7753_v21 = vadd.f32 %v7677_v52, %v7529_v12  ;;  %v20968_v13 = vrot.slane %v16760_v28, 6  ;;  %v20971_v59 = vrot.slane %v20970_v16, 4  ;;  %v20974_v52 = vld [vmem:[#allocation12_spill] sm:$0xff]  ;;  %v9389_v12 = vpop.permute.xlu1 %9388 }
 0x51c   : > { %v17293_v15 = vsel %vm6709_vm4, %v20965_v39, %v6955_v10  ;;  %v6149_v8 = vsel %vm4812_vm3, %v6146_v34, %v20967_v51  ;;  %v20972_v39 = vld [vmem:[#allocation331_spill] sm:$0xff]  ;;  %v17311_v33 = vsel %vm7388_vm5, %v7634_v49, %v7636_v36  ;;  %v20973_v7 = vrot.slane %v16952_v54, 5  ;;  %v20975_v51 = vld [vmem:[#allocation18_spill] sm:$0xff] }
 0x51d   : > { %20966 = vst [vmem:[#allocation312_spill] sm:$0xff] %v17293_v15  ;;  %v17304_v5 = vsel %vm7388_vm5, %v20968_v13, %v7634_v49  ;;  %v6145_v47 = vsel %vm4812_vm3, %v20971_v59, %v6144_v18  ;;  %v7086_v15 = vmul.f32 %v9513_v24, %v20972_v39  ;;  %v17319_v32 = vadd.f32 %v6149_v8, %v20974_v52  ;;  %v20979_v49 = vld [vmem:[#allocation416_spill] sm:$0xff] }
 0x51e   : > { %20969 = vst [vmem:[#allocation421_spill] sm:$0xff] %v17304_v5  ;;  %v17316_v10 = vsel %vm6709_vm4, %v6969_v2, %v20973_v7  ;;  %v6967_v28 = vrot.slane %v6877_v56, 5  ;;  %v7977_v13 = vadd.f32 %v20975_v51, %v7753_v21  ;;  %v20976_v16 = vrot.slane %v16982_v9, 6  ;;  %v20981_v8 = vld [vmem:[#allocation332_spill] sm:$0xff] }
 0x51f   : > { %v20977_v59 = vrot.slane %v17278_v22, 6  ;;  %v6147_v36 = vsel %vm4812_vm3, %v6144_v18, %v6146_v34  ;;  %v7646_v54 = vrot.slane %v17288_v60, 6  ;;  %v17332_v7 = vadd.f32 %v6145_v47, %v20979_v49  ;;  %v20985_v34 = vld [vmem:[#allocation177_spill] sm:$0xff] }
 0x520   : > { %v7765_v52 = vmul.f32 %v9513_v24, %v20981_v8  ;;  %v9512_v56 = vunpack.i.l.bf16 %v9511_v20  ;;  %v20983_v1 = vrot.slane %v20982_v0, 4  ;;  %v8017_v9 = vadd.f32 %v16698_v62, %v7977_v13 }
 0x521   : > { %v17327_v5 = vsel %vm7388_vm5, %v20977_v59, %v20976_v16  ;;  %20980 = vst [vmem:[#allocation263_spill] sm:$0xff] %v17332_v7  ;;  %v7161_v51 = vrot.slane %v7086_v15, 5  ;;  %v9391_v59 = vunpack.i.h.bf16 %v9389_v12  ;;  %v17341_v18 = vadd.f32 %v6147_v36, %v20984_v6  ;;  %v20988_v15 = vld [vmem:[#allocation162_spill] sm:$0xff] }
 0x522   : > { %20978 = vst [vmem:[#allocation275_spill] sm:$0xff] %v17327_v5  ;;  %v6485_v21 = vsel %vm4812_vm3, %v6482_v48, %v20983_v1  ;;  %v20986_v60 = vrot.slane %v20985_v34, 5  ;;  %v6406_v20 = vmul.f32 %v9512_v56, %v20961_v41  ;;  %v7085_v24 = vmul.f32 %v9512_v56, %v20972_v39  ;;  %v20993_v5 = vld [vmem:[#allocation17_spill] sm:$0xff] }
 0x523   : > { %v6590_v16 = vadd.f32 %v6485_v21, %v17002_v50  ;;  %v8053_v0 = vmax.f32 %v8017_v9, 0.0  ;;  %v17351_v1 = vsel %vm6709_vm4, %v6967_v28, %v6969_v2  ;;  %v17355_v13 = vmul.f32 %v9391_v59, %v20757_v19  ;;  %v20991_v2 = vld [vmem:[#allocation248_spill] sm:$0xff] }
 0x524   : > { %v17346_v47 = vsel %vm6709_vm4, %v20986_v60, %v6967_v28  ;;  %v7840_v6 = vrot.slane %v7765_v52, 6  ;;  %v6480_v36 = vrot.slane %v6406_v20, 4  ;;  %v7159_v49 = vrot.slane %v7085_v24, 5 }
 0x525   : > { %20987 = vst [vmem:[#allocation61_spill] sm:$0xff] %v17346_v47  ;;  %v6821_v50 = vadd.f32 %v20988_v15, %v6590_v16  ;;  %v9390_v21 = vunpack.i.l.bf16 %v9389_v12  ;;  %v8089_v34 = vpack.c.bf16 %v8053_v0, %v8053_v0  ;;  %v20989_v47 = vld [vmem:[#allocation336_spill] sm:$0xff]  ;;  %v6158_v26 = vrot.slane %v17355_v13, 4 }
 0x526   : > { %v20990_v7 = vrot.slane %v20989_v47, 5  ;;  %v20992_v28 = vrot.slane %v20991_v2, 4  ;;  %v6483_v15 = vsel %vm4812_vm3, %v6480_v36, %v6482_v48  ;;  %v20994_v52 = vrot.slane %v20993_v5, 5  ;;  %v20998_v48 = vld [vmem:[#allocation339_spill] sm:$0xff] }
 0x527   : > { %v7045_v60 = vadd.f32 %v17043_v55, %v6821_v50  ;;  %v17370_v12 = vmul.f32 %v9512_v56, %v20981_v8  ;;  %8126 = vst.msk [vmem:[%s16754_s15 + $0x7c] sm:$0xf] %vm8094_vm6, %v8089_v34  ;;  %v20996_v55 = vld [vmem:[#allocation179_spill] sm:$0xff]  ;;  %v6589_v0 = vadd.f32 %v6483_v15, %v17066_v61  ;;  %v20999_v13 = vrot.slane %v20998_v48, 6 }
 0x528   : > { %v7164_v9 = vsel %vm6709_vm4, %v7161_v51, %v20990_v7  ;;  %v6481_v16 = vsel %vm4812_vm3, %v20992_v28, %v6480_v36  ;;  %v7160_v20 = vsel %vm6709_vm4, %v20994_v52, %v7159_v49  ;;  %v20997_v47 = vrot.slane %v20996_v55, 6  ;;  %v21001_v28 = vld [vmem:[#allocation259_spill] sm:$0xff]  ;;  %v21002_v55 = vld [vmem:[#allocation98_spill] sm:$0xff] }
 0x529   : > { %20995 = vst [vmem:[#allocation315_spill] sm:$0xff] %v17370_v12  ;;  %v6588_v24 = vadd.f32 %v6481_v16, %v17047_v40  ;;  %v7269_v50 = vadd.f32 %v7164_v9, %v7045_v60  ;;  %v7843_v5 = vsel %vm7388_vm5, %v7840_v6, %v20999_v13  ;;  %v21000_v36 = vrot.slane %v17080_v45, 4  ;;  %v21003_v16 = vld [vmem:[#allocation57_spill] sm:$0xff]  ;;  %v21004_v60 = vld [vmem:[#allocation154_spill] sm:$0xff] }
 0x52a   : > { %v17377_v7 = vsel %vm7388_vm5, %v20997_v47, %v7646_v54  ;;  %v17388_v34 = vmul.f32 %v9391_v59, %v20761_v11  ;;  %v6060_v2 = vmul.f32 %v9390_v21, %v20757_v19  ;;  %v6820_v40 = vadd.f32 %v21002_v55, %v6589_v0  ;;  %v9527_v55 = vpop.permute.xlu2 %9526 }
 0x52b   : > { %v6161_v56 = vsel %vm4812_vm3, %v6158_v26, %v21000_v36  ;;  %v6819_v52 = vadd.f32 %v21001_v28, %v6588_v24  ;;  %v7500_v61 = vadd.f32 %v21003_v16, %v7269_v50  ;;  %v7162_v15 = vsel %vm6709_vm4, %v7159_v49, %v7161_v51  ;;  %v21005_v28 = vld [vmem:[#allocation192_spill] sm:$0xff] }
 0x52c   : > { %v17395_v9 = vadd.f32 %v6161_v56, %v21004_v60  ;;  %v18731_v45 = vrot.slane %v17370_v12, 6  ;;  %v6156_v47 = vrot.slane %v6060_v2, 4  ;;  %v6883_v48 = vmul.f32 %v9390_v21, %v20761_v11 }
 0x52d   : > { %v7043_v13 = vadd.f32 %v17071_v53, %v6819_v52  ;;  %v7044_v36 = vadd.f32 %v17074_v38, %v6820_v40  ;;  %v7724_v24 = vadd.f32 %v17054_v43, %v7500_v61  ;;  %v17404_v0 = vmul.f32 %v9390_v21, %v20762_v23  ;;  %v21008_v38 = vld [vmem:[#allocation307_spill] sm:$0xff]  ;;  %v9404_v43 = vpop.permute.xlu1 %9403  ;;  %v21010_v61 = vld [vmem:[#allocation193_spill] sm:$0xff] }
 0x52e   : > { %v6981_v50 = vrot.slane %v17388_v34, 5  ;;  %v7563_v56 = vmul.f32 %v9391_v59, %v20762_v23  ;;  %v21006_v51 = vrot.slane %v21005_v28, 4  ;;  %v6979_v2 = vrot.slane %v6883_v48, 5 }
 0x52f   : > { %v17411_v16 = vadd.f32 %v7160_v20, %v7043_v13  ;;  %v7268_v53 = vadd.f32 %v7162_v15, %v7044_v36  ;;  %v7948_v52 = vadd.f32 %v7843_v5, %v7724_v24  ;;  %v21009_v21 = vrot.slane %v17278_v22, 6  ;;  %v21013_v15 = vld [vmem:[#allocation16_spill] sm:$0xff] }
 0x530   : > { %v6157_v49 = vsel %vm4812_vm3, %v21006_v51, %v6156_v47  ;;  %v7841_v59 = vsel %vm7388_vm5, %v18731_v45, %v7840_v6  ;;  %v21011_v60 = vrot.slane %v21010_v61, 5  ;;  %v7658_v5 = vrot.slane %v17404_v0, 6  ;;  %v21015_v6 = vld [vmem:[#allocation195_spill] sm:$0xff] }
 0x531   : > { %21007 = vst [vmem:[#allocation153_spill] sm:$0xff] %v17411_v16  ;;  %v17414_v40 = vadd.f32 %v6157_v49, %v21008_v38  ;;  %v17419_v34 = vsel %vm7388_vm5, %v7646_v54, %v21009_v21  ;;  %v7499_v48 = vadd.f32 %v21013_v15, %v7268_v53  ;;  %v7988_v13 = vadd.f32 %v16698_v62, %v7948_v52 }
 0x532   : > { %v17427_v20 = vsel %vm6709_vm4, %v21011_v60, %v6979_v2  ;;  %v9529_v36 = vunpack.i.h.bf16 %v9527_v55  ;;  %v9528_v22 = vunpack.i.l.bf16 %v9527_v55  ;;  %v21014_v54 = vrot.slane %v17083_v29, 5 }
 0x533   : > { %21012 = vst [vmem:[#allocation141_spill] sm:$0xff] %v17427_v20  ;;  %v7660_v28 = vrot.slane %v7563_v56, 6  ;;  %v21016_v51 = vrot.slane %v21015_v6, 6  ;;  %v9406_v38 = vunpack.i.h.bf16 %v9404_v43  ;;  %v7723_v0 = vadd.f32 %v17137_v46, %v7499_v48 }
 0x534   : > { %v17435_v24 = vsel %vm6709_vm4, %v6981_v50, %v21014_v54  ;;  %v8024_v21 = vmax.f32 %v7988_v13, 0.0  ;;  %v17444_v53 = vmul.f32 %v9529_v36, %v20961_v41  ;;  %v17447_v55 = vmul.f32 %v9529_v36, %v20972_v39 }
 0x535   : > { %v17440_v49 = vsel %vm7388_vm5, %v21016_v51, %v7658_v5  ;;  %v17450_v29 = vmul.f32 %v9529_v36, %v20981_v8  ;;  %v17453_v56 = vmul.f32 %v9528_v22, %v20961_v41  ;;  %v17456_v52 = vmul.f32 %v9528_v22, %v20972_v39 }
 0x536   : > { %21017 = vst [vmem:[#allocation124_spill] sm:$0xff] %v17440_v49  ;;  %v9405_v61 = vunpack.i.l.bf16 %v9404_v43  ;;  %v7947_v60 = vadd.f32 %v7841_v59, %v7723_v0  ;;  %v8060_v46 = vpack.c.bf16 %v8024_v21, %v8024_v21  ;;  %v18732_v15 = vrot.slane %v17444_v53, 4 }
 0x537   : > { %v17460_v48 = vmul.f32 %v9528_v22, %v20981_v8  ;;  %v21018_v13 = vrot.slane %v17086_v31, 6  ;;  %v6159_v36 = vsel %vm4812_vm3, %v6156_v47, %v6158_v26  ;;  %v18733_v51 = vrot.slane %v17453_v56, 4 }
 0x538   : > { %v7987_v43 = vadd.f32 %v16698_v62, %v7947_v60  ;;  %8097 = vst.msk [vmem:[%s16754_s15 + $0x8] sm:$0xf] %vm8094_vm6, %v8060_v46  ;;  %v6067_v59 = vmul.f32 %v9406_v38, %v20757_v19  ;;  %v17475_v22 = vmul.f32 %v9406_v38, %v20761_v11  ;;  %v17478_v31 = vmul.f32 %v9406_v38, %v20762_v23  ;;  %v21020_v62 = vld [vmem:[#allocation402_spill] sm:$0xff]  ;;  %v9537_v46 = vpop.permute.xlu2 %9536 }
 0x539   : > { %v17465_v54 = vsel %vm7388_vm5, %v7660_v28, %v21018_v13  ;;  %v6495_v26 = vsel %vm4812_vm3, %v18733_v51, %v18732_v15  ;;  %v6066_v47 = vmul.f32 %v9405_v61, %v20757_v19  ;;  %v21019_v13 = vld [vmem:[#allocation201_spill] sm:$0xff]  ;;  %v17494_v0 = vsel %vm6709_vm4, %v6979_v2, %v6981_v50 }
 0x53a   : > { %v8023_v21 = vmax.f32 %v7987_v43, 0.0  ;;  %v6595_v60 = vadd.f32 %v6495_v26, %v17191_v44  ;;  %v6170_v38 = vrot.slane %v6067_v59, 4  ;;  %v17491_v45 = vadd.f32 %v6159_v36, %v21019_v13  ;;  %v9505_v59 = vpop.permute.xlu1 %9504 }
 0x53b   : > { %v18735_v6 = vrot.slane %v17475_v22, 5  ;;  %v6168_v15 = vrot.slane %v6066_v47, 4  ;;  %v21021_v43 = vrot.slane %v17185_v17, 4  ;;  %v17503_v36 = vsel %vm7388_vm5, %v7658_v5, %v7660_v28 }
 0x53c   : > { %v8059_v51 = vpack.c.bf16 %v8023_v21, %v8023_v21  ;;  %v6826_v12 = vadd.f32 %v21020_v62, %v6595_v60  ;;  %v21022_v50 = vrot.slane %v17447_v55, 5  ;;  %v21023_v2 = vrot.slane %v17456_v52, 5  ;;  %v21024_v21 = vld [vmem:[#allocation207_spill] sm:$0xff] }
 0x53d   : > { %v6173_v44 = vsel %vm4812_vm3, %v6170_v38, %v21021_v43  ;;  %v21025_v13 = vrot.slane %v21024_v21, 4  ;;  %v21026_v5 = vrot.slane %v17450_v29, 6  ;;  %v21027_v28 = vrot.slane %v17460_v48, 6 }
 0x53e   : > { %v7174_v47 = vsel %vm6709_vm4, %v21023_v2, %v21022_v50  ;;  %v17514_v17 = vadd.f32 %v6173_v44, %v16855_v42  ;;  %8096 = vst.msk [vmem:[%s16754_s15 + $0x4] sm:$0xf] %vm8094_vm6, %v8059_v51  ;;  %v7050_v60 = vadd.f32 %v17220_v25, %v6826_v12  ;;  %v6171_v26 = vsel %vm4812_vm3, %v6168_v15, %v6170_v38  ;;  %v21028_v50 = vld [vmem:[#allocation415_spill] sm:$0xff] }
 0x53f   : > { %v6169_v62 = vsel %vm4812_vm3, %v21025_v13, %v6168_v15  ;;  %v7853_v43 = vsel %vm7388_vm5, %v21027_v28, %v21026_v5  ;;  %v17529_v21 = vmul.f32 %v9405_v61, %v20761_v11  ;;  %v9539_v42 = vunpack.i.h.bf16 %v9537_v46  ;;  %v21033_v28 = vld [vmem:[#allocation144_spill] sm:$0xff] }
 0x540   : > { %v17526_v2 = vadd.f32 %v6169_v62, %v21028_v50  ;;  %v9538_v44 = vunpack.i.l.bf16 %v9537_v46  ;;  %v9507_v13 = vunpack.i.h.bf16 %v9505_v59  ;;  %v7274_v51 = vadd.f32 %v7174_v47, %v7050_v60 }
 0x541   : > { %v21030_v25 = vrot.slane %v17194_v57, 5  ;;  %v21031_v5 = vrot.slane %v17204_v35, 6  ;;  %v21032_v15 = vrot.slane %v17478_v31, 6  ;;  %v17546_v62 = vmul.f32 %v9405_v61, %v20762_v23 }
 0x542   : > { %21029 = vst [vmem:[#allocation151_spill] sm:$0xff] %v17526_v2  ;;  %v17549_v46 = vadd.f32 %v6171_v26, %v16842_v14  ;;  %v6417_v57 = vmul.f32 %v9539_v42, %v20961_v41  ;;  %v7096_v47 = vmul.f32 %v9539_v42, %v20972_v39  ;;  %v9506_v60 = vunpack.i.l.bf16 %v9505_v59  ;;  %v21034_v2 = vld [vmem:[#allocation358_spill] sm:$0xff] }
 0x543   : > { %v17536_v12 = vsel %vm6709_vm4, %v18735_v6, %v21030_v25  ;;  %v17543_v38 = vsel %vm7388_vm5, %v21032_v15, %v21031_v5  ;;  %v7505_v50 = vadd.f32 %v21033_v28, %v7274_v51  ;;  %v17555_v35 = vmul.f32 %v9539_v42, %v20981_v8  ;;  %v9552_v6 = vpop.permute.xlu2 %9551 }
 0x544   : > { %v17558_v25 = vmul.f32 %v9538_v44, %v20961_v41  ;;  %v17561_v5 = vmul.f32 %v9538_v44, %v20972_v39  ;;  %v6502_v61 = vrot.slane %v6417_v57, 4  ;;  %v7181_v15 = vrot.slane %v7096_v47, 5 }
 0x545   : > { %v17564_v14 = vmul.f32 %v9538_v44, %v20981_v8  ;;  %v6073_v26 = vmul.f32 %v9507_v13, %v20757_v19  ;;  %v7729_v59 = vadd.f32 %v17238_v27, %v7505_v50  ;;  %v7860_v16 = vrot.slane %v17555_v35, 6  ;;  %v21036_v44 = vld [vmem:[#allocation359_spill] sm:$0xff] }
 0x546   : > { %v18737_v42 = vrot.slane %v17558_v25, 4  ;;  %v18736_v28 = vrot.slane %v17561_v5, 5  ;;  %v21035_v57 = vrot.slane %v21034_v2, 4  ;;  %v21037_v49 = vrot.slane %v21036_v44, 5 }
 0x547   : > { %v7953_v20 = vadd.f32 %v7853_v43, %v7729_v59  ;;  %v6072_v44 = vmul.f32 %v9506_v60, %v20757_v19  ;;  %v17597_v59 = vmul.f32 %v9506_v60, %v20761_v11  ;;  %v9553_v19 = vunpack.i.l.bf16 %v9552_v6 }
 0x548   : > { %v6505_v47 = vsel %vm4812_vm3, %v6502_v61, %v21035_v57  ;;  %v7184_v13 = vsel %vm6709_vm4, %v7181_v15, %v21037_v49  ;;  %v6503_v27 = vsel %vm4812_vm3, %v18737_v42, %v6502_v61  ;;  %v7182_v2 = vsel %vm6709_vm4, %v18736_v28, %v7181_v15  ;;  %v17592_v49 = vld [vmem:[%s18227_s2] ss:$0 sm:$0xff] }
 0x549   : > { %v6600_v50 = vadd.f32 %v6505_v47, %v17243_v4  ;;  %v6599_v35 = vadd.f32 %v6503_v27, %v17282_v37  ;;  %v6182_v57 = vrot.slane %v6073_v26, 4  ;;  %v7993_v43 = vadd.f32 %v17592_v49, %v7953_v20  ;;  %v21038_v4 = vld [vmem:[#allocation145_spill] sm:$0xff]  ;;  %21039 = vst [vmem:[#allocation165_spill] sm:$0xff] %v17597_v59  ;;  %v21041_v47 = vld [vmem:[#allocation246_spill] sm:$0xff] }
 0x54a   : > { %v17600_v37 = vmul.f32 %v9506_v60, %v20762_v23  ;;  %v6180_v26 = vrot.slane %v6072_v44, 4  ;;  %v9554_v27 = vunpack.i.h.bf16 %v9552_v6  ;;  %v18741_v51 = vrot.slane %v17597_v59, 5 }
 0x54b   : > { %v6831_v61 = vadd.f32 %v21038_v4, %v6600_v50  ;;  %v6830_v15 = vadd.f32 %v21041_v47, %v6599_v35  ;;  %v8029_v28 = vmax.f32 %v7993_v43, 0.0  ;;  %v21042_v4 = vld [vmem:[#allocation223_spill] sm:$0xff] }
 0x54c   : > { %21040 = vst [vmem:[#allocation158_spill] sm:$0xff] %v17600_v37  ;;  %v18740_v20 = vrot.slane %v17600_v37, 6  ;;  %v21043_v11 = vrot.slane %v21042_v4, 4  ;;  %v6183_v23 = vsel %vm4812_vm3, %v6180_v26, %v6182_v57  ;;  %v6423_v35 = vmul.f32 %v9554_v27, %v20961_v41 }
 0x54d   : > { %v7055_v42 = vadd.f32 %v17263_v58, %v6831_v61  ;;  %v7054_v50 = vadd.f32 %v17296_v63, %v6830_v15  ;;  %v8065_v44 = vpack.c.bf16 %v8029_v28, %v8029_v28  ;;  %v21044_v58 = vld [vmem:[#allocation316_spill] sm:$0xff]  ;;  %v21057_v37 = vrot.slane %v17529_v21, 5 }
 0x54e   : > { %v6181_v60 = vsel %vm4812_vm3, %v21043_v11, %v6180_v26  ;;  %v17616_v61 = vadd.f32 %v6183_v23, %v21044_v58  ;;  %v21045_v63 = vld [vmem:[#allocation224_spill] sm:$0xff]  ;;  %v21047_v11 = vld [vmem:[#allocation225_spill] sm:$0xff]  ;;  %v21050_v23 = vld [vmem:[#allocation139_spill] sm:$0xff]  ;;  %v17638_v26 = vmul.f32 %v9553_v19, %v20961_v41 }
 0x54f   : > { %v7279_v6 = vadd.f32 %v7184_v13, %v7055_v42  ;;  %v17613_v43 = vadd.f32 %v6181_v60, %v16937_v30  ;;  %v7278_v47 = vadd.f32 %v7182_v2, %v7054_v50  ;;  %v21046_v15 = vrot.slane %v21045_v63, 5  ;;  %8102 = vst.msk [vmem:[%s16754_s15 + $0x1c] sm:$0xf] %vm8094_vm6, %v8065_v44  ;;  %v21051_v50 = vld [vmem:[#allocation338_spill] sm:$0xff]  ;;  %v21052_v58 = vld [vmem:[#allocation372_spill] sm:$0xff] }
 0x550   : > { %v21048_v57 = vrot.slane %v21047_v11, 6  ;;  %v6514_v30 = vrot.slane %v6423_v35, 4  ;;  %v7102_v13 = vmul.f32 %v9554_v27, %v20972_v39  ;;  %v7781_v2 = vmul.f32 %v9554_v27, %v20981_v8 }
 0x551   : > { %v17623_v4 = vsel %vm6709_vm4, %v21046_v15, %v18741_v51  ;;  %v7510_v28 = vadd.f32 %v21050_v23, %v7279_v6  ;;  %v7509_v60 = vadd.f32 %v21051_v50, %v7278_v47  ;;  %v21053_v63 = vrot.slane %v21052_v58, 4  ;;  %v21055_v50 = vld [vmem:[#allocation5_spill] sm:$0xff] }
 0x552   : > { %v17630_v42 = vsel %vm7388_vm5, %v21048_v57, %v18740_v20  ;;  %v17645_v11 = vmul.f32 %v9553_v19, %v20972_v39  ;;  %v17648_v35 = vmul.f32 %v9553_v19, %v20981_v8  ;;  %v21054_v6 = vrot.slane %v17564_v14, 6  ;;  %v9567_v19 = vpop.permute.xlu2 %9566 }
 0x553   : > { %21049 = vst [vmem:[#allocation286_spill] sm:$0xff] %v17630_v42  ;;  %v6517_v15 = vsel %vm4812_vm3, %v6514_v30, %v21053_v63  ;;  %v7734_v44 = vadd.f32 %v17268_v3, %v7510_v28  ;;  %v7193_v57 = vrot.slane %v7102_v13, 5  ;;  %v18744_v23 = vrot.slane %v17638_v26, 4  ;;  %v21058_v3 = vld [vmem:[#allocation208_spill] sm:$0xff] }
 0x554   : > { %v7861_v27 = vsel %vm7388_vm5, %v21054_v6, %v7860_v16  ;;  %v7733_v47 = vadd.f32 %v17311_v33, %v7509_v60  ;;  %v21056_v58 = vrot.slane %v21055_v50, 6  ;;  %v7872_v20 = vrot.slane %v7781_v2, 6  ;;  %v21060_v2 = vld [vmem:[#allocation73_spill] sm:$0xff] }
 0x555   : > { %v6606_v51 = vadd.f32 %v6517_v15, %v17319_v32  ;;  %v21059_v28 = vrot.slane %v21058_v3, 5  ;;  %v6515_v33 = vsel %vm4812_vm3, %v18744_v23, %v6514_v30  ;;  %v18745_v60 = vrot.slane %v17645_v11, 5  ;;  %v21063_v30 = vld [vmem:[#allocation281_spill] sm:$0xff] }
 0x556   : > { %v7863_v63 = vsel %vm7388_vm5, %v7860_v16, %v21056_v58  ;;  %v7957_v6 = vadd.f32 %v7861_v27, %v7733_v47  ;;  %v6605_v16 = vadd.f32 %v6515_v33, %v17341_v18  ;;  %v21061_v58 = vld [vmem:[#allocation373_spill] sm:$0xff]  ;;  %v21064_v47 = vld [vmem:[#allocation375_spill] sm:$0xff]  ;;  %v9522_v33 = vpop.permute.xlu1 %9521 }
 0x557   : > { %v17665_v59 = vsel %vm6709_vm4, %v21059_v28, %v21057_v37  ;;  %v7958_v13 = vadd.f32 %v7863_v63, %v7734_v44  ;;  %v6837_v32 = vadd.f32 %v21060_v2, %v6606_v51  ;;  %v21062_v3 = vrot.slane %v21061_v58, 5 }
 0x558   : > { %v9569_v44 = vunpack.i.h.bf16 %v9567_v19  ;;  %v9568_v63 = vunpack.i.l.bf16 %v9567_v19  ;;  %v7997_v28 = vadd.f32 %v17592_v49, %v7957_v6  ;;  %v6836_v23 = vadd.f32 %v21063_v30, %v6605_v16 }
 0x559   : > { %v7998_v50 = vadd.f32 %v17592_v49, %v7958_v13  ;;  %v7196_v37 = vsel %vm6709_vm4, %v7193_v57, %v21062_v3  ;;  %v7061_v27 = vadd.f32 %v17316_v10, %v6837_v32  ;;  %v21065_v18 = vrot.slane %v21064_v47, 6 }
 0x55a   : > { %v7194_v13 = vsel %vm6709_vm4, %v18745_v60, %v7193_v57  ;;  %v6429_v58 = vmul.f32 %v9569_v44, %v20961_v41  ;;  %v7108_v19 = vmul.f32 %v9569_v44, %v20972_v39  ;;  %v8033_v6 = vmax.f32 %v7997_v28, 0.0  ;;  %v21066_v57 = vld [vmem:[#allocation3_spill] sm:$0xff] }
 0x55b   : > { %v7875_v51 = vsel %vm7388_vm5, %v7872_v20, %v21065_v18  ;;  %v8034_v2 = vmax.f32 %v7998_v50, 0.0  ;;  %v7060_v16 = vadd.f32 %v17351_v1, %v6836_v23  ;;  %v7285_v10 = vadd.f32 %v7196_v37, %v7061_v27  ;;  %v21067_v1 = vld [vmem:[#allocation395_spill] sm:$0xff] }
 0x55c   : > { %v17691_v32 = vmul.f32 %v9568_v63, %v20961_v41  ;;  %v6526_v30 = vrot.slane %v6429_v58, 4  ;;  %v7787_v50 = vmul.f32 %v9569_v44, %v20981_v8  ;;  %v9524_v47 = vunpack.i.h.bf16 %v9522_v33  ;;  %v21069_v44 = vld [vmem:[#allocation324_spill] sm:$0xff]  ;;  %v21070_v58 = vld [vmem:[#allocation275_spill] sm:$0xff] }
 0x55d   : > { %v8070_v3 = vpack.c.bf16 %v8034_v2, %v8034_v2  ;;  %v8069_v18 = vpack.c.bf16 %v8033_v6, %v8033_v6  ;;  %v7284_v15 = vadd.f32 %v7194_v13, %v7060_v16  ;;  %v7516_v60 = vadd.f32 %v21066_v57, %v7285_v10 }
 0x55e   : > { %v18746_v42 = vrot.slane %v17691_v32, 4  ;;  %v7205_v28 = vrot.slane %v7108_v19, 5  ;;  %v21068_v23 = vrot.slane %v21067_v1, 4  ;;  %v17702_v27 = vmul.f32 %v9568_v63, %v20972_v39 }
 0x55f   : > { %8107 = vst.msk [vmem:[%s16754_s15 + $0x30] sm:$0xf] %vm8094_vm6, %v8070_v3  ;;  %v17705_v2 = vmul.f32 %v9568_v63, %v20981_v8  ;;  %v7515_v13 = vadd.f32 %v21069_v44, %v7284_v15  ;;  %v7740_v6 = vadd.f32 %v21070_v58, %v7516_v60  ;;  %v21071_v10 = vrot.slane %v17648_v35, 6  ;;  %v21073_v58 = vld [vmem:[#allocation40_spill] sm:$0xff] }
 0x560   : > { %v6529_v37 = vsel %vm4812_vm3, %v6526_v30, %v21068_v23  ;;  %8106 = vst.msk [vmem:[%s16754_s15 + $0x2c] sm:$0xf] %vm8094_vm6, %v8069_v18  ;;  %v6527_v19 = vsel %vm4812_vm3, %v18746_v42, %v6526_v30  ;;  %v7884_v57 = vrot.slane %v7787_v50, 6  ;;  %v7203_v1 = vrot.slane %v17702_v27, 5  ;;  %v21072_v23 = vld [vmem:[#allocation424_spill] sm:$0xff] }
 0x561   : > { %v6612_v16 = vadd.f32 %v6529_v37, %v17395_v9  ;;  %v7873_v3 = vsel %vm7388_vm5, %v21071_v10, %v7872_v20  ;;  %v6611_v63 = vadd.f32 %v6527_v19, %v17491_v45  ;;  %v7739_v18 = vadd.f32 %v17419_v34, %v7515_v13  ;;  %v21074_v42 = vld [vmem:[#allocation396_spill] sm:$0xff] }
 0x562   : > { %v7964_v15 = vadd.f32 %v7875_v51, %v7740_v6  ;;  %v6411_v44 = vmul.f32 %v9524_v47, %v20961_v41  ;;  %v21075_v9 = vrot.slane %v21074_v42, 5  ;;  %v7882_v20 = vrot.slane %v17705_v2, 6 }
 0x563   : > { %v6843_v60 = vadd.f32 %v21072_v23, %v6612_v16  ;;  %v6842_v30 = vadd.f32 %v21073_v58, %v6611_v63  ;;  %v17729_v50 = vmul.f32 %v9524_v47, %v20972_v39  ;;  %v7963_v45 = vadd.f32 %v7873_v3, %v7739_v18  ;;  %v21079_v58 = vld [vmem:[#allocation303_spill] sm:$0xff] }
 0x564   : > { %v7208_v37 = vsel %vm6709_vm4, %v7205_v28, %v21075_v9  ;;  %v8004_v19 = vadd.f32 %v17592_v49, %v7964_v15  ;;  %v6490_v51 = vrot.slane %v6411_v44, 4  ;;  %v7206_v6 = vsel %vm6709_vm4, %v7203_v1, %v7205_v28  ;;  %v21077_v15 = vld [vmem:[#allocation397_spill] sm:$0xff] }
 0x565   : > { %v7067_v34 = vadd.f32 %v17435_v24, %v6843_v60  ;;  %v7066_v13 = vadd.f32 %v17494_v0, %v6842_v30  ;;  %v17738_v42 = vmul.f32 %v9524_v47, %v20981_v8  ;;  %v9523_v16 = vunpack.i.l.bf16 %v9522_v33  ;;  %v21080_v9 = vld [vmem:[#allocation25_spill] sm:$0xff] }
 0x566   : > { %v8003_v10 = vadd.f32 %v17592_v49, %v7963_v45  ;;  %v8040_v63 = vmax.f32 %v8004_v19, 0.0  ;;  %v21076_v3 = vrot.slane %v17453_v56, 4  ;;  %v7885_v0 = vsel %vm7388_vm5, %v7882_v20, %v7884_v57  ;;  %v21081_v19 = vld [vmem:[#allocation156_spill] sm:$0xff] }
 0x567   : > { %v7291_v23 = vadd.f32 %v7208_v37, %v7067_v34  ;;  %v7290_v18 = vadd.f32 %v7206_v6, %v7066_v13  ;;  %v21078_v28 = vrot.slane %v21077_v15, 6  ;;  %v7169_v33 = vrot.slane %v17729_v50, 5  ;;  %v9582_v6 = vpop.permute.xlu2 %9581  ;;  %v21082_v50 = vld [vmem:[#allocation380_spill] sm:$0xff] }
 0x568   : > { %v6493_v24 = vsel %vm4812_vm3, %v6490_v51, %v21076_v3  ;;  %v8039_v60 = vmax.f32 %v8003_v10, 0.0  ;;  %v8076_v44 = vpack.c.bf16 %v8040_v63, %v8040_v63  ;;  %v6410_v56 = vmul.f32 %v9523_v16, %v20961_v41  ;;  %v21083_v10 = vld [vmem:[#allocation183_spill] sm:$0xff] }
 0x569   : > { %v7887_v47 = vsel %vm7388_vm5, %v7884_v57, %v21078_v28  ;;  %v7522_v30 = vadd.f32 %v21079_v58, %v7291_v23  ;;  %v7521_v37 = vadd.f32 %v21080_v9, %v7290_v18  ;;  %v7848_v45 = vrot.slane %v17738_v42, 6  ;;  %v21084_v28 = vld [vmem:[#allocation272_spill] sm:$0xff]  ;;  %v21085_v9 = vld [vmem:[#allocation71_spill] sm:$0xff] }
 0x56a   : > { %v6594_v34 = vadd.f32 %v6493_v24, %v21081_v19  ;;  %v7089_v13 = vmul.f32 %v9523_v16, %v20972_v39  ;;  %v8075_v3 = vpack.c.bf16 %v8039_v60, %v8039_v60  ;;  %8113 = vst.msk [vmem:[%s16754_s15 + $0x48] sm:$0xf] %vm8094_vm6, %v8076_v44  ;;  %v6225_v63 = vadd.f32 %v21083_v10, %v21082_v50  ;;  %v21087_v50 = vld [vmem:[#allocation306_spill] sm:$0xff] }
 0x56b   : > { %v7746_v57 = vadd.f32 %v17465_v54, %v7522_v30  ;;  %v6488_v23 = vrot.slane %v6410_v56, 4  ;;  %v7745_v15 = vadd.f32 %v17503_v36, %v7521_v37  ;;  %v7768_v42 = vmul.f32 %v9523_v16, %v20981_v8  ;;  %v21088_v36 = vld [vmem:[#allocation314_spill] sm:$0xff] }
 0x56c   : > { %v6825_v18 = vadd.f32 %v21084_v28, %v6594_v34  ;;  %v7167_v58 = vrot.slane %v7089_v13, 5  ;;  %8112 = vst.msk [vmem:[%s16754_s15 + $0x44] sm:$0xf] %vm8094_vm6, %v8075_v3  ;;  %v21086_v60 = vrot.slane %v21085_v9, 4  ;;  %v9584_v30 = vunpack.i.h.bf16 %v9582_v6  ;;  %v21095_v9 = vld [vmem:[#allocation334_spill] sm:$0xff] }
 0x56d   : > { %v7970_v24 = vadd.f32 %v7887_v47, %v7746_v57  ;;  %v6491_v54 = vsel %vm4812_vm3, %v6488_v23, %v6490_v51  ;;  %v7969_v19 = vadd.f32 %v7885_v0, %v7745_v15  ;;  %v21089_v34 = vrot.slane %v17475_v22, 5  ;;  %v21094_v22 = vld [vmem:[#allocation116_spill] sm:$0xff] }
 0x56e   : > { %v6489_v44 = vsel %vm4812_vm3, %v21086_v60, %v6488_v23  ;;  %v6593_v10 = vadd.f32 %v6491_v54, %v6225_v63  ;;  %v7049_v37 = vadd.f32 %v21088_v36, %v6825_v18  ;;  %v21090_v16 = vrot.slane %v17529_v21, 5  ;;  %v21093_v23 = vld [vmem:[#allocation35_spill] sm:$0xff]  ;;  %v21098_v36 = vld [vmem:[#allocation184_spill] sm:$0xff] }
 0x56f   : > { %v6592_v56 = vadd.f32 %v6489_v44, %v21087_v50  ;;  %v8010_v47 = vadd.f32 %v17592_v49, %v7970_v24  ;;  %v21091_v3 = vrot.slane %v17456_v52, 5  ;;  %v21092_v0 = vrot.slane %v17460_v48, 6  ;;  %v21097_v48 = vld [vmem:[#allocation302_spill] sm:$0xff] }
 0x570   : > { %v17778_v13 = vsel %vm6709_vm4, %v21090_v16, %v21089_v34  ;;  %v8009_v63 = vadd.f32 %v17592_v49, %v7969_v19  ;;  %v6824_v28 = vadd.f32 %v21094_v22, %v6593_v10  ;;  %v21096_v60 = vrot.slane %v21095_v9, 5  ;;  %v21099_v34 = vld [vmem:[#allocation406_spill] sm:$0xff] }
 0x571   : > { %v7172_v51 = vsel %vm6709_vm4, %v7169_v33, %v21091_v3  ;;  %v7851_v57 = vsel %vm7388_vm5, %v7848_v45, %v21092_v0  ;;  %v6823_v15 = vadd.f32 %v21093_v23, %v6592_v56  ;;  %v8046_v18 = vmax.f32 %v8010_v47, 0.0 }
 0x572   : > { %v7273_v21 = vadd.f32 %v7172_v51, %v7049_v37  ;;  %v7168_v24 = vsel %vm6709_vm4, %v21096_v60, %v7167_v58  ;;  %v7846_v52 = vrot.slane %v7768_v42, 6  ;;  %v6435_v44 = vmul.f32 %v9584_v30, %v20961_v41  ;;  %v21100_v42 = vld [vmem:[#allocation83_spill] sm:$0xff] }
 0x573   : > { %v8045_v54 = vmax.f32 %v8009_v63, 0.0  ;;  %v7047_v50 = vadd.f32 %v21097_v48, %v6823_v15  ;;  %v7048_v19 = vadd.f32 %v21098_v36, %v6824_v28  ;;  %v8082_v16 = vpack.c.bf16 %v8046_v18, %v8046_v18  ;;  %v21101_v63 = vld [vmem:[#allocation335_spill] sm:$0xff]  ;;  %v21103_v18 = vld [vmem:[#allocation405_spill] sm:$0xff] }
 0x574   : > { %v7504_v56 = vadd.f32 %v21099_v34, %v7273_v21  ;;  %v7170_v10 = vsel %vm6709_vm4, %v7167_v58, %v7169_v33  ;;  %v6538_v37 = vrot.slane %v6435_v44, 4  ;;  %v7114_v47 = vmul.f32 %v9584_v30, %v20972_v39  ;;  %v21105_v58 = vld [vmem:[#allocation187_spill] sm:$0xff]  ;;  %v21107_v34 = vld [vmem:[#allocation414_spill] sm:$0xff] }
 0x575   : > { %v8081_v3 = vpack.c.bf16 %v8045_v54, %v8045_v54  ;;  %v7271_v51 = vadd.f32 %v7168_v24, %v7047_v50  ;;  %v7272_v0 = vadd.f32 %v7170_v10, %v7048_v19  ;;  %8119 = vst.msk [vmem:[%s16754_s15 + $0x60] sm:$0xf] %vm8094_vm6, %v8082_v16  ;;  %v21102_v15 = vrot.slane %v21101_v63, 6  ;;  %v21106_v24 = vld [vmem:[#allocation389_spill] sm:$0xff]  ;;  %v9532_v50 = vpop.permute.xlu1 %9531 }
 0x576   : > { %v7728_v23 = vadd.f32 %v21100_v42, %v7504_v56  ;;  %v7793_v28 = vmul.f32 %v9584_v30, %v20981_v8  ;;  %v9583_v21 = vunpack.i.l.bf16 %v9582_v6  ;;  %v21104_v9 = vrot.slane %v21103_v18, 4  ;;  %v21108_v16 = vld [vmem:[#allocation185_spill] sm:$0xff] }
 0x577   : > { %v7847_v22 = vsel %vm7388_vm5, %v21102_v15, %v7846_v52  ;;  %8118 = vst.msk [vmem:[%s16754_s15 + $0x5c] sm:$0xf] %vm8094_vm6, %v8081_v3  ;;  %v7502_v60 = vadd.f32 %v21105_v58, %v7271_v51  ;;  %v7503_v44 = vadd.f32 %v21106_v24, %v7272_v0  ;;  %v7849_v36 = vsel %vm7388_vm5, %v7846_v52, %v7848_v45  ;;  %v21109_v51 = vld [vmem:[#allocation51_spill] sm:$0xff] }
 0x578   : > { %v6541_v33 = vsel %vm4812_vm3, %v6538_v37, %v21104_v9  ;;  %v7952_v54 = vadd.f32 %v7851_v57, %v7728_v23  ;;  %v7217_v19 = vrot.slane %v7114_v47, 5  ;;  %v17816_v30 = vmul.f32 %v9583_v21, %v20961_v41  ;;  %v21110_v9 = vld [vmem:[#allocation410_spill] sm:$0xff] }
 0x579   : > { %v6618_v48 = vadd.f32 %v6541_v33, %v17514_v17  ;;  %v17819_v6 = vmul.f32 %v9583_v21, %v20972_v39  ;;  %v7726_v56 = vadd.f32 %v21107_v34, %v7502_v60  ;;  %v7727_v10 = vadd.f32 %v21108_v16, %v7503_v44  ;;  %v21112_v34 = vld [vmem:[#allocation274_spill] sm:$0xff] }
 0x57a   : > { %v7992_v3 = vadd.f32 %v17592_v49, %v7952_v54  ;;  %v7896_v0 = vrot.slane %v7793_v28, 6  ;;  %v6536_v17 = vrot.slane %v17816_v30, 4  ;;  %v17827_v45 = vmul.f32 %v9583_v21, %v20981_v8 }
 0x57b   : > { %v6849_v57 = vadd.f32 %v21109_v51, %v6618_v48  ;;  %v9534_v52 = vunpack.i.h.bf16 %v9532_v50  ;;  %v7950_v47 = vadd.f32 %v7847_v22, %v7726_v56  ;;  %v7951_v42 = vadd.f32 %v7849_v36, %v7727_v10  ;;  %v21115_v51 = vld [vmem:[#allocation434_spill] sm:$0xff] }
 0x57c   : > { %v8028_v23 = vmax.f32 %v7992_v3, 0.0  ;;  %v6539_v15 = vsel %vm4812_vm3, %v6536_v17, %v6538_v37  ;;  %v7215_v18 = vrot.slane %v17819_v6, 5  ;;  %v21111_v28 = vrot.slane %v21110_v9, 5  ;;  %v21202_v6 = vld [vmem:[#allocation279_spill] sm:$0xff] }
 0x57d   : > { %v7073_v63 = vadd.f32 %v17536_v12, %v6849_v57  ;;  %v6415_v21 = vmul.f32 %v9534_v52, %v20961_v41  ;;  %v7990_v58 = vadd.f32 %v17592_v49, %v7950_v47  ;;  %v7991_v22 = vadd.f32 %v17592_v49, %v7951_v42  ;;  %v21116_v47 = vld [vmem:[#allocation412_spill] sm:$0xff] }
 0x57e   : > { %v7220_v33 = vsel %vm6709_vm4, %v7217_v19, %v21111_v28  ;;  %v8064_v60 = vpack.c.bf16 %v8028_v23, %v8028_v23  ;;  %v6617_v24 = vadd.f32 %v6539_v15, %v17549_v46  ;;  %v7894_v44 = vrot.slane %v17827_v45, 6 }
 0x57f   : > { %v7297_v12 = vadd.f32 %v7220_v33, %v7073_v63  ;;  %v6498_v54 = vrot.slane %v6415_v21, 4  ;;  %v7094_v37 = vmul.f32 %v9534_v52, %v20972_v39  ;;  %v8026_v48 = vmax.f32 %v7990_v58, 0.0 }
 0x580   : > { %v8027_v36 = vmax.f32 %v7991_v22, 0.0  ;;  %8101 = vst.msk [vmem:[%s16754_s15 + $0x18] sm:$0xf] %vm8094_vm6, %v8064_v60  ;;  %v6848_v56 = vadd.f32 %v21112_v34, %v6617_v24  ;;  %v9533_v16 = vunpack.i.l.bf16 %v9532_v50  ;;  %v21113_v10 = vrot.slane %v17478_v31, 6  ;;  %v9713_v60 = vpop.permute.xlu2 %9712 }
 0x581   : > { %v21114_v3 = vrot.slane %v17546_v62, 6  ;;  %v7528_v57 = vadd.f32 %v21115_v51, %v7297_v12  ;;  %v21117_v42 = vrot.slane %v21116_v47, 6  ;;  %v21118_v63 = vrot.slane %v17558_v25, 4  ;;  %v21119_v25 = vld [vmem:[#allocation325_spill] sm:$0xff] }
 0x582   : > { %v8062_v9 = vpack.c.bf16 %v8026_v48, %v8026_v48  ;;  %v8063_v28 = vpack.c.bf16 %v8027_v36, %v8027_v36  ;;  %v7072_v50 = vadd.f32 %v17778_v13, %v6848_v56  ;;  %v6414_v31 = vmul.f32 %v9533_v16, %v20961_v41 }
 0x583   : > { %v7673_v46 = vsel %vm7388_vm5, %v21114_v3, %v21113_v10  ;;  %v7899_v23 = vsel %vm7388_vm5, %v7896_v0, %v21117_v42  ;;  %v6501_v15 = vsel %vm4812_vm3, %v6498_v54, %v21118_v63  ;;  %v7218_v33 = vsel %vm6709_vm4, %v7215_v18, %v7217_v19  ;;  %v21123_v42 = vld [vmem:[#allocation178_spill] sm:$0xff] }
 0x584   : > { %v7752_v21 = vadd.f32 %v17543_v38, %v7528_v57  ;;  %v7897_v58 = vsel %vm7388_vm5, %v7894_v44, %v7896_v0  ;;  %v6598_v22 = vadd.f32 %v6501_v15, %v21119_v25  ;;  %8099 = vst.msk [vmem:[%s16754_s15 + $0x10] sm:$0xf] %vm8094_vm6, %v8062_v9  ;;  %v7296_v24 = vadd.f32 %v7218_v33, %v7072_v50  ;;  %v21120_v38 = vld [vmem:[#allocation290_spill] sm:$0xff]  ;;  %v21121_v0 = vld [vmem:[#allocation343_spill] sm:$0xff] }
 0x585   : > { %v7177_v12 = vrot.slane %v7094_v37, 5  ;;  %v6496_v13 = vrot.slane %v6414_v31, 4  ;;  %v7093_v48 = vmul.f32 %v9533_v16, %v20972_v39  ;;  %8100 = vst.msk [vmem:[%s16754_s15 + $0x14] sm:$0xf] %vm8094_vm6, %v8063_v28  ;;  %v7773_v19 = vmul.f32 %v9534_v52, %v20981_v8  ;;  %v21125_v52 = vld [vmem:[#allocation312_spill] sm:$0xff] }
 0x586   : > { %v7976_v36 = vadd.f32 %v7899_v23, %v7752_v21  ;;  %v6829_v34 = vadd.f32 %v21120_v38, %v6598_v22  ;;  %v7772_v56 = vmul.f32 %v9533_v16, %v20981_v8  ;;  %v7527_v10 = vadd.f32 %v21121_v0, %v7296_v24  ;;  %v21124_v23 = vld [vmem:[#allocation297_spill] sm:$0xff]  ;;  %v21127_v21 = vld [vmem:[#allocation399_spill] sm:$0xff] }
 0x587   : > { %v21122_v3 = vrot.slane %v17444_v53, 4  ;;  %v6499_v37 = vsel %vm4812_vm3, %v6496_v13, %v6498_v54  ;;  %v9715_v57 = vunpack.i.h.bf16 %v9713_v60  ;;  %v21126_v16 = vrot.slane %v17561_v5, 5  ;;  %v21128_v54 = vld [vmem:[#allocation128_spill] sm:$0xff]  ;;  %v21130_v5 = vld [vmem:[#allocation155_spill] sm:$0xff] }
 0x588   : > { %v8016_v47 = vadd.f32 %v17592_v49, %v7976_v36  ;;  %v6597_v15 = vadd.f32 %v6499_v37, %v21124_v23  ;;  %v7053_v9 = vadd.f32 %v21125_v52, %v6829_v34  ;;  %v7751_v28 = vadd.f32 %v7673_v46, %v7527_v10  ;;  %v21129_v46 = vld [vmem:[#allocation262_spill] sm:$0xff] }
 0x589   : > { %v6497_v51 = vsel %vm4812_vm3, %v21122_v3, %v6496_v13  ;;  %v7180_v50 = vsel %vm6709_vm4, %v7177_v12, %v21126_v16  ;;  %v7175_v31 = vrot.slane %v7093_v48, 5  ;;  %v9714_v53 = vunpack.i.l.bf16 %v9713_v60  ;;  %v9547_v60 = vpop.permute.xlu1 %9546 }
 0x58a   : > { %v6596_v63 = vadd.f32 %v6497_v51, %v21123_v42  ;;  %v8052_v33 = vmax.f32 %v8016_v47, 0.0  ;;  %v6828_v22 = vadd.f32 %v21128_v54, %v6597_v15  ;;  %v7277_v24 = vadd.f32 %v7180_v50, %v7053_v9  ;;  %v21131_v51 = vld [vmem:[#allocation271_spill] sm:$0xff]  ;;  %v21136_v9 = vld [vmem:[#allocation421_spill] sm:$0xff] }
 0x58b   : > { %v7975_v13 = vadd.f32 %v7897_v58, %v7751_v28  ;;  %v7856_v36 = vrot.slane %v7773_v19, 6  ;;  %v7854_v38 = vrot.slane %v7772_v56, 6  ;;  %v6441_v0 = vmul.f32 %v9715_v57, %v20961_v41  ;;  %v21134_v57 = vld [vmem:[#allocation209_spill] sm:$0xff] }
 0x58c   : > { %v6827_v25 = vadd.f32 %v21127_v21, %v6596_v63  ;;  %v8088_v34 = vpack.c.bf16 %v8052_v33, %v8052_v33  ;;  %v7052_v3 = vadd.f32 %v21130_v5, %v6828_v22  ;;  %v7508_v48 = vadd.f32 %v21131_v51, %v7277_v24  ;;  %v21139_v33 = vld [vmem:[#allocation63_spill] sm:$0xff] }
 0x58d   : > { %v8015_v37 = vadd.f32 %v17592_v49, %v7975_v13  ;;  %v21132_v47 = vrot.slane %v17447_v55, 5  ;;  %v7178_v58 = vsel %vm6709_vm4, %v7175_v31, %v7177_v12  ;;  %v17900_v19 = vmul.f32 %v9714_v53, %v20961_v41 }
 0x58e   : > { %v7051_v10 = vadd.f32 %v21129_v46, %v6827_v25  ;;  %v21133_v56 = vrot.slane %v17546_v62, 6  ;;  %v21135_v63 = vrot.slane %v21134_v57, 6  ;;  %8125 = vst.msk [vmem:[%s16754_s15 + $0x78] sm:$0xf] %vm8094_vm6, %v8088_v34  ;;  %v7276_v52 = vadd.f32 %v7178_v58, %v7052_v3  ;;  %v21140_v25 = vld [vmem:[#allocation276_spill] sm:$0xff] }
 0x58f   : > { %v7176_v42 = vsel %vm6709_vm4, %v21132_v47, %v7175_v31  ;;  %v7732_v55 = vadd.f32 %v21136_v9, %v7508_v48  ;;  %v8051_v28 = vmax.f32 %v8015_v37, 0.0  ;;  %v21137_v16 = vrot.slane %v17564_v14, 6 }
 0x590   : > { %v17907_v23 = vsel %vm7388_vm5, %v21135_v63, %v21133_v56  ;;  %v7275_v15 = vadd.f32 %v7176_v42, %v7051_v10  ;;  %v21138_v50 = vrot.slane %v17450_v29, 6  ;;  %v9549_v31 = vunpack.i.h.bf16 %v9547_v60  ;;  %v21141_v10 = vld [vmem:[#allocation255_spill] sm:$0xff]  ;;  %v21142_v29 = vld [vmem:[#allocation58_spill] sm:$0xff] }
 0x591   : > { %v7859_v12 = vsel %vm7388_vm5, %v7856_v36, %v21137_v16  ;;  %v7507_v54 = vadd.f32 %v21140_v25, %v7276_v52  ;;  %v6550_v24 = vrot.slane %v6441_v0, 4  ;;  %v8087_v13 = vpack.c.bf16 %v8051_v28, %v8051_v28  ;;  %v21144_v28 = vld [vmem:[#allocation263_spill] sm:$0xff] }
 0x592   : > { %v7855_v62 = vsel %vm7388_vm5, %v21138_v50, %v7854_v38  ;;  %v7506_v21 = vadd.f32 %v21139_v33, %v7275_v15  ;;  %v7956_v22 = vadd.f32 %v7859_v12, %v7732_v55  ;;  %v6548_v34 = vrot.slane %v17900_v19, 4  ;;  %v21145_v50 = vld [vmem:[#allocation237_spill] sm:$0xff] }
 0x593   : > { %v17922_v46 = vmul.f32 %v9714_v53, %v20972_v39  ;;  %v6421_v14 = vmul.f32 %v9549_v31, %v20961_v41  ;;  %v7731_v3 = vadd.f32 %v21142_v29, %v7507_v54  ;;  %v7857_v51 = vsel %vm7388_vm5, %v7854_v38, %v7856_v36  ;;  %8124 = vst.msk [vmem:[%s16754_s15 + $0x74] sm:$0xf] %vm8094_vm6, %v8087_v13  ;;  %v21148_v13 = vld [vmem:[#allocation353_spill] sm:$0xff] }
 0x594   : > { %v7730_v5 = vadd.f32 %v21141_v10, %v7506_v21  ;;  %v7996_v48 = vadd.f32 %v17592_v49, %v7956_v22  ;;  %v17932_v0 = vmul.f32 %v9714_v53, %v20981_v8  ;;  %v7100_v47 = vmul.f32 %v9549_v31, %v20972_v39  ;;  %v21147_v22 = vld [vmem:[#allocation198_spill] sm:$0xff] }
 0x595   : > { %v6510_v37 = vrot.slane %v6421_v14, 4  ;;  %v9548_v42 = vunpack.i.l.bf16 %v9547_v60  ;;  %v7955_v56 = vadd.f32 %v7857_v51, %v7731_v3  ;;  %v7779_v63 = vmul.f32 %v9549_v31, %v20981_v8  ;;  %v17958_v51 = vpop.permute.xlu2 %7080 }
 0x596   : > { %v7954_v58 = vadd.f32 %v7855_v62, %v7730_v5  ;;  %v8032_v57 = vmax.f32 %v7996_v48, 0.0  ;;  %v6551_v36 = vsel %vm4812_vm3, %v6548_v34, %v6550_v24  ;;  %v7227_v38 = vrot.slane %v17922_v46, 5  ;;  %v21146_v62 = vld [vmem:[#allocation189_spill] sm:$0xff]  ;;  %v21220_v46 = vld [vmem:[#allocation408_spill] sm:$0xff] }
 0x597   : > { %v21143_v15 = vrot.slane %v17638_v26, 4  ;;  %v6420_v52 = vmul.f32 %v9548_v42, %v20961_v41  ;;  %v7995_v9 = vadd.f32 %v17592_v49, %v7955_v56  ;;  %v7189_v12 = vrot.slane %v7100_v47, 5 }
 0x598   : > { %v7994_v60 = vadd.f32 %v17592_v49, %v7954_v58  ;;  %v8068_v55 = vpack.c.bf16 %v8032_v57, %v8032_v57  ;;  %v6235_v31 = vadd.f32 %v21146_v62, %v21145_v50  ;;  %v7099_v21 = vmul.f32 %v9548_v42, %v20972_v39  ;;  %v21150_v58 = vld [vmem:[#allocation350_spill] sm:$0xff]  ;;  %v21155_v50 = vld [vmem:[#allocation115_spill] sm:$0xff] }
 0x599   : > { %v6513_v53 = vsel %vm4812_vm3, %v6510_v37, %v21143_v15  ;;  %v6508_v33 = vrot.slane %v6420_v52, 4  ;;  %v8031_v26 = vmax.f32 %v7995_v9, 0.0  ;;  %v7868_v54 = vrot.slane %v7779_v63, 6  ;;  %v9562_v63 = vpop.permute.xlu1 %9561 }
 0x59a   : > { %v6604_v16 = vadd.f32 %v6513_v53, %v21144_v28  ;;  %v8030_v25 = vmax.f32 %v7994_v60, 0.0  ;;  %8105 = vst.msk [vmem:[%s16754_s15 + $0x28] sm:$0xf] %vm8094_vm6, %v8068_v55  ;;  %v21149_v14 = vrot.slane %v21148_v13, 4  ;;  %v7187_v29 = vrot.slane %v7099_v21, 5  ;;  %v21152_v60 = vld [vmem:[#allocation61_spill] sm:$0xff] }
 0x59b   : > { %v6511_v5 = vsel %vm4812_vm3, %v6508_v33, %v6510_v37  ;;  %v7778_v3 = vmul.f32 %v9548_v42, %v20981_v8  ;;  %v8067_v47 = vpack.c.bf16 %v8031_v26, %v8031_v26  ;;  %v17962_v15 = vadd.f32 %v6551_v36, %v17616_v61  ;;  %v21154_v28 = vld [vmem:[#allocation11_spill] sm:$0xff]  ;;  %v21156_v21 = vld [vmem:[#allocation92_spill] sm:$0xff]  ;;  %v21157_v26 = vld [vmem:[#allocation190_spill] sm:$0xff] }
 0x59c   : > { %v6835_v24 = vadd.f32 %v21147_v22, %v6604_v16  ;;  %v6509_v10 = vsel %vm4812_vm3, %v21149_v14, %v6508_v33  ;;  %v8066_v48 = vpack.c.bf16 %v8030_v25, %v8030_v25  ;;  %v6603_v57 = vadd.f32 %v6511_v5, %v6235_v31  ;;  %v21158_v22 = vld [vmem:[#allocation355_spill] sm:$0xff] }
 0x59d   : > { %v6602_v56 = vadd.f32 %v6509_v10, %v21150_v58  ;;  %v7906_v53 = vrot.slane %v17932_v0, 6  ;;  %v21151_v52 = vrot.slane %v17645_v11, 5  ;;  %v21153_v9 = vrot.slane %v17648_v35, 6  ;;  %8104 = vst.msk [vmem:[%s16754_s15 + $0x24] sm:$0xf] %vm8094_vm6, %v8067_v47  ;;  %v21160_v14 = vld [vmem:[#allocation119_spill] sm:$0xff] }
 0x59e   : > { %v7059_v42 = vadd.f32 %v21152_v60, %v6835_v24  ;;  %8103 = vst.msk [vmem:[%s16754_s15 + $0x20] sm:$0xf] %vm8094_vm6, %v8066_v48  ;;  %v6834_v62 = vadd.f32 %v21155_v50, %v6603_v57  ;;  %v17978_v61 = vmul.f32 %v20972_v39, %v17958_v51  ;;  %v7866_v36 = vrot.slane %v7778_v3, 6  ;;  %v21161_v10 = vld [vmem:[#allocation203_spill] sm:$0xff]  ;;  %v21162_v58 = vld [vmem:[#allocation169_spill] sm:$0xff] }
 0x59f   : > { %v7192_v37 = vsel %vm6709_vm4, %v7189_v12, %v21151_v52  ;;  %v7871_v55 = vsel %vm7388_vm5, %v7868_v54, %v21153_v9  ;;  %v6833_v16 = vadd.f32 %v21154_v28, %v6602_v56  ;;  %v9564_v31 = vunpack.i.h.bf16 %v9562_v63 }
 0x5a0   : > { %v7283_v11 = vadd.f32 %v7192_v37, %v7059_v42  ;;  %v9563_v33 = vunpack.i.l.bf16 %v9562_v63  ;;  %v7058_v35 = vadd.f32 %v21157_v26, %v6834_v62  ;;  %v21159_v24 = vrot.slane %v21158_v22, 5  ;;  %v21163_v42 = vld [vmem:[#allocation357_spill] sm:$0xff]  ;;  %v21166_v62 = vld [vmem:[#allocation188_spill] sm:$0xff] }
 0x5a1   : > { %v7057_v25 = vadd.f32 %v21156_v21, %v6833_v16  ;;  %v6241_v5 = vadd.f32 %v21161_v10, %v21160_v14  ;;  %v7190_v48 = vsel %vm6709_vm4, %v7187_v29, %v7189_v12  ;;  %v6427_v47 = vmul.f32 %v9564_v31, %v20961_v41  ;;  %v21165_v16 = vld [vmem:[#allocation138_spill] sm:$0xff]  ;;  %v21169_v14 = vld [vmem:[#allocation191_spill] sm:$0xff]  ;;  %v21170_v10 = vld [vmem:[#allocation369_spill] sm:$0xff] }
 0x5a2   : > { %v7188_v13 = vsel %vm6709_vm4, %v21159_v24, %v7187_v29  ;;  %v7514_v56 = vadd.f32 %v21162_v58, %v7283_v11  ;;  %v7106_v3 = vmul.f32 %v9564_v31, %v20972_v39  ;;  %v7282_v63 = vadd.f32 %v7190_v48, %v7058_v35  ;;  %v21168_v24 = vld [vmem:[#allocation441_spill] sm:$0xff] }
 0x5a3   : > { %v7281_v57 = vadd.f32 %v7188_v13, %v7057_v25  ;;  %v17994_v52 = vmul.f32 %v9564_v31, %v20981_v8  ;;  %v6426_v37 = vmul.f32 %v9563_v33, %v20961_v41  ;;  %v21164_v9 = vrot.slane %v21163_v42, 6  ;;  %v9577_v42 = vpop.permute.xlu1 %9576 }
 0x5a4   : > { %v7738_v60 = vadd.f32 %v17377_v7, %v7514_v56  ;;  %v7869_v12 = vsel %vm7388_vm5, %v7866_v36, %v7868_v54  ;;  %v6522_v29 = vrot.slane %v6427_v47, 4  ;;  %v7513_v11 = vadd.f32 %v21166_v62, %v7282_v63  ;;  %v21174_v62 = vld [vmem:[#allocation256_spill] sm:$0xff] }
 0x5a5   : > { %v7867_v28 = vsel %vm7388_vm5, %v21164_v9, %v7866_v36  ;;  %v7512_v50 = vadd.f32 %v21165_v16, %v7281_v57  ;;  %v7229_v21 = vrot.slane %v17978_v61, 5  ;;  %v6520_v25 = vrot.slane %v6426_v37, 4  ;;  %v21173_v16 = vld [vmem:[#allocation146_spill] sm:$0xff]  ;;  %v21206_v61 = vld [vmem:[#allocation132_spill] sm:$0xff] }
 0x5a6   : > { %v7962_v31 = vadd.f32 %v7871_v55, %v7738_v60  ;;  %v21167_v26 = vrot.slane %v17691_v32, 4  ;;  %v7201_v7 = vrot.slane %v7106_v3, 5  ;;  %v7105_v22 = vmul.f32 %v9563_v33, %v20972_v39  ;;  %v21172_v32 = vld [vmem:[#allocation251_spill] sm:$0xff] }
 0x5a7   : > { %v7736_v13 = vadd.f32 %v21168_v24, %v7512_v50  ;;  %v7737_v54 = vadd.f32 %v21169_v14, %v7513_v11  ;;  %v7880_v36 = vrot.slane %v17994_v52, 6  ;;  %v21171_v48 = vrot.slane %v21170_v10, 4 }
 0x5a8   : > { %v6525_v35 = vsel %vm4812_vm3, %v6522_v29, %v21167_v26  ;;  %v8002_v56 = vadd.f32 %v17592_v49, %v7962_v31  ;;  %v6523_v55 = vsel %vm4812_vm3, %v6520_v25, %v6522_v29  ;;  %v7199_v60 = vrot.slane %v7105_v22, 5  ;;  %v21176_v31 = vld [vmem:[#allocation13_spill] sm:$0xff]  ;;  %v21178_v22 = vld [vmem:[#allocation370_spill] sm:$0xff] }
 0x5a9   : > { %v6521_v58 = vsel %vm4812_vm3, %v21171_v48, %v6520_v25  ;;  %v6610_v3 = vadd.f32 %v6525_v35, %v17414_v40  ;;  %v7960_v57 = vadd.f32 %v7867_v28, %v7736_v13  ;;  %v7961_v63 = vadd.f32 %v7869_v12, %v7737_v54  ;;  %v21175_v40 = vld [vmem:[#allocation123_spill] sm:$0xff]  ;;  %v21177_v35 = vld [vmem:[#allocation141_spill] sm:$0xff]  ;;  %v21180_v54 = vld [vmem:[#allocation204_spill] sm:$0xff] }
 0x5aa   : > { %v6608_v47 = vadd.f32 %v6521_v58, %v21172_v32  ;;  %v6609_v37 = vadd.f32 %v6523_v55, %v6241_v5  ;;  %v8038_v9 = vmax.f32 %v8002_v56, 0.0  ;;  %v7204_v52 = vsel %vm6709_vm4, %v7201_v7, %v7203_v1 }
 0x5ab   : > { %v6841_v11 = vadd.f32 %v21174_v62, %v6610_v3  ;;  %v8000_v29 = vadd.f32 %v17592_v49, %v7960_v57  ;;  %v8001_v25 = vadd.f32 %v17592_v49, %v7961_v63  ;;  %v7784_v5 = vmul.f32 %v9563_v33, %v20981_v8 }
 0x5ac   : > { %v6839_v50 = vadd.f32 %v21173_v16, %v6608_v47  ;;  %v6840_v28 = vadd.f32 %v21175_v40, %v6609_v37  ;;  %v8074_v12 = vpack.c.bf16 %v8038_v9, %v8038_v9  ;;  %v21179_v24 = vrot.slane %v21178_v22, 5  ;;  %v21181_v37 = vld [vmem:[#allocation47_spill] sm:$0xff]  ;;  %v21182_v16 = vld [vmem:[#allocation294_spill] sm:$0xff]  ;;  %v21187_v40 = vld [vmem:[#allocation124_spill] sm:$0xff] }
 0x5ad   : > { %v7065_v27 = vadd.f32 %v21177_v35, %v6841_v11  ;;  %v8036_v13 = vmax.f32 %v8000_v29, 0.0  ;;  %v8037_v14 = vmax.f32 %v8001_v25, 0.0  ;;  %v7202_v48 = vsel %vm6709_vm4, %v7199_v60, %v7201_v7  ;;  %v21184_v11 = vld [vmem:[#allocation109_spill] sm:$0xff]  ;;  %v21185_v29 = vld [vmem:[#allocation219_spill] sm:$0xff] }
 0x5ae   : > { %v7063_v26 = vadd.f32 %v21176_v31, %v6839_v50  ;;  %v7200_v1 = vsel %vm6709_vm4, %v21179_v24, %v7199_v60  ;;  %v7064_v10 = vadd.f32 %v21180_v54, %v6840_v28  ;;  %8111 = vst.msk [vmem:[%s16754_s15 + $0x40] sm:$0xf] %vm8094_vm6, %v8074_v12  ;;  %v9579_v56 = vunpack.i.h.bf16 %v9577_v42  ;;  %v21183_v60 = vld [vmem:[#allocation202_spill] sm:$0xff]  ;;  %v21189_v35 = vld [vmem:[#allocation371_spill] sm:$0xff] }
 0x5af   : > { %v7289_v33 = vadd.f32 %v7204_v52, %v7065_v27  ;;  %v9578_v55 = vunpack.i.l.bf16 %v9577_v42  ;;  %v8072_v32 = vpack.c.bf16 %v8036_v13, %v8036_v13  ;;  %v8073_v47 = vpack.c.bf16 %v8037_v14, %v8037_v14  ;;  %v21188_v31 = vld [vmem:[#allocation206_spill] sm:$0xff]  ;;  %v9708_v13 = vpop.permute.xlu1 %9707 }
 0x5b0   : > { %v7287_v58 = vadd.f32 %v7200_v1, %v7063_v26  ;;  %v7288_v3 = vadd.f32 %v7202_v48, %v7064_v10  ;;  %v7878_v57 = vrot.slane %v7784_v5, 6  ;;  %v7883_v63 = vsel %vm7388_vm5, %v7880_v36, %v7882_v20  ;;  %v21186_v20 = vld [vmem:[#allocation244_spill] sm:$0xff] }
 0x5b1   : > { %v7520_v50 = vadd.f32 %v21182_v16, %v7289_v33  ;;  %v6433_v7 = vmul.f32 %v9579_v56, %v20961_v41  ;;  %8109 = vst.msk [vmem:[%s16754_s15 + $0x38] sm:$0xf] %vm8094_vm6, %v8072_v32  ;;  %v7112_v42 = vmul.f32 %v9579_v56, %v20972_v39  ;;  %v18048_v62 = vmul.f32 %v9579_v56, %v20981_v8  ;;  %v21191_v32 = vld [vmem:[#allocation151_spill] sm:$0xff] }
 0x5b2   : > { %v7518_v9 = vadd.f32 %v21181_v37, %v7287_v58  ;;  %v7519_v52 = vadd.f32 %v21183_v60, %v7288_v3  ;;  %v6247_v2 = vadd.f32 %v21185_v29, %v21184_v11  ;;  %8110 = vst.msk [vmem:[%s16754_s15 + $0x3c] sm:$0xf] %vm8094_vm6, %v8073_v47  ;;  %v6432_v12 = vmul.f32 %v9578_v55, %v20961_v41 }
 0x5b3   : > { %v7744_v28 = vadd.f32 %v21187_v40, %v7520_v50  ;;  %v6534_v5 = vrot.slane %v6433_v7, 4  ;;  %v21190_v27 = vrot.slane %v21189_v35, 6  ;;  %v7881_v24 = vsel %vm7388_vm5, %v7878_v57, %v7880_v36  ;;  %v21195_v7 = vld [vmem:[#allocation100_spill] sm:$0xff] }
 0x5b4   : > { %v7742_v25 = vadd.f32 %v21186_v20, %v7518_v9  ;;  %v7743_v26 = vadd.f32 %v21188_v31, %v7519_v52  ;;  %v7111_v1 = vmul.f32 %v9578_v55, %v20972_v39  ;;  %v6532_v48 = vrot.slane %v6432_v12, 4  ;;  %v21196_v20 = vld [vmem:[#allocation423_spill] sm:$0xff]  ;;  %v21197_v40 = vld [vmem:[#allocation252_spill] sm:$0xff] }
 0x5b5   : > { %v7879_v22 = vsel %vm7388_vm5, %v21190_v27, %v7878_v57  ;;  %v7968_v54 = vadd.f32 %v7883_v63, %v7744_v28  ;;  %v6537_v10 = vsel %vm4812_vm3, %v6534_v5, %v6536_v17  ;;  %v7213_v33 = vrot.slane %v7112_v42, 5  ;;  %v21192_v57 = vld [vmem:[#allocation388_spill] sm:$0xff]  ;;  %v21194_v17 = vld [vmem:[#allocation94_spill] sm:$0xff] }
 0x5b6   : > { %v7966_v14 = vadd.f32 %v7879_v22, %v7742_v25  ;;  %v7967_v58 = vadd.f32 %v7881_v24, %v7743_v26  ;;  %v7892_v56 = vrot.slane %v18048_v62, 6  ;;  %v6616_v47 = vadd.f32 %v6537_v10, %v21191_v32  ;;  %v21198_v26 = vld [vmem:[#allocation393_spill] sm:$0xff] }
 0x5b7   : > { %v8008_v36 = vadd.f32 %v17592_v49, %v7968_v54  ;;  %v21193_v37 = vrot.slane %v21192_v57, 4  ;;  %v6535_v63 = vsel %vm4812_vm3, %v6532_v48, %v6534_v5  ;;  %v7211_v62 = vrot.slane %v7111_v1, 5  ;;  %v21201_v1 = vld [vmem:[#allocation220_spill] sm:$0xff] }
 0x5b8   : > { %v8006_v3 = vadd.f32 %v17592_v49, %v7966_v14  ;;  %v8007_v30 = vadd.f32 %v17592_v49, %v7967_v58  ;;  %v6615_v50 = vadd.f32 %v6535_v63, %v6247_v2  ;;  %v6847_v60 = vadd.f32 %v21195_v7, %v6616_v47  ;;  %v21203_v58 = vld [vmem:[#allocation232_spill] sm:$0xff] }
 0x5b9   : > { %v6533_v9 = vsel %vm4812_vm3, %v21193_v37, %v6532_v48  ;;  %v8044_v42 = vmax.f32 %v8008_v36, 0.0  ;;  %v7790_v11 = vmul.f32 %v9578_v55, %v20981_v8  ;;  %v7216_v2 = vsel %vm6709_vm4, %v7213_v33, %v7215_v18  ;;  %v21200_v55 = vld [vmem:[#allocation217_spill] sm:$0xff]  ;;  %v18097_v37 = vpop.permute.xlu1 %9723 }
 0x5ba   : > { %v6614_v16 = vadd.f32 %v6533_v9, %v21194_v17  ;;  %v8042_v52 = vmax.f32 %v8006_v3, 0.0  ;;  %v8043_v29 = vmax.f32 %v8007_v30, 0.0  ;;  %v6846_v28 = vadd.f32 %v21197_v40, %v6615_v50  ;;  %v21204_v3 = vld [vmem:[#allocation105_spill] sm:$0xff]  ;;  %v21205_v30 = vld [vmem:[#allocation296_spill] sm:$0xff] }
 0x5bb   : > { %v7071_v5 = vadd.f32 %v17665_v59, %v6847_v60  ;;  %v8080_v31 = vpack.c.bf16 %v8044_v42, %v8044_v42  ;;  %v21199_v35 = vrot.slane %v21198_v26, 5  ;;  %v7214_v59 = vsel %vm6709_vm4, %v7211_v62, %v7213_v33  ;;  %v21208_v42 = vld [vmem:[#allocation221_spill] sm:$0xff] }
 0x5bc   : > { %v6845_v25 = vadd.f32 %v21196_v20, %v6614_v16  ;;  %v8078_v12 = vpack.c.bf16 %v8042_v52, %v8042_v52  ;;  %v8079_v22 = vpack.c.bf16 %v8043_v29, %v8043_v29  ;;  %v7070_v14 = vadd.f32 %v21201_v1, %v6846_v28  ;;  %v21207_v52 = vld [vmem:[#allocation442_spill] sm:$0xff] }
 0x5bd   : > { %v7212_v27 = vsel %vm6709_vm4, %v21199_v35, %v7211_v62  ;;  %v7295_v54 = vadd.f32 %v7216_v2, %v7071_v5  ;;  %v9710_v10 = vunpack.i.h.bf16 %v9708_v13  ;;  %v9709_v48 = vunpack.i.l.bf16 %v9708_v13  ;;  %8117 = vst.msk [vmem:[%s16754_s15 + $0x58] sm:$0xf] %vm8094_vm6, %v8080_v31  ;;  %v21211_v35 = vld [vmem:[#allocation404_spill] sm:$0xff] }
 0x5be   : > { %v7069_v24 = vadd.f32 %v21200_v55, %v6845_v25  ;;  %8115 = vst.msk [vmem:[%s16754_s15 + $0x50] sm:$0xf] %vm8094_vm6, %v8078_v12  ;;  %v6253_v18 = vadd.f32 %v21203_v58, %v21202_v6  ;;  %v7294_v47 = vadd.f32 %v7214_v59, %v7070_v14  ;;  %v7890_v57 = vrot.slane %v7790_v11, 6  ;;  %v21209_v11 = vld [vmem:[#allocation394_spill] sm:$0xff] }
 0x5bf   : > { %8116 = vst.msk [vmem:[%s16754_s15 + $0x54] sm:$0xf] %vm8094_vm6, %v8079_v22  ;;  %v7526_v36 = vadd.f32 %v21204_v3, %v7295_v54  ;;  %v18104_v33 = vsel %vm6709_vm4, %v7227_v38, %v7229_v21  ;;  %v18108_v13 = vmul.f32 %v20981_v8, %v17958_v51  ;;  %v7895_v9 = vsel %vm7388_vm5, %v7892_v56, %v7894_v44  ;;  %v21214_v54 = vld [vmem:[#allocation351_spill] sm:$0xff] }
 0x5c0   : > { %v7293_v32 = vadd.f32 %v7212_v27, %v7069_v24  ;;  %v6439_v63 = vmul.f32 %v9710_v10, %v20961_v41  ;;  %v7525_v16 = vadd.f32 %v21206_v61, %v7294_v47  ;;  %v7118_v21 = vmul.f32 %v9710_v10, %v20972_v39  ;;  %v21213_v24 = vld [vmem:[#allocation313_spill] sm:$0xff]  ;;  %v21215_v3 = vld [vmem:[#allocation67_spill] sm:$0xff] }
 0x5c1   : > { %v7750_v50 = vadd.f32 %v17907_v23, %v7526_v36  ;;  %v18121_v51 = vmul.f32 %v9710_v10, %v20981_v8  ;;  %v6438_v60 = vmul.f32 %v9709_v48, %v20961_v41  ;;  %v9726_v45 = vunpack.i.h.bf16 %v18097_v37  ;;  %v21216_v36 = vld [vmem:[#allocation148_spill] sm:$0xff] }
 0x5c2   : > { %v7524_v17 = vadd.f32 %v21205_v30, %v7293_v32  ;;  %v6546_v7 = vrot.slane %v6439_v63, 4  ;;  %v7749_v62 = vadd.f32 %v21208_v42, %v7525_v16  ;;  %v21210_v29 = vrot.slane %v21209_v11, 6  ;;  %v21222_v42 = vld [vmem:[#allocation122_spill] sm:$0xff] }
 0x5c3   : > { %v7974_v25 = vadd.f32 %v7895_v9, %v7750_v50  ;;  %v7893_v23 = vsel %vm7388_vm5, %v7890_v57, %v7892_v56  ;;  %v6544_v28 = vrot.slane %v6438_v60, 4  ;;  %v7117_v41 = vmul.f32 %v9709_v48, %v20972_v39  ;;  %v21219_v50 = vld [vmem:[#allocation234_spill] sm:$0xff]  ;;  %v7760_v60 = vpop.permute.xlu1 %7759 }
 0x5c4   : > { %v7748_v44 = vadd.f32 %v21207_v52, %v7524_v17  ;;  %v7891_v20 = vsel %vm7388_vm5, %v21210_v29, %v7890_v57  ;;  %v6549_v40 = vsel %vm4812_vm3, %v6546_v7, %v6548_v34  ;;  %v7973_v12 = vadd.f32 %v7893_v23, %v7749_v62  ;;  %v21223_v29 = vld [vmem:[#allocation216_spill] sm:$0xff]  ;;  %v21224_v23 = vld [vmem:[#allocation101_spill] sm:$0xff] }
 0x5c5   : > { %v8014_v31 = vadd.f32 %v17592_v49, %v7974_v25  ;;  %v7225_v2 = vrot.slane %v7118_v21, 5  ;;  %v7904_v26 = vrot.slane %v18121_v51, 6  ;;  %v21212_v27 = vrot.slane %v21211_v35, 4 }
 0x5c6   : > { %v7972_v5 = vadd.f32 %v7891_v20, %v7748_v44  ;;  %v6547_v56 = vsel %vm4812_vm3, %v6544_v28, %v6546_v7  ;;  %v6622_v19 = vadd.f32 %v6549_v40, %v17613_v43  ;;  %v8013_v55 = vadd.f32 %v17592_v49, %v7973_v12 }
 0x5c7   : > { %v6545_v22 = vsel %vm4812_vm3, %v21212_v27, %v6544_v28  ;;  %v8050_v39 = vmax.f32 %v8014_v31, 0.0  ;;  %v6621_v14 = vadd.f32 %v6547_v56, %v6253_v18  ;;  %v7223_v10 = vrot.slane %v7117_v41, 5  ;;  %v21217_v18 = vld [vmem:[#allocation140_spill] sm:$0xff]  ;;  %v21225_v41 = vld [vmem:[#allocation435_spill] sm:$0xff]  ;;  %v21228_v27 = vld [vmem:[#allocation286_spill] sm:$0xff] }
 0x5c8   : > { %v8012_v34 = vadd.f32 %v17592_v49, %v7972_v5  ;;  %v6620_v1 = vadd.f32 %v6545_v22, %v21213_v24  ;;  %v6853_v59 = vadd.f32 %v21214_v54, %v6622_v19  ;;  %v7796_v6 = vmul.f32 %v9709_v48, %v20981_v8  ;;  %v21218_v48 = vld [vmem:[#allocation322_spill] sm:$0xff]  ;;  %v21229_v56 = vld [vmem:[#allocation211_spill] sm:$0xff] }
 0x5c9   : > { %v8049_v32 = vmax.f32 %v8013_v55, 0.0  ;;  %v8086_v47 = vpack.c.bf16 %v8050_v39, %v8050_v39  ;;  %v7228_v49 = vsel %vm6709_vm4, %v7225_v2, %v7227_v38  ;;  %v6852_v57 = vadd.f32 %v21216_v36, %v6621_v14  ;;  %v21231_v55 = vld [vmem:[#allocation311_spill] sm:$0xff]  ;;  %v21233_v14 = vld [vmem:[#allocation409_spill] sm:$0xff] }
 0x5ca   : > { %v8048_v58 = vmax.f32 %v8012_v34, 0.0  ;;  %v6851_v43 = vadd.f32 %v21215_v3, %v6620_v1  ;;  %v7077_v9 = vadd.f32 %v17623_v4, %v6853_v59  ;;  %v7539_v63 = vmul.f32 %v9726_v45, %v21217_v18  ;;  %v21230_v34 = vld [vmem:[#allocation153_spill] sm:$0xff]  ;;  %v21232_v24 = vld [vmem:[#allocation323_spill] sm:$0xff] }
 0x5cb   : > { %v8085_v17 = vpack.c.bf16 %v8049_v32, %v8049_v32  ;;  %8123 = vst.msk [vmem:[%s16754_s15 + $0x70] sm:$0xf] %vm8094_vm6, %v8086_v47  ;;  %v9725_v16 = vunpack.i.l.bf16 %v18097_v37  ;;  %v7076_v21 = vadd.f32 %v21219_v50, %v6852_v57  ;;  %v21221_v7 = vrot.slane %v21220_v46, 5  ;;  %v21237_v32 = vld [vmem:[#allocation236_spill] sm:$0xff]  ;;  %v21240_v50 = vld [vmem:[#allocation81_spill] sm:$0xff] }
 0x5cc   : > { %v8084_v30 = vpack.c.bf16 %v8048_v58, %v8048_v58  ;;  %v7075_v61 = vadd.f32 %v21218_v48, %v6851_v43  ;;  %v7226_v51 = vsel %vm6709_vm4, %v7223_v10, %v7225_v2  ;;  %v7301_v4 = vadd.f32 %v7228_v49, %v7077_v9  ;;  %v21227_v2 = vld [vmem:[#allocation143_spill] sm:$0xff]  ;;  %v21242_v46 = vld [vmem:[#allocation48_spill] sm:$0xff] }
 0x5cd   : > { %v7224_v38 = vsel %vm6709_vm4, %v21221_v7, %v7223_v10  ;;  %v7902_v52 = vrot.slane %v7796_v6, 6  ;;  %v7613_v44 = vrot.slane %v7539_v63, 6  ;;  %v6896_v62 = vmul.f32 %v9725_v16, %v21222_v42  ;;  %8122 = vst.msk [vmem:[%s16754_s15 + $0x6c] sm:$0xf] %vm8094_vm6, %v8085_v17  ;;  %v21235_v10 = vld [vmem:[#allocation165_spill] sm:$0xff]  ;;  %v21238_v9 = vld [vmem:[#allocation315_spill] sm:$0xff] }
 0x5ce   : > { %8121 = vst.msk [vmem:[%s16754_s15 + $0x68] sm:$0xf] %vm8094_vm6, %v8084_v30  ;;  %v7299_v45 = vadd.f32 %v7224_v38, %v7075_v61  ;;  %v7907_v37 = vsel %vm7388_vm5, %v7904_v26, %v7906_v53  ;;  %v7300_v11 = vadd.f32 %v7226_v51, %v7076_v21  ;;  %v7532_v20 = vadd.f32 %v21223_v29, %v7301_v4  ;;  %v9736_v17 = vld [vmem:[%s18227_s2] ss:$0 sm:$0xff] }
 0x5cf   : > { %v7575_v25 = vmul.f32 %v9725_v16, %v21217_v18  ;;  %v7005_v28 = vrot.slane %v6896_v62, 5  ;;  %v21226_v5 = vrot.slane %v21225_v41, 6  ;;  %v7763_v31 = vmul.f32 %v20981_v8, %v7760_v60 }
 0x5d0   : > { %v7530_v40 = vadd.f32 %v21224_v23, %v7299_v45  ;;  %v7531_v35 = vadd.f32 %v21227_v2, %v7300_v11  ;;  %v7756_v22 = vadd.f32 %v21228_v27, %v7532_v20  ;;  %v6854_v19 = vadd.f32 %v21229_v56, %v17962_v15 }
 0x5d1   : > { %v7615_v12 = vsel %vm7388_vm5, %v7613_v44, %v21226_v5  ;;  %v7498_v39 = vadd.f32 %v21231_v55, %v21230_v34  ;;  %v21234_v54 = vrot.slane %v21233_v14, 6  ;;  %v21236_v6 = vrot.slane %v21235_v10, 5 }
 0x5d2   : > { %v7754_v1 = vadd.f32 %v21232_v24, %v7530_v40  ;;  %v7837_v58 = vrot.slane %v7763_v31, 6  ;;  %v7755_v47 = vadd.f32 %v21237_v32, %v7531_v35  ;;  %v7980_v3 = vadd.f32 %v7907_v37, %v7756_v22 }
 0x5d3   : > { %v7903_v59 = vsel %vm7388_vm5, %v21234_v54, %v7902_v52  ;;  %v7006_v8 = vsel %vm6709_vm4, %v21236_v6, %v7005_v28  ;;  %v7722_v49 = vadd.f32 %v7615_v12, %v7498_v39  ;;  %v7905_v15 = vsel %vm7388_vm5, %v7902_v52, %v7904_v26 }
 0x5d4   : > { %v7078_v43 = vadd.f32 %v7006_v8, %v6854_v19  ;;  %v7978_v36 = vadd.f32 %v7903_v59, %v7754_v1  ;;  %v7684_v57 = vrot.slane %v7575_v25, 6  ;;  %v21239_v18 = vrot.slane %v21238_v9, 6 }
 0x5d5   : > { %v7979_v30 = vadd.f32 %v7905_v15, %v7755_v47  ;;  %v8020_v48 = vadd.f32 %v9736_v17, %v7980_v3  ;;  %v21241_v21 = vrot.slane %v21240_v50, 6  ;;  %v21243_v7 = vrot.slane %v21242_v46, 6 }
 0x5d6   : > { %v7839_v63 = vsel %vm7388_vm5, %v7837_v58, %v21239_v18  ;;  %v7302_v61 = vadd.f32 %v18104_v33, %v7078_v43  ;;  %v7908_v38 = vrot.slane %v18108_v13, 6  ;;  %v8018_v51 = vadd.f32 %v9736_v17, %v7978_v36  ;;  %v21244_v33 = vld [vmem:[#allocation158_spill] sm:$0xff] }
 0x5d7   : > { %v7946_v16 = vadd.f32 %v7839_v63, %v7722_v49  ;;  %v7461_v26 = vsel %vm7388_vm5, %v21243_v7, %v21241_v21  ;;  %v8019_v4 = vadd.f32 %v9736_v17, %v7979_v30  ;;  %v8056_v60 = vmax.f32 %v8020_v48, 0.0 }
 0x5d8   : > { %v7533_v45 = vadd.f32 %v7461_v26, %v7302_v61  ;;  %v8054_v44 = vmax.f32 %v8018_v51, 0.0  ;;  %v21245_v42 = vrot.slane %v21244_v33, 6  ;;  %v7909_v13 = vsel %vm7388_vm5, %v7906_v53, %v7908_v38 }
 0x5d9   : > { %v7986_v52 = vadd.f32 %v9736_v17, %v7946_v16  ;;  %v8055_v37 = vmax.f32 %v8019_v4, 0.0  ;;  %v8092_v11 = vpack.c.bf16 %v8056_v60, %v8056_v60 }
 0x5da   : > { %v7685_v62 = vsel %vm7388_vm5, %v21245_v42, %v7684_v57  ;;  %v8090_v25 = vpack.c.bf16 %v8054_v44, %v8054_v44 }
 0x5db   : > { %v7757_v29 = vadd.f32 %v7685_v62, %v7533_v45  ;;  %v8022_v20 = vmax.f32 %v7986_v52, 0.0  ;;  %v8091_v23 = vpack.c.bf16 %v8055_v37, %v8055_v37  ;;  %8129 = vst.msk [vmem:[%s16754_s15 + $0x88] sm:$0xf] %vm8094_vm6, %v8092_v11 }
 0x5dc   : > { %8127 = vst.msk [vmem:[%s16754_s15 + $0x80] sm:$0xf] %vm8094_vm6, %v8090_v25 }
 0x5dd   : > { %v7981_v40 = vadd.f32 %v7909_v13, %v7757_v29  ;;  %v8058_v28 = vpack.c.bf16 %v8022_v20, %v8022_v20  ;;  %8128 = vst.msk [vmem:[%s16754_s15 + $0x84] sm:$0xf] %vm8094_vm6, %v8091_v23 }
 0x5df   : > { %v8021_v41 = vadd.f32 %v9736_v17, %v7981_v40  ;;  %8095 = vst.msk [vmem:[%s16754_s15] sm:$0xf] %vm8094_vm6, %v8058_v28 }
 0x5e1   : > { %v8057_v5 = vmax.f32 %v8021_v41, 0.0 }
 0x5e3   : > { %v8093_v12 = vpack.c.bf16 %v8057_v5, %v8057_v5 }
 0x5e5   : > { %8130 = vst.msk [vmem:[%s16754_s15 + $0x8c] sm:$0xf] %vm8094_vm6, %v8093_v12 }
 0x5e6 PF: > { %s13_s12 = sadd.s32 1, %s9743_s12  }
 0x5e7   : > { %p10_p4 = scmp.ge.s32.totalorder %s13_s12, 4  }
 0x5e9   :  { %12 = sbr.rel (!%p10_p4) target bundleno = 1 (0x1), region = 70 }

</bundles_post_ra>
